<compile_context>
chip_gen: v7x
topology: tpu7x:2x2x1
jax: 0.10.0
libtpu: 0.0.40
codegen_flags: <defaults>
</compile_context>

<pallas_src>
import functools
import numpy as np
import jax
import jax.numpy as jnp
from jax.experimental import pallas as pl
from jax.experimental.pallas import tpu as pltpu

EPS = 1e-5
STEM_CH = 16
GROUPS = 4
REDUCTION = 4
# (grouped-conv width, block out channels, first-block stride, num blocks)
LAYER_CFG = [
    (16, 32, 1, 1),
    (32, 64, 2, 2),
    (64, 128, 2, 1),
    (128, 256, 2, 1),
]

COMPUTE_DTYPE = jnp.bfloat16      # MXU operands / inter-kernel activations
VMEM_LIMIT = 32 * 1024 * 1024     # safe on v5e/v6e (128 MiB) and v7x (64 MiB physical)


def _round_up(x, m):
    return (x + m - 1) // m * m


def _mosaic_params(*sem):
    return pltpu.CompilerParams(dimension_semantics=sem,
                                vmem_limit_bytes=VMEM_LIMIT)


def _row_select(out_h, out_w, src_h, src_w, stride, row_off, col_off):
    """0/1 selection matrix (out_h*out_w, src_h*src_w):
    output row (i, j) picks source row (stride*i + row_off, stride*j + col_off)."""
    m = np.zeros((out_h * out_w, src_h * src_w), np.float32)
    for i in range(out_h):
        for j in range(out_w):
            r = (stride * i + row_off) * src_w + (stride * j + col_off)
            m[i * out_w + j, r] = 1.0
    return m


def _bcast_spec(shape):
    """Full-extent block broadcast over the batch grid axis."""
    if len(shape) == 2:
        return pl.BlockSpec(shape, lambda n: (0, 0))
    assert len(shape) == 3
    return pl.BlockSpec(shape, lambda n: (0, 0, 0))


# ---------------------------- stem (conv7x7 + bn + relu + maxpool) ----------------------------

def _extract_patches(x, kh, kw, stride, pad):
    """x: (N,H,W,C) -> (N,OH,OW, kh*kw*C) with (kh,kw,C)-minor ordering (XLA glue)."""
    if pad:
        x = jnp.pad(x, ((0, 0), (pad, pad), (pad, pad), (0, 0)))
    N, Hp, Wp, C = x.shape
    oh = (Hp - kh) // stride + 1
    ow = (Wp - kw) // stride + 1
    cols = []
    for i in range(kh):
        for j in range(kw):
            cols.append(x[:, i:i + stride * oh:stride, j:j + stride * ow:stride, :])
    return jnp.concatenate(cols, axis=-1), oh, ow


def stem_forward(x_nhwc, stem_w, stem_b):
    """7x7/s2/p3 conv + folded BN + ReLU + MaxPool2d(3,2,ceil_mode=True), one fused
    pallas_call per the whole stem.  Returns (N, mh*mw, STEM_CH) bf16 and (mh, mw)."""
    n = x_nhwc.shape[0]
    # TODO(synk): the 7x7 im2col is still XLA slicing glue (one-time, ~300 KB);
    # an in-kernel halo formulation would remove it.
    patches, oh, ow = _extract_patches(x_nhwc.astype(COMPUTE_DTYPE), 7, 7, 2, 3)
    kdim = patches.shape[-1]
    patches = patches.reshape(n, oh * ow, kdim)
    cst = stem_w.shape[1]

    # MaxPool2d(3, stride=2, ceil_mode=True) geometry.
    mh = -(-(oh - 3) // 2) + 1
    mw = -(-(ow - 3) // 2) + 1
    # No window may start entirely inside the implicit padding (PyTorch drops those).
    assert (mh - 1) * 2 < oh and (mw - 1) * 2 < ow, "ceil_mode window fully in padding"
    hp = (mh - 1) * 2 + 3
    wp = (mw - 1) * 2 + 3
    hpwp = hp * wp
    xrows = hpwp + 2 * wp + 2          # margin so all 9 shifted slices stay in-bounds

    embed = jnp.asarray(_row_select(oh, ow, hp, wp, 1, 0, 0).T, COMPUTE_DTYPE)
    psel = jnp.asarray(_row_select(mh, mw, hp, wp, 2, 0, 0), COMPUTE_DTYPE)

    def kernel(p_ref, w_ref, b_ref, emb_ref, sel_ref, out_ref, mbig):
        # conv (as matmul) + folded BN + ReLU
        y = jnp.dot(p_ref[...], w_ref[...], preferred_element_type=jnp.float32)
        y = jnp.maximum(y + b_ref[...], 0.0).astype(COMPUTE_DTYPE)
        # scatter into the zero-padded flat map (padding value 0 is exact post-ReLU)
        padmap = jnp.dot(emb_ref[...], y,
                         preferred_element_type=jnp.float32).astype(COMPUTE_DTYPE)
        mbig[...] = jnp.zeros_like(mbig)
        mbig[0:hpwp, :] = padmap
        # 3x3 stride-1 max via 9 shifted slices, then stride-2 selection matmul
        m = padmap
        for di in range(3):
            for dj in range(3):
                if di == 0 and dj == 0:
                    continue
                off = di * wp + dj
                m = jnp.maximum(m, mbig[off:off + hpwp, :])
        out = jnp.dot(sel_ref[...], m, preferred_element_type=jnp.float32)
        out_ref[...] = out.astype(out_ref.dtype)

    out = pl.pallas_call(
        kernel,
        grid=(n,),
        out_shape=jax.ShapeDtypeStruct((n, mh * mw, cst), COMPUTE_DTYPE),
        in_specs=[
            pl.BlockSpec((None, oh * ow, kdim), lambda i: (i, 0, 0)),
            _bcast_spec(stem_w.shape),
            _bcast_spec(stem_b.shape),
            _bcast_spec(embed.shape),
            _bcast_spec(psel.shape),
        ],
        out_specs=pl.BlockSpec((None, mh * mw, cst), lambda i: (i, 0, 0)),
        scratch_shapes=[pltpu.VMEM((xrows, cst), COMPUTE_DTYPE)],
        compiler_params=_mosaic_params("parallel"),
    )(patches, stem_w, stem_b, embed, psel)
    return out, mh, mw


# ---------------------------- fused SE-ResNeXt bottleneck block ----------------------------

def se_block(x, blk, h, w, stride):
    """One fully fused bottleneck block.
    x: (N, h*w, Cin) bf16 -> (N, oh*ow, Cout) bf16, single pallas_call (grid over batch)."""
    n, hw, cin = x.shape
    assert hw == h * w
    cmid = blk["w1"].shape[1]
    cout = blk["w3"].shape[1]
    has_down = "wd" in blk

    oh = (h - 1) // stride + 1
    ow = (w - 1) // stride + 1
    ohow = oh * ow
    hp, wp = h + 2, w + 2
    hpwp = hp * wp
    pay = _round_up(wp + 1, 16)        # aligned payload start inside the shift scratch
    xrows = pay + hpwp + wp + 1        # room for shifts up to +-(wp+1)

    embed = jnp.asarray(_row_select(h, w, hp, wp, 1, 1, 1).T, COMPUTE_DTYPE)
    psel = jnp.asarray(_row_select(oh, ow, hp, wp, stride, 1, 1), COMPUTE_DTYPE)

    args = [x, blk["w1"], blk["b1"], embed, blk["w2"], blk["b2"], psel,
            blk["w3"], blk["b3"], blk["fc1_w"], blk["fc1_b"],
            blk["fc2_w"], blk["fc2_b"]]
    if has_down:
        if stride > 1:
            args.append(jnp.asarray(_row_select(oh, ow, h, w, stride, 0, 0),
                                    COMPUTE_DTYPE))
        args += [blk["wd"], blk["bd"]]

    def kernel(*refs):
        if has_down and stride > 1:
            (x_ref, w1_ref, b1_ref, emb_ref, w2_ref, b2_ref, sel_ref,
             w3_ref, b3_ref, f1w, f1b, f2w, f2b,
             sres_ref, wd_ref, bd_ref, out_ref, xbig) = refs
        elif has_down:
            (x_ref, w1_ref, b1_ref, emb_ref, w2_ref, b2_ref, sel_ref,
             w3_ref, b3_ref, f1w, f1b, f2w, f2b,
             wd_ref, bd_ref, out_ref, xbig) = refs
            sres_ref = None
        else:
            (x_ref, w1_ref, b1_ref, emb_ref, w2_ref, b2_ref, sel_ref,
             w3_ref, b3_ref, f1w, f1b, f2w, f2b, out_ref, xbig) = refs
            sres_ref = wd_ref = bd_ref = None

        xv = x_ref[...]                                            # (hw, cin) bf16

        # conv1 (1x1) + folded BN + ReLU
        h1 = jnp.dot(xv, w1_ref[...], preferred_element_type=jnp.float32)
        h1 = jnp.maximum(h1 + b1_ref[...], 0.0).astype(COMPUTE_DTYPE)

        # scatter into the zero-padded flat map (kept in a VMEM shift scratch)
        xpad = jnp.dot(emb_ref[...], h1, preferred_element_type=jnp.float32)
        xbig[...] = jnp.zeros_like(xbig)
        xbig[pay:pay + hpwp, :] = xpad.astype(COMPUTE_DTYPE)

        # grouped 3x3 conv2: 9 shifted slices x block-diagonal (cmid, cmid) weights,
        # accumulated in f32; stride + interior extraction folded into sel_ref.
        acc = None
        for t in range(9):
            di, dj = t // 3, t % 3
            off = pay + (di - 1) * wp + (dj - 1)
            d = jnp.dot(xbig[off:off + hpwp, :], w2_ref[t],
                        preferred_element_type=jnp.float32)
            acc = d if acc is None else acc + d
        y2 = jnp.dot(sel_ref[...], acc.astype(COMPUTE_DTYPE),
                     preferred_element_type=jnp.float32)
        y2 = jnp.maximum(y2 + b2_ref[...], 0.0).astype(COMPUTE_DTYPE)

        # conv3 (1x1) + folded BN (no activation yet)
        y3 = jnp.dot(y2, w3_ref[...], preferred_element_type=jnp.float32) + b3_ref[...]

        # SE: squeeze (spatial mean) -> fc1 -> ReLU -> fc2 -> sigmoid
        pooled = jnp.mean(y3, axis=0, keepdims=True).astype(COMPUTE_DTYPE)
        se = jnp.dot(pooled, f1w[...], preferred_element_type=jnp.float32) + f1b[...]
        se = jnp.maximum(se, 0.0).astype(COMPUTE_DTYPE)
        se = jnp.dot(se, f2w[...], preferred_element_type=jnp.float32) + f2b[...]
        gate = jax.nn.sigmoid(se)                                  # (1, cout) f32

        # residual branch (optional 1x1 stride-s downsample conv + folded BN)
        if has_down:
            if stride == 1:
                rin = xv
            else:
                rin = jnp.dot(sres_ref[...], xv,
                              preferred_element_type=jnp.float32).astype(COMPUTE_DTYPE)
            resid = jnp.dot(rin, wd_ref[...],
                            preferred_element_type=jnp.float32) + bd_ref[...]
        else:
            resid = xv.astype(jnp.float32)

        out_ref[...] = jnp.maximum(y3 * gate + resid, 0.0).astype(out_ref.dtype)

    in_specs = [pl.BlockSpec((None, hw, cin), lambda i: (i, 0, 0))]
    for a in args[1:]:
        in_specs.append(_bcast_spec(a.shape))

    out = pl.pallas_call(
        kernel,
        grid=(n,),
        out_shape=jax.ShapeDtypeStruct((n, ohow, cout), COMPUTE_DTYPE),
        in_specs=in_specs,
        out_specs=pl.BlockSpec((None, ohow, cout), lambda i: (i, 0, 0)),
        scratch_shapes=[pltpu.VMEM((xrows, cmid), COMPUTE_DTYPE)],
        compiler_params=_mosaic_params("parallel"),
    )(*args)
    return out, oh, ow


# ---------------------------- head: avgpool + flatten + Linear(C, 1) ----------------------------

def _head_kernel(x_ref, w_ref, b_ref, flat_ref, out_ref, *, inv_hw):
    pooled = jnp.sum(x_ref[...].astype(jnp.float32), axis=1) * inv_hw   # (N, C)
    flat_ref[...] = pooled
    out_ref[...] = (jnp.sum(pooled * w_ref[...], axis=-1, keepdims=True)
                    + b_ref[...])


def avgpool_linear(x, w_row, b):
    """AdaptiveAvgPool2d(1)+flatten+Linear fused.  x:(N,HW,C) bf16; w_row:(1,C); b:(1,1)."""
    n, hw, c = x.shape
    flat, out = pl.pallas_call(
        functools.partial(_head_kernel, inv_hw=1.0 / hw),
        grid=(1,),
        out_shape=(jax.ShapeDtypeStruct((n, c), jnp.float32),
                   jax.ShapeDtypeStruct((n, 1), jnp.float32)),
        in_specs=[
            pl.BlockSpec((n, hw, c), lambda i: (0, 0, 0)),
            pl.BlockSpec((1, c), lambda i: (0, 0)),
            pl.BlockSpec((1, 1), lambda i: (0, 0)),
        ],
        out_specs=(pl.BlockSpec((n, c), lambda i: (0, 0)),
                   pl.BlockSpec((n, 1), lambda i: (0, 0))),
        compiler_params=_mosaic_params("arbitrary"),
    )(x, w_row, b)
    return flat, out


# ---------------------------- model definition ----------------------------

class KeyGen:
    def __init__(self, seed):
        self.key = jax.random.PRNGKey(seed)

    def __call__(self):
        self.key, sub = jax.random.split(self.key)
        return sub


def init_params(seed=42):
    """Raw (PyTorch-layout) synthetic weights + inference-mode folded BN."""
    kg = KeyGen(seed)

    def conv(cout, cin, kh, kw):
        fan_in = cin * kh * kw
        return jax.random.normal(kg(), (cout, cin, kh, kw), jnp.float32) / np.sqrt(fan_in)

    def bn(c):
        gamma = 1.0 + 0.1 * jax.random.normal(kg(), (c,), jnp.float32)
        beta = 0.1 * jax.random.normal(kg(), (c,), jnp.float32)
        mean = 0.1 * jax.random.normal(kg(), (c,), jnp.float32)
        var = 1.0 + 0.1 * jnp.abs(jax.random.normal(kg(), (c,), jnp.float32))
        scale = gamma / jnp.sqrt(var + EPS)
        bias = beta - mean * scale
        return scale, bias

    def linear(cin, cout):
        w = jax.random.normal(kg(), (cin, cout), jnp.float32) / np.sqrt(cin)
        b = 0.01 * jax.random.normal(kg(), (cout,), jnp.float32)
        return w, b

    params = {"stem_w": conv(STEM_CH, 3, 7, 7), "stem_bn": bn(STEM_CH)}
    inplanes = STEM_CH
    layers = []
    for (width, out_ch, stride, nblocks) in LAYER_CFG:
        blocks = []
        for b in range(nblocks):
            st = stride if b == 0 else 1
            blk = {
                "conv1_w": conv(width, inplanes, 1, 1), "bn1": bn(width),
                "conv2_w": conv(width, width // GROUPS, 3, 3), "bn2": bn(width),
                "conv3_w": conv(out_ch, width, 1, 1), "bn3": bn(out_ch),
                "se_fc1": linear(out_ch, out_ch // REDUCTION),
                "se_fc2": linear(out_ch // REDUCTION, out_ch),
            }
            if st != 1 or inplanes != out_ch:
                blk["down_w"] = conv(out_ch, inplanes, 1, 1)
                blk["down_bn"] = bn(out_ch)
            blocks.append(blk)
            inplanes = out_ch
        layers.append(blocks)
    params["layers"] = layers
    params["final_w"], params["final_b"] = linear(inplanes, 1)
    return params


def prepare_params(params):
    """Fold BN, build block-diagonal grouped weights, pre-cast to bf16 (done once)."""
    def to_np(x):
        return np.asarray(x, np.float32)

    def conv1x1(w, scale, bias):
        cout, cin = w.shape[0], w.shape[1]
        wk = to_np(w).reshape(cout, cin).T * to_np(scale)[None, :]
        return jnp.asarray(wk, COMPUTE_DTYPE), jnp.asarray(to_np(bias).reshape(1, cout))

    def conv3x3_grouped(w, scale, bias, groups):
        cout, cin_g = w.shape[0], w.shape[1]
        cg = cout // groups
        wn = to_np(w)
        bd = np.zeros((3, 3, groups * cin_g, cout), np.float32)
        for g in range(groups):
            blkw = wn[g * cg:(g + 1) * cg]                       # (cg, cin_g, 3, 3)
            bd[:, :, g * cin_g:(g + 1) * cin_g, g * cg:(g + 1) * cg] = \
                blkw.transpose(2, 3, 1, 0)
        bd = bd * to_np(scale)[None, None, None, :]
        bd = bd.reshape(9, groups * cin_g, cout)
        return jnp.asarray(bd, COMPUTE_DTYPE), jnp.asarray(to_np(bias).reshape(1, cout))

    def lin(w, b):
        return (jnp.asarray(to_np(w), COMPUTE_DTYPE),
                jnp.asarray(to_np(b).reshape(1, -1)))

    prep = {}
    s, b = params["stem_bn"]
    sw = params["stem_w"]
    cout = sw.shape[0]
    wk = to_np(sw).transpose(2, 3, 1, 0).reshape(-1, cout) * to_np(s)[None, :]
    prep["stem_w"] = jnp.asarray(wk, COMPUTE_DTYPE)
    prep["stem_b"] = jnp.asarray(to_np(b).reshape(1, cout))

    layers = []
    for blocks in params["layers"]:
        pblocks = []
        for blk in blocks:
            s1, b1 = blk["bn1"]
            s2, b2 = blk["bn2"]
            s3, b3 = blk["bn3"]
            w1, bb1 = conv1x1(blk["conv1_w"], s1, b1)
            w2, bb2 = conv3x3_grouped(blk["conv2_w"], s2, b2, GROUPS)
            w3, bb3 = conv1x1(blk["conv3_w"], s3, b3)
            f1w, f1b = lin(*blk["se_fc1"])
            f2w, f2b = lin(*blk["se_fc2"])
            pb = {"w1": w1, "b1": bb1, "w2": w2, "b2": bb2, "w3": w3, "b3": bb3,
                  "fc1_w": f1w, "fc1_b": f1b, "fc2_w": f2w, "fc2_b": f2b}
            if "down_w" in blk:
                sd, bd_ = blk["down_bn"]
                wd, bbd = conv1x1(blk["down_w"], sd, bd_)
                pb["wd"] = wd
                pb["bd"] = bbd
            pblocks.append(pb)
        layers.append(pblocks)
    prep["layers"] = layers
    prep["final_w"] = jnp.asarray(to_np(params["final_w"]).reshape(1, -1))  # (1, C) f32
    prep["final_b"] = jnp.asarray(to_np(params["final_b"]).reshape(1, 1))
    return prep


def se_resnext_forward(prep, x_nchw):
    """Mirrors CustomSEResNeXt.forward: returns (flattened_features, linear_output)."""
    x_nhwc = jnp.transpose(x_nchw, (0, 2, 3, 1)).astype(jnp.float32)   # NCHW -> NHWC
    x, h, w = stem_forward(x_nhwc, prep["stem_w"], prep["stem_b"])      # (N, HW, 16) bf16
    for (width, out_ch, stride, nblocks), blocks in zip(LAYER_CFG, prep["layers"]):
        for bi, blk in enumerate(blocks):
            x, h, w = se_block(x, blk, h, w, stride if bi == 0 else 1)
    # AdaptiveAvgPool2d(1) + flatten + final Linear(C, 1), one fused kernel.
    flattened, output = avgpool_linear(x, prep["final_w"], prep["final_b"])
    return flattened, output


if __name__ == "__main__":
    params = init_params(seed=42)
    prep = prepare_params(params)
    key = jax.random.PRNGKey(0)
    x = jax.random.normal(key, (2, 3, 32, 32), jnp.float32)             # NCHW like PyTorch
    fwd = jax.jit(se_resnext_forward)
    flattened, output = fwd(prep, x)
    jax.block_until_ready((flattened, output))
    assert flattened.shape == (2, LAYER_CFG[-1][1])
    assert output.shape == (2, 1)
    assert bool(jnp.all(jnp.isfinite(flattened))) and bool(jnp.all(jnp.isfinite(output)))
    print("KERNEL_OK")
</pallas_src>

<mosaic_0001>
module attributes {stable_mosaic.version = 11 : i64} {
  func.func @kernel(%arg0: i32, %arg1: memref<1x16x64xbf16, #tpu.memory_space<vmem>>, %arg2: memref<64x32xbf16, #tpu.memory_space<vmem>>, %arg3: memref<1x32xf32, #tpu.memory_space<vmem>>, %arg4: memref<36x16xbf16, #tpu.memory_space<vmem>>, %arg5: memref<9x32x32xbf16, #tpu.memory_space<vmem>>, %arg6: memref<1x32xf32, #tpu.memory_space<vmem>>, %arg7: memref<16x36xbf16, #tpu.memory_space<vmem>>, %arg8: memref<32x64xbf16, #tpu.memory_space<vmem>>, %arg9: memref<1x64xf32, #tpu.memory_space<vmem>>, %arg10: memref<64x16xbf16, #tpu.memory_space<vmem>>, %arg11: memref<1x16xf32, #tpu.memory_space<vmem>>, %arg12: memref<16x64xbf16, #tpu.memory_space<vmem>>, %arg13: memref<1x64xf32, #tpu.memory_space<vmem>>, %arg14: memref<1x16x64xbf16, #tpu.memory_space<vmem>>, %arg15: memref<59x32xbf16, #tpu.memory_space<vmem>>) attributes {dimension_semantics = [#tpu.dimension_semantics<parallel>], iteration_bounds = array<i64: 2>, scalar_prefetch = 0 : i64, scratch_operands = 1 : i64, tpu.core_type = #tpu.core_type<tc>, window_params = [{transform_indices = @transform_0, window_bounds = array<i64: 1, 16, 64>}, {pipeline_mode = #tpu.pipeline_mode<synchronous>, transform_indices = @transform_1, window_bounds = array<i64: 64, 32>}, {pipeline_mode = #tpu.pipeline_mode<synchronous>, transform_indices = @transform_2, window_bounds = array<i64: 1, 32>}, {pipeline_mode = #tpu.pipeline_mode<synchronous>, transform_indices = @transform_3, window_bounds = array<i64: 36, 16>}, {pipeline_mode = #tpu.pipeline_mode<synchronous>, transform_indices = @transform_4, window_bounds = array<i64: 9, 32, 32>}, {pipeline_mode = #tpu.pipeline_mode<synchronous>, transform_indices = @transform_5, window_bounds = array<i64: 1, 32>}, {pipeline_mode = #tpu.pipeline_mode<synchronous>, transform_indices = @transform_6, window_bounds = array<i64: 16, 36>}, {pipeline_mode = #tpu.pipeline_mode<synchronous>, transform_indices = @transform_7, window_bounds = array<i64: 32, 64>}, {pipeline_mode = #tpu.pipeline_mode<synchronous>, transform_indices = @transform_8, window_bounds = array<i64: 1, 64>}, {pipeline_mode = #tpu.pipeline_mode<synchronous>, transform_indices = @transform_9, window_bounds = array<i64: 64, 16>}, {pipeline_mode = #tpu.pipeline_mode<synchronous>, transform_indices = @transform_10, window_bounds = array<i64: 1, 16>}, {pipeline_mode = #tpu.pipeline_mode<synchronous>, transform_indices = @transform_11, window_bounds = array<i64: 16, 64>}, {pipeline_mode = #tpu.pipeline_mode<synchronous>, transform_indices = @transform_12, window_bounds = array<i64: 1, 64>}, {transform_indices = @transform_13, window_bounds = array<i64: 1, 16, 64>}]} {
    %c0 = arith.constant 0 : index
    %c0_0 = arith.constant 0 : index
    %c0_1 = arith.constant 0 : index
    %0 = vector.load %arg1[%c0, %c0_0, %c0_1] : memref<1x16x64xbf16, #tpu.memory_space<vmem>>, vector<1x16x64xbf16>
    %1 = vector.shape_cast %0 : vector<1x16x64xbf16> to vector<16x64xbf16>
    %c0_2 = arith.constant 0 : index
    %c0_3 = arith.constant 0 : index
    %2 = vector.load %arg2[%c0_2, %c0_3] : memref<64x32xbf16, #tpu.memory_space<vmem>>, vector<64x32xbf16>
    %cst = arith.constant dense<0.000000e+00> : vector<16x32xf32>
    %3 = tpu.matmul %1, %2, %cst {dimension_numbers = #tpu.dot_dimension_numbers<[1], [0], [0], [1], [0, 0, 1, 1], [], []>} : vector<16x64xbf16>, vector<64x32xbf16>, vector<16x32xf32> -> vector<16x32xf32>
    %c0_4 = arith.constant 0 : index
    %c0_5 = arith.constant 0 : index
    %4 = vector.load %arg3[%c0_4, %c0_5] : memref<1x32xf32, #tpu.memory_space<vmem>>, vector<1x32xf32>
    %5 = vector.broadcast %4 : vector<1x32xf32> to vector<16x32xf32>
    %6 = arith.addf %3, %5 : vector<16x32xf32>
    %cst_6 = arith.constant 0.000000e+00 : f32
    %7 = vector.broadcast %cst_6 : f32 to vector<16x32xf32>
    %8 = arith.maximumf %6, %7 : vector<16x32xf32>
    %9 = arith.truncf %8 : vector<16x32xf32> to vector<16x32xbf16>
    %c0_7 = arith.constant 0 : index
    %c0_8 = arith.constant 0 : index
    %10 = vector.load %arg4[%c0_7, %c0_8] : memref<36x16xbf16, #tpu.memory_space<vmem>>, vector<36x16xbf16>
    %cst_9 = arith.constant dense<0.000000e+00> : vector<36x32xf32>
    %11 = tpu.matmul %10, %9, %cst_9 {dimension_numbers = #tpu.dot_dimension_numbers<[1], [0], [0], [1], [0, 0, 1, 1], [], []>} : vector<36x16xbf16>, vector<16x32xbf16>, vector<36x32xf32> -> vector<36x32xf32>
    %cst_10 = arith.constant 0.000000e+00 : bf16
    %12 = vector.broadcast %cst_10 : bf16 to vector<59x32xbf16>
    %c0_11 = arith.constant 0 : index
    %c0_12 = arith.constant 0 : index
    %13 = vector.load %arg15[%c0_11, %c0_12] : memref<59x32xbf16, #tpu.memory_space<vmem>>, vector<59x32xbf16>
    tpu.vector_store %arg15[%c0_11, %c0_12], %12 {strides = array<i32>} : memref<59x32xbf16, #tpu.memory_space<vmem>>, vector<59x32xbf16>,
    %14 = arith.truncf %11 : vector<36x32xf32> to vector<36x32xbf16>
    %c16 = arith.constant 16 : index
    %c0_13 = arith.constant 0 : index
    %15 = vector.load %arg15[%c16, %c0_13] : memref<59x32xbf16, #tpu.memory_space<vmem>>, vector<36x32xbf16>
    tpu.vector_store %arg15[%c16, %c0_13], %14 {strides = array<i32>} : memref<59x32xbf16, #tpu.memory_space<vmem>>, vector<36x32xbf16>,
    %c9 = arith.constant 9 : index
    %c0_14 = arith.constant 0 : index
    %16 = vector.load %arg15[%c9, %c0_14] : memref<59x32xbf16, #tpu.memory_space<vmem>>, vector<36x32xbf16>
    %c0_15 = arith.constant 0 : index
    %c0_16 = arith.constant 0 : index
    %c0_17 = arith.constant 0 : index
    %17 = vector.load %arg5[%c0_15, %c0_16, %c0_17] : memref<9x32x32xbf16, #tpu.memory_space<vmem>>, vector<1x32x32xbf16>
    %18 = vector.shape_cast %17 : vector<1x32x32xbf16> to vector<32x32xbf16>
    %cst_18 = arith.constant dense<0.000000e+00> : vector<36x32xf32>
    %19 = tpu.matmul %16, %18, %cst_18 {dimension_numbers = #tpu.dot_dimension_numbers<[1], [0], [0], [1], [0, 0, 1, 1], [], []>} : vector<36x32xbf16>, vector<32x32xbf16>, vector<36x32xf32> -> vector<36x32xf32>
    %c10 = arith.constant 10 : index
    %c0_19 = arith.constant 0 : index
    %20 = vector.load %arg15[%c10, %c0_19] : memref<59x32xbf16, #tpu.memory_space<vmem>>, vector<36x32xbf16>
    %c1 = arith.constant 1 : index
    %c0_20 = arith.constant 0 : index
    %c0_21 = arith.constant 0 : index
    %21 = vector.load %arg5[%c1, %c0_20, %c0_21] : memref<9x32x32xbf16, #tpu.memory_space<vmem>>, vector<1x32x32xbf16>
    %22 = vector.shape_cast %21 : vector<1x32x32xbf16> to vector<32x32xbf16>
    %cst_22 = arith.constant dense<0.000000e+00> : vector<36x32xf32>
    %23 = tpu.matmul %20, %22, %cst_22 {dimension_numbers = #tpu.dot_dimension_numbers<[1], [0], [0], [1], [0, 0, 1, 1], [], []>} : vector<36x32xbf16>, vector<32x32xbf16>, vector<36x32xf32> -> vector<36x32xf32>
    %24 = arith.addf %19, %23 : vector<36x32xf32>
    %c11 = arith.constant 11 : index
    %c0_23 = arith.constant 0 : index
    %25 = vector.load %arg15[%c11, %c0_23] : memref<59x32xbf16, #tpu.memory_space<vmem>>, vector<36x32xbf16>
    %c2 = arith.constant 2 : index
    %c0_24 = arith.constant 0 : index
    %c0_25 = arith.constant 0 : index
    %26 = vector.load %arg5[%c2, %c0_24, %c0_25] : memref<9x32x32xbf16, #tpu.memory_space<vmem>>, vector<1x32x32xbf16>
    %27 = vector.shape_cast %26 : vector<1x32x32xbf16> to vector<32x32xbf16>
    %cst_26 = arith.constant dense<0.000000e+00> : vector<36x32xf32>
    %28 = tpu.matmul %25, %27, %cst_26 {dimension_numbers = #tpu.dot_dimension_numbers<[1], [0], [0], [1], [0, 0, 1, 1], [], []>} : vector<36x32xbf16>, vector<32x32xbf16>, vector<36x32xf32> -> vector<36x32xf32>
    %29 = arith.addf %24, %28 : vector<36x32xf32>
    %c15 = arith.constant 15 : index
    %c0_27 = arith.constant 0 : index
    %30 = vector.load %arg15[%c15, %c0_27] : memref<59x32xbf16, #tpu.memory_space<vmem>>, vector<36x32xbf16>
    %c3 = arith.constant 3 : index
    %c0_28 = arith.constant 0 : index
    %c0_29 = arith.constant 0 : index
    %31 = vector.load %arg5[%c3, %c0_28, %c0_29] : memref<9x32x32xbf16, #tpu.memory_space<vmem>>, vector<1x32x32xbf16>
    %32 = vector.shape_cast %31 : vector<1x32x32xbf16> to vector<32x32xbf16>
    %cst_30 = arith.constant dense<0.000000e+00> : vector<36x32xf32>
    %33 = tpu.matmul %30, %32, %cst_30 {dimension_numbers = #tpu.dot_dimension_numbers<[1], [0], [0], [1], [0, 0, 1, 1], [], []>} : vector<36x32xbf16>, vector<32x32xbf16>, vector<36x32xf32> -> vector<36x32xf32>
    %34 = arith.addf %29, %33 : vector<36x32xf32>
    %c16_31 = arith.constant 16 : index
    %c0_32 = arith.constant 0 : index
    %35 = vector.load %arg15[%c16_31, %c0_32] : memref<59x32xbf16, #tpu.memory_space<vmem>>, vector<36x32xbf16>
    %c4 = arith.constant 4 : index
    %c0_33 = arith.constant 0 : index
    %c0_34 = arith.constant 0 : index
    %36 = vector.load %arg5[%c4, %c0_33, %c0_34] : memref<9x32x32xbf16, #tpu.memory_space<vmem>>, vector<1x32x32xbf16>
    %37 = vector.shape_cast %36 : vector<1x32x32xbf16> to vector<32x32xbf16>
    %cst_35 = arith.constant dense<0.000000e+00> : vector<36x32xf32>
    %38 = tpu.matmul %35, %37, %cst_35 {dimension_numbers = #tpu.dot_dimension_numbers<[1], [0], [0], [1], [0, 0, 1, 1], [], []>} : vector<36x32xbf16>, vector<32x32xbf16>, vector<36x32xf32> -> vector<36x32xf32>
    %39 = arith.addf %34, %38 : vector<36x32xf32>
    %c17 = arith.constant 17 : index
    %c0_36 = arith.constant 0 : index
    %40 = vector.load %arg15[%c17, %c0_36] : memref<59x32xbf16, #tpu.memory_space<vmem>>, vector<36x32xbf16>
    %c5 = arith.constant 5 : index
    %c0_37 = arith.constant 0 : index
    %c0_38 = arith.constant 0 : index
    %41 = vector.load %arg5[%c5, %c0_37, %c0_38] : memref<9x32x32xbf16, #tpu.memory_space<vmem>>, vector<1x32x32xbf16>
    %42 = vector.shape_cast %41 : vector<1x32x32xbf16> to vector<32x32xbf16>
    %cst_39 = arith.constant dense<0.000000e+00> : vector<36x32xf32>
    %43 = tpu.matmul %40, %42, %cst_39 {dimension_numbers = #tpu.dot_dimension_numbers<[1], [0], [0], [1], [0, 0, 1, 1], [], []>} : vector<36x32xbf16>, vector<32x32xbf16>, vector<36x32xf32> -> vector<36x32xf32>
    %44 = arith.addf %39, %43 : vector<36x32xf32>
    %c21 = arith.constant 21 : index
    %c0_40 = arith.constant 0 : index
    %45 = vector.load %arg15[%c21, %c0_40] : memref<59x32xbf16, #tpu.memory_space<vmem>>, vector<36x32xbf16>
    %c6 = arith.constant 6 : index
    %c0_41 = arith.constant 0 : index
    %c0_42 = arith.constant 0 : index
    %46 = vector.load %arg5[%c6, %c0_41, %c0_42] : memref<9x32x32xbf16, #tpu.memory_space<vmem>>, vector<1x32x32xbf16>
    %47 = vector.shape_cast %46 : vector<1x32x32xbf16> to vector<32x32xbf16>
    %cst_43 = arith.constant dense<0.000000e+00> : vector<36x32xf32>
    %48 = tpu.matmul %45, %47, %cst_43 {dimension_numbers = #tpu.dot_dimension_numbers<[1], [0], [0], [1], [0, 0, 1, 1], [], []>} : vector<36x32xbf16>, vector<32x32xbf16>, vector<36x32xf32> -> vector<36x32xf32>
    %49 = arith.addf %44, %48 : vector<36x32xf32>
    %c22 = arith.constant 22 : index
    %c0_44 = arith.constant 0 : index
    %50 = vector.load %arg15[%c22, %c0_44] : memref<59x32xbf16, #tpu.memory_space<vmem>>, vector<36x32xbf16>
    %c7 = arith.constant 7 : index
    %c0_45 = arith.constant 0 : index
    %c0_46 = arith.constant 0 : index
    %51 = vector.load %arg5[%c7, %c0_45, %c0_46] : memref<9x32x32xbf16, #tpu.memory_space<vmem>>, vector<1x32x32xbf16>
    %52 = vector.shape_cast %51 : vector<1x32x32xbf16> to vector<32x32xbf16>
    %cst_47 = arith.constant dense<0.000000e+00> : vector<36x32xf32>
    %53 = tpu.matmul %50, %52, %cst_47 {dimension_numbers = #tpu.dot_dimension_numbers<[1], [0], [0], [1], [0, 0, 1, 1], [], []>} : vector<36x32xbf16>, vector<32x32xbf16>, vector<36x32xf32> -> vector<36x32xf32>
    %54 = arith.addf %49, %53 : vector<36x32xf32>
    %c23 = arith.constant 23 : index
    %c0_48 = arith.constant 0 : index
    %55 = vector.load %arg15[%c23, %c0_48] : memref<59x32xbf16, #tpu.memory_space<vmem>>, vector<36x32xbf16>
    %c8 = arith.constant 8 : index
    %c0_49 = arith.constant 0 : index
    %c0_50 = arith.constant 0 : index
    %56 = vector.load %arg5[%c8, %c0_49, %c0_50] : memref<9x32x32xbf16, #tpu.memory_space<vmem>>, vector<1x32x32xbf16>
    %57 = vector.shape_cast %56 : vector<1x32x32xbf16> to vector<32x32xbf16>
    %cst_51 = arith.constant dense<0.000000e+00> : vector<36x32xf32>
    %58 = tpu.matmul %55, %57, %cst_51 {dimension_numbers = #tpu.dot_dimension_numbers<[1], [0], [0], [1], [0, 0, 1, 1], [], []>} : vector<36x32xbf16>, vector<32x32xbf16>, vector<36x32xf32> -> vector<36x32xf32>
    %59 = arith.addf %54, %58 : vector<36x32xf32>
    %c0_52 = arith.constant 0 : index
    %c0_53 = arith.constant 0 : index
    %60 = vector.load %arg7[%c0_52, %c0_53] : memref<16x36xbf16, #tpu.memory_space<vmem>>, vector<16x36xbf16>
    %61 = arith.truncf %59 : vector<36x32xf32> to vector<36x32xbf16>
    %cst_54 = arith.constant dense<0.000000e+00> : vector<16x32xf32>
    %62 = tpu.matmul %60, %61, %cst_54 {dimension_numbers = #tpu.dot_dimension_numbers<[1], [0], [0], [1], [0, 0, 1, 1], [], []>} : vector<16x36xbf16>, vector<36x32xbf16>, vector<16x32xf32> -> vector<16x32xf32>
    %c0_55 = arith.constant 0 : index
    %c0_56 = arith.constant 0 : index
    %63 = vector.load %arg6[%c0_55, %c0_56] : memref<1x32xf32, #tpu.memory_space<vmem>>, vector<1x32xf32>
    %64 = vector.broadcast %63 : vector<1x32xf32> to vector<16x32xf32>
    %65 = arith.addf %62, %64 : vector<16x32xf32>
    %cst_57 = arith.constant 0.000000e+00 : f32
    %66 = vector.broadcast %cst_57 : f32 to vector<16x32xf32>
    %67 = arith.maximumf %65, %66 : vector<16x32xf32>
    %68 = arith.truncf %67 : vector<16x32xf32> to vector<16x32xbf16>
    %c0_58 = arith.constant 0 : index
    %c0_59 = arith.constant 0 : index
    %69 = vector.load %arg8[%c0_58, %c0_59] : memref<32x64xbf16, #tpu.memory_space<vmem>>, vector<32x64xbf16>
    %cst_60 = arith.constant dense<0.000000e+00> : vector<16x64xf32>
    %70 = tpu.matmul %68, %69, %cst_60 {dimension_numbers = #tpu.dot_dimension_numbers<[1], [0], [0], [1], [0, 0, 1, 1], [], []>} : vector<16x32xbf16>, vector<32x64xbf16>, vector<16x64xf32> -> vector<16x64xf32>
    %c0_61 = arith.constant 0 : index
    %c0_62 = arith.constant 0 : index
    %71 = vector.load %arg9[%c0_61, %c0_62] : memref<1x64xf32, #tpu.memory_space<vmem>>, vector<1x64xf32>
    %72 = vector.broadcast %71 : vector<1x64xf32> to vector<16x64xf32>
    %73 = arith.addf %70, %72 : vector<16x64xf32>
    %cst_63 = arith.constant dense<0.000000e+00> : vector<64xf32>
    %74 = vector.multi_reduction <add>, %73, %cst_63 [0] : vector<16x64xf32> to vector<64xf32>
    %75 = vector.shape_cast %74 : vector<64xf32> to vector<1x64xf32>
    %cst_64 = arith.constant 1.600000e+01 : f32
    %76 = vector.broadcast %cst_64 : f32 to vector<1x64xf32>
    %77 = arith.divf %75, %76 : vector<1x64xf32>
    %78 = arith.truncf %77 : vector<1x64xf32> to vector<1x64xbf16>
    %c0_65 = arith.constant 0 : index
    %c0_66 = arith.constant 0 : index
    %79 = vector.load %arg10[%c0_65, %c0_66] : memref<64x16xbf16, #tpu.memory_space<vmem>>, vector<64x16xbf16>
    %cst_67 = arith.constant dense<0.000000e+00> : vector<1x16xf32>
    %80 = tpu.matmul %78, %79, %cst_67 {dimension_numbers = #tpu.dot_dimension_numbers<[1], [0], [0], [1], [0, 0, 1, 1], [], []>} : vector<1x64xbf16>, vector<64x16xbf16>, vector<1x16xf32> -> vector<1x16xf32>
    %c0_68 = arith.constant 0 : index
    %c0_69 = arith.constant 0 : index
    %81 = vector.load %arg11[%c0_68, %c0_69] : memref<1x16xf32, #tpu.memory_space<vmem>>, vector<1x16xf32>
    %82 = arith.addf %80, %81 : vector<1x16xf32>
    %cst_70 = arith.constant 0.000000e+00 : f32
    %83 = vector.broadcast %cst_70 : f32 to vector<1x16xf32>
    %84 = arith.maximumf %82, %83 : vector<1x16xf32>
    %85 = arith.truncf %84 : vector<1x16xf32> to vector<1x16xbf16>
    %c0_71 = arith.constant 0 : index
    %c0_72 = arith.constant 0 : index
    %86 = vector.load %arg12[%c0_71, %c0_72] : memref<16x64xbf16, #tpu.memory_space<vmem>>, vector<16x64xbf16>
    %cst_73 = arith.constant dense<0.000000e+00> : vector<1x64xf32>
    %87 = tpu.matmul %85, %86, %cst_73 {dimension_numbers = #tpu.dot_dimension_numbers<[1], [0], [0], [1], [0, 0, 1, 1], [], []>} : vector<1x16xbf16>, vector<16x64xbf16>, vector<1x64xf32> -> vector<1x64xf32>
    %c0_74 = arith.constant 0 : index
    %c0_75 = arith.constant 0 : index
    %88 = vector.load %arg13[%c0_74, %c0_75] : memref<1x64xf32, #tpu.memory_space<vmem>>, vector<1x64xf32>
    %89 = arith.addf %87, %88 : vector<1x64xf32>
    %90 = arith.negf %89 : vector<1x64xf32>
    %91 = math.exp %90 : vector<1x64xf32>
    %cst_76 = arith.constant 1.000000e+00 : f32
    %92 = vector.broadcast %cst_76 : f32 to vector<1x64xf32>
    %93 = arith.addf %92, %91 : vector<1x64xf32>
    %94 = arith.divf %92, %93 : vector<1x64xf32>
    %95 = arith.extf %1 : vector<16x64xbf16> to vector<16x64xf32>
    %96 = vector.broadcast %94 : vector<1x64xf32> to vector<16x64xf32>
    %97 = arith.mulf %73, %96 : vector<16x64xf32>
    %98 = arith.addf %97, %95 : vector<16x64xf32>
    %cst_77 = arith.constant 0.000000e+00 : f32
    %99 = vector.broadcast %cst_77 : f32 to vector<16x64xf32>
    %100 = arith.maximumf %98, %99 : vector<16x64xf32>
    %101 = arith.truncf %100 : vector<16x64xf32> to vector<16x64xbf16>
    %c0_78 = arith.constant 0 : index
    %c0_79 = arith.constant 0 : index
    %c0_80 = arith.constant 0 : index
    %102 = vector.load %arg14[%c0_78, %c0_79, %c0_80] : memref<1x16x64xbf16, #tpu.memory_space<vmem>>, vector<1x16x64xbf16>
    %103 = vector.shape_cast %102 : vector<1x16x64xbf16> to vector<16x64xbf16>
    %104 = vector.shape_cast %101 : vector<16x64xbf16> to vector<1x16x64xbf16>
    tpu.vector_store %arg14[%c0_78, %c0_79, %c0_80], %104 {strides = array<i32>} : memref<1x16x64xbf16, #tpu.memory_space<vmem>>, vector<1x16x64xbf16>,
    return
  }
  func.func @transform_0(%arg0: i32) -> (i32, i32, i32) {
    %c0_i32 = arith.constant 0 : i32
    %c0_i32_0 = arith.constant 0 : i32
    %c0_i32_1 = arith.constant 0 : i32
    return %arg0, %c0_i32, %c0_i32_0 : i32, i32, i32
  }
  func.func @transform_1(%arg0: i32) -> (i32, i32) {
    %c0_i32 = arith.constant 0 : i32
    %c0_i32_0 = arith.constant 0 : i32
    %c0_i32_1 = arith.constant 0 : i32
    return %c0_i32, %c0_i32_0 : i32, i32
  }
  func.func @transform_2(%arg0: i32) -> (i32, i32) {
    %c0_i32 = arith.constant 0 : i32
    %c0_i32_0 = arith.constant 0 : i32
    %c0_i32_1 = arith.constant 0 : i32
    return %c0_i32, %c0_i32_0 : i32, i32
  }
  func.func @transform_3(%arg0: i32) -> (i32, i32) {
    %c0_i32 = arith.constant 0 : i32
    %c0_i32_0 = arith.constant 0 : i32
    %c0_i32_1 = arith.constant 0 : i32
    return %c0_i32, %c0_i32_0 : i32, i32
  }
  func.func @transform_4(%arg0: i32) -> (i32, i32, i32) {
    %c0_i32 = arith.constant 0 : i32
    %c0_i32_0 = arith.constant 0 : i32
    %c0_i32_1 = arith.constant 0 : i32
    %c0_i32_2 = arith.constant 0 : i32
    return %c0_i32, %c0_i32_0, %c0_i32_1 : i32, i32, i32
  }
  func.func @transform_5(%arg0: i32) -> (i32, i32) {
    %c0_i32 = arith.constant 0 : i32
    %c0_i32_0 = arith.constant 0 : i32
    %c0_i32_1 = arith.constant 0 : i32
    return %c0_i32, %c0_i32_0 : i32, i32
  }
  func.func @transform_6(%arg0: i32) -> (i32, i32) {
    %c0_i32 = arith.constant 0 : i32
    %c0_i32_0 = arith.constant 0 : i32
    %c0_i32_1 = arith.constant 0 : i32
    return %c0_i32, %c0_i32_0 : i32, i32
  }
  func.func @transform_7(%arg0: i32) -> (i32, i32) {
    %c0_i32 = arith.constant 0 : i32
    %c0_i32_0 = arith.constant 0 : i32
    %c0_i32_1 = arith.constant 0 : i32
    return %c0_i32, %c0_i32_0 : i32, i32
  }
  func.func @transform_8(%arg0: i32) -> (i32, i32) {
    %c0_i32 = arith.constant 0 : i32
    %c0_i32_0 = arith.constant 0 : i32
    %c0_i32_1 = arith.constant 0 : i32
    return %c0_i32, %c0_i32_0 : i32, i32
  }
  func.func @transform_9(%arg0: i32) -> (i32, i32) {
    %c0_i32 = arith.constant 0 : i32
    %c0_i32_0 = arith.constant 0 : i32
    %c0_i32_1 = arith.constant 0 : i32
    return %c0_i32, %c0_i32_0 : i32, i32
  }
  func.func @transform_10(%arg0: i32) -> (i32, i32) {
    %c0_i32 = arith.constant 0 : i32
    %c0_i32_0 = arith.constant 0 : i32
    %c0_i32_1 = arith.constant 0 : i32
    return %c0_i32, %c0_i32_0 : i32, i32
  }
  func.func @transform_11(%arg0: i32) -> (i32, i32) {
    %c0_i32 = arith.constant 0 : i32
    %c0_i32_0 = arith.constant 0 : i32
    %c0_i32_1 = arith.constant 0 : i32
    return %c0_i32, %c0_i32_0 : i32, i32
  }
  func.func @transform_12(%arg0: i32) -> (i32, i32) {
    %c0_i32 = arith.constant 0 : i32
    %c0_i32_0 = arith.constant 0 : i32
    %c0_i32_1 = arith.constant 0 : i32
    return %c0_i32, %c0_i32_0 : i32, i32
  }
  func.func @transform_13(%arg0: i32) -> (i32, i32, i32) {
    %c0_i32 = arith.constant 0 : i32
    %c0_i32_0 = arith.constant 0 : i32
    %c0_i32_1 = arith.constant 0 : i32
    return %arg0, %c0_i32, %c0_i32_0 : i32, i32, i32
  }
}

module attributes {stable_mosaic.version = 11 : i64} {
  func.func @kernel(%arg0: i32, %arg1: memref<1x256x147xbf16, #tpu.memory_space<vmem>>, %arg2: memref<147x16xbf16, #tpu.memory_space<vmem>>, %arg3: memref<1x16xf32, #tpu.memory_space<vmem>>, %arg4: memref<289x256xbf16, #tpu.memory_space<vmem>>, %arg5: memref<64x289xbf16, #tpu.memory_space<vmem>>, %arg6: memref<1x64x16xbf16, #tpu.memory_space<vmem>>, %arg7: memref<325x16xbf16, #tpu.memory_space<vmem>>) attributes {dimension_semantics = [#tpu.dimension_semantics<parallel>], iteration_bounds = array<i64: 2>, scalar_prefetch = 0 : i64, scratch_operands = 1 : i64, tpu.core_type = #tpu.core_type<tc>, window_params = [{transform_indices = @transform_0, window_bounds = array<i64: 1, 256, 147>}, {pipeline_mode = #tpu.pipeline_mode<synchronous>, transform_indices = @transform_1, window_bounds = array<i64: 147, 16>}, {pipeline_mode = #tpu.pipeline_mode<synchronous>, transform_indices = @transform_2, window_bounds = array<i64: 1, 16>}, {pipeline_mode = #tpu.pipeline_mode<synchronous>, transform_indices = @transform_3, window_bounds = array<i64: 289, 256>}, {pipeline_mode = #tpu.pipeline_mode<synchronous>, transform_indices = @transform_4, window_bounds = array<i64: 64, 289>}, {transform_indices = @transform_5, window_bounds = array<i64: 1, 64, 16>}]} {
    %c0 = arith.constant 0 : index
    %c0_0 = arith.constant 0 : index
    %c0_1 = arith.constant 0 : index
    %0 = vector.load %arg1[%c0, %c0_0, %c0_1] : memref<1x256x147xbf16, #tpu.memory_space<vmem>>, vector<1x256x147xbf16>
    %1 = vector.shape_cast %0 : vector<1x256x147xbf16> to vector<256x147xbf16>
    %c0_2 = arith.constant 0 : index
    %c0_3 = arith.constant 0 : index
    %2 = vector.load %arg2[%c0_2, %c0_3] : memref<147x16xbf16, #tpu.memory_space<vmem>>, vector<147x16xbf16>
    %cst = arith.constant dense<0.000000e+00> : vector<256x16xf32>
    %3 = tpu.matmul %1, %2, %cst {dimension_numbers = #tpu.dot_dimension_numbers<[1], [0], [0], [1], [0, 0, 1, 1], [], []>} : vector<256x147xbf16>, vector<147x16xbf16>, vector<256x16xf32> -> vector<256x16xf32>
    %c0_4 = arith.constant 0 : index
    %c0_5 = arith.constant 0 : index
    %4 = vector.load %arg3[%c0_4, %c0_5] : memref<1x16xf32, #tpu.memory_space<vmem>>, vector<1x16xf32>
    %5 = vector.broadcast %4 : vector<1x16xf32> to vector<256x16xf32>
    %6 = arith.addf %3, %5 : vector<256x16xf32>
    %cst_6 = arith.constant 0.000000e+00 : f32
    %7 = vector.broadcast %cst_6 : f32 to vector<256x16xf32>
    %8 = arith.maximumf %6, %7 : vector<256x16xf32>
    %9 = arith.truncf %8 : vector<256x16xf32> to vector<256x16xbf16>
    %c0_7 = arith.constant 0 : index
    %c0_8 = arith.constant 0 : index
    %10 = vector.load %arg4[%c0_7, %c0_8] : memref<289x256xbf16, #tpu.memory_space<vmem>>, vector<289x256xbf16>
    %cst_9 = arith.constant dense<0.000000e+00> : vector<289x16xf32>
    %11 = tpu.matmul %10, %9, %cst_9 {dimension_numbers = #tpu.dot_dimension_numbers<[1], [0], [0], [1], [0, 0, 1, 1], [], []>} : vector<289x256xbf16>, vector<256x16xbf16>, vector<289x16xf32> -> vector<289x16xf32>
    %12 = arith.truncf %11 : vector<289x16xf32> to vector<289x16xbf16>
    %cst_10 = arith.constant 0.000000e+00 : bf16
    %13 = vector.broadcast %cst_10 : bf16 to vector<325x16xbf16>
    %c0_11 = arith.constant 0 : index
    %c0_12 = arith.constant 0 : index
    %14 = vector.load %arg7[%c0_11, %c0_12] : memref<325x16xbf16, #tpu.memory_space<vmem>>, vector<325x16xbf16>
    tpu.vector_store %arg7[%c0_11, %c0_12], %13 {strides = array<i32>} : memref<325x16xbf16, #tpu.memory_space<vmem>>, vector<325x16xbf16>,
    %c0_13 = arith.constant 0 : index
    %c0_14 = arith.constant 0 : index
    %15 = vector.load %arg7[%c0_13, %c0_14] : memref<325x16xbf16, #tpu.memory_space<vmem>>, vector<289x16xbf16>
    tpu.vector_store %arg7[%c0_13, %c0_14], %12 {strides = array<i32>} : memref<325x16xbf16, #tpu.memory_space<vmem>>, vector<289x16xbf16>,
    %c1 = arith.constant 1 : index
    %c0_15 = arith.constant 0 : index
    %16 = vector.load %arg7[%c1, %c0_15] : memref<325x16xbf16, #tpu.memory_space<vmem>>, vector<289x16xbf16>
    %17 = arith.maximumf %12, %16 : vector<289x16xbf16>
    %c2 = arith.constant 2 : index
    %c0_16 = arith.constant 0 : index
    %18 = vector.load %arg7[%c2, %c0_16] : memref<325x16xbf16, #tpu.memory_space<vmem>>, vector<289x16xbf16>
    %19 = arith.maximumf %17, %18 : vector<289x16xbf16>
    %c17 = arith.constant 17 : index
    %c0_17 = arith.constant 0 : index
    %20 = vector.load %arg7[%c17, %c0_17] : memref<325x16xbf16, #tpu.memory_space<vmem>>, vector<289x16xbf16>
    %21 = arith.maximumf %19, %20 : vector<289x16xbf16>
    %c18 = arith.constant 18 : index
    %c0_18 = arith.constant 0 : index
    %22 = vector.load %arg7[%c18, %c0_18] : memref<325x16xbf16, #tpu.memory_space<vmem>>, vector<289x16xbf16>
    %23 = arith.maximumf %21, %22 : vector<289x16xbf16>
    %c19 = arith.constant 19 : index
    %c0_19 = arith.constant 0 : index
    %24 = vector.load %arg7[%c19, %c0_19] : memref<325x16xbf16, #tpu.memory_space<vmem>>, vector<289x16xbf16>
    %25 = arith.maximumf %23, %24 : vector<289x16xbf16>
    %c34 = arith.constant 34 : index
    %c0_20 = arith.constant 0 : index
    %26 = vector.load %arg7[%c34, %c0_20] : memref<325x16xbf16, #tpu.memory_space<vmem>>, vector<289x16xbf16>
    %27 = arith.maximumf %25, %26 : vector<289x16xbf16>
    %c35 = arith.constant 35 : index
    %c0_21 = arith.constant 0 : index
    %28 = vector.load %arg7[%c35, %c0_21] : memref<325x16xbf16, #tpu.memory_space<vmem>>, vector<289x16xbf16>
    %29 = arith.maximumf %27, %28 : vector<289x16xbf16>
    %c36 = arith.constant 36 : index
    %c0_22 = arith.constant 0 : index
    %30 = vector.load %arg7[%c36, %c0_22] : memref<325x16xbf16, #tpu.memory_space<vmem>>, vector<289x16xbf16>
    %31 = arith.maximumf %29, %30 : vector<289x16xbf16>
    %c0_23 = arith.constant 0 : index
    %c0_24 = arith.constant 0 : index
    %32 = vector.load %arg5[%c0_23, %c0_24] : memref<64x289xbf16, #tpu.memory_space<vmem>>, vector<64x289xbf16>
    %cst_25 = arith.constant dense<0.000000e+00> : vector<64x16xf32>
    %33 = tpu.matmul %32, %31, %cst_25 {dimension_numbers = #tpu.dot_dimension_numbers<[1], [0], [0], [1], [0, 0, 1, 1], [], []>} : vector<64x289xbf16>, vector<289x16xbf16>, vector<64x16xf32> -> vector<64x16xf32>
    %34 = arith.truncf %33 : vector<64x16xf32> to vector<64x16xbf16>
    %c0_26 = arith.constant 0 : index
    %c0_27 = arith.constant 0 : index
    %c0_28 = arith.constant 0 : index
    %35 = vector.load %arg6[%c0_26, %c0_27, %c0_28] : memref<1x64x16xbf16, #tpu.memory_space<vmem>>, vector<1x64x16xbf16>
    %36 = vector.shape_cast %35 : vector<1x64x16xbf16> to vector<64x16xbf16>
    %37 = vector.shape_cast %34 : vector<64x16xbf16> to vector<1x64x16xbf16>
    tpu.vector_store %arg6[%c0_26, %c0_27, %c0_28], %37 {strides = array<i32>} : memref<1x64x16xbf16, #tpu.memory_space<vmem>>, vector<1x64x16xbf16>,
    return
  }
  func.func @transform_0(%arg0: i32) -> (i32, i32, i32) {
    %c0_i32 = arith.constant 0 : i32
    %c0_i32_0 = arith.constant 0 : i32
    %c0_i32_1 = arith.constant 0 : i32
    return %arg0, %c0_i32, %c0_i32_0 : i32, i32, i32
  }
  func.func @transform_1(%arg0: i32) -> (i32, i32) {
    %c0_i32 = arith.constant 0 : i32
    %c0_i32_0 = arith.constant 0 : i32
    %c0_i32_1 = arith.constant 0 : i32
    return %c0_i32, %c0_i32_0 : i32, i32
  }
  func.func @transform_2(%arg0: i32) -> (i32, i32) {
    %c0_i32 = arith.constant 0 : i32
    %c0_i32_0 = arith.constant 0 : i32
    %c0_i32_1 = arith.constant 0 : i32
    return %c0_i32, %c0_i32_0 : i32, i32
  }
  func.func @transform_3(%arg0: i32) -> (i32, i32) {
    %c0_i32 = arith.constant 0 : i32
    %c0_i32_0 = arith.constant 0 : i32
    %c0_i32_1 = arith.constant 0 : i32
    return %c0_i32, %c0_i32_0 : i32, i32
  }
  func.func @transform_4(%arg0: i32) -> (i32, i32) {
    %c0_i32 = arith.constant 0 : i32
    %c0_i32_0 = arith.constant 0 : i32
    %c0_i32_1 = arith.constant 0 : i32
    return %c0_i32, %c0_i32_0 : i32, i32
  }
  func.func @transform_5(%arg0: i32) -> (i32, i32, i32) {
    %c0_i32 = arith.constant 0 : i32
    %c0_i32_0 = arith.constant 0 : i32
    %c0_i32_1 = arith.constant 0 : i32
    return %arg0, %c0_i32, %c0_i32_0 : i32, i32, i32
  }
}

module attributes {stable_mosaic.version = 11 : i64} {
  func.func @kernel(%arg0: i32, %arg1: memref<1x64x16xbf16, #tpu.memory_space<vmem>>, %arg2: memref<16x16xbf16, #tpu.memory_space<vmem>>, %arg3: memref<1x16xf32, #tpu.memory_space<vmem>>, %arg4: memref<100x64xbf16, #tpu.memory_space<vmem>>, %arg5: memref<9x16x16xbf16, #tpu.memory_space<vmem>>, %arg6: memref<1x16xf32, #tpu.memory_space<vmem>>, %arg7: memref<64x100xbf16, #tpu.memory_space<vmem>>, %arg8: memref<16x32xbf16, #tpu.memory_space<vmem>>, %arg9: memref<1x32xf32, #tpu.memory_space<vmem>>, %arg10: memref<32x8xbf16, #tpu.memory_space<vmem>>, %arg11: memref<1x8xf32, #tpu.memory_space<vmem>>, %arg12: memref<8x32xbf16, #tpu.memory_space<vmem>>, %arg13: memref<1x32xf32, #tpu.memory_space<vmem>>, %arg14: memref<16x32xbf16, #tpu.memory_space<vmem>>, %arg15: memref<1x32xf32, #tpu.memory_space<vmem>>, %arg16: memref<1x64x32xbf16, #tpu.memory_space<vmem>>, %arg17: memref<127x16xbf16, #tpu.memory_space<vmem>>) attributes {dimension_semantics = [#tpu.dimension_semantics<parallel>], iteration_bounds = array<i64: 2>, scalar_prefetch = 0 : i64, scratch_operands = 1 : i64, tpu.core_type = #tpu.core_type<tc>, window_params = [{transform_indices = @transform_0, window_bounds = array<i64: 1, 64, 16>}, {pipeline_mode = #tpu.pipeline_mode<synchronous>, transform_indices = @transform_1, window_bounds = array<i64: 16, 16>}, {pipeline_mode = #tpu.pipeline_mode<synchronous>, transform_indices = @transform_2, window_bounds = array<i64: 1, 16>}, {pipeline_mode = #tpu.pipeline_mode<synchronous>, transform_indices = @transform_3, window_bounds = array<i64: 100, 64>}, {pipeline_mode = #tpu.pipeline_mode<synchronous>, transform_indices = @transform_4, window_bounds = array<i64: 9, 16, 16>}, {pipeline_mode = #tpu.pipeline_mode<synchronous>, transform_indices = @transform_5, window_bounds = array<i64: 1, 16>}, {pipeline_mode = #tpu.pipeline_mode<synchronous>, transform_indices = @transform_6, window_bounds = array<i64: 64, 100>}, {pipeline_mode = #tpu.pipeline_mode<synchronous>, transform_indices = @transform_7, window_bounds = array<i64: 16, 32>}, {pipeline_mode = #tpu.pipeline_mode<synchronous>, transform_indices = @transform_8, window_bounds = array<i64: 1, 32>}, {pipeline_mode = #tpu.pipeline_mode<synchronous>, transform_indices = @transform_9, window_bounds = array<i64: 32, 8>}, {pipeline_mode = #tpu.pipeline_mode<synchronous>, transform_indices = @transform_10, window_bounds = array<i64: 1, 8>}, {pipeline_mode = #tpu.pipeline_mode<synchronous>, transform_indices = @transform_11, window_bounds = array<i64: 8, 32>}, {pipeline_mode = #tpu.pipeline_mode<synchronous>, transform_indices = @transform_12, window_bounds = array<i64: 1, 32>}, {pipeline_mode = #tpu.pipeline_mode<synchronous>, transform_indices = @transform_13, window_bounds = array<i64: 16, 32>}, {pipeline_mode = #tpu.pipeline_mode<synchronous>, transform_indices = @transform_14, window_bounds = array<i64: 1, 32>}, {transform_indices = @transform_15, window_bounds = array<i64: 1, 64, 32>}]} {
    %c0 = arith.constant 0 : index
    %c0_0 = arith.constant 0 : index
    %c0_1 = arith.constant 0 : index
    %0 = vector.load %arg1[%c0, %c0_0, %c0_1] : memref<1x64x16xbf16, #tpu.memory_space<vmem>>, vector<1x64x16xbf16>
    %1 = vector.shape_cast %0 : vector<1x64x16xbf16> to vector<64x16xbf16>
    %c0_2 = arith.constant 0 : index
    %c0_3 = arith.constant 0 : index
    %2 = vector.load %arg2[%c0_2, %c0_3] : memref<16x16xbf16, #tpu.memory_space<vmem>>, vector<16x16xbf16>
    %cst = arith.constant dense<0.000000e+00> : vector<64x16xf32>
    %3 = tpu.matmul %1, %2, %cst {dimension_numbers = #tpu.dot_dimension_numbers<[1], [0], [0], [1], [0, 0, 1, 1], [], []>} : vector<64x16xbf16>, vector<16x16xbf16>, vector<64x16xf32> -> vector<64x16xf32>
    %c0_4 = arith.constant 0 : index
    %c0_5 = arith.constant 0 : index
    %4 = vector.load %arg3[%c0_4, %c0_5] : memref<1x16xf32, #tpu.memory_space<vmem>>, vector<1x16xf32>
    %5 = vector.broadcast %4 : vector<1x16xf32> to vector<64x16xf32>
    %6 = arith.addf %3, %5 : vector<64x16xf32>
    %cst_6 = arith.constant 0.000000e+00 : f32
    %7 = vector.broadcast %cst_6 : f32 to vector<64x16xf32>
    %8 = arith.maximumf %6, %7 : vector<64x16xf32>
    %9 = arith.truncf %8 : vector<64x16xf32> to vector<64x16xbf16>
    %c0_7 = arith.constant 0 : index
    %c0_8 = arith.constant 0 : index
    %10 = vector.load %arg4[%c0_7, %c0_8] : memref<100x64xbf16, #tpu.memory_space<vmem>>, vector<100x64xbf16>
    %cst_9 = arith.constant dense<0.000000e+00> : vector<100x16xf32>
    %11 = tpu.matmul %10, %9, %cst_9 {dimension_numbers = #tpu.dot_dimension_numbers<[1], [0], [0], [1], [0, 0, 1, 1], [], []>} : vector<100x64xbf16>, vector<64x16xbf16>, vector<100x16xf32> -> vector<100x16xf32>
    %cst_10 = arith.constant 0.000000e+00 : bf16
    %12 = vector.broadcast %cst_10 : bf16 to vector<127x16xbf16>
    %c0_11 = arith.constant 0 : index
    %c0_12 = arith.constant 0 : index
    %13 = vector.load %arg17[%c0_11, %c0_12] : memref<127x16xbf16, #tpu.memory_space<vmem>>, vector<127x16xbf16>
    tpu.vector_store %arg17[%c0_11, %c0_12], %12 {strides = array<i32>} : memref<127x16xbf16, #tpu.memory_space<vmem>>, vector<127x16xbf16>,
    %14 = arith.truncf %11 : vector<100x16xf32> to vector<100x16xbf16>
    %c16 = arith.constant 16 : index
    %c0_13 = arith.constant 0 : index
    %15 = vector.load %arg17[%c16, %c0_13] : memref<127x16xbf16, #tpu.memory_space<vmem>>, vector<100x16xbf16>
    tpu.vector_store %arg17[%c16, %c0_13], %14 {strides = array<i32>} : memref<127x16xbf16, #tpu.memory_space<vmem>>, vector<100x16xbf16>,
    %c5 = arith.constant 5 : index
    %c0_14 = arith.constant 0 : index
    %16 = vector.load %arg17[%c5, %c0_14] : memref<127x16xbf16, #tpu.memory_space<vmem>>, vector<100x16xbf16>
    %c0_15 = arith.constant 0 : index
    %c0_16 = arith.constant 0 : index
    %c0_17 = arith.constant 0 : index
    %17 = vector.load %arg5[%c0_15, %c0_16, %c0_17] : memref<9x16x16xbf16, #tpu.memory_space<vmem>>, vector<1x16x16xbf16>
    %18 = vector.shape_cast %17 : vector<1x16x16xbf16> to vector<16x16xbf16>
    %cst_18 = arith.constant dense<0.000000e+00> : vector<100x16xf32>
    %19 = tpu.matmul %16, %18, %cst_18 {dimension_numbers = #tpu.dot_dimension_numbers<[1], [0], [0], [1], [0, 0, 1, 1], [], []>} : vector<100x16xbf16>, vector<16x16xbf16>, vector<100x16xf32> -> vector<100x16xf32>
    %c6 = arith.constant 6 : index
    %c0_19 = arith.constant 0 : index
    %20 = vector.load %arg17[%c6, %c0_19] : memref<127x16xbf16, #tpu.memory_space<vmem>>, vector<100x16xbf16>
    %c1 = arith.constant 1 : index
    %c0_20 = arith.constant 0 : index
    %c0_21 = arith.constant 0 : index
    %21 = vector.load %arg5[%c1, %c0_20, %c0_21] : memref<9x16x16xbf16, #tpu.memory_space<vmem>>, vector<1x16x16xbf16>
    %22 = vector.shape_cast %21 : vector<1x16x16xbf16> to vector<16x16xbf16>
    %cst_22 = arith.constant dense<0.000000e+00> : vector<100x16xf32>
    %23 = tpu.matmul %20, %22, %cst_22 {dimension_numbers = #tpu.dot_dimension_numbers<[1], [0], [0], [1], [0, 0, 1, 1], [], []>} : vector<100x16xbf16>, vector<16x16xbf16>, vector<100x16xf32> -> vector<100x16xf32>
    %24 = arith.addf %19, %23 : vector<100x16xf32>
    %c7 = arith.constant 7 : index
    %c0_23 = arith.constant 0 : index
    %25 = vector.load %arg17[%c7, %c0_23] : memref<127x16xbf16, #tpu.memory_space<vmem>>, vector<100x16xbf16>
    %c2 = arith.constant 2 : index
    %c0_24 = arith.constant 0 : index
    %c0_25 = arith.constant 0 : index
    %26 = vector.load %arg5[%c2, %c0_24, %c0_25] : memref<9x16x16xbf16, #tpu.memory_space<vmem>>, vector<1x16x16xbf16>
    %27 = vector.shape_cast %26 : vector<1x16x16xbf16> to vector<16x16xbf16>
    %cst_26 = arith.constant dense<0.000000e+00> : vector<100x16xf32>
    %28 = tpu.matmul %25, %27, %cst_26 {dimension_numbers = #tpu.dot_dimension_numbers<[1], [0], [0], [1], [0, 0, 1, 1], [], []>} : vector<100x16xbf16>, vector<16x16xbf16>, vector<100x16xf32> -> vector<100x16xf32>
    %29 = arith.addf %24, %28 : vector<100x16xf32>
    %c15 = arith.constant 15 : index
    %c0_27 = arith.constant 0 : index
    %30 = vector.load %arg17[%c15, %c0_27] : memref<127x16xbf16, #tpu.memory_space<vmem>>, vector<100x16xbf16>
    %c3 = arith.constant 3 : index
    %c0_28 = arith.constant 0 : index
    %c0_29 = arith.constant 0 : index
    %31 = vector.load %arg5[%c3, %c0_28, %c0_29] : memref<9x16x16xbf16, #tpu.memory_space<vmem>>, vector<1x16x16xbf16>
    %32 = vector.shape_cast %31 : vector<1x16x16xbf16> to vector<16x16xbf16>
    %cst_30 = arith.constant dense<0.000000e+00> : vector<100x16xf32>
    %33 = tpu.matmul %30, %32, %cst_30 {dimension_numbers = #tpu.dot_dimension_numbers<[1], [0], [0], [1], [0, 0, 1, 1], [], []>} : vector<100x16xbf16>, vector<16x16xbf16>, vector<100x16xf32> -> vector<100x16xf32>
    %34 = arith.addf %29, %33 : vector<100x16xf32>
    %c16_31 = arith.constant 16 : index
    %c0_32 = arith.constant 0 : index
    %35 = vector.load %arg17[%c16_31, %c0_32] : memref<127x16xbf16, #tpu.memory_space<vmem>>, vector<100x16xbf16>
    %c4 = arith.constant 4 : index
    %c0_33 = arith.constant 0 : index
    %c0_34 = arith.constant 0 : index
    %36 = vector.load %arg5[%c4, %c0_33, %c0_34] : memref<9x16x16xbf16, #tpu.memory_space<vmem>>, vector<1x16x16xbf16>
    %37 = vector.shape_cast %36 : vector<1x16x16xbf16> to vector<16x16xbf16>
    %cst_35 = arith.constant dense<0.000000e+00> : vector<100x16xf32>
    %38 = tpu.matmul %35, %37, %cst_35 {dimension_numbers = #tpu.dot_dimension_numbers<[1], [0], [0], [1], [0, 0, 1, 1], [], []>} : vector<100x16xbf16>, vector<16x16xbf16>, vector<100x16xf32> -> vector<100x16xf32>
    %39 = arith.addf %34, %38 : vector<100x16xf32>
    %c17 = arith.constant 17 : index
    %c0_36 = arith.constant 0 : index
    %40 = vector.load %arg17[%c17, %c0_36] : memref<127x16xbf16, #tpu.memory_space<vmem>>, vector<100x16xbf16>
    %c5_37 = arith.constant 5 : index
    %c0_38 = arith.constant 0 : index
    %c0_39 = arith.constant 0 : index
    %41 = vector.load %arg5[%c5_37, %c0_38, %c0_39] : memref<9x16x16xbf16, #tpu.memory_space<vmem>>, vector<1x16x16xbf16>
    %42 = vector.shape_cast %41 : vector<1x16x16xbf16> to vector<16x16xbf16>
    %cst_40 = arith.constant dense<0.000000e+00> : vector<100x16xf32>
    %43 = tpu.matmul %40, %42, %cst_40 {dimension_numbers = #tpu.dot_dimension_numbers<[1], [0], [0], [1], [0, 0, 1, 1], [], []>} : vector<100x16xbf16>, vector<16x16xbf16>, vector<100x16xf32> -> vector<100x16xf32>
    %44 = arith.addf %39, %43 : vector<100x16xf32>
    %c25 = arith.constant 25 : index
    %c0_41 = arith.constant 0 : index
    %45 = vector.load %arg17[%c25, %c0_41] : memref<127x16xbf16, #tpu.memory_space<vmem>>, vector<100x16xbf16>
    %c6_42 = arith.constant 6 : index
    %c0_43 = arith.constant 0 : index
    %c0_44 = arith.constant 0 : index
    %46 = vector.load %arg5[%c6_42, %c0_43, %c0_44] : memref<9x16x16xbf16, #tpu.memory_space<vmem>>, vector<1x16x16xbf16>
    %47 = vector.shape_cast %46 : vector<1x16x16xbf16> to vector<16x16xbf16>
    %cst_45 = arith.constant dense<0.000000e+00> : vector<100x16xf32>
    %48 = tpu.matmul %45, %47, %cst_45 {dimension_numbers = #tpu.dot_dimension_numbers<[1], [0], [0], [1], [0, 0, 1, 1], [], []>} : vector<100x16xbf16>, vector<16x16xbf16>, vector<100x16xf32> -> vector<100x16xf32>
    %49 = arith.addf %44, %48 : vector<100x16xf32>
    %c26 = arith.constant 26 : index
    %c0_46 = arith.constant 0 : index
    %50 = vector.load %arg17[%c26, %c0_46] : memref<127x16xbf16, #tpu.memory_space<vmem>>, vector<100x16xbf16>
    %c7_47 = arith.constant 7 : index
    %c0_48 = arith.constant 0 : index
    %c0_49 = arith.constant 0 : index
    %51 = vector.load %arg5[%c7_47, %c0_48, %c0_49] : memref<9x16x16xbf16, #tpu.memory_space<vmem>>, vector<1x16x16xbf16>
    %52 = vector.shape_cast %51 : vector<1x16x16xbf16> to vector<16x16xbf16>
    %cst_50 = arith.constant dense<0.000000e+00> : vector<100x16xf32>
    %53 = tpu.matmul %50, %52, %cst_50 {dimension_numbers = #tpu.dot_dimension_numbers<[1], [0], [0], [1], [0, 0, 1, 1], [], []>} : vector<100x16xbf16>, vector<16x16xbf16>, vector<100x16xf32> -> vector<100x16xf32>
    %54 = arith.addf %49, %53 : vector<100x16xf32>
    %c27 = arith.constant 27 : index
    %c0_51 = arith.constant 0 : index
    %55 = vector.load %arg17[%c27, %c0_51] : memref<127x16xbf16, #tpu.memory_space<vmem>>, vector<100x16xbf16>
    %c8 = arith.constant 8 : index
    %c0_52 = arith.constant 0 : index
    %c0_53 = arith.constant 0 : index
    %56 = vector.load %arg5[%c8, %c0_52, %c0_53] : memref<9x16x16xbf16, #tpu.memory_space<vmem>>, vector<1x16x16xbf16>
    %57 = vector.shape_cast %56 : vector<1x16x16xbf16> to vector<16x16xbf16>
    %cst_54 = arith.constant dense<0.000000e+00> : vector<100x16xf32>
    %58 = tpu.matmul %55, %57, %cst_54 {dimension_numbers = #tpu.dot_dimension_numbers<[1], [0], [0], [1], [0, 0, 1, 1], [], []>} : vector<100x16xbf16>, vector<16x16xbf16>, vector<100x16xf32> -> vector<100x16xf32>
    %59 = arith.addf %54, %58 : vector<100x16xf32>
    %c0_55 = arith.constant 0 : index
    %c0_56 = arith.constant 0 : index
    %60 = vector.load %arg7[%c0_55, %c0_56] : memref<64x100xbf16, #tpu.memory_space<vmem>>, vector<64x100xbf16>
    %61 = arith.truncf %59 : vector<100x16xf32> to vector<100x16xbf16>
    %cst_57 = arith.constant dense<0.000000e+00> : vector<64x16xf32>
    %62 = tpu.matmul %60, %61, %cst_57 {dimension_numbers = #tpu.dot_dimension_numbers<[1], [0], [0], [1], [0, 0, 1, 1], [], []>} : vector<64x100xbf16>, vector<100x16xbf16>, vector<64x16xf32> -> vector<64x16xf32>
    %c0_58 = arith.constant 0 : index
    %c0_59 = arith.constant 0 : index
    %63 = vector.load %arg6[%c0_58, %c0_59] : memref<1x16xf32, #tpu.memory_space<vmem>>, vector<1x16xf32>
    %64 = vector.broadcast %63 : vector<1x16xf32> to vector<64x16xf32>
    %65 = arith.addf %62, %64 : vector<64x16xf32>
    %cst_60 = arith.constant 0.000000e+00 : f32
    %66 = vector.broadcast %cst_60 : f32 to vector<64x16xf32>
    %67 = arith.maximumf %65, %66 : vector<64x16xf32>
    %68 = arith.truncf %67 : vector<64x16xf32> to vector<64x16xbf16>
    %c0_61 = arith.constant 0 : index
    %c0_62 = arith.constant 0 : index
    %69 = vector.load %arg8[%c0_61, %c0_62] : memref<16x32xbf16, #tpu.memory_space<vmem>>, vector<16x32xbf16>
    %cst_63 = arith.constant dense<0.000000e+00> : vector<64x32xf32>
    %70 = tpu.matmul %68, %69, %cst_63 {dimension_numbers = #tpu.dot_dimension_numbers<[1], [0], [0], [1], [0, 0, 1, 1], [], []>} : vector<64x16xbf16>, vector<16x32xbf16>, vector<64x32xf32> -> vector<64x32xf32>
    %c0_64 = arith.constant 0 : index
    %c0_65 = arith.constant 0 : index
    %71 = vector.load %arg9[%c0_64, %c0_65] : memref<1x32xf32, #tpu.memory_space<vmem>>, vector<1x32xf32>
    %72 = vector.broadcast %71 : vector<1x32xf32> to vector<64x32xf32>
    %73 = arith.addf %70, %72 : vector<64x32xf32>
    %cst_66 = arith.constant dense<0.000000e+00> : vector<32xf32>
    %74 = vector.multi_reduction <add>, %73, %cst_66 [0] : vector<64x32xf32> to vector<32xf32>
    %75 = vector.shape_cast %74 : vector<32xf32> to vector<1x32xf32>
    %cst_67 = arith.constant 6.400000e+01 : f32
    %76 = vector.broadcast %cst_67 : f32 to vector<1x32xf32>
    %77 = arith.divf %75, %76 : vector<1x32xf32>
    %78 = arith.truncf %77 : vector<1x32xf32> to vector<1x32xbf16>
    %c0_68 = arith.constant 0 : index
    %c0_69 = arith.constant 0 : index
    %79 = vector.load %arg10[%c0_68, %c0_69] : memref<32x8xbf16, #tpu.memory_space<vmem>>, vector<32x8xbf16>
    %cst_70 = arith.constant dense<0.000000e+00> : vector<1x8xf32>
    %80 = tpu.matmul %78, %79, %cst_70 {dimension_numbers = #tpu.dot_dimension_numbers<[1], [0], [0], [1], [0, 0, 1, 1], [], []>} : vector<1x32xbf16>, vector<32x8xbf16>, vector<1x8xf32> -> vector<1x8xf32>
    %c0_71 = arith.constant 0 : index
    %c0_72 = arith.constant 0 : index
    %81 = vector.load %arg11[%c0_71, %c0_72] : memref<1x8xf32, #tpu.memory_space<vmem>>, vector<1x8xf32>
    %82 = arith.addf %80, %81 : vector<1x8xf32>
    %cst_73 = arith.constant 0.000000e+00 : f32
    %83 = vector.broadcast %cst_73 : f32 to vector<1x8xf32>
    %84 = arith.maximumf %82, %83 : vector<1x8xf32>
    %85 = arith.truncf %84 : vector<1x8xf32> to vector<1x8xbf16>
    %c0_74 = arith.constant 0 : index
    %c0_75 = arith.constant 0 : index
    %86 = vector.load %arg12[%c0_74, %c0_75] : memref<8x32xbf16, #tpu.memory_space<vmem>>, vector<8x32xbf16>
    %cst_76 = arith.constant dense<0.000000e+00> : vector<1x32xf32>
    %87 = tpu.matmul %85, %86, %cst_76 {dimension_numbers = #tpu.dot_dimension_numbers<[1], [0], [0], [1], [0, 0, 1, 1], [], []>} : vector<1x8xbf16>, vector<8x32xbf16>, vector<1x32xf32> -> vector<1x32xf32>
    %c0_77 = arith.constant 0 : index
    %c0_78 = arith.constant 0 : index
    %88 = vector.load %arg13[%c0_77, %c0_78] : memref<1x32xf32, #tpu.memory_space<vmem>>, vector<1x32xf32>
    %89 = arith.addf %87, %88 : vector<1x32xf32>
    %90 = arith.negf %89 : vector<1x32xf32>
    %91 = math.exp %90 : vector<1x32xf32>
    %cst_79 = arith.constant 1.000000e+00 : f32
    %92 = vector.broadcast %cst_79 : f32 to vector<1x32xf32>
    %93 = arith.addf %92, %91 : vector<1x32xf32>
    %94 = arith.divf %92, %93 : vector<1x32xf32>
    %c0_80 = arith.constant 0 : index
    %c0_81 = arith.constant 0 : index
    %95 = vector.load %arg14[%c0_80, %c0_81] : memref<16x32xbf16, #tpu.memory_space<vmem>>, vector<16x32xbf16>
    %cst_82 = arith.constant dense<0.000000e+00> : vector<64x32xf32>
    %96 = tpu.matmul %1, %95, %cst_82 {dimension_numbers = #tpu.dot_dimension_numbers<[1], [0], [0], [1], [0, 0, 1, 1], [], []>} : vector<64x16xbf16>, vector<16x32xbf16>, vector<64x32xf32> -> vector<64x32xf32>
    %c0_83 = arith.constant 0 : index
    %c0_84 = arith.constant 0 : index
    %97 = vector.load %arg15[%c0_83, %c0_84] : memref<1x32xf32, #tpu.memory_space<vmem>>, vector<1x32xf32>
    %98 = vector.broadcast %97 : vector<1x32xf32> to vector<64x32xf32>
    %99 = arith.addf %96, %98 : vector<64x32xf32>
    %100 = vector.broadcast %94 : vector<1x32xf32> to vector<64x32xf32>
    %101 = arith.mulf %73, %100 : vector<64x32xf32>
    %102 = arith.addf %101, %99 : vector<64x32xf32>
    %cst_85 = arith.constant 0.000000e+00 : f32
    %103 = vector.broadcast %cst_85 : f32 to vector<64x32xf32>
    %104 = arith.maximumf %102, %103 : vector<64x32xf32>
    %105 = arith.truncf %104 : vector<64x32xf32> to vector<64x32xbf16>
    %c0_86 = arith.constant 0 : index
    %c0_87 = arith.constant 0 : index
    %c0_88 = arith.constant 0 : index
    %106 = vector.load %arg16[%c0_86, %c0_87, %c0_88] : memref<1x64x32xbf16, #tpu.memory_space<vmem>>, vector<1x64x32xbf16>
    %107 = vector.shape_cast %106 : vector<1x64x32xbf16> to vector<64x32xbf16>
    %108 = vector.shape_cast %105 : vector<64x32xbf16> to vector<1x64x32xbf16>
    tpu.vector_store %arg16[%c0_86, %c0_87, %c0_88], %108 {strides = array<i32>} : memref<1x64x32xbf16, #tpu.memory_space<vmem>>, vector<1x64x32xbf16>,
    return
  }
  func.func @transform_0(%arg0: i32) -> (i32, i32, i32) {
    %c0_i32 = arith.constant 0 : i32
    %c0_i32_0 = arith.constant 0 : i32
    %c0_i32_1 = arith.constant 0 : i32
    return %arg0, %c0_i32, %c0_i32_0 : i32, i32, i32
  }
  func.func @transform_1(%arg0: i32) -> (i32, i32) {
    %c0_i32 = arith.constant 0 : i32
    %c0_i32_0 = arith.constant 0 : i32
    %c0_i32_1 = arith.constant 0 : i32
    return %c0_i32, %c0_i32_0 : i32, i32
  }
  func.func @transform_2(%arg0: i32) -> (i32, i32) {
    %c0_i32 = arith.constant 0 : i32
    %c0_i32_0 = arith.constant 0 : i32
    %c0_i32_1 = arith.constant 0 : i32
    return %c0_i32, %c0_i32_0 : i32, i32
  }
  func.func @transform_3(%arg0: i32) -> (i32, i32) {
    %c0_i32 = arith.constant 0 : i32
    %c0_i32_0 = arith.constant 0 : i32
    %c0_i32_1 = arith.constant 0 : i32
    return %c0_i32, %c0_i32_0 : i32, i32
  }
  func.func @transform_4(%arg0: i32) -> (i32, i32, i32) {
    %c0_i32 = arith.constant 0 : i32
    %c0_i32_0 = arith.constant 0 : i32
    %c0_i32_1 = arith.constant 0 : i32
    %c0_i32_2 = arith.constant 0 : i32
    return %c0_i32, %c0_i32_0, %c0_i32_1 : i32, i32, i32
  }
  func.func @transform_5(%arg0: i32) -> (i32, i32) {
    %c0_i32 = arith.constant 0 : i32
    %c0_i32_0 = arith.constant 0 : i32
    %c0_i32_1 = arith.constant 0 : i32
    return %c0_i32, %c0_i32_0 : i32, i32
  }
  func.func @transform_6(%arg0: i32) -> (i32, i32) {
    %c0_i32 = arith.constant 0 : i32
    %c0_i32_0 = arith.constant 0 : i32
    %c0_i32_1 = arith.constant 0 : i32
    return %c0_i32, %c0_i32_0 : i32, i32
  }
  func.func @transform_7(%arg0: i32) -> (i32, i32) {
    %c0_i32 = arith.constant 0 : i32
    %c0_i32_0 = arith.constant 0 : i32
    %c0_i32_1 = arith.constant 0 : i32
    return %c0_i32, %c0_i32_0 : i32, i32
  }
  func.func @transform_8(%arg0: i32) -> (i32, i32) {
    %c0_i32 = arith.constant 0 : i32
    %c0_i32_0 = arith.constant 0 : i32
    %c0_i32_1 = arith.constant 0 : i32
    return %c0_i32, %c0_i32_0 : i32, i32
  }
  func.func @transform_9(%arg0: i32) -> (i32, i32) {
    %c0_i32 = arith.constant 0 : i32
    %c0_i32_0 = arith.constant 0 : i32
    %c0_i32_1 = arith.constant 0 : i32
    return %c0_i32, %c0_i32_0 : i32, i32
  }
  func.func @transform_10(%arg0: i32) -> (i32, i32) {
    %c0_i32 = arith.constant 0 : i32
    %c0_i32_0 = arith.constant 0 : i32
    %c0_i32_1 = arith.constant 0 : i32
    return %c0_i32, %c0_i32_0 : i32, i32
  }
  func.func @transform_11(%arg0: i32) -> (i32, i32) {
    %c0_i32 = arith.constant 0 : i32
    %c0_i32_0 = arith.constant 0 : i32
    %c0_i32_1 = arith.constant 0 : i32
    return %c0_i32, %c0_i32_0 : i32, i32
  }
  func.func @transform_12(%arg0: i32) -> (i32, i32) {
    %c0_i32 = arith.constant 0 : i32
    %c0_i32_0 = arith.constant 0 : i32
    %c0_i32_1 = arith.constant 0 : i32
    return %c0_i32, %c0_i32_0 : i32, i32
  }
  func.func @transform_13(%arg0: i32) -> (i32, i32) {
    %c0_i32 = arith.constant 0 : i32
    %c0_i32_0 = arith.constant 0 : i32
    %c0_i32_1 = arith.constant 0 : i32
    return %c0_i32, %c0_i32_0 : i32, i32
  }
  func.func @transform_14(%arg0: i32) -> (i32, i32) {
    %c0_i32 = arith.constant 0 : i32
    %c0_i32_0 = arith.constant 0 : i32
    %c0_i32_1 = arith.constant 0 : i32
    return %c0_i32, %c0_i32_0 : i32, i32
  }
  func.func @transform_15(%arg0: i32) -> (i32, i32, i32) {
    %c0_i32 = arith.constant 0 : i32
    %c0_i32_0 = arith.constant 0 : i32
    %c0_i32_1 = arith.constant 0 : i32
    return %arg0, %c0_i32, %c0_i32_0 : i32, i32, i32
  }
}

module attributes {stable_mosaic.version = 11 : i64} {
  func.func @kernel(%arg0: i32, %arg1: memref<1x64x32xbf16, #tpu.memory_space<vmem>>, %arg2: memref<32x32xbf16, #tpu.memory_space<vmem>>, %arg3: memref<1x32xf32, #tpu.memory_space<vmem>>, %arg4: memref<100x64xbf16, #tpu.memory_space<vmem>>, %arg5: memref<9x32x32xbf16, #tpu.memory_space<vmem>>, %arg6: memref<1x32xf32, #tpu.memory_space<vmem>>, %arg7: memref<16x100xbf16, #tpu.memory_space<vmem>>, %arg8: memref<32x64xbf16, #tpu.memory_space<vmem>>, %arg9: memref<1x64xf32, #tpu.memory_space<vmem>>, %arg10: memref<64x16xbf16, #tpu.memory_space<vmem>>, %arg11: memref<1x16xf32, #tpu.memory_space<vmem>>, %arg12: memref<16x64xbf16, #tpu.memory_space<vmem>>, %arg13: memref<1x64xf32, #tpu.memory_space<vmem>>, %arg14: memref<16x64xbf16, #tpu.memory_space<vmem>>, %arg15: memref<32x64xbf16, #tpu.memory_space<vmem>>, %arg16: memref<1x64xf32, #tpu.memory_space<vmem>>, %arg17: memref<1x16x64xbf16, #tpu.memory_space<vmem>>, %arg18: memref<127x32xbf16, #tpu.memory_space<vmem>>) attributes {dimension_semantics = [#tpu.dimension_semantics<parallel>], iteration_bounds = array<i64: 2>, scalar_prefetch = 0 : i64, scratch_operands = 1 : i64, tpu.core_type = #tpu.core_type<tc>, window_params = [{transform_indices = @transform_0, window_bounds = array<i64: 1, 64, 32>}, {pipeline_mode = #tpu.pipeline_mode<synchronous>, transform_indices = @transform_1, window_bounds = array<i64: 32, 32>}, {pipeline_mode = #tpu.pipeline_mode<synchronous>, transform_indices = @transform_2, window_bounds = array<i64: 1, 32>}, {pipeline_mode = #tpu.pipeline_mode<synchronous>, transform_indices = @transform_3, window_bounds = array<i64: 100, 64>}, {pipeline_mode = #tpu.pipeline_mode<synchronous>, transform_indices = @transform_4, window_bounds = array<i64: 9, 32, 32>}, {pipeline_mode = #tpu.pipeline_mode<synchronous>, transform_indices = @transform_5, window_bounds = array<i64: 1, 32>}, {pipeline_mode = #tpu.pipeline_mode<synchronous>, transform_indices = @transform_6, window_bounds = array<i64: 16, 100>}, {pipeline_mode = #tpu.pipeline_mode<synchronous>, transform_indices = @transform_7, window_bounds = array<i64: 32, 64>}, {pipeline_mode = #tpu.pipeline_mode<synchronous>, transform_indices = @transform_8, window_bounds = array<i64: 1, 64>}, {pipeline_mode = #tpu.pipeline_mode<synchronous>, transform_indices = @transform_9, window_bounds = array<i64: 64, 16>}, {pipeline_mode = #tpu.pipeline_mode<synchronous>, transform_indices = @transform_10, window_bounds = array<i64: 1, 16>}, {pipeline_mode = #tpu.pipeline_mode<synchronous>, transform_indices = @transform_11, window_bounds = array<i64: 16, 64>}, {pipeline_mode = #tpu.pipeline_mode<synchronous>, transform_indices = @transform_12, window_bounds = array<i64: 1, 64>}, {pipeline_mode = #tpu.pipeline_mode<synchronous>, transform_indices = @transform_13, window_bounds = array<i64: 16, 64>}, {pipeline_mode = #tpu.pipeline_mode<synchronous>, transform_indices = @transform_14, window_bounds = array<i64: 32, 64>}, {pipeline_mode = #tpu.pipeline_mode<synchronous>, transform_indices = @transform_15, window_bounds = array<i64: 1, 64>}, {transform_indices = @transform_16, window_bounds = array<i64: 1, 16, 64>}]} {
    %c0 = arith.constant 0 : index
    %c0_0 = arith.constant 0 : index
    %c0_1 = arith.constant 0 : index
    %0 = vector.load %arg1[%c0, %c0_0, %c0_1] : memref<1x64x32xbf16, #tpu.memory_space<vmem>>, vector<1x64x32xbf16>
    %1 = vector.shape_cast %0 : vector<1x64x32xbf16> to vector<64x32xbf16>
    %c0_2 = arith.constant 0 : index
    %c0_3 = arith.constant 0 : index
    %2 = vector.load %arg2[%c0_2, %c0_3] : memref<32x32xbf16, #tpu.memory_space<vmem>>, vector<32x32xbf16>
    %cst = arith.constant dense<0.000000e+00> : vector<64x32xf32>
    %3 = tpu.matmul %1, %2, %cst {dimension_numbers = #tpu.dot_dimension_numbers<[1], [0], [0], [1], [0, 0, 1, 1], [], []>} : vector<64x32xbf16>, vector<32x32xbf16>, vector<64x32xf32> -> vector<64x32xf32>
    %c0_4 = arith.constant 0 : index
    %c0_5 = arith.constant 0 : index
    %4 = vector.load %arg3[%c0_4, %c0_5] : memref<1x32xf32, #tpu.memory_space<vmem>>, vector<1x32xf32>
    %5 = vector.broadcast %4 : vector<1x32xf32> to vector<64x32xf32>
    %6 = arith.addf %3, %5 : vector<64x32xf32>
    %cst_6 = arith.constant 0.000000e+00 : f32
    %7 = vector.broadcast %cst_6 : f32 to vector<64x32xf32>
    %8 = arith.maximumf %6, %7 : vector<64x32xf32>
    %9 = arith.truncf %8 : vector<64x32xf32> to vector<64x32xbf16>
    %c0_7 = arith.constant 0 : index
    %c0_8 = arith.constant 0 : index
    %10 = vector.load %arg4[%c0_7, %c0_8] : memref<100x64xbf16, #tpu.memory_space<vmem>>, vector<100x64xbf16>
    %cst_9 = arith.constant dense<0.000000e+00> : vector<100x32xf32>
    %11 = tpu.matmul %10, %9, %cst_9 {dimension_numbers = #tpu.dot_dimension_numbers<[1], [0], [0], [1], [0, 0, 1, 1], [], []>} : vector<100x64xbf16>, vector<64x32xbf16>, vector<100x32xf32> -> vector<100x32xf32>
    %cst_10 = arith.constant 0.000000e+00 : bf16
    %12 = vector.broadcast %cst_10 : bf16 to vector<127x32xbf16>
    %c0_11 = arith.constant 0 : index
    %c0_12 = arith.constant 0 : index
    %13 = vector.load %arg18[%c0_11, %c0_12] : memref<127x32xbf16, #tpu.memory_space<vmem>>, vector<127x32xbf16>
    tpu.vector_store %arg18[%c0_11, %c0_12], %12 {strides = array<i32>} : memref<127x32xbf16, #tpu.memory_space<vmem>>, vector<127x32xbf16>,
    %14 = arith.truncf %11 : vector<100x32xf32> to vector<100x32xbf16>
    %c16 = arith.constant 16 : index
    %c0_13 = arith.constant 0 : index
    %15 = vector.load %arg18[%c16, %c0_13] : memref<127x32xbf16, #tpu.memory_space<vmem>>, vector<100x32xbf16>
    tpu.vector_store %arg18[%c16, %c0_13], %14 {strides = array<i32>} : memref<127x32xbf16, #tpu.memory_space<vmem>>, vector<100x32xbf16>,
    %c5 = arith.constant 5 : index
    %c0_14 = arith.constant 0 : index
    %16 = vector.load %arg18[%c5, %c0_14] : memref<127x32xbf16, #tpu.memory_space<vmem>>, vector<100x32xbf16>
    %c0_15 = arith.constant 0 : index
    %c0_16 = arith.constant 0 : index
    %c0_17 = arith.constant 0 : index
    %17 = vector.load %arg5[%c0_15, %c0_16, %c0_17] : memref<9x32x32xbf16, #tpu.memory_space<vmem>>, vector<1x32x32xbf16>
    %18 = vector.shape_cast %17 : vector<1x32x32xbf16> to vector<32x32xbf16>
    %cst_18 = arith.constant dense<0.000000e+00> : vector<100x32xf32>
    %19 = tpu.matmul %16, %18, %cst_18 {dimension_numbers = #tpu.dot_dimension_numbers<[1], [0], [0], [1], [0, 0, 1, 1], [], []>} : vector<100x32xbf16>, vector<32x32xbf16>, vector<100x32xf32> -> vector<100x32xf32>
    %c6 = arith.constant 6 : index
    %c0_19 = arith.constant 0 : index
    %20 = vector.load %arg18[%c6, %c0_19] : memref<127x32xbf16, #tpu.memory_space<vmem>>, vector<100x32xbf16>
    %c1 = arith.constant 1 : index
    %c0_20 = arith.constant 0 : index
    %c0_21 = arith.constant 0 : index
    %21 = vector.load %arg5[%c1, %c0_20, %c0_21] : memref<9x32x32xbf16, #tpu.memory_space<vmem>>, vector<1x32x32xbf16>
    %22 = vector.shape_cast %21 : vector<1x32x32xbf16> to vector<32x32xbf16>
    %cst_22 = arith.constant dense<0.000000e+00> : vector<100x32xf32>
    %23 = tpu.matmul %20, %22, %cst_22 {dimension_numbers = #tpu.dot_dimension_numbers<[1], [0], [0], [1], [0, 0, 1, 1], [], []>} : vector<100x32xbf16>, vector<32x32xbf16>, vector<100x32xf32> -> vector<100x32xf32>
    %24 = arith.addf %19, %23 : vector<100x32xf32>
    %c7 = arith.constant 7 : index
    %c0_23 = arith.constant 0 : index
    %25 = vector.load %arg18[%c7, %c0_23] : memref<127x32xbf16, #tpu.memory_space<vmem>>, vector<100x32xbf16>
    %c2 = arith.constant 2 : index
    %c0_24 = arith.constant 0 : index
    %c0_25 = arith.constant 0 : index
    %26 = vector.load %arg5[%c2, %c0_24, %c0_25] : memref<9x32x32xbf16, #tpu.memory_space<vmem>>, vector<1x32x32xbf16>
    %27 = vector.shape_cast %26 : vector<1x32x32xbf16> to vector<32x32xbf16>
    %cst_26 = arith.constant dense<0.000000e+00> : vector<100x32xf32>
    %28 = tpu.matmul %25, %27, %cst_26 {dimension_numbers = #tpu.dot_dimension_numbers<[1], [0], [0], [1], [0, 0, 1, 1], [], []>} : vector<100x32xbf16>, vector<32x32xbf16>, vector<100x32xf32> -> vector<100x32xf32>
    %29 = arith.addf %24, %28 : vector<100x32xf32>
    %c15 = arith.constant 15 : index
    %c0_27 = arith.constant 0 : index
    %30 = vector.load %arg18[%c15, %c0_27] : memref<127x32xbf16, #tpu.memory_space<vmem>>, vector<100x32xbf16>
    %c3 = arith.constant 3 : index
    %c0_28 = arith.constant 0 : index
    %c0_29 = arith.constant 0 : index
    %31 = vector.load %arg5[%c3, %c0_28, %c0_29] : memref<9x32x32xbf16, #tpu.memory_space<vmem>>, vector<1x32x32xbf16>
    %32 = vector.shape_cast %31 : vector<1x32x32xbf16> to vector<32x32xbf16>
    %cst_30 = arith.constant dense<0.000000e+00> : vector<100x32xf32>
    %33 = tpu.matmul %30, %32, %cst_30 {dimension_numbers = #tpu.dot_dimension_numbers<[1], [0], [0], [1], [0, 0, 1, 1], [], []>} : vector<100x32xbf16>, vector<32x32xbf16>, vector<100x32xf32> -> vector<100x32xf32>
    %34 = arith.addf %29, %33 : vector<100x32xf32>
    %c16_31 = arith.constant 16 : index
    %c0_32 = arith.constant 0 : index
    %35 = vector.load %arg18[%c16_31, %c0_32] : memref<127x32xbf16, #tpu.memory_space<vmem>>, vector<100x32xbf16>
    %c4 = arith.constant 4 : index
    %c0_33 = arith.constant 0 : index
    %c0_34 = arith.constant 0 : index
    %36 = vector.load %arg5[%c4, %c0_33, %c0_34] : memref<9x32x32xbf16, #tpu.memory_space<vmem>>, vector<1x32x32xbf16>
    %37 = vector.shape_cast %36 : vector<1x32x32xbf16> to vector<32x32xbf16>
    %cst_35 = arith.constant dense<0.000000e+00> : vector<100x32xf32>
    %38 = tpu.matmul %35, %37, %cst_35 {dimension_numbers = #tpu.dot_dimension_numbers<[1], [0], [0], [1], [0, 0, 1, 1], [], []>} : vector<100x32xbf16>, vector<32x32xbf16>, vector<100x32xf32> -> vector<100x32xf32>
    %39 = arith.addf %34, %38 : vector<100x32xf32>
    %c17 = arith.constant 17 : index
    %c0_36 = arith.constant 0 : index
    %40 = vector.load %arg18[%c17, %c0_36] : memref<127x32xbf16, #tpu.memory_space<vmem>>, vector<100x32xbf16>
    %c5_37 = arith.constant 5 : index
    %c0_38 = arith.constant 0 : index
    %c0_39 = arith.constant 0 : index
    %41 = vector.load %arg5[%c5_37, %c0_38, %c0_39] : memref<9x32x32xbf16, #tpu.memory_space<vmem>>, vector<1x32x32xbf16>
    %42 = vector.shape_cast %41 : vector<1x32x32xbf16> to vector<32x32xbf16>
    %cst_40 = arith.constant dense<0.000000e+00> : vector<100x32xf32>
    %43 = tpu.matmul %40, %42, %cst_40 {dimension_numbers = #tpu.dot_dimension_numbers<[1], [0], [0], [1], [0, 0, 1, 1], [], []>} : vector<100x32xbf16>, vector<32x32xbf16>, vector<100x32xf32> -> vector<100x32xf32>
    %44 = arith.addf %39, %43 : vector<100x32xf32>
    %c25 = arith.constant 25 : index
    %c0_41 = arith.constant 0 : index
    %45 = vector.load %arg18[%c25, %c0_41] : memref<127x32xbf16, #tpu.memory_space<vmem>>, vector<100x32xbf16>
    %c6_42 = arith.constant 6 : index
    %c0_43 = arith.constant 0 : index
    %c0_44 = arith.constant 0 : index
    %46 = vector.load %arg5[%c6_42, %c0_43, %c0_44] : memref<9x32x32xbf16, #tpu.memory_space<vmem>>, vector<1x32x32xbf16>
    %47 = vector.shape_cast %46 : vector<1x32x32xbf16> to vector<32x32xbf16>
    %cst_45 = arith.constant dense<0.000000e+00> : vector<100x32xf32>
    %48 = tpu.matmul %45, %47, %cst_45 {dimension_numbers = #tpu.dot_dimension_numbers<[1], [0], [0], [1], [0, 0, 1, 1], [], []>} : vector<100x32xbf16>, vector<32x32xbf16>, vector<100x32xf32> -> vector<100x32xf32>
    %49 = arith.addf %44, %48 : vector<100x32xf32>
    %c26 = arith.constant 26 : index
    %c0_46 = arith.constant 0 : index
    %50 = vector.load %arg18[%c26, %c0_46] : memref<127x32xbf16, #tpu.memory_space<vmem>>, vector<100x32xbf16>
    %c7_47 = arith.constant 7 : index
    %c0_48 = arith.constant 0 : index
    %c0_49 = arith.constant 0 : index
    %51 = vector.load %arg5[%c7_47, %c0_48, %c0_49] : memref<9x32x32xbf16, #tpu.memory_space<vmem>>, vector<1x32x32xbf16>
    %52 = vector.shape_cast %51 : vector<1x32x32xbf16> to vector<32x32xbf16>
    %cst_50 = arith.constant dense<0.000000e+00> : vector<100x32xf32>
    %53 = tpu.matmul %50, %52, %cst_50 {dimension_numbers = #tpu.dot_dimension_numbers<[1], [0], [0], [1], [0, 0, 1, 1], [], []>} : vector<100x32xbf16>, vector<32x32xbf16>, vector<100x32xf32> -> vector<100x32xf32>
    %54 = arith.addf %49, %53 : vector<100x32xf32>
    %c27 = arith.constant 27 : index
    %c0_51 = arith.constant 0 : index
    %55 = vector.load %arg18[%c27, %c0_51] : memref<127x32xbf16, #tpu.memory_space<vmem>>, vector<100x32xbf16>
    %c8 = arith.constant 8 : index
    %c0_52 = arith.constant 0 : index
    %c0_53 = arith.constant 0 : index
    %56 = vector.load %arg5[%c8, %c0_52, %c0_53] : memref<9x32x32xbf16, #tpu.memory_space<vmem>>, vector<1x32x32xbf16>
    %57 = vector.shape_cast %56 : vector<1x32x32xbf16> to vector<32x32xbf16>
    %cst_54 = arith.constant dense<0.000000e+00> : vector<100x32xf32>
    %58 = tpu.matmul %55, %57, %cst_54 {dimension_numbers = #tpu.dot_dimension_numbers<[1], [0], [0], [1], [0, 0, 1, 1], [], []>} : vector<100x32xbf16>, vector<32x32xbf16>, vector<100x32xf32> -> vector<100x32xf32>
    %59 = arith.addf %54, %58 : vector<100x32xf32>
    %c0_55 = arith.constant 0 : index
    %c0_56 = arith.constant 0 : index
    %60 = vector.load %arg7[%c0_55, %c0_56] : memref<16x100xbf16, #tpu.memory_space<vmem>>, vector<16x100xbf16>
    %61 = arith.truncf %59 : vector<100x32xf32> to vector<100x32xbf16>
    %cst_57 = arith.constant dense<0.000000e+00> : vector<16x32xf32>
    %62 = tpu.matmul %60, %61, %cst_57 {dimension_numbers = #tpu.dot_dimension_numbers<[1], [0], [0], [1], [0, 0, 1, 1], [], []>} : vector<16x100xbf16>, vector<100x32xbf16>, vector<16x32xf32> -> vector<16x32xf32>
    %c0_58 = arith.constant 0 : index
    %c0_59 = arith.constant 0 : index
    %63 = vector.load %arg6[%c0_58, %c0_59] : memref<1x32xf32, #tpu.memory_space<vmem>>, vector<1x32xf32>
    %64 = vector.broadcast %63 : vector<1x32xf32> to vector<16x32xf32>
    %65 = arith.addf %62, %64 : vector<16x32xf32>
    %cst_60 = arith.constant 0.000000e+00 : f32
    %66 = vector.broadcast %cst_60 : f32 to vector<16x32xf32>
    %67 = arith.maximumf %65, %66 : vector<16x32xf32>
    %68 = arith.truncf %67 : vector<16x32xf32> to vector<16x32xbf16>
    %c0_61 = arith.constant 0 : index
    %c0_62 = arith.constant 0 : index
    %69 = vector.load %arg8[%c0_61, %c0_62] : memref<32x64xbf16, #tpu.memory_space<vmem>>, vector<32x64xbf16>
    %cst_63 = arith.constant dense<0.000000e+00> : vector<16x64xf32>
    %70 = tpu.matmul %68, %69, %cst_63 {dimension_numbers = #tpu.dot_dimension_numbers<[1], [0], [0], [1], [0, 0, 1, 1], [], []>} : vector<16x32xbf16>, vector<32x64xbf16>, vector<16x64xf32> -> vector<16x64xf32>
    %c0_64 = arith.constant 0 : index
    %c0_65 = arith.constant 0 : index
    %71 = vector.load %arg9[%c0_64, %c0_65] : memref<1x64xf32, #tpu.memory_space<vmem>>, vector<1x64xf32>
    %72 = vector.broadcast %71 : vector<1x64xf32> to vector<16x64xf32>
    %73 = arith.addf %70, %72 : vector<16x64xf32>
    %cst_66 = arith.constant dense<0.000000e+00> : vector<64xf32>
    %74 = vector.multi_reduction <add>, %73, %cst_66 [0] : vector<16x64xf32> to vector<64xf32>
    %75 = vector.shape_cast %74 : vector<64xf32> to vector<1x64xf32>
    %cst_67 = arith.constant 1.600000e+01 : f32
    %76 = vector.broadcast %cst_67 : f32 to vector<1x64xf32>
    %77 = arith.divf %75, %76 : vector<1x64xf32>
    %78 = arith.truncf %77 : vector<1x64xf32> to vector<1x64xbf16>
    %c0_68 = arith.constant 0 : index
    %c0_69 = arith.constant 0 : index
    %79 = vector.load %arg10[%c0_68, %c0_69] : memref<64x16xbf16, #tpu.memory_space<vmem>>, vector<64x16xbf16>
    %cst_70 = arith.constant dense<0.000000e+00> : vector<1x16xf32>
    %80 = tpu.matmul %78, %79, %cst_70 {dimension_numbers = #tpu.dot_dimension_numbers<[1], [0], [0], [1], [0, 0, 1, 1], [], []>} : vector<1x64xbf16>, vector<64x16xbf16>, vector<1x16xf32> -> vector<1x16xf32>
    %c0_71 = arith.constant 0 : index
    %c0_72 = arith.constant 0 : index
    %81 = vector.load %arg11[%c0_71, %c0_72] : memref<1x16xf32, #tpu.memory_space<vmem>>, vector<1x16xf32>
    %82 = arith.addf %80, %81 : vector<1x16xf32>
    %cst_73 = arith.constant 0.000000e+00 : f32
    %83 = vector.broadcast %cst_73 : f32 to vector<1x16xf32>
    %84 = arith.maximumf %82, %83 : vector<1x16xf32>
    %85 = arith.truncf %84 : vector<1x16xf32> to vector<1x16xbf16>
    %c0_74 = arith.constant 0 : index
    %c0_75 = arith.constant 0 : index
    %86 = vector.load %arg12[%c0_74, %c0_75] : memref<16x64xbf16, #tpu.memory_space<vmem>>, vector<16x64xbf16>
    %cst_76 = arith.constant dense<0.000000e+00> : vector<1x64xf32>
    %87 = tpu.matmul %85, %86, %cst_76 {dimension_numbers = #tpu.dot_dimension_numbers<[1], [0], [0], [1], [0, 0, 1, 1], [], []>} : vector<1x16xbf16>, vector<16x64xbf16>, vector<1x64xf32> -> vector<1x64xf32>
    %c0_77 = arith.constant 0 : index
    %c0_78 = arith.constant 0 : index
    %88 = vector.load %arg13[%c0_77, %c0_78] : memref<1x64xf32, #tpu.memory_space<vmem>>, vector<1x64xf32>
    %89 = arith.addf %87, %88 : vector<1x64xf32>
    %90 = arith.negf %89 : vector<1x64xf32>
    %91 = math.exp %90 : vector<1x64xf32>
    %cst_79 = arith.constant 1.000000e+00 : f32
    %92 = vector.broadcast %cst_79 : f32 to vector<1x64xf32>
    %93 = arith.addf %92, %91 : vector<1x64xf32>
    %94 = arith.divf %92, %93 : vector<1x64xf32>
    %c0_80 = arith.constant 0 : index
    %c0_81 = arith.constant 0 : index
    %95 = vector.load %arg14[%c0_80, %c0_81] : memref<16x64xbf16, #tpu.memory_space<vmem>>, vector<16x64xbf16>
    %cst_82 = arith.constant dense<0.000000e+00> : vector<16x32xf32>
    %96 = tpu.matmul %95, %1, %cst_82 {dimension_numbers = #tpu.dot_dimension_numbers<[1], [0], [0], [1], [0, 0, 1, 1], [], []>} : vector<16x64xbf16>, vector<64x32xbf16>, vector<16x32xf32> -> vector<16x32xf32>
    %97 = arith.truncf %96 : vector<16x32xf32> to vector<16x32xbf16>
    %c0_83 = arith.constant 0 : index
    %c0_84 = arith.constant 0 : index
    %98 = vector.load %arg15[%c0_83, %c0_84] : memref<32x64xbf16, #tpu.memory_space<vmem>>, vector<32x64xbf16>
    %cst_85 = arith.constant dense<0.000000e+00> : vector<16x64xf32>
    %99 = tpu.matmul %97, %98, %cst_85 {dimension_numbers = #tpu.dot_dimension_numbers<[1], [0], [0], [1], [0, 0, 1, 1], [], []>} : vector<16x32xbf16>, vector<32x64xbf16>, vector<16x64xf32> -> vector<16x64xf32>
    %c0_86 = arith.constant 0 : index
    %c0_87 = arith.constant 0 : index
    %100 = vector.load %arg16[%c0_86, %c0_87] : memref<1x64xf32, #tpu.memory_space<vmem>>, vector<1x64xf32>
    %101 = vector.broadcast %100 : vector<1x64xf32> to vector<16x64xf32>
    %102 = arith.addf %99, %101 : vector<16x64xf32>
    %103 = vector.broadcast %94 : vector<1x64xf32> to vector<16x64xf32>
    %104 = arith.mulf %73, %103 : vector<16x64xf32>
    %105 = arith.addf %104, %102 : vector<16x64xf32>
    %cst_88 = arith.constant 0.000000e+00 : f32
    %106 = vector.broadcast %cst_88 : f32 to vector<16x64xf32>
    %107 = arith.maximumf %105, %106 : vector<16x64xf32>
    %108 = arith.truncf %107 : vector<16x64xf32> to vector<16x64xbf16>
    %c0_89 = arith.constant 0 : index
    %c0_90 = arith.constant 0 : index
    %c0_91 = arith.constant 0 : index
    %109 = vector.load %arg17[%c0_89, %c0_90, %c0_91] : memref<1x16x64xbf16, #tpu.memory_space<vmem>>, vector<1x16x64xbf16>
    %110 = vector.shape_cast %109 : vector<1x16x64xbf16> to vector<16x64xbf16>
    %111 = vector.shape_cast %108 : vector<16x64xbf16> to vector<1x16x64xbf16>
    tpu.vector_store %arg17[%c0_89, %c0_90, %c0_91], %111 {strides = array<i32>} : memref<1x16x64xbf16, #tpu.memory_space<vmem>>, vector<1x16x64xbf16>,
    return
  }
  func.func @transform_0(%arg0: i32) -> (i32, i32, i32) {
    %c0_i32 = arith.constant 0 : i32
    %c0_i32_0 = arith.constant 0 : i32
    %c0_i32_1 = arith.constant 0 : i32
    return %arg0, %c0_i32, %c0_i32_0 : i32, i32, i32
  }
  func.func @transform_1(%arg0: i32) -> (i32, i32) {
    %c0_i32 = arith.constant 0 : i32
    %c0_i32_0 = arith.constant 0 : i32
    %c0_i32_1 = arith.constant 0 : i32
    return %c0_i32, %c0_i32_0 : i32, i32
  }
  func.func @transform_2(%arg0: i32) -> (i32, i32) {
    %c0_i32 = arith.constant 0 : i32
    %c0_i32_0 = arith.constant 0 : i32
    %c0_i32_1 = arith.constant 0 : i32
    return %c0_i32, %c0_i32_0 : i32, i32
  }
  func.func @transform_3(%arg0: i32) -> (i32, i32) {
    %c0_i32 = arith.constant 0 : i32
    %c0_i32_0 = arith.constant 0 : i32
    %c0_i32_1 = arith.constant 0 : i32
    return %c0_i32, %c0_i32_0 : i32, i32
  }
  func.func @transform_4(%arg0: i32) -> (i32, i32, i32) {
    %c0_i32 = arith.constant 0 : i32
    %c0_i32_0 = arith.constant 0 : i32
    %c0_i32_1 = arith.constant 0 : i32
    %c0_i32_2 = arith.constant 0 : i32
    return %c0_i32, %c0_i32_0, %c0_i32_1 : i32, i32, i32
  }
  func.func @transform_5(%arg0: i32) -> (i32, i32) {
    %c0_i32 = arith.constant 0 : i32
    %c0_i32_0 = arith.constant 0 : i32
    %c0_i32_1 = arith.constant 0 : i32
    return %c0_i32, %c0_i32_0 : i32, i32
  }
  func.func @transform_6(%arg0: i32) -> (i32, i32) {
    %c0_i32 = arith.constant 0 : i32
    %c0_i32_0 = arith.constant 0 : i32
    %c0_i32_1 = arith.constant 0 : i32
    return %c0_i32, %c0_i32_0 : i32, i32
  }
  func.func @transform_7(%arg0: i32) -> (i32, i32) {
    %c0_i32 = arith.constant 0 : i32
    %c0_i32_0 = arith.constant 0 : i32
    %c0_i32_1 = arith.constant 0 : i32
    return %c0_i32, %c0_i32_0 : i32, i32
  }
  func.func @transform_8(%arg0: i32) -> (i32, i32) {
    %c0_i32 = arith.constant 0 : i32
    %c0_i32_0 = arith.constant 0 : i32
    %c0_i32_1 = arith.constant 0 : i32
    return %c0_i32, %c0_i32_0 : i32, i32
  }
  func.func @transform_9(%arg0: i32) -> (i32, i32) {
    %c0_i32 = arith.constant 0 : i32
    %c0_i32_0 = arith.constant 0 : i32
    %c0_i32_1 = arith.constant 0 : i32
    return %c0_i32, %c0_i32_0 : i32, i32
  }
  func.func @transform_10(%arg0: i32) -> (i32, i32) {
    %c0_i32 = arith.constant 0 : i32
    %c0_i32_0 = arith.constant 0 : i32
    %c0_i32_1 = arith.constant 0 : i32
    return %c0_i32, %c0_i32_0 : i32, i32
  }
  func.func @transform_11(%arg0: i32) -> (i32, i32) {
    %c0_i32 = arith.constant 0 : i32
    %c0_i32_0 = arith.constant 0 : i32
    %c0_i32_1 = arith.constant 0 : i32
    return %c0_i32, %c0_i32_0 : i32, i32
  }
  func.func @transform_12(%arg0: i32) -> (i32, i32) {
    %c0_i32 = arith.constant 0 : i32
    %c0_i32_0 = arith.constant 0 : i32
    %c0_i32_1 = arith.constant 0 : i32
    return %c0_i32, %c0_i32_0 : i32, i32
  }
  func.func @transform_13(%arg0: i32) -> (i32, i32) {
    %c0_i32 = arith.constant 0 : i32
    %c0_i32_0 = arith.constant 0 : i32
    %c0_i32_1 = arith.constant 0 : i32
    return %c0_i32, %c0_i32_0 : i32, i32
  }
  func.func @transform_14(%arg0: i32) -> (i32, i32) {
    %c0_i32 = arith.constant 0 : i32
    %c0_i32_0 = arith.constant 0 : i32
    %c0_i32_1 = arith.constant 0 : i32
    return %c0_i32, %c0_i32_0 : i32, i32
  }
  func.func @transform_15(%arg0: i32) -> (i32, i32) {
    %c0_i32 = arith.constant 0 : i32
    %c0_i32_0 = arith.constant 0 : i32
    %c0_i32_1 = arith.constant 0 : i32
    return %c0_i32, %c0_i32_0 : i32, i32
  }
  func.func @transform_16(%arg0: i32) -> (i32, i32, i32) {
    %c0_i32 = arith.constant 0 : i32
    %c0_i32_0 = arith.constant 0 : i32
    %c0_i32_1 = arith.constant 0 : i32
    return %arg0, %c0_i32, %c0_i32_0 : i32, i32, i32
  }
}

module attributes {stable_mosaic.version = 11 : i64} {
  func.func @kernel(%arg0: i32, %arg1: memref<1x16x64xbf16, #tpu.memory_space<vmem>>, %arg2: memref<64x64xbf16, #tpu.memory_space<vmem>>, %arg3: memref<1x64xf32, #tpu.memory_space<vmem>>, %arg4: memref<36x16xbf16, #tpu.memory_space<vmem>>, %arg5: memref<9x64x64xbf16, #tpu.memory_space<vmem>>, %arg6: memref<1x64xf32, #tpu.memory_space<vmem>>, %arg7: memref<4x36xbf16, #tpu.memory_space<vmem>>, %arg8: memref<64x128xbf16, #tpu.memory_space<vmem>>, %arg9: memref<1x128xf32, #tpu.memory_space<vmem>>, %arg10: memref<128x32xbf16, #tpu.memory_space<vmem>>, %arg11: memref<1x32xf32, #tpu.memory_space<vmem>>, %arg12: memref<32x128xbf16, #tpu.memory_space<vmem>>, %arg13: memref<1x128xf32, #tpu.memory_space<vmem>>, %arg14: memref<4x16xbf16, #tpu.memory_space<vmem>>, %arg15: memref<64x128xbf16, #tpu.memory_space<vmem>>, %arg16: memref<1x128xf32, #tpu.memory_space<vmem>>, %arg17: memref<1x4x128xbf16, #tpu.memory_space<vmem>>, %arg18: memref<59x64xbf16, #tpu.memory_space<vmem>>) attributes {dimension_semantics = [#tpu.dimension_semantics<parallel>], iteration_bounds = array<i64: 2>, scalar_prefetch = 0 : i64, scratch_operands = 1 : i64, tpu.core_type = #tpu.core_type<tc>, window_params = [{transform_indices = @transform_0, window_bounds = array<i64: 1, 16, 64>}, {pipeline_mode = #tpu.pipeline_mode<synchronous>, transform_indices = @transform_1, window_bounds = array<i64: 64, 64>}, {pipeline_mode = #tpu.pipeline_mode<synchronous>, transform_indices = @transform_2, window_bounds = array<i64: 1, 64>}, {pipeline_mode = #tpu.pipeline_mode<synchronous>, transform_indices = @transform_3, window_bounds = array<i64: 36, 16>}, {pipeline_mode = #tpu.pipeline_mode<synchronous>, transform_indices = @transform_4, window_bounds = array<i64: 9, 64, 64>}, {pipeline_mode = #tpu.pipeline_mode<synchronous>, transform_indices = @transform_5, window_bounds = array<i64: 1, 64>}, {pipeline_mode = #tpu.pipeline_mode<synchronous>, transform_indices = @transform_6, window_bounds = array<i64: 4, 36>}, {pipeline_mode = #tpu.pipeline_mode<synchronous>, transform_indices = @transform_7, window_bounds = array<i64: 64, 128>}, {pipeline_mode = #tpu.pipeline_mode<synchronous>, transform_indices = @transform_8, window_bounds = array<i64: 1, 128>}, {pipeline_mode = #tpu.pipeline_mode<synchronous>, transform_indices = @transform_9, window_bounds = array<i64: 128, 32>}, {pipeline_mode = #tpu.pipeline_mode<synchronous>, transform_indices = @transform_10, window_bounds = array<i64: 1, 32>}, {pipeline_mode = #tpu.pipeline_mode<synchronous>, transform_indices = @transform_11, window_bounds = array<i64: 32, 128>}, {pipeline_mode = #tpu.pipeline_mode<synchronous>, transform_indices = @transform_12, window_bounds = array<i64: 1, 128>}, {pipeline_mode = #tpu.pipeline_mode<synchronous>, transform_indices = @transform_13, window_bounds = array<i64: 4, 16>}, {pipeline_mode = #tpu.pipeline_mode<synchronous>, transform_indices = @transform_14, window_bounds = array<i64: 64, 128>}, {pipeline_mode = #tpu.pipeline_mode<synchronous>, transform_indices = @transform_15, window_bounds = array<i64: 1, 128>}, {transform_indices = @transform_16, window_bounds = array<i64: 1, 4, 128>}]} {
    %c0 = arith.constant 0 : index
    %c0_0 = arith.constant 0 : index
    %c0_1 = arith.constant 0 : index
    %0 = vector.load %arg1[%c0, %c0_0, %c0_1] : memref<1x16x64xbf16, #tpu.memory_space<vmem>>, vector<1x16x64xbf16>
    %1 = vector.shape_cast %0 : vector<1x16x64xbf16> to vector<16x64xbf16>
    %c0_2 = arith.constant 0 : index
    %c0_3 = arith.constant 0 : index
    %2 = vector.load %arg2[%c0_2, %c0_3] : memref<64x64xbf16, #tpu.memory_space<vmem>>, vector<64x64xbf16>
    %cst = arith.constant dense<0.000000e+00> : vector<16x64xf32>
    %3 = tpu.matmul %1, %2, %cst {dimension_numbers = #tpu.dot_dimension_numbers<[1], [0], [0], [1], [0, 0, 1, 1], [], []>} : vector<16x64xbf16>, vector<64x64xbf16>, vector<16x64xf32> -> vector<16x64xf32>
    %c0_4 = arith.constant 0 : index
    %c0_5 = arith.constant 0 : index
    %4 = vector.load %arg3[%c0_4, %c0_5] : memref<1x64xf32, #tpu.memory_space<vmem>>, vector<1x64xf32>
    %5 = vector.broadcast %4 : vector<1x64xf32> to vector<16x64xf32>
    %6 = arith.addf %3, %5 : vector<16x64xf32>
    %cst_6 = arith.constant 0.000000e+00 : f32
    %7 = vector.broadcast %cst_6 : f32 to vector<16x64xf32>
    %8 = arith.maximumf %6, %7 : vector<16x64xf32>
    %9 = arith.truncf %8 : vector<16x64xf32> to vector<16x64xbf16>
    %c0_7 = arith.constant 0 : index
    %c0_8 = arith.constant 0 : index
    %10 = vector.load %arg4[%c0_7, %c0_8] : memref<36x16xbf16, #tpu.memory_space<vmem>>, vector<36x16xbf16>
    %cst_9 = arith.constant dense<0.000000e+00> : vector<36x64xf32>
    %11 = tpu.matmul %10, %9, %cst_9 {dimension_numbers = #tpu.dot_dimension_numbers<[1], [0], [0], [1], [0, 0, 1, 1], [], []>} : vector<36x16xbf16>, vector<16x64xbf16>, vector<36x64xf32> -> vector<36x64xf32>
    %cst_10 = arith.constant 0.000000e+00 : bf16
    %12 = vector.broadcast %cst_10 : bf16 to vector<59x64xbf16>
    %c0_11 = arith.constant 0 : index
    %c0_12 = arith.constant 0 : index
    %13 = vector.load %arg18[%c0_11, %c0_12] : memref<59x64xbf16, #tpu.memory_space<vmem>>, vector<59x64xbf16>
    tpu.vector_store %arg18[%c0_11, %c0_12], %12 {strides = array<i32>} : memref<59x64xbf16, #tpu.memory_space<vmem>>, vector<59x64xbf16>,
    %14 = arith.truncf %11 : vector<36x64xf32> to vector<36x64xbf16>
    %c16 = arith.constant 16 : index
    %c0_13 = arith.constant 0 : index
    %15 = vector.load %arg18[%c16, %c0_13] : memref<59x64xbf16, #tpu.memory_space<vmem>>, vector<36x64xbf16>
    tpu.vector_store %arg18[%c16, %c0_13], %14 {strides = array<i32>} : memref<59x64xbf16, #tpu.memory_space<vmem>>, vector<36x64xbf16>,
    %c9 = arith.constant 9 : index
    %c0_14 = arith.constant 0 : index
    %16 = vector.load %arg18[%c9, %c0_14] : memref<59x64xbf16, #tpu.memory_space<vmem>>, vector<36x64xbf16>
    %c0_15 = arith.constant 0 : index
    %c0_16 = arith.constant 0 : index
    %c0_17 = arith.constant 0 : index
    %17 = vector.load %arg5[%c0_15, %c0_16, %c0_17] : memref<9x64x64xbf16, #tpu.memory_space<vmem>>, vector<1x64x64xbf16>
    %18 = vector.shape_cast %17 : vector<1x64x64xbf16> to vector<64x64xbf16>
    %cst_18 = arith.constant dense<0.000000e+00> : vector<36x64xf32>
    %19 = tpu.matmul %16, %18, %cst_18 {dimension_numbers = #tpu.dot_dimension_numbers<[1], [0], [0], [1], [0, 0, 1, 1], [], []>} : vector<36x64xbf16>, vector<64x64xbf16>, vector<36x64xf32> -> vector<36x64xf32>
    %c10 = arith.constant 10 : index
    %c0_19 = arith.constant 0 : index
    %20 = vector.load %arg18[%c10, %c0_19] : memref<59x64xbf16, #tpu.memory_space<vmem>>, vector<36x64xbf16>
    %c1 = arith.constant 1 : index
    %c0_20 = arith.constant 0 : index
    %c0_21 = arith.constant 0 : index
    %21 = vector.load %arg5[%c1, %c0_20, %c0_21] : memref<9x64x64xbf16, #tpu.memory_space<vmem>>, vector<1x64x64xbf16>
    %22 = vector.shape_cast %21 : vector<1x64x64xbf16> to vector<64x64xbf16>
    %cst_22 = arith.constant dense<0.000000e+00> : vector<36x64xf32>
    %23 = tpu.matmul %20, %22, %cst_22 {dimension_numbers = #tpu.dot_dimension_numbers<[1], [0], [0], [1], [0, 0, 1, 1], [], []>} : vector<36x64xbf16>, vector<64x64xbf16>, vector<36x64xf32> -> vector<36x64xf32>
    %24 = arith.addf %19, %23 : vector<36x64xf32>
    %c11 = arith.constant 11 : index
    %c0_23 = arith.constant 0 : index
    %25 = vector.load %arg18[%c11, %c0_23] : memref<59x64xbf16, #tpu.memory_space<vmem>>, vector<36x64xbf16>
    %c2 = arith.constant 2 : index
    %c0_24 = arith.constant 0 : index
    %c0_25 = arith.constant 0 : index
    %26 = vector.load %arg5[%c2, %c0_24, %c0_25] : memref<9x64x64xbf16, #tpu.memory_space<vmem>>, vector<1x64x64xbf16>
    %27 = vector.shape_cast %26 : vector<1x64x64xbf16> to vector<64x64xbf16>
    %cst_26 = arith.constant dense<0.000000e+00> : vector<36x64xf32>
    %28 = tpu.matmul %25, %27, %cst_26 {dimension_numbers = #tpu.dot_dimension_numbers<[1], [0], [0], [1], [0, 0, 1, 1], [], []>} : vector<36x64xbf16>, vector<64x64xbf16>, vector<36x64xf32> -> vector<36x64xf32>
    %29 = arith.addf %24, %28 : vector<36x64xf32>
    %c15 = arith.constant 15 : index
    %c0_27 = arith.constant 0 : index
    %30 = vector.load %arg18[%c15, %c0_27] : memref<59x64xbf16, #tpu.memory_space<vmem>>, vector<36x64xbf16>
    %c3 = arith.constant 3 : index
    %c0_28 = arith.constant 0 : index
    %c0_29 = arith.constant 0 : index
    %31 = vector.load %arg5[%c3, %c0_28, %c0_29] : memref<9x64x64xbf16, #tpu.memory_space<vmem>>, vector<1x64x64xbf16>
    %32 = vector.shape_cast %31 : vector<1x64x64xbf16> to vector<64x64xbf16>
    %cst_30 = arith.constant dense<0.000000e+00> : vector<36x64xf32>
    %33 = tpu.matmul %30, %32, %cst_30 {dimension_numbers = #tpu.dot_dimension_numbers<[1], [0], [0], [1], [0, 0, 1, 1], [], []>} : vector<36x64xbf16>, vector<64x64xbf16>, vector<36x64xf32> -> vector<36x64xf32>
    %34 = arith.addf %29, %33 : vector<36x64xf32>
    %c16_31 = arith.constant 16 : index
    %c0_32 = arith.constant 0 : index
    %35 = vector.load %arg18[%c16_31, %c0_32] : memref<59x64xbf16, #tpu.memory_space<vmem>>, vector<36x64xbf16>
    %c4 = arith.constant 4 : index
    %c0_33 = arith.constant 0 : index
    %c0_34 = arith.constant 0 : index
    %36 = vector.load %arg5[%c4, %c0_33, %c0_34] : memref<9x64x64xbf16, #tpu.memory_space<vmem>>, vector<1x64x64xbf16>
    %37 = vector.shape_cast %36 : vector<1x64x64xbf16> to vector<64x64xbf16>
    %cst_35 = arith.constant dense<0.000000e+00> : vector<36x64xf32>
    %38 = tpu.matmul %35, %37, %cst_35 {dimension_numbers = #tpu.dot_dimension_numbers<[1], [0], [0], [1], [0, 0, 1, 1], [], []>} : vector<36x64xbf16>, vector<64x64xbf16>, vector<36x64xf32> -> vector<36x64xf32>
    %39 = arith.addf %34, %38 : vector<36x64xf32>
    %c17 = arith.constant 17 : index
    %c0_36 = arith.constant 0 : index
    %40 = vector.load %arg18[%c17, %c0_36] : memref<59x64xbf16, #tpu.memory_space<vmem>>, vector<36x64xbf16>
    %c5 = arith.constant 5 : index
    %c0_37 = arith.constant 0 : index
    %c0_38 = arith.constant 0 : index
    %41 = vector.load %arg5[%c5, %c0_37, %c0_38] : memref<9x64x64xbf16, #tpu.memory_space<vmem>>, vector<1x64x64xbf16>
    %42 = vector.shape_cast %41 : vector<1x64x64xbf16> to vector<64x64xbf16>
    %cst_39 = arith.constant dense<0.000000e+00> : vector<36x64xf32>
    %43 = tpu.matmul %40, %42, %cst_39 {dimension_numbers = #tpu.dot_dimension_numbers<[1], [0], [0], [1], [0, 0, 1, 1], [], []>} : vector<36x64xbf16>, vector<64x64xbf16>, vector<36x64xf32> -> vector<36x64xf32>
    %44 = arith.addf %39, %43 : vector<36x64xf32>
    %c21 = arith.constant 21 : index
    %c0_40 = arith.constant 0 : index
    %45 = vector.load %arg18[%c21, %c0_40] : memref<59x64xbf16, #tpu.memory_space<vmem>>, vector<36x64xbf16>
    %c6 = arith.constant 6 : index
    %c0_41 = arith.constant 0 : index
    %c0_42 = arith.constant 0 : index
    %46 = vector.load %arg5[%c6, %c0_41, %c0_42] : memref<9x64x64xbf16, #tpu.memory_space<vmem>>, vector<1x64x64xbf16>
    %47 = vector.shape_cast %46 : vector<1x64x64xbf16> to vector<64x64xbf16>
    %cst_43 = arith.constant dense<0.000000e+00> : vector<36x64xf32>
    %48 = tpu.matmul %45, %47, %cst_43 {dimension_numbers = #tpu.dot_dimension_numbers<[1], [0], [0], [1], [0, 0, 1, 1], [], []>} : vector<36x64xbf16>, vector<64x64xbf16>, vector<36x64xf32> -> vector<36x64xf32>
    %49 = arith.addf %44, %48 : vector<36x64xf32>
    %c22 = arith.constant 22 : index
    %c0_44 = arith.constant 0 : index
    %50 = vector.load %arg18[%c22, %c0_44] : memref<59x64xbf16, #tpu.memory_space<vmem>>, vector<36x64xbf16>
    %c7 = arith.constant 7 : index
    %c0_45 = arith.constant 0 : index
    %c0_46 = arith.constant 0 : index
    %51 = vector.load %arg5[%c7, %c0_45, %c0_46] : memref<9x64x64xbf16, #tpu.memory_space<vmem>>, vector<1x64x64xbf16>
    %52 = vector.shape_cast %51 : vector<1x64x64xbf16> to vector<64x64xbf16>
    %cst_47 = arith.constant dense<0.000000e+00> : vector<36x64xf32>
    %53 = tpu.matmul %50, %52, %cst_47 {dimension_numbers = #tpu.dot_dimension_numbers<[1], [0], [0], [1], [0, 0, 1, 1], [], []>} : vector<36x64xbf16>, vector<64x64xbf16>, vector<36x64xf32> -> vector<36x64xf32>
    %54 = arith.addf %49, %53 : vector<36x64xf32>
    %c23 = arith.constant 23 : index
    %c0_48 = arith.constant 0 : index
    %55 = vector.load %arg18[%c23, %c0_48] : memref<59x64xbf16, #tpu.memory_space<vmem>>, vector<36x64xbf16>
    %c8 = arith.constant 8 : index
    %c0_49 = arith.constant 0 : index
    %c0_50 = arith.constant 0 : index
    %56 = vector.load %arg5[%c8, %c0_49, %c0_50] : memref<9x64x64xbf16, #tpu.memory_space<vmem>>, vector<1x64x64xbf16>
    %57 = vector.shape_cast %56 : vector<1x64x64xbf16> to vector<64x64xbf16>
    %cst_51 = arith.constant dense<0.000000e+00> : vector<36x64xf32>
    %58 = tpu.matmul %55, %57, %cst_51 {dimension_numbers = #tpu.dot_dimension_numbers<[1], [0], [0], [1], [0, 0, 1, 1], [], []>} : vector<36x64xbf16>, vector<64x64xbf16>, vector<36x64xf32> -> vector<36x64xf32>
    %59 = arith.addf %54, %58 : vector<36x64xf32>
    %c0_52 = arith.constant 0 : index
    %c0_53 = arith.constant 0 : index
    %60 = vector.load %arg7[%c0_52, %c0_53] : memref<4x36xbf16, #tpu.memory_space<vmem>>, vector<4x36xbf16>
    %61 = arith.truncf %59 : vector<36x64xf32> to vector<36x64xbf16>
    %cst_54 = arith.constant dense<0.000000e+00> : vector<4x64xf32>
    %62 = tpu.matmul %60, %61, %cst_54 {dimension_numbers = #tpu.dot_dimension_numbers<[1], [0], [0], [1], [0, 0, 1, 1], [], []>} : vector<4x36xbf16>, vector<36x64xbf16>, vector<4x64xf32> -> vector<4x64xf32>
    %c0_55 = arith.constant 0 : index
    %c0_56 = arith.constant 0 : index
    %63 = vector.load %arg6[%c0_55, %c0_56] : memref<1x64xf32, #tpu.memory_space<vmem>>, vector<1x64xf32>
    %64 = vector.broadcast %63 : vector<1x64xf32> to vector<4x64xf32>
    %65 = arith.addf %62, %64 : vector<4x64xf32>
    %cst_57 = arith.constant 0.000000e+00 : f32
    %66 = vector.broadcast %cst_57 : f32 to vector<4x64xf32>
    %67 = arith.maximumf %65, %66 : vector<4x64xf32>
    %68 = arith.truncf %67 : vector<4x64xf32> to vector<4x64xbf16>
    %c0_58 = arith.constant 0 : index
    %c0_59 = arith.constant 0 : index
    %69 = vector.load %arg8[%c0_58, %c0_59] : memref<64x128xbf16, #tpu.memory_space<vmem>>, vector<64x128xbf16>
    %cst_60 = arith.constant dense<0.000000e+00> : vector<4x128xf32>
    %70 = tpu.matmul %68, %69, %cst_60 {dimension_numbers = #tpu.dot_dimension_numbers<[1], [0], [0], [1], [0, 0, 1, 1], [], []>} : vector<4x64xbf16>, vector<64x128xbf16>, vector<4x128xf32> -> vector<4x128xf32>
    %c0_61 = arith.constant 0 : index
    %c0_62 = arith.constant 0 : index
    %71 = vector.load %arg9[%c0_61, %c0_62] : memref<1x128xf32, #tpu.memory_space<vmem>>, vector<1x128xf32>
    %72 = vector.broadcast %71 : vector<1x128xf32> to vector<4x128xf32>
    %73 = arith.addf %70, %72 : vector<4x128xf32>
    %cst_63 = arith.constant dense<0.000000e+00> : vector<128xf32>
    %74 = vector.multi_reduction <add>, %73, %cst_63 [0] : vector<4x128xf32> to vector<128xf32>
    %75 = vector.shape_cast %74 : vector<128xf32> to vector<1x128xf32>
    %cst_64 = arith.constant 4.000000e+00 : f32
    %76 = vector.broadcast %cst_64 : f32 to vector<1x128xf32>
    %77 = arith.divf %75, %76 : vector<1x128xf32>
    %78 = arith.truncf %77 : vector<1x128xf32> to vector<1x128xbf16>
    %c0_65 = arith.constant 0 : index
    %c0_66 = arith.constant 0 : index
    %79 = vector.load %arg10[%c0_65, %c0_66] : memref<128x32xbf16, #tpu.memory_space<vmem>>, vector<128x32xbf16>
    %cst_67 = arith.constant dense<0.000000e+00> : vector<1x32xf32>
    %80 = tpu.matmul %78, %79, %cst_67 {dimension_numbers = #tpu.dot_dimension_numbers<[1], [0], [0], [1], [0, 0, 1, 1], [], []>} : vector<1x128xbf16>, vector<128x32xbf16>, vector<1x32xf32> -> vector<1x32xf32>
    %c0_68 = arith.constant 0 : index
    %c0_69 = arith.constant 0 : index
    %81 = vector.load %arg11[%c0_68, %c0_69] : memref<1x32xf32, #tpu.memory_space<vmem>>, vector<1x32xf32>
    %82 = arith.addf %80, %81 : vector<1x32xf32>
    %cst_70 = arith.constant 0.000000e+00 : f32
    %83 = vector.broadcast %cst_70 : f32 to vector<1x32xf32>
    %84 = arith.maximumf %82, %83 : vector<1x32xf32>
    %85 = arith.truncf %84 : vector<1x32xf32> to vector<1x32xbf16>
    %c0_71 = arith.constant 0 : index
    %c0_72 = arith.constant 0 : index
    %86 = vector.load %arg12[%c0_71, %c0_72] : memref<32x128xbf16, #tpu.memory_space<vmem>>, vector<32x128xbf16>
    %cst_73 = arith.constant dense<0.000000e+00> : vector<1x128xf32>
    %87 = tpu.matmul %85, %86, %cst_73 {dimension_numbers = #tpu.dot_dimension_numbers<[1], [0], [0], [1], [0, 0, 1, 1], [], []>} : vector<1x32xbf16>, vector<32x128xbf16>, vector<1x128xf32> -> vector<1x128xf32>
    %c0_74 = arith.constant 0 : index
    %c0_75 = arith.constant 0 : index
    %88 = vector.load %arg13[%c0_74, %c0_75] : memref<1x128xf32, #tpu.memory_space<vmem>>, vector<1x128xf32>
    %89 = arith.addf %87, %88 : vector<1x128xf32>
    %90 = arith.negf %89 : vector<1x128xf32>
    %91 = math.exp %90 : vector<1x128xf32>
    %cst_76 = arith.constant 1.000000e+00 : f32
    %92 = vector.broadcast %cst_76 : f32 to vector<1x128xf32>
    %93 = arith.addf %92, %91 : vector<1x128xf32>
    %94 = arith.divf %92, %93 : vector<1x128xf32>
    %c0_77 = arith.constant 0 : index
    %c0_78 = arith.constant 0 : index
    %95 = vector.load %arg14[%c0_77, %c0_78] : memref<4x16xbf16, #tpu.memory_space<vmem>>, vector<4x16xbf16>
    %cst_79 = arith.constant dense<0.000000e+00> : vector<4x64xf32>
    %96 = tpu.matmul %95, %1, %cst_79 {dimension_numbers = #tpu.dot_dimension_numbers<[1], [0], [0], [1], [0, 0, 1, 1], [], []>} : vector<4x16xbf16>, vector<16x64xbf16>, vector<4x64xf32> -> vector<4x64xf32>
    %97 = arith.truncf %96 : vector<4x64xf32> to vector<4x64xbf16>
    %c0_80 = arith.constant 0 : index
    %c0_81 = arith.constant 0 : index
    %98 = vector.load %arg15[%c0_80, %c0_81] : memref<64x128xbf16, #tpu.memory_space<vmem>>, vector<64x128xbf16>
    %cst_82 = arith.constant dense<0.000000e+00> : vector<4x128xf32>
    %99 = tpu.matmul %97, %98, %cst_82 {dimension_numbers = #tpu.dot_dimension_numbers<[1], [0], [0], [1], [0, 0, 1, 1], [], []>} : vector<4x64xbf16>, vector<64x128xbf16>, vector<4x128xf32> -> vector<4x128xf32>
    %c0_83 = arith.constant 0 : index
    %c0_84 = arith.constant 0 : index
    %100 = vector.load %arg16[%c0_83, %c0_84] : memref<1x128xf32, #tpu.memory_space<vmem>>, vector<1x128xf32>
    %101 = vector.broadcast %100 : vector<1x128xf32> to vector<4x128xf32>
    %102 = arith.addf %99, %101 : vector<4x128xf32>
    %103 = vector.broadcast %94 : vector<1x128xf32> to vector<4x128xf32>
    %104 = arith.mulf %73, %103 : vector<4x128xf32>
    %105 = arith.addf %104, %102 : vector<4x128xf32>
    %cst_85 = arith.constant 0.000000e+00 : f32
    %106 = vector.broadcast %cst_85 : f32 to vector<4x128xf32>
    %107 = arith.maximumf %105, %106 : vector<4x128xf32>
    %108 = arith.truncf %107 : vector<4x128xf32> to vector<4x128xbf16>
    %c0_86 = arith.constant 0 : index
    %c0_87 = arith.constant 0 : index
    %c0_88 = arith.constant 0 : index
    %109 = vector.load %arg17[%c0_86, %c0_87, %c0_88] : memref<1x4x128xbf16, #tpu.memory_space<vmem>>, vector<1x4x128xbf16>
    %110 = vector.shape_cast %109 : vector<1x4x128xbf16> to vector<4x128xbf16>
    %111 = vector.shape_cast %108 : vector<4x128xbf16> to vector<1x4x128xbf16>
    tpu.vector_store %arg17[%c0_86, %c0_87, %c0_88], %111 {strides = array<i32>} : memref<1x4x128xbf16, #tpu.memory_space<vmem>>, vector<1x4x128xbf16>,
    return
  }
  func.func @transform_0(%arg0: i32) -> (i32, i32, i32) {
    %c0_i32 = arith.constant 0 : i32
    %c0_i32_0 = arith.constant 0 : i32
    %c0_i32_1 = arith.constant 0 : i32
    return %arg0, %c0_i32, %c0_i32_0 : i32, i32, i32
  }
  func.func @transform_1(%arg0: i32) -> (i32, i32) {
    %c0_i32 = arith.constant 0 : i32
    %c0_i32_0 = arith.constant 0 : i32
    %c0_i32_1 = arith.constant 0 : i32
    return %c0_i32, %c0_i32_0 : i32, i32
  }
  func.func @transform_2(%arg0: i32) -> (i32, i32) {
    %c0_i32 = arith.constant 0 : i32
    %c0_i32_0 = arith.constant 0 : i32
    %c0_i32_1 = arith.constant 0 : i32
    return %c0_i32, %c0_i32_0 : i32, i32
  }
  func.func @transform_3(%arg0: i32) -> (i32, i32) {
    %c0_i32 = arith.constant 0 : i32
    %c0_i32_0 = arith.constant 0 : i32
    %c0_i32_1 = arith.constant 0 : i32
    return %c0_i32, %c0_i32_0 : i32, i32
  }
  func.func @transform_4(%arg0: i32) -> (i32, i32, i32) {
    %c0_i32 = arith.constant 0 : i32
    %c0_i32_0 = arith.constant 0 : i32
    %c0_i32_1 = arith.constant 0 : i32
    %c0_i32_2 = arith.constant 0 : i32
    return %c0_i32, %c0_i32_0, %c0_i32_1 : i32, i32, i32
  }
  func.func @transform_5(%arg0: i32) -> (i32, i32) {
    %c0_i32 = arith.constant 0 : i32
    %c0_i32_0 = arith.constant 0 : i32
    %c0_i32_1 = arith.constant 0 : i32
    return %c0_i32, %c0_i32_0 : i32, i32
  }
  func.func @transform_6(%arg0: i32) -> (i32, i32) {
    %c0_i32 = arith.constant 0 : i32
    %c0_i32_0 = arith.constant 0 : i32
    %c0_i32_1 = arith.constant 0 : i32
    return %c0_i32, %c0_i32_0 : i32, i32
  }
  func.func @transform_7(%arg0: i32) -> (i32, i32) {
    %c0_i32 = arith.constant 0 : i32
    %c0_i32_0 = arith.constant 0 : i32
    %c0_i32_1 = arith.constant 0 : i32
    return %c0_i32, %c0_i32_0 : i32, i32
  }
  func.func @transform_8(%arg0: i32) -> (i32, i32) {
    %c0_i32 = arith.constant 0 : i32
    %c0_i32_0 = arith.constant 0 : i32
    %c0_i32_1 = arith.constant 0 : i32
    return %c0_i32, %c0_i32_0 : i32, i32
  }
  func.func @transform_9(%arg0: i32) -> (i32, i32) {
    %c0_i32 = arith.constant 0 : i32
    %c0_i32_0 = arith.constant 0 : i32
    %c0_i32_1 = arith.constant 0 : i32
    return %c0_i32, %c0_i32_0 : i32, i32
  }
  func.func @transform_10(%arg0: i32) -> (i32, i32) {
    %c0_i32 = arith.constant 0 : i32
    %c0_i32_0 = arith.constant 0 : i32
    %c0_i32_1 = arith.constant 0 : i32
    return %c0_i32, %c0_i32_0 : i32, i32
  }
  func.func @transform_11(%arg0: i32) -> (i32, i32) {
    %c0_i32 = arith.constant 0 : i32
    %c0_i32_0 = arith.constant 0 : i32
    %c0_i32_1 = arith.constant 0 : i32
    return %c0_i32, %c0_i32_0 : i32, i32
  }
  func.func @transform_12(%arg0: i32) -> (i32, i32) {
    %c0_i32 = arith.constant 0 : i32
    %c0_i32_0 = arith.constant 0 : i32
    %c0_i32_1 = arith.constant 0 : i32
    return %c0_i32, %c0_i32_0 : i32, i32
  }
  func.func @transform_13(%arg0: i32) -> (i32, i32) {
    %c0_i32 = arith.constant 0 : i32
    %c0_i32_0 = arith.constant 0 : i32
    %c0_i32_1 = arith.constant 0 : i32
    return %c0_i32, %c0_i32_0 : i32, i32
  }
  func.func @transform_14(%arg0: i32) -> (i32, i32) {
    %c0_i32 = arith.constant 0 : i32
    %c0_i32_0 = arith.constant 0 : i32
    %c0_i32_1 = arith.constant 0 : i32
    return %c0_i32, %c0_i32_0 : i32, i32
  }
  func.func @transform_15(%arg0: i32) -> (i32, i32) {
    %c0_i32 = arith.constant 0 : i32
    %c0_i32_0 = arith.constant 0 : i32
    %c0_i32_1 = arith.constant 0 : i32
    return %c0_i32, %c0_i32_0 : i32, i32
  }
  func.func @transform_16(%arg0: i32) -> (i32, i32, i32) {
    %c0_i32 = arith.constant 0 : i32
    %c0_i32_0 = arith.constant 0 : i32
    %c0_i32_1 = arith.constant 0 : i32
    return %arg0, %c0_i32, %c0_i32_0 : i32, i32, i32
  }
}

module attributes {stable_mosaic.version = 11 : i64} {
  func.func @_head_kernel(%arg0: i32, %arg1: memref<2x1x256xbf16, #tpu.memory_space<vmem>>, %arg2: memref<1x256xf32, #tpu.memory_space<vmem>>, %arg3: memref<1x1xf32, #tpu.memory_space<vmem>>, %arg4: memref<2x256xf32, #tpu.memory_space<vmem>>, %arg5: memref<2x1xf32, #tpu.memory_space<vmem>>) attributes {dimension_semantics = [#tpu.dimension_semantics<arbitrary>], iteration_bounds = array<i64: 1>, scalar_prefetch = 0 : i64, scratch_operands = 0 : i64, tpu.core_type = #tpu.core_type<tc>, window_params = [{pipeline_mode = #tpu.pipeline_mode<synchronous>, transform_indices = @transform_0, window_bounds = array<i64: 2, 1, 256>}, {pipeline_mode = #tpu.pipeline_mode<synchronous>, transform_indices = @transform_1, window_bounds = array<i64: 1, 256>}, {pipeline_mode = #tpu.pipeline_mode<synchronous>, transform_indices = @transform_2, window_bounds = array<i64: 1, 1>}, {pipeline_mode = #tpu.pipeline_mode<synchronous>, transform_indices = @transform_3, window_bounds = array<i64: 2, 256>}, {pipeline_mode = #tpu.pipeline_mode<synchronous>, transform_indices = @transform_4, window_bounds = array<i64: 2, 1>}]} {
    %c0 = arith.constant 0 : index
    %c0_0 = arith.constant 0 : index
    %c0_1 = arith.constant 0 : index
    %0 = vector.load %arg1[%c0, %c0_0, %c0_1] : memref<2x1x256xbf16, #tpu.memory_space<vmem>>, vector<2x1x256xbf16>
    %1 = arith.extf %0 : vector<2x1x256xbf16> to vector<2x1x256xf32>
    %cst = arith.constant dense<0.000000e+00> : vector<2x256xf32>
    %2 = vector.multi_reduction <add>, %1, %cst [1] : vector<2x1x256xf32> to vector<2x256xf32>
    %cst_2 = arith.constant 1.000000e+00 : f32
    %3 = vector.broadcast %cst_2 : f32 to vector<2x256xf32>
    %4 = arith.mulf %2, %3 : vector<2x256xf32>
    %c0_3 = arith.constant 0 : index
    %c0_4 = arith.constant 0 : index
    %5 = vector.load %arg4[%c0_3, %c0_4] : memref<2x256xf32, #tpu.memory_space<vmem>>, vector<2x256xf32>
    tpu.vector_store %arg4[%c0_3, %c0_4], %4 {strides = array<i32>} : memref<2x256xf32, #tpu.memory_space<vmem>>, vector<2x256xf32>,
    %c0_5 = arith.constant 0 : index
    %c0_6 = arith.constant 0 : index
    %6 = vector.load %arg2[%c0_5, %c0_6] : memref<1x256xf32, #tpu.memory_space<vmem>>, vector<1x256xf32>
    %7 = vector.broadcast %6 : vector<1x256xf32> to vector<2x256xf32>
    %8 = arith.mulf %4, %7 : vector<2x256xf32>
    %cst_7 = arith.constant dense<0.000000e+00> : vector<2xf32>
    %9 = vector.multi_reduction <add>, %8, %cst_7 [1] : vector<2x256xf32> to vector<2xf32>
    %10 = vector.shape_cast %9 : vector<2xf32> to vector<2x1xf32>
    %c0_8 = arith.constant 0 : index
    %c0_9 = arith.constant 0 : index
    %11 = vector.load %arg3[%c0_8, %c0_9] : memref<1x1xf32, #tpu.memory_space<vmem>>, vector<1x1xf32>
    %12 = vector.broadcast %11 : vector<1x1xf32> to vector<2x1xf32>
    %13 = arith.addf %10, %12 : vector<2x1xf32>
    %c0_10 = arith.constant 0 : index
    %c0_11 = arith.constant 0 : index
    %14 = vector.load %arg5[%c0_10, %c0_11] : memref<2x1xf32, #tpu.memory_space<vmem>>, vector<2x1xf32>
    tpu.vector_store %arg5[%c0_10, %c0_11], %13 {strides = array<i32>} : memref<2x1xf32, #tpu.memory_space<vmem>>, vector<2x1xf32>,
    return
  }
  func.func @transform_0(%arg0: i32) -> (i32, i32, i32) {
    %c0_i32 = arith.constant 0 : i32
    %c0_i32_0 = arith.constant 0 : i32
    %c0_i32_1 = arith.constant 0 : i32
    %c0_i32_2 = arith.constant 0 : i32
    return %c0_i32, %c0_i32_0, %c0_i32_1 : i32, i32, i32
  }
  func.func @transform_1(%arg0: i32) -> (i32, i32) {
    %c0_i32 = arith.constant 0 : i32
    %c0_i32_0 = arith.constant 0 : i32
    %c0_i32_1 = arith.constant 0 : i32
    return %c0_i32, %c0_i32_0 : i32, i32
  }
  func.func @transform_2(%arg0: i32) -> (i32, i32) {
    %c0_i32 = arith.constant 0 : i32
    %c0_i32_0 = arith.constant 0 : i32
    %c0_i32_1 = arith.constant 0 : i32
    return %c0_i32, %c0_i32_0 : i32, i32
  }
  func.func @transform_3(%arg0: i32) -> (i32, i32) {
    %c0_i32 = arith.constant 0 : i32
    %c0_i32_0 = arith.constant 0 : i32
    %c0_i32_1 = arith.constant 0 : i32
    return %c0_i32, %c0_i32_0 : i32, i32
  }
  func.func @transform_4(%arg0: i32) -> (i32, i32) {
    %c0_i32 = arith.constant 0 : i32
    %c0_i32_0 = arith.constant 0 : i32
    %c0_i32_1 = arith.constant 0 : i32
    return %c0_i32, %c0_i32_0 : i32, i32
  }
}

module attributes {stable_mosaic.version = 11 : i64} {
  func.func @kernel(%arg0: i32, %arg1: memref<1x4x128xbf16, #tpu.memory_space<vmem>>, %arg2: memref<128x128xbf16, #tpu.memory_space<vmem>>, %arg3: memref<1x128xf32, #tpu.memory_space<vmem>>, %arg4: memref<16x4xbf16, #tpu.memory_space<vmem>>, %arg5: memref<9x128x128xbf16, #tpu.memory_space<vmem>>, %arg6: memref<1x128xf32, #tpu.memory_space<vmem>>, %arg7: memref<1x16xbf16, #tpu.memory_space<vmem>>, %arg8: memref<128x256xbf16, #tpu.memory_space<vmem>>, %arg9: memref<1x256xf32, #tpu.memory_space<vmem>>, %arg10: memref<256x64xbf16, #tpu.memory_space<vmem>>, %arg11: memref<1x64xf32, #tpu.memory_space<vmem>>, %arg12: memref<64x256xbf16, #tpu.memory_space<vmem>>, %arg13: memref<1x256xf32, #tpu.memory_space<vmem>>, %arg14: memref<1x4xbf16, #tpu.memory_space<vmem>>, %arg15: memref<128x256xbf16, #tpu.memory_space<vmem>>, %arg16: memref<1x256xf32, #tpu.memory_space<vmem>>, %arg17: memref<1x1x256xbf16, #tpu.memory_space<vmem>>, %arg18: memref<37x128xbf16, #tpu.memory_space<vmem>>) attributes {dimension_semantics = [#tpu.dimension_semantics<parallel>], iteration_bounds = array<i64: 2>, scalar_prefetch = 0 : i64, scratch_operands = 1 : i64, tpu.core_type = #tpu.core_type<tc>, window_params = [{transform_indices = @transform_0, window_bounds = array<i64: 1, 4, 128>}, {pipeline_mode = #tpu.pipeline_mode<synchronous>, transform_indices = @transform_1, window_bounds = array<i64: 128, 128>}, {pipeline_mode = #tpu.pipeline_mode<synchronous>, transform_indices = @transform_2, window_bounds = array<i64: 1, 128>}, {pipeline_mode = #tpu.pipeline_mode<synchronous>, transform_indices = @transform_3, window_bounds = array<i64: 16, 4>}, {pipeline_mode = #tpu.pipeline_mode<synchronous>, transform_indices = @transform_4, window_bounds = array<i64: 9, 128, 128>}, {pipeline_mode = #tpu.pipeline_mode<synchronous>, transform_indices = @transform_5, window_bounds = array<i64: 1, 128>}, {pipeline_mode = #tpu.pipeline_mode<synchronous>, transform_indices = @transform_6, window_bounds = array<i64: 1, 16>}, {pipeline_mode = #tpu.pipeline_mode<synchronous>, transform_indices = @transform_7, window_bounds = array<i64: 128, 256>}, {pipeline_mode = #tpu.pipeline_mode<synchronous>, transform_indices = @transform_8, window_bounds = array<i64: 1, 256>}, {pipeline_mode = #tpu.pipeline_mode<synchronous>, transform_indices = @transform_9, window_bounds = array<i64: 256, 64>}, {pipeline_mode = #tpu.pipeline_mode<synchronous>, transform_indices = @transform_10, window_bounds = array<i64: 1, 64>}, {pipeline_mode = #tpu.pipeline_mode<synchronous>, transform_indices = @transform_11, window_bounds = array<i64: 64, 256>}, {pipeline_mode = #tpu.pipeline_mode<synchronous>, transform_indices = @transform_12, window_bounds = array<i64: 1, 256>}, {pipeline_mode = #tpu.pipeline_mode<synchronous>, transform_indices = @transform_13, window_bounds = array<i64: 1, 4>}, {pipeline_mode = #tpu.pipeline_mode<synchronous>, transform_indices = @transform_14, window_bounds = array<i64: 128, 256>}, {pipeline_mode = #tpu.pipeline_mode<synchronous>, transform_indices = @transform_15, window_bounds = array<i64: 1, 256>}, {transform_indices = @transform_16, window_bounds = array<i64: 1, 1, 256>}]} {
    %c0 = arith.constant 0 : index
    %c0_0 = arith.constant 0 : index
    %c0_1 = arith.constant 0 : index
    %0 = vector.load %arg1[%c0, %c0_0, %c0_1] : memref<1x4x128xbf16, #tpu.memory_space<vmem>>, vector<1x4x128xbf16>
    %1 = vector.shape_cast %0 : vector<1x4x128xbf16> to vector<4x128xbf16>
    %c0_2 = arith.constant 0 : index
    %c0_3 = arith.constant 0 : index
    %2 = vector.load %arg2[%c0_2, %c0_3] : memref<128x128xbf16, #tpu.memory_space<vmem>>, vector<128x128xbf16>
    %cst = arith.constant dense<0.000000e+00> : vector<4x128xf32>
    %3 = tpu.matmul %1, %2, %cst {dimension_numbers = #tpu.dot_dimension_numbers<[1], [0], [0], [1], [0, 0, 1, 1], [], []>} : vector<4x128xbf16>, vector<128x128xbf16>, vector<4x128xf32> -> vector<4x128xf32>
    %c0_4 = arith.constant 0 : index
    %c0_5 = arith.constant 0 : index
    %4 = vector.load %arg3[%c0_4, %c0_5] : memref<1x128xf32, #tpu.memory_space<vmem>>, vector<1x128xf32>
    %5 = vector.broadcast %4 : vector<1x128xf32> to vector<4x128xf32>
    %6 = arith.addf %3, %5 : vector<4x128xf32>
    %cst_6 = arith.constant 0.000000e+00 : f32
    %7 = vector.broadcast %cst_6 : f32 to vector<4x128xf32>
    %8 = arith.maximumf %6, %7 : vector<4x128xf32>
    %9 = arith.truncf %8 : vector<4x128xf32> to vector<4x128xbf16>
    %c0_7 = arith.constant 0 : index
    %c0_8 = arith.constant 0 : index
    %10 = vector.load %arg4[%c0_7, %c0_8] : memref<16x4xbf16, #tpu.memory_space<vmem>>, vector<16x4xbf16>
    %cst_9 = arith.constant dense<0.000000e+00> : vector<16x128xf32>
    %11 = tpu.matmul %10, %9, %cst_9 {dimension_numbers = #tpu.dot_dimension_numbers<[1], [0], [0], [1], [0, 0, 1, 1], [], []>} : vector<16x4xbf16>, vector<4x128xbf16>, vector<16x128xf32> -> vector<16x128xf32>
    %cst_10 = arith.constant 0.000000e+00 : bf16
    %12 = vector.broadcast %cst_10 : bf16 to vector<37x128xbf16>
    %c0_11 = arith.constant 0 : index
    %c0_12 = arith.constant 0 : index
    %13 = vector.load %arg18[%c0_11, %c0_12] : memref<37x128xbf16, #tpu.memory_space<vmem>>, vector<37x128xbf16>
    tpu.vector_store %arg18[%c0_11, %c0_12], %12 {strides = array<i32>} : memref<37x128xbf16, #tpu.memory_space<vmem>>, vector<37x128xbf16>,
    %14 = arith.truncf %11 : vector<16x128xf32> to vector<16x128xbf16>
    %c16 = arith.constant 16 : index
    %c0_13 = arith.constant 0 : index
    %15 = vector.load %arg18[%c16, %c0_13] : memref<37x128xbf16, #tpu.memory_space<vmem>>, vector<16x128xbf16>
    tpu.vector_store %arg18[%c16, %c0_13], %14 {strides = array<i32>} : memref<37x128xbf16, #tpu.memory_space<vmem>>, vector<16x128xbf16>,
    %c11 = arith.constant 11 : index
    %c0_14 = arith.constant 0 : index
    %16 = vector.load %arg18[%c11, %c0_14] : memref<37x128xbf16, #tpu.memory_space<vmem>>, vector<16x128xbf16>
    %c0_15 = arith.constant 0 : index
    %c0_16 = arith.constant 0 : index
    %c0_17 = arith.constant 0 : index
    %17 = vector.load %arg5[%c0_15, %c0_16, %c0_17] : memref<9x128x128xbf16, #tpu.memory_space<vmem>>, vector<1x128x128xbf16>
    %18 = vector.shape_cast %17 : vector<1x128x128xbf16> to vector<128x128xbf16>
    %cst_18 = arith.constant dense<0.000000e+00> : vector<16x128xf32>
    %19 = tpu.matmul %16, %18, %cst_18 {dimension_numbers = #tpu.dot_dimension_numbers<[1], [0], [0], [1], [0, 0, 1, 1], [], []>} : vector<16x128xbf16>, vector<128x128xbf16>, vector<16x128xf32> -> vector<16x128xf32>
    %c12 = arith.constant 12 : index
    %c0_19 = arith.constant 0 : index
    %20 = vector.load %arg18[%c12, %c0_19] : memref<37x128xbf16, #tpu.memory_space<vmem>>, vector<16x128xbf16>
    %c1 = arith.constant 1 : index
    %c0_20 = arith.constant 0 : index
    %c0_21 = arith.constant 0 : index
    %21 = vector.load %arg5[%c1, %c0_20, %c0_21] : memref<9x128x128xbf16, #tpu.memory_space<vmem>>, vector<1x128x128xbf16>
    %22 = vector.shape_cast %21 : vector<1x128x128xbf16> to vector<128x128xbf16>
    %cst_22 = arith.constant dense<0.000000e+00> : vector<16x128xf32>
    %23 = tpu.matmul %20, %22, %cst_22 {dimension_numbers = #tpu.dot_dimension_numbers<[1], [0], [0], [1], [0, 0, 1, 1], [], []>} : vector<16x128xbf16>, vector<128x128xbf16>, vector<16x128xf32> -> vector<16x128xf32>
    %24 = arith.addf %19, %23 : vector<16x128xf32>
    %c13 = arith.constant 13 : index
    %c0_23 = arith.constant 0 : index
    %25 = vector.load %arg18[%c13, %c0_23] : memref<37x128xbf16, #tpu.memory_space<vmem>>, vector<16x128xbf16>
    %c2 = arith.constant 2 : index
    %c0_24 = arith.constant 0 : index
    %c0_25 = arith.constant 0 : index
    %26 = vector.load %arg5[%c2, %c0_24, %c0_25] : memref<9x128x128xbf16, #tpu.memory_space<vmem>>, vector<1x128x128xbf16>
    %27 = vector.shape_cast %26 : vector<1x128x128xbf16> to vector<128x128xbf16>
    %cst_26 = arith.constant dense<0.000000e+00> : vector<16x128xf32>
    %28 = tpu.matmul %25, %27, %cst_26 {dimension_numbers = #tpu.dot_dimension_numbers<[1], [0], [0], [1], [0, 0, 1, 1], [], []>} : vector<16x128xbf16>, vector<128x128xbf16>, vector<16x128xf32> -> vector<16x128xf32>
    %29 = arith.addf %24, %28 : vector<16x128xf32>
    %c15 = arith.constant 15 : index
    %c0_27 = arith.constant 0 : index
    %30 = vector.load %arg18[%c15, %c0_27] : memref<37x128xbf16, #tpu.memory_space<vmem>>, vector<16x128xbf16>
    %c3 = arith.constant 3 : index
    %c0_28 = arith.constant 0 : index
    %c0_29 = arith.constant 0 : index
    %31 = vector.load %arg5[%c3, %c0_28, %c0_29] : memref<9x128x128xbf16, #tpu.memory_space<vmem>>, vector<1x128x128xbf16>
    %32 = vector.shape_cast %31 : vector<1x128x128xbf16> to vector<128x128xbf16>
    %cst_30 = arith.constant dense<0.000000e+00> : vector<16x128xf32>
    %33 = tpu.matmul %30, %32, %cst_30 {dimension_numbers = #tpu.dot_dimension_numbers<[1], [0], [0], [1], [0, 0, 1, 1], [], []>} : vector<16x128xbf16>, vector<128x128xbf16>, vector<16x128xf32> -> vector<16x128xf32>
    %34 = arith.addf %29, %33 : vector<16x128xf32>
    %c16_31 = arith.constant 16 : index
    %c0_32 = arith.constant 0 : index
    %35 = vector.load %arg18[%c16_31, %c0_32] : memref<37x128xbf16, #tpu.memory_space<vmem>>, vector<16x128xbf16>
    %c4 = arith.constant 4 : index
    %c0_33 = arith.constant 0 : index
    %c0_34 = arith.constant 0 : index
    %36 = vector.load %arg5[%c4, %c0_33, %c0_34] : memref<9x128x128xbf16, #tpu.memory_space<vmem>>, vector<1x128x128xbf16>
    %37 = vector.shape_cast %36 : vector<1x128x128xbf16> to vector<128x128xbf16>
    %cst_35 = arith.constant dense<0.000000e+00> : vector<16x128xf32>
    %38 = tpu.matmul %35, %37, %cst_35 {dimension_numbers = #tpu.dot_dimension_numbers<[1], [0], [0], [1], [0, 0, 1, 1], [], []>} : vector<16x128xbf16>, vector<128x128xbf16>, vector<16x128xf32> -> vector<16x128xf32>
    %39 = arith.addf %34, %38 : vector<16x128xf32>
    %c17 = arith.constant 17 : index
    %c0_36 = arith.constant 0 : index
    %40 = vector.load %arg18[%c17, %c0_36] : memref<37x128xbf16, #tpu.memory_space<vmem>>, vector<16x128xbf16>
    %c5 = arith.constant 5 : index
    %c0_37 = arith.constant 0 : index
    %c0_38 = arith.constant 0 : index
    %41 = vector.load %arg5[%c5, %c0_37, %c0_38] : memref<9x128x128xbf16, #tpu.memory_space<vmem>>, vector<1x128x128xbf16>
    %42 = vector.shape_cast %41 : vector<1x128x128xbf16> to vector<128x128xbf16>
    %cst_39 = arith.constant dense<0.000000e+00> : vector<16x128xf32>
    %43 = tpu.matmul %40, %42, %cst_39 {dimension_numbers = #tpu.dot_dimension_numbers<[1], [0], [0], [1], [0, 0, 1, 1], [], []>} : vector<16x128xbf16>, vector<128x128xbf16>, vector<16x128xf32> -> vector<16x128xf32>
    %44 = arith.addf %39, %43 : vector<16x128xf32>
    %c19 = arith.constant 19 : index
    %c0_40 = arith.constant 0 : index
    %45 = vector.load %arg18[%c19, %c0_40] : memref<37x128xbf16, #tpu.memory_space<vmem>>, vector<16x128xbf16>
    %c6 = arith.constant 6 : index
    %c0_41 = arith.constant 0 : index
    %c0_42 = arith.constant 0 : index
    %46 = vector.load %arg5[%c6, %c0_41, %c0_42] : memref<9x128x128xbf16, #tpu.memory_space<vmem>>, vector<1x128x128xbf16>
    %47 = vector.shape_cast %46 : vector<1x128x128xbf16> to vector<128x128xbf16>
    %cst_43 = arith.constant dense<0.000000e+00> : vector<16x128xf32>
    %48 = tpu.matmul %45, %47, %cst_43 {dimension_numbers = #tpu.dot_dimension_numbers<[1], [0], [0], [1], [0, 0, 1, 1], [], []>} : vector<16x128xbf16>, vector<128x128xbf16>, vector<16x128xf32> -> vector<16x128xf32>
    %49 = arith.addf %44, %48 : vector<16x128xf32>
    %c20 = arith.constant 20 : index
    %c0_44 = arith.constant 0 : index
    %50 = vector.load %arg18[%c20, %c0_44] : memref<37x128xbf16, #tpu.memory_space<vmem>>, vector<16x128xbf16>
    %c7 = arith.constant 7 : index
    %c0_45 = arith.constant 0 : index
    %c0_46 = arith.constant 0 : index
    %51 = vector.load %arg5[%c7, %c0_45, %c0_46] : memref<9x128x128xbf16, #tpu.memory_space<vmem>>, vector<1x128x128xbf16>
    %52 = vector.shape_cast %51 : vector<1x128x128xbf16> to vector<128x128xbf16>
    %cst_47 = arith.constant dense<0.000000e+00> : vector<16x128xf32>
    %53 = tpu.matmul %50, %52, %cst_47 {dimension_numbers = #tpu.dot_dimension_numbers<[1], [0], [0], [1], [0, 0, 1, 1], [], []>} : vector<16x128xbf16>, vector<128x128xbf16>, vector<16x128xf32> -> vector<16x128xf32>
    %54 = arith.addf %49, %53 : vector<16x128xf32>
    %c21 = arith.constant 21 : index
    %c0_48 = arith.constant 0 : index
    %55 = vector.load %arg18[%c21, %c0_48] : memref<37x128xbf16, #tpu.memory_space<vmem>>, vector<16x128xbf16>
    %c8 = arith.constant 8 : index
    %c0_49 = arith.constant 0 : index
    %c0_50 = arith.constant 0 : index
    %56 = vector.load %arg5[%c8, %c0_49, %c0_50] : memref<9x128x128xbf16, #tpu.memory_space<vmem>>, vector<1x128x128xbf16>
    %57 = vector.shape_cast %56 : vector<1x128x128xbf16> to vector<128x128xbf16>
    %cst_51 = arith.constant dense<0.000000e+00> : vector<16x128xf32>
    %58 = tpu.matmul %55, %57, %cst_51 {dimension_numbers = #tpu.dot_dimension_numbers<[1], [0], [0], [1], [0, 0, 1, 1], [], []>} : vector<16x128xbf16>, vector<128x128xbf16>, vector<16x128xf32> -> vector<16x128xf32>
    %59 = arith.addf %54, %58 : vector<16x128xf32>
    %c0_52 = arith.constant 0 : index
    %c0_53 = arith.constant 0 : index
    %60 = vector.load %arg7[%c0_52, %c0_53] : memref<1x16xbf16, #tpu.memory_space<vmem>>, vector<1x16xbf16>
    %61 = arith.truncf %59 : vector<16x128xf32> to vector<16x128xbf16>
    %cst_54 = arith.constant dense<0.000000e+00> : vector<1x128xf32>
    %62 = tpu.matmul %60, %61, %cst_54 {dimension_numbers = #tpu.dot_dimension_numbers<[1], [0], [0], [1], [0, 0, 1, 1], [], []>} : vector<1x16xbf16>, vector<16x128xbf16>, vector<1x128xf32> -> vector<1x128xf32>
    %c0_55 = arith.constant 0 : index
    %c0_56 = arith.constant 0 : index
    %63 = vector.load %arg6[%c0_55, %c0_56] : memref<1x128xf32, #tpu.memory_space<vmem>>, vector<1x128xf32>
    %64 = arith.addf %62, %63 : vector<1x128xf32>
    %cst_57 = arith.constant 0.000000e+00 : f32
    %65 = vector.broadcast %cst_57 : f32 to vector<1x128xf32>
    %66 = arith.maximumf %64, %65 : vector<1x128xf32>
    %67 = arith.truncf %66 : vector<1x128xf32> to vector<1x128xbf16>
    %c0_58 = arith.constant 0 : index
    %c0_59 = arith.constant 0 : index
    %68 = vector.load %arg8[%c0_58, %c0_59] : memref<128x256xbf16, #tpu.memory_space<vmem>>, vector<128x256xbf16>
    %cst_60 = arith.constant dense<0.000000e+00> : vector<1x256xf32>
    %69 = tpu.matmul %67, %68, %cst_60 {dimension_numbers = #tpu.dot_dimension_numbers<[1], [0], [0], [1], [0, 0, 1, 1], [], []>} : vector<1x128xbf16>, vector<128x256xbf16>, vector<1x256xf32> -> vector<1x256xf32>
    %c0_61 = arith.constant 0 : index
    %c0_62 = arith.constant 0 : index
    %70 = vector.load %arg9[%c0_61, %c0_62] : memref<1x256xf32, #tpu.memory_space<vmem>>, vector<1x256xf32>
    %71 = arith.addf %69, %70 : vector<1x256xf32>
    %cst_63 = arith.constant dense<0.000000e+00> : vector<256xf32>
    %72 = vector.multi_reduction <add>, %71, %cst_63 [0] : vector<1x256xf32> to vector<256xf32>
    %73 = vector.shape_cast %72 : vector<256xf32> to vector<1x256xf32>
    %cst_64 = arith.constant 1.000000e+00 : f32
    %74 = vector.broadcast %cst_64 : f32 to vector<1x256xf32>
    %75 = arith.divf %73, %74 : vector<1x256xf32>
    %76 = arith.truncf %75 : vector<1x256xf32> to vector<1x256xbf16>
    %c0_65 = arith.constant 0 : index
    %c0_66 = arith.constant 0 : index
    %77 = vector.load %arg10[%c0_65, %c0_66] : memref<256x64xbf16, #tpu.memory_space<vmem>>, vector<256x64xbf16>
    %cst_67 = arith.constant dense<0.000000e+00> : vector<1x64xf32>
    %78 = tpu.matmul %76, %77, %cst_67 {dimension_numbers = #tpu.dot_dimension_numbers<[1], [0], [0], [1], [0, 0, 1, 1], [], []>} : vector<1x256xbf16>, vector<256x64xbf16>, vector<1x64xf32> -> vector<1x64xf32>
    %c0_68 = arith.constant 0 : index
    %c0_69 = arith.constant 0 : index
    %79 = vector.load %arg11[%c0_68, %c0_69] : memref<1x64xf32, #tpu.memory_space<vmem>>, vector<1x64xf32>
    %80 = arith.addf %78, %79 : vector<1x64xf32>
    %cst_70 = arith.constant 0.000000e+00 : f32
    %81 = vector.broadcast %cst_70 : f32 to vector<1x64xf32>
    %82 = arith.maximumf %80, %81 : vector<1x64xf32>
    %83 = arith.truncf %82 : vector<1x64xf32> to vector<1x64xbf16>
    %c0_71 = arith.constant 0 : index
    %c0_72 = arith.constant 0 : index
    %84 = vector.load %arg12[%c0_71, %c0_72] : memref<64x256xbf16, #tpu.memory_space<vmem>>, vector<64x256xbf16>
    %cst_73 = arith.constant dense<0.000000e+00> : vector<1x256xf32>
    %85 = tpu.matmul %83, %84, %cst_73 {dimension_numbers = #tpu.dot_dimension_numbers<[1], [0], [0], [1], [0, 0, 1, 1], [], []>} : vector<1x64xbf16>, vector<64x256xbf16>, vector<1x256xf32> -> vector<1x256xf32>
    %c0_74 = arith.constant 0 : index
    %c0_75 = arith.constant 0 : index
    %86 = vector.load %arg13[%c0_74, %c0_75] : memref<1x256xf32, #tpu.memory_space<vmem>>, vector<1x256xf32>
    %87 = arith.addf %85, %86 : vector<1x256xf32>
    %88 = arith.negf %87 : vector<1x256xf32>
    %89 = math.exp %88 : vector<1x256xf32>
    %cst_76 = arith.constant 1.000000e+00 : f32
    %90 = vector.broadcast %cst_76 : f32 to vector<1x256xf32>
    %91 = arith.addf %90, %89 : vector<1x256xf32>
    %92 = arith.divf %90, %91 : vector<1x256xf32>
    %c0_77 = arith.constant 0 : index
    %c0_78 = arith.constant 0 : index
    %93 = vector.load %arg14[%c0_77, %c0_78] : memref<1x4xbf16, #tpu.memory_space<vmem>>, vector<1x4xbf16>
    %cst_79 = arith.constant dense<0.000000e+00> : vector<1x128xf32>
    %94 = tpu.matmul %93, %1, %cst_79 {dimension_numbers = #tpu.dot_dimension_numbers<[1], [0], [0], [1], [0, 0, 1, 1], [], []>} : vector<1x4xbf16>, vector<4x128xbf16>, vector<1x128xf32> -> vector<1x128xf32>
    %95 = arith.truncf %94 : vector<1x128xf32> to vector<1x128xbf16>
    %c0_80 = arith.constant 0 : index
    %c0_81 = arith.constant 0 : index
    %96 = vector.load %arg15[%c0_80, %c0_81] : memref<128x256xbf16, #tpu.memory_space<vmem>>, vector<128x256xbf16>
    %cst_82 = arith.constant dense<0.000000e+00> : vector<1x256xf32>
    %97 = tpu.matmul %95, %96, %cst_82 {dimension_numbers = #tpu.dot_dimension_numbers<[1], [0], [0], [1], [0, 0, 1, 1], [], []>} : vector<1x128xbf16>, vector<128x256xbf16>, vector<1x256xf32> -> vector<1x256xf32>
    %c0_83 = arith.constant 0 : index
    %c0_84 = arith.constant 0 : index
    %98 = vector.load %arg16[%c0_83, %c0_84] : memref<1x256xf32, #tpu.memory_space<vmem>>, vector<1x256xf32>
    %99 = arith.addf %97, %98 : vector<1x256xf32>
    %100 = arith.mulf %71, %92 : vector<1x256xf32>
    %101 = arith.addf %100, %99 : vector<1x256xf32>
    %cst_85 = arith.constant 0.000000e+00 : f32
    %102 = vector.broadcast %cst_85 : f32 to vector<1x256xf32>
    %103 = arith.maximumf %101, %102 : vector<1x256xf32>
    %104 = arith.truncf %103 : vector<1x256xf32> to vector<1x256xbf16>
    %c0_86 = arith.constant 0 : index
    %c0_87 = arith.constant 0 : index
    %c0_88 = arith.constant 0 : index
    %105 = vector.load %arg17[%c0_86, %c0_87, %c0_88] : memref<1x1x256xbf16, #tpu.memory_space<vmem>>, vector<1x1x256xbf16>
    %106 = vector.shape_cast %105 : vector<1x1x256xbf16> to vector<1x256xbf16>
    %107 = vector.shape_cast %104 : vector<1x256xbf16> to vector<1x1x256xbf16>
    tpu.vector_store %arg17[%c0_86, %c0_87, %c0_88], %107 {strides = array<i32>} : memref<1x1x256xbf16, #tpu.memory_space<vmem>>, vector<1x1x256xbf16>,
    return
  }
  func.func @transform_0(%arg0: i32) -> (i32, i32, i32) {
    %c0_i32 = arith.constant 0 : i32
    %c0_i32_0 = arith.constant 0 : i32
    %c0_i32_1 = arith.constant 0 : i32
    return %arg0, %c0_i32, %c0_i32_0 : i32, i32, i32
  }
  func.func @transform_1(%arg0: i32) -> (i32, i32) {
    %c0_i32 = arith.constant 0 : i32
    %c0_i32_0 = arith.constant 0 : i32
    %c0_i32_1 = arith.constant 0 : i32
    return %c0_i32, %c0_i32_0 : i32, i32
  }
  func.func @transform_2(%arg0: i32) -> (i32, i32) {
    %c0_i32 = arith.constant 0 : i32
    %c0_i32_0 = arith.constant 0 : i32
    %c0_i32_1 = arith.constant 0 : i32
    return %c0_i32, %c0_i32_0 : i32, i32
  }
  func.func @transform_3(%arg0: i32) -> (i32, i32) {
    %c0_i32 = arith.constant 0 : i32
    %c0_i32_0 = arith.constant 0 : i32
    %c0_i32_1 = arith.constant 0 : i32
    return %c0_i32, %c0_i32_0 : i32, i32
  }
  func.func @transform_4(%arg0: i32) -> (i32, i32, i32) {
    %c0_i32 = arith.constant 0 : i32
    %c0_i32_0 = arith.constant 0 : i32
    %c0_i32_1 = arith.constant 0 : i32
    %c0_i32_2 = arith.constant 0 : i32
    return %c0_i32, %c0_i32_0, %c0_i32_1 : i32, i32, i32
  }
  func.func @transform_5(%arg0: i32) -> (i32, i32) {
    %c0_i32 = arith.constant 0 : i32
    %c0_i32_0 = arith.constant 0 : i32
    %c0_i32_1 = arith.constant 0 : i32
    return %c0_i32, %c0_i32_0 : i32, i32
  }
  func.func @transform_6(%arg0: i32) -> (i32, i32) {
    %c0_i32 = arith.constant 0 : i32
    %c0_i32_0 = arith.constant 0 : i32
    %c0_i32_1 = arith.constant 0 : i32
    return %c0_i32, %c0_i32_0 : i32, i32
  }
  func.func @transform_7(%arg0: i32) -> (i32, i32) {
    %c0_i32 = arith.constant 0 : i32
    %c0_i32_0 = arith.constant 0 : i32
    %c0_i32_1 = arith.constant 0 : i32
    return %c0_i32, %c0_i32_0 : i32, i32
  }
  func.func @transform_8(%arg0: i32) -> (i32, i32) {
    %c0_i32 = arith.constant 0 : i32
    %c0_i32_0 = arith.constant 0 : i32
    %c0_i32_1 = arith.constant 0 : i32
    return %c0_i32, %c0_i32_0 : i32, i32
  }
  func.func @transform_9(%arg0: i32) -> (i32, i32) {
    %c0_i32 = arith.constant 0 : i32
    %c0_i32_0 = arith.constant 0 : i32
    %c0_i32_1 = arith.constant 0 : i32
    return %c0_i32, %c0_i32_0 : i32, i32
  }
  func.func @transform_10(%arg0: i32) -> (i32, i32) {
    %c0_i32 = arith.constant 0 : i32
    %c0_i32_0 = arith.constant 0 : i32
    %c0_i32_1 = arith.constant 0 : i32
    return %c0_i32, %c0_i32_0 : i32, i32
  }
  func.func @transform_11(%arg0: i32) -> (i32, i32) {
    %c0_i32 = arith.constant 0 : i32
    %c0_i32_0 = arith.constant 0 : i32
    %c0_i32_1 = arith.constant 0 : i32
    return %c0_i32, %c0_i32_0 : i32, i32
  }
  func.func @transform_12(%arg0: i32) -> (i32, i32) {
    %c0_i32 = arith.constant 0 : i32
    %c0_i32_0 = arith.constant 0 : i32
    %c0_i32_1 = arith.constant 0 : i32
    return %c0_i32, %c0_i32_0 : i32, i32
  }
  func.func @transform_13(%arg0: i32) -> (i32, i32) {
    %c0_i32 = arith.constant 0 : i32
    %c0_i32_0 = arith.constant 0 : i32
    %c0_i32_1 = arith.constant 0 : i32
    return %c0_i32, %c0_i32_0 : i32, i32
  }
  func.func @transform_14(%arg0: i32) -> (i32, i32) {
    %c0_i32 = arith.constant 0 : i32
    %c0_i32_0 = arith.constant 0 : i32
    %c0_i32_1 = arith.constant 0 : i32
    return %c0_i32, %c0_i32_0 : i32, i32
  }
  func.func @transform_15(%arg0: i32) -> (i32, i32) {
    %c0_i32 = arith.constant 0 : i32
    %c0_i32_0 = arith.constant 0 : i32
    %c0_i32_1 = arith.constant 0 : i32
    return %c0_i32, %c0_i32_0 : i32, i32
  }
  func.func @transform_16(%arg0: i32) -> (i32, i32, i32) {
    %c0_i32 = arith.constant 0 : i32
    %c0_i32_0 = arith.constant 0 : i32
    %c0_i32_1 = arith.constant 0 : i32
    return %arg0, %c0_i32, %c0_i32_0 : i32, i32, i32
  }
}

</mosaic_0001>

<bundles_post_ra>
// kernel: se_resnext_forward.10
= control target key start
LH: loop header
LB: loop body
LE: loop exit
PB: predicated region body
PF: predicated region fallthrough
CT: control target
= control target key end

     0   :  { %s2697_s25 = smov 0   ;;  %s3067_s0 = inlined_call_operand.vmem [shape: bf16[2,16,64], index: 0, kind: input, shape index: {}]   ;;  %s3068_s1 = inlined_call_operand.vmem [shape: bf16[64,32], index: 1, kind: input, shape index: {}]   ;;  %s3069_s2 = inlined_call_operand.vmem [shape: f32[1,32], index: 2, kind: input, shape index: {}]   ;;  %s3070_s3 = inlined_call_operand.vmem [shape: bf16[36,16], index: 3, kind: input, shape index: {}]   ;;  %s3071_s4 = inlined_call_operand.vmem [shape: bf16[9,32,32], index: 4, kind: input, shape index: {}]   ;;  %s3072_s5 = inlined_call_operand.vmem [shape: f32[1,32], index: 5, kind: input, shape index: {}]   ;;  %s3073_s6 = inlined_call_operand.vmem [shape: bf16[16,36], index: 6, kind: input, shape index: {}]   ;;  %s3074_s7 = inlined_call_operand.vmem [shape: bf16[32,64], index: 7, kind: input, shape index: {}]   ;;  %s3075_s8 = inlined_call_operand.vmem [shape: f32[1,64], index: 8, kind: input, shape index: {}]   ;;  %s3076_s9 = inlined_call_operand.vmem [shape: bf16[64,16], index: 9, kind: input, shape index: {}]   ;;  %s3077_s10 = inlined_call_operand.vmem [shape: f32[1,16], index: 10, kind: input, shape index: {}]   ;;  %s3078_s11 = inlined_call_operand.vmem [shape: bf16[16,64], index: 11, kind: input, shape index: {}]   ;;  %s3079_s12 = inlined_call_operand.vmem [shape: f32[1,64], index: 12, kind: input, shape index: {}]   ;;  %s3080_s13 = inlined_call_operand.vmem [shape: bf16[2,16,64], index: 13, kind: output, shape index: {}]  }
   0x1 LB: > { %s2033_s26 = sadd.s32 4294967295, %s2622_s25   ;;  %p2037_p0 = scmp.ge.s32.totalorder %s2622_s25, 1  ;;  %s2622_s25 = sphi %s2697_s25, %s23_s25  }
   0x2   : > { %p387_p1 = scmp.lt.s32.totalorder %s2622_s25, 3 }
   0x4   : > { %p388_p2 = pnand %p2037_p0, %p387_p1 }
   0x5   : > { %v2560_v0 = vld [vmem:[%s3068_s1] sm:$0xff] (!%p388_p2)   ;;  %v2624_v1 = vmov (!%p388_p2), 0.0   ;;  %v2561_v2 = vld [vmem:[%s3068_s1 + $0x8] sm:$0xff] (!%p388_p2)   ;;  %vm2625_vm0 = vmmov (!%p388_p2), 0   ;;  %p431_p3 = scmp.lt.s32.totalorder (!%p388_p2), %s2033_s26, 1  ;;  %v2562_v3 = vld [vmem:[%s3068_s1 + $0x10] sm:$0xff] (!%p388_p2)  }
   0x6   : > { %391 = sbr.rel (%p388_p2) target bundleno = 1753 (0x6d9), region = 72  ;;  %2250 = vmatprep.subr.bf16.mxu0 (!%p388_p2), %v2624_v1  ;;  %2262 = vmatprep.subr.bf16.mxu1 (!%p388_p2), %v2624_v1  ;;  %v2563_v4 = vld [vmem:[%s3068_s1 + $0x18] sm:$0xff] (!%p388_p2)   ;;  %vm488_vm1 = vcmask (!%p388_p2), 523264   ;;  %v2042_v6 = vld [vmem:[%s3069_s2] ss:$0 sm:$0xff] (!%p388_p2)  ;;  %vm554_vm2 = vcmask (!%p388_p2), 130048  }
   0x7   : > { %2251 = vmatpush3.bf16.msra.mxu0 (!%p388_p2), %v2560_v0  ;;  %2258 = vmatprep.mubr.msk.bf16.mxu0 (!%p388_p2), %vm2625_vm0, %v2624_v1  ;;  %v2565_v16 = vld [vmem:[%s3070_s3] sm:$0xff] (!%p388_p2)   ;;  %v2566_v17 = vld [vmem:[%s3070_s3 + $0x8] sm:$0xff] (!%p388_p2)   ;;  %v2567_v18 = vld [vmem:[%s3070_s3 + $0x10] ss:$0 sps:$4 sm:$0x33] (!%p388_p2)   ;;  %vm620_vm3 = vcmask (!%p388_p2), 257024  }
   0x8   : > { %2252 = vmatprep.subr.bf16.mxu0 (!%p388_p2), %v2624_v1  ;;  %2264 = vmatprep.mubr.msk.bf16.mxu1 (!%p388_p2), %vm2625_vm0, %v2624_v1  ;;  %v2626_v19 = vmov (!%p388_p2), 0   ;;  %v2568_v20 = vld [vmem:[%s3071_s4 + $0x10] sm:$0xff] (!%p388_p2)   ;;  %vm628_vm4 = vcmask (!%p388_p2), 254976   ;;  %vm629_vm5 = vsmask.f32 (!%p388_p2), 1280  ;;  %v2569_v23 = vld [vmem:[%s3071_s4 + $0x18] sm:$0xff] (!%p388_p2)  }
   0x9   : > { %622 = vst.msk [vmem:[#allocation2 + $0x4] sm:$0xf] (!%p388_p2), %vm620_vm3, %v2626_v19  ;;  %623 = vst.msk [vmem:[#allocation2 + $0x8] sm:$0xf] (!%p388_p2), %vm620_vm3, %v2626_v19  ;;  %v631_v21 = vld [vmem:[#allocation2 + $0x1c] sm:$0x3] (!%p388_p2) }
   0xa   : > { %624 = vst.msk [vmem:[#allocation2 + $0xc] sm:$0xf] (!%p388_p2), %vm620_vm3, %v2626_v19  ;;  %625 = vst.msk [vmem:[#allocation2 + $0x10] sm:$0xf] (!%p388_p2), %vm620_vm3, %v2626_v19  ;;  %v2780_v24 = vld [vmem:[%s3071_s4 + $0x30] sm:$0xff] (!%p388_p2)   ;;  %v2788_v25 = vld [vmem:[%s3071_s4 + $0x38] sm:$0xff] (!%p388_p2)  }
   0xb   : > { %2253 = vmatpush3.bf16.msra.mxu0 (!%p388_p2), %v2561_v2  ;;  %626 = vst.msk [vmem:[#allocation2 + $0x14] sm:$0xf] (!%p388_p2), %vm620_vm3, %v2626_v19  ;;  %627 = vst.msk [vmem:[#allocation2 + $0x18] sm:$0xf] (!%p388_p2), %vm620_vm3, %v2626_v19  ;;  %vm689_vm7 = vcmask (!%p388_p2), 1046528   ;;  %vm707_vm8 = vcmask (!%p388_p2), 261120  }
   0xc   : > { %2254 = vmatprep.subr.bf16.mxu0 (!%p388_p2), %v2624_v1  ;;  %vm630_vm6 = vmand (!%p388_p2), %vm628_vm4, %vm629_vm5  ;;  %v2580_v57 = vld [vmem:[%s3071_s4] sm:$0xff] (!%p388_p2)   ;;  %vm1016_vm9 = vsmask.f32 (!%p388_p2), 4352  ;;  %vm776_vm10 = vsmask.f32 (!%p388_p2), 7424  ;;  %vm1471_vm13 = vcmask (!%p388_p2), 1044480  }
   0xd   : > { %s3082_s26 = smov (!%p431_p3, %s2033_s26), 1  ;;  %v632_v22 = vsel %vm630_vm6, 0, %v631_v21  ;;  %vm886_vm11 = vsmask.f32 6400  ;;  %vm1353_vm12 = vsmask.f32 5376 }
   0xe   : > { %s2173_s16 = sshll.u32 %s3082_s26, 3  ;;  %633 = vst [vmem:[#allocation2 + $0x1c] sm:$0x3] %v632_v22  ;;  %vm1692_vm14 = vcmask 1041408   ;;  %vm1688_vm15 = vcmask 293888  }
   0xf   : > { %s435_s19 = scalar_lea.vmem %s3067_s0, %s2173_s16  ;;  %2255 = vmatpush3.bf16.msra.mxu0 %v2562_v3  ;;  %v2582_v3 = vld [vmem:[%s3071_s4 + $0x8] sm:$0xff]   ;;  %s440_s22 = scalar_lea.vmem %s3080_s13, %s2173_s16 }
  0x10   : > { %v2733_v5 = vld [vmem:[%s435_s19] sm:$0xff]   ;;  %2256 = vmatprep.subr.bf16.mxu0 %v2624_v1 }
  0x11   : > { %v990_v36 = vld [vmem:[#allocation2 + $0x4] sm:$0x8] }
  0x12   : > { %v670_v41 = vld [vmem:[#allocation2 + $0x4] sm:$0xe] }
  0x13   : > { %2257 = vmatpush3.bf16.msra.mxu0 %v2563_v4 }
  0x14   : > { %2324 = vmatprep.subr.bf16.mxu0 %v2624_v1 }
  0x16   : > { %2259 = vmatmul.mubr.msk.bf16.vlgmr.msra.gmra.mrb[0].mxu0 %vm488_vm1, %v2733_v5 }
  0x17   : > { %2328 = vmatprep.mubr.msk.bf16.mxu0 %vm2625_vm0, %v2624_v1  ;;  %2325 = vmatpush3.bf16.msra.mxu0 %v2780_v24 }
  0x18   : > { %2326 = vmatprep.subr.bf16.mxu0 %v2624_v1 }
  0x1b   : > { %2327 = vmatpush3.bf16.msra.mxu0 %v2788_v25 }
  0x1c   : > { %2340 = vmatprep.subr.bf16.mxu0 %v2624_v1 }
  0xe9   : > { %v526_v7 = vpop.f32.mrb[0].mxu0 }
  0xea   : > { %v527_v8 = vadd.f32 %v2042_v6, %v526_v7  ;;  %v2260_v9 = vpop.f32.mrb[1].mxu0  ;;  %v2576_v7 = vld [vmem:[%s3071_s4 + $0x40] sm:$0xff]  }
  0xeb   : > { %v529_v10 = vpop.f32.mrb[2].mxu0 }
  0xec   : > { %v530_v11 = vadd.f32 %v2042_v6, %v529_v10  ;;  %v2261_v12 = vpop.f32.mrb[3].mxu0  ;;  %v533_v13 = vmax.f32 %v527_v8, 0.0 }
  0xee   : > { %v534_v14 = vmax.f32 %v530_v11, 0.0 }
  0xf0   : > { %v535_v15 = vpack.c.bf16 %v534_v14, %v533_v13  ;;  %v2578_v13 = vld [vmem:[%s3071_s4 + $0x48] sm:$0xff]   ;;  %v661_v14 = vld [vmem:[#allocation2 + $0x4] sm:$0xf] }
  0xf2   : > { %2263 = vmatpush3.bf16.msra.mxu1 %v535_v15 }
  0xf3   : > { %2276 = vmatprep.subr.bf16.mxu1 %v2624_v1 }
  0xf5   : > { %2265 = vmatmul.mubr.msk.bf16.vlgmr.msra.gmra.mrb[0].mxu1 %vm554_vm2, %v2565_v16 }
  0xf6   : > { %2268 = vmatprep.mubr.msk.bf16.mxu1 %vm2625_vm0, %v2624_v1  ;;  %2277 = vmatpush3.bf16.msra.mxu1 %v2568_v20 }
  0xf7   : > { %2278 = vmatprep.subr.bf16.mxu1 %v2624_v1 }
  0xfa   : > { %2279 = vmatpush3.bf16.msra.mxu1 %v2569_v23 }
  0xfb   : > { %2292 = vmatprep.subr.bf16.mxu1 %v2624_v1 }
  0xfd   : > { %2269 = vmatmul.mubr.msk.bf16.gmra.mrb[4].mxu1 %vm554_vm2, %v2566_v17 }
  0xfe   : > { %2272 = vmatprep.mubr.msk.bf16.mxu1 %vm2625_vm0, %v2624_v1 }
 0x105   : > { %2273 = vmatmul.mubr.msk.bf16.gmra.mrb[8].mxu1 %vm554_vm2, %v2567_v18 }
 0x106   : > { %2280 = vmatprep.mubr.msk.bf16.mxu1 %vm2625_vm0, %v2624_v1 }
 0x1c8   : > { %v598_v26 = vpop.f32.mrb[0].mxu1 }
 0x1c9   : > { %v2175_v27 = vpack.c.bf16 %v598_v26, %v598_v26  ;;  %v2266_v28 = vpop.f32.mrb[1].mxu1  ;;  %v2581_v26 = vld [vmem:[%s3071_s4 + $0x50] sm:$0xff]  }
 0x1ca   : > { %v601_v29 = vpop.f32.mrb[2].mxu1 }
 0x1cb   : > { %655 = vst.msk [vmem:[#allocation2 + $0x8] sm:$0xf] %vm620_vm3, %v2175_v27  ;;  %v2176_v30 = vpack.c.bf16 %v601_v29, %v601_v29  ;;  %v2267_v31 = vpop.f32.mrb[3].mxu1 }
 0x1cd   : > { %656 = vst.msk [vmem:[#allocation2 + $0xc] sm:$0xf] %vm620_vm3, %v2176_v30  ;;  %v2585_v30 = vld [vmem:[%s3071_s4 + $0x58] sm:$0xff]  }
 0x1d0   : > { %v606_v32 = vpop.f32.mrb[4].mxu1 }
 0x1d1   : > { %v2177_v33 = vpack.c.bf16 %v606_v32, %v606_v32  ;;  %v2270_v34 = vpop.f32.mrb[5].mxu1 }
 0x1d2   : > { %v609_v35 = vpop.f32.mrb[6].mxu1  ;;  %v2794_v37 = vld [vmem:[#allocation2 + $0x8] sm:$0xf]  ;;  %v2588_v34 = vld [vmem:[%s3071_s4 + $0x20] sm:$0xff]  }
 0x1d3   : > { %657 = vst.msk [vmem:[#allocation2 + $0x10] sm:$0xf] %vm620_vm3, %v2177_v33  ;;  %v2178_v38 = vpack.c.bf16 %v609_v35, %v609_v35  ;;  %v2271_v39 = vpop.f32.mrb[7].mxu1  ;;  %v662_v40 = vld [vmem:[#allocation2 + $0x8] sm:$0xf]  ;;  %v2092_v42 = vcombine.low %v990_v36, %v2794_v37 }
 0x1d4   : > { %v2799_v44 = vcombine.low %v670_v41, %v662_v40  ;;  %v992_v46 = vld [vmem:[#allocation2 + $0xc] sm:$0xf]  ;;  %v2072_v20 = vcombine.low %v661_v14, %v662_v40 }
 0x1d5   : > { %658 = vst.msk [vmem:[#allocation2 + $0x14] sm:$0xf] %vm620_vm3, %v2178_v38  ;;  %v1018_v47 = vshrl.u32 %v2092_v42, 16  ;;  %v1021_v48 = vshll.u32 %v2092_v42, 16  ;;  %v2104_v27 = vcombine.low %v2794_v37, %v992_v46  ;;  %v2590_v39 = vld [vmem:[%s3071_s4 + $0x28] sm:$0xff]  }
 0x1d6   : > { %v690_v55 = vrot.slane %v2799_v44, 1  ;;  %v780_v23 = vshll.u32 %v2072_v20, 16  ;;  %v778_v31 = vshrl.u32 %v2072_v20, 16 }
 0x1d7   : > { %v1020_v58 = vrot.slane %v1018_v47, 3  ;;  %v1023_v59 = vrot.slane %v1021_v48, 4 }
 0x1d8   : > { %v614_v43 = vpop.f32.mrb[8].mxu1  ;;  %v782_v29 = vrot.slane %v780_v23, 1 }
 0x1d9   : > { %v2179_v45 = vpack.c.bf16 %v614_v43, %v614_v43  ;;  %v2274_v49 = vpop.f32.mrb[9].mxu1  ;;  %v1024_v4 = vor.u32 %v1023_v59, %v1020_v58  ;;  %v1226_v43 = vshll.u32 %v2104_v27, 16 }
 0x1da   : > { %v2801_v50 = vld [vmem:[#allocation2 + $0xc] sm:$0xff]   ;;  %v617_v52 = vpop.f32.mrb[10].mxu1  ;;  %v783_v33 = vor.u32 %v782_v29, %v778_v31 }
 0x1db   : > { %v2803_v51 = vld [vmem:[#allocation2 + $0x10] sm:$0xf]  ;;  %660 = vst.msk [vmem:[#allocation2 + $0x18] sm:$0x3] %vm628_vm4, %v2179_v45  ;;  %v2275_v54 = vpop.f32.mrb[11].mxu1  ;;  %v691_v56 = vrot.slane %v2801_v50, 1 }
 0x1dc   : > { %v2093_v53 = vcombine.low %v992_v46, %v2803_v51  ;;  %v2813_v63 = vld [vmem:[#allocation2 + $0x14] ss:$0 sps:$4 sm:$0x77]   ;;  %v785_v28 = vshll.u32 %v2801_v50, 16  ;;  %v789_v38 = vshrl.u32 %v2801_v50, 16  ;;  %v1228_v47 = vrot.slane %v1226_v43, 1 }
 0x1dd   : > { %v692_v62 = vsel %vm689_vm7, %v690_v55, %v691_v56  ;;  %v994_v8 = vld [vmem:[#allocation2 + $0x14] sm:$0xf]  ;;  %v693_v9 = vrot.slane %v2813_v63, 1  ;;  %v793_v37 = vshll.u32 %v2813_v63, 16  ;;  %v797_v49 = vshrl.u32 %v2813_v63, 16  ;;  %v2592_v63 = vld [vmem:[%s3071_s4 + $0x68] sm:$0xff]  }
 0x1de   : > { %v1026_v60 = vshrl.u32 %v2093_v53, 16  ;;  %v1029_v61 = vshll.u32 %v2093_v53, 16  ;;  %2281 = vmatmul.mubr.msk.bf16.vlgmr.msra.gmra.mrb[12].mxu1 %vm707_vm8, %v692_v62  ;;  %v787_v32 = vrot.slane %v785_v28, 1  ;;  %v2105_v36 = vcombine.low %v2803_v51, %v994_v8  ;;  %v2593_v59 = vld [vmem:[#allocation2 + $0x14] ss:$0 sps:$4 sm:$0xff]  }
 0x1df   : > { %2284 = vmatprep.mubr.msk.bf16.mxu1 %vm2625_vm0, %v2624_v1  ;;  %2293 = vmatpush3.bf16.msra.mxu1 %v2580_v57  ;;  %v694_v17 = vsel %vm689_vm7, %v691_v56, %v693_v9  ;;  %v795_v41 = vrot.slane %v793_v37, 1  ;;  %v1224_v50 = vshrl.u32 %v2104_v27, 16  ;;  %v888_v52 = vshrl.u32 %v2799_v44, 16  ;;  %v2589_v56 = vld [vmem:[%s3071_s4 + $0x60] sm:$0xff]   ;;  %v2913_v14 = vld [vmem:[#allocation2 + $0x10] sm:$0xff]  }
 0x1e0   : > { %v1028_v0 = vrot.slane %v1026_v60, 3  ;;  %v1031_v2 = vrot.slane %v1029_v61, 4  ;;  %2294 = vmatprep.subr.bf16.mxu1 %v2624_v1  ;;  %v788_v35 = vsel %vm776_vm10, %v783_v33, %v787_v32  ;;  %v791_v40 = vor.u32 %v789_v38, %v787_v32 }
 0x1e1   : > { %v1230_v46 = vshll.u32 %v2105_v36, 16  ;;  %v891_v53 = vshll.u32 %v2799_v44, 16  ;;  %v799_v54 = vor.u32 %v797_v49, %v795_v41  ;;  %v1229_v55 = vor.u32 %v1228_v47, %v1224_v50  ;;  %v2600_v49 = vld [vmem:[%s3071_s4 + $0x80] sm:$0xff]  }
 0x1e2   : > { %v1032_v6 = vor.u32 %v1031_v2, %v1028_v0  ;;  %v2826_v10 = vld [vmem:[#allocation2 + $0x18] sm:$0x3]  ;;  %v796_v45 = vsel %vm776_vm10, %v791_v40, %v795_v41  ;;  %v895_v57 = vrot.slane %v789_v38, 1  ;;  %v896_v58 = vrot.slane %v785_v28, 2  ;;  %v2596_v38 = vld [vmem:[%s3071_s4 + $0x70] sm:$0xff]  }
 0x1e3   : > { %v2094_v12 = vcombine.low %v994_v8, %v2826_v10  ;;  %2295 = vmatpush3.bf16.msra.mxu1 %v2582_v3  ;;  %v2106_v42 = vcombine.low %v2826_v10, %v2826_v10  ;;  %v1232_v48 = vrot.slane %v1230_v46, 1  ;;  %v2591_v51 = vld [vmem:[#allocation2 + $0x18] ss:$0 sps:$4 sm:$0x77]   ;;  %v890_v44 = vrot.slane %v888_v52, 1 }
 0x1e4   : > { %v1033_v11 = vsel %vm1016_vm9, %v1024_v4, %v1032_v6  ;;  %2308 = vmatprep.subr.bf16.mxu1 %v2624_v1  ;;  %v1238_v61 = vshll.u32 %v2591_v51, 16  ;;  %v893_v62 = vrot.slane %v891_v53, 2  ;;  %v897_v0 = vor.u32 %v896_v58, %v895_v57  ;;  %v2924_v23 = vld [vmem:[#allocation2 + $0x18] sm:$0xf]  ;;  %v1462_v46 = vld [vmem:[#allocation2 + $0x8] sm:$0x8] }
 0x1e5   : > { %2329 = vmatmul.mubr.msk.bf16.vlgmr.msra.gmra.mrb[4].mxu0 %vm707_vm8, %v1033_v11  ;;  %v1035_v15 = vshrl.u32 %v2094_v12, 16  ;;  %v1038_v16 = vshll.u32 %v2094_v12, 16  ;;  %v1233_v60 = vsel %vm776_vm10, %v1229_v55, %v1232_v48  ;;  %v900_v2 = vshrl.u32 %v2593_v59, 16  ;;  %v1328_v12 = vld [vmem:[#allocation2 + $0xc] sm:$0xf] }
 0x1e6   : > { %2341 = vmatpush3.bf16.msra.mxu0 %v2576_v7  ;;  %2344 = vmatprep.mubr.msk.bf16.mxu0 %vm2625_vm0, %v2624_v1  ;;  %v903_v3 = vshll.u32 %v2593_v59, 16  ;;  %v1234_v4 = vshrl.u32 %v2105_v36, 16  ;;  %v894_v7 = vor.u32 %v893_v62, %v890_v44  ;;  %v1366_v20 = vshll.u32 %v2913_v14, 16  ;;  %v1559_v53 = vld [vmem:[#allocation2 + $0x1c] sm:$0x3] }
 0x1e7   : > { %2342 = vmatprep.subr.bf16.mxu0 %v2624_v1  ;;  %2285 = vmatmul.mubr.msk.bf16.gmra.mrb[16].mxu1 %vm707_vm8, %v694_v17  ;;  %v1037_v18 = vrot.slane %v1035_v15, 3  ;;  %v1040_v19 = vrot.slane %v1038_v16, 4  ;;  %v902_v10 = vrot.slane %v900_v2, 1  ;;  %v1327_v15 = vld [vmem:[#allocation2 + $0x8] sm:$0xc]  ;;  %v1473_v47 = vrot.slane %v2913_v14, 3 }
 0x1e8   : > { %2288 = vmatprep.mubr.msk.bf16.mxu1 %vm2625_vm0, %v2624_v1  ;;  %v1236_v8 = vor.u32 %v1234_v4, %v1232_v48  ;;  %v905_v11 = vrot.slane %v903_v3, 2  ;;  %v2126_v16 = vcombine.low %v1327_v15, %v1328_v12  ;;  %v1368_v31 = vrot.slane %v1366_v20, 3 }
 0x1e9   : > { %v2842_v21 = vor.u32 %v1040_v19, %v1037_v18  ;;  %v1242_v18 = vshrl.u32 %v2591_v51, 16  ;;  %v1363_v19 = vshrl.u32 %v2913_v14, 16  ;;  %v1577_v57 = vrot.slane %v1366_v20, 4 }
 0x1ea   : > { %2343 = vmatpush3.bf16.msra.mxu0 %v2578_v13  ;;  %v906_v17 = vor.u32 %v905_v11, %v902_v10  ;;  %v1358_v28 = vshll.u32 %v2126_v16, 16  ;;  %v2148_v58 = vcombine.low %v2924_v23, %v1559_v53 }
 0x1eb   : > { %2356 = vmatprep.subr.bf16.mxu0 %v2624_v1  ;;  %v2847_v22 = vsel %vm1016_vm9, %v1032_v6, %v2842_v21  ;;  %v1240_v6 = vrot.slane %v1238_v61, 1 }
 0x1ec   : > { %v907_v29 = vsel %vm886_vm11, %v897_v0, %v906_v17  ;;  %v1360_v33 = vrot.slane %v1358_v28, 3  ;;  %v1581_v44 = vshrl.u32 %v2148_v58, 16  ;;  %v1584_v62 = vshll.u32 %v2148_v58, 16  ;;  %v2157_v58 = vld [vmem:[%s3075_s8] ss:$0 sm:$0xff] }
 0x1ed   : > { %v1241_v13 = vsel %vm776_vm10, %v1236_v8, %v1240_v6 }
 0x1ee   : > { %v1583_v2 = vrot.slane %v1581_v44, 3  ;;  %v1586_v3 = vrot.slane %v1584_v62, 4 }
 0x1ef   : > { %2289 = vmatmul.mubr.msk.bf16.gmra.mrb[20].mxu1 %vm707_vm8, %v693_v9  ;;  %v898_v9 = vsel %vm886_vm11, %v894_v7, %v897_v0 }
 0x1f0   : > { %2296 = vmatprep.mubr.msk.bf16.mxu1 %vm2625_vm0, %v2624_v1  ;;  %v1587_v4 = vor.u32 %v1586_v3, %v1583_v2 }
 0x1f1   : > { %2345 = vmatmul.mubr.msk.bf16.vlgmr.msra.gmra.mrb[4].mxu0 %vm707_vm8, %v2104_v27  ;;  %v1355_v27 = vshrl.u32 %v2126_v16, 16 }
 0x1f2   : > { %2357 = vmatpush3.bf16.msra.mxu0 %v2581_v26  ;;  %2348 = vmatprep.mubr.msk.bf16.mxu0 %vm2625_vm0, %v2624_v1  ;;  %v1332_v26 = vld [vmem:[#allocation2 + $0x1c] sm:$0x1] }
 0x1f3   : > { %2358 = vmatprep.subr.bf16.mxu0 %v2624_v1  ;;  %v2128_v32 = vcombine.low %v2924_v23, %v1332_v26 }
 0x1f5   : > { %v1475_v51 = vrot.slane %v2128_v32, 3 }
 0x1f6   : > { %2359 = vmatpush3.bf16.msra.mxu0 %v2585_v30  ;;  %v1244_v30 = vor.u32 %v1242_v18, %v1240_v6 }
 0x1f7   : > { %2372 = vmatprep.subr.bf16.mxu0 %v2624_v1  ;;  %2297 = vmatmul.mubr.msk.bf16.vlgmr.msra.gmra.mrb[12].mxu1 %vm707_vm8, %v788_v35  ;;  %v1372_v35 = vshrl.u32 %v2128_v32, 16  ;;  %v1476_v52 = vsel %vm1471_vm13, %v1473_v47, %v1475_v51 }
 0x1f8   : > { %2300 = vmatprep.mubr.msk.bf16.mxu1 %vm2625_vm0, %v2624_v1  ;;  %2309 = vmatpush3.bf16.msra.mxu1 %v2588_v34 }
 0x1f9   : > { %2349 = vmatmul.mubr.msk.bf16.gmra.mrb[8].mxu0 %vm707_vm8, %v2105_v36  ;;  %2310 = vmatprep.subr.bf16.mxu1 %v2624_v1  ;;  %v1375_v36 = vshll.u32 %v2128_v32, 16  ;;  %v1374_v40 = vrot.slane %v1372_v35, 2 }
 0x1fa   : > { %2352 = vmatprep.mubr.msk.bf16.mxu0 %vm2625_vm0, %v2624_v1 }
 0x1fb   : > { %v1377_v41 = vrot.slane %v1375_v36, 3 }
 0x1fc   : > { %2311 = vmatpush3.bf16.msra.mxu1 %v2590_v39 }
 0x1fd   : > { %2456 = vmatprep.subr.bf16.mxu1 %v2624_v1  ;;  %v1378_v43 = vor.u32 %v1377_v41, %v1374_v40 }
 0x1ff   : > { %2301 = vmatmul.mubr.msk.bf16.gmra.mrb[16].mxu1 %vm707_vm8, %v796_v45 }
 0x200   : > { %2304 = vmatprep.mubr.msk.bf16.mxu1 %vm2625_vm0, %v2624_v1 }
 0x201   : > { %2353 = vmatmul.mubr.msk.bf16.gmra.mrb[12].mxu0 %vm707_vm8, %v2106_v42  ;;  %v2598_v42 = vld [vmem:[%s3071_s4 + $0x78] sm:$0xff]  }
 0x202   : > { %2360 = vmatprep.mubr.msk.bf16.mxu0 %vm2625_vm0, %v2624_v1 }
 0x207   : > { %2305 = vmatmul.mubr.msk.bf16.gmra.mrb[20].mxu1 %vm707_vm8, %v799_v54 }
 0x208   : > { %2312 = vmatprep.mubr.msk.bf16.mxu1 %vm2625_vm0, %v2624_v1 }
 0x209   : > { %2361 = vmatmul.mubr.msk.bf16.vlgmr.msra.gmra.mrb[4].mxu0 %vm707_vm8, %v1233_v60 }
 0x20a   : > { %2373 = vmatpush3.bf16.msra.mxu0 %v2589_v56  ;;  %2364 = vmatprep.mubr.msk.bf16.mxu0 %vm2625_vm0, %v2624_v1  ;;  %v1576_v56 = vrot.slane %v1363_v19, 3 }
 0x20b   : > { %2374 = vmatprep.subr.bf16.mxu0 %v2624_v1 }
 0x20c   : > { %v1578_v61 = vor.u32 %v1577_v57, %v1576_v56  ;;  %v2608_v56 = vld [vmem:[%s3076_s9 + $0x10] sm:$0xff]   ;;  %v2609_v57 = vld [vmem:[%s3076_s9 + $0x18] sm:$0xff]  }
 0x20e   : > { %2375 = vmatpush3.bf16.msra.mxu0 %v2592_v63  ;;  %v1588_v6 = vsel %vm1016_vm9, %v1578_v61, %v1587_v4 }
 0x20f   : > { %2388 = vmatprep.subr.bf16.mxu0 %v2624_v1  ;;  %2313 = vmatmul.mubr.msk.bf16.vlgmr.msra.gmra.mrb[12].mxu1 %vm707_vm8, %v898_v9 }
 0x210   : > { %2316 = vmatprep.mubr.msk.bf16.mxu1 %vm2625_vm0, %v2624_v1  ;;  %2458 = vmatpush3.bf16.msra.mxu1 %v2780_v24  ;;  %v1365_v24 = vrot.slane %v1363_v19, 2 }
 0x211   : > { %2365 = vmatmul.mubr.msk.bf16.gmra.mrb[8].mxu0 %vm707_vm8, %v1241_v13  ;;  %2457 = vmatprep.subr.bf16.mxu1 %v2624_v1 }
 0x212   : > { %2368 = vmatprep.mubr.msk.bf16.mxu0 %vm2625_vm0, %v2624_v1  ;;  %v1369_v34 = vor.u32 %v1368_v31, %v1365_v24 }
 0x214   : > { %2459 = vmatpush3.bf16.msra.mxu1 %v2788_v25  ;;  %v1357_v25 = vrot.slane %v1355_v27, 2  ;;  %v1379_v45 = vsel %vm1353_vm12, %v1369_v34, %v1378_v43 }
 0x215   : > { %2420 = vmatprep.subr.bf16.mxu1 %v2624_v1 }
 0x216   : > { %v1361_v37 = vor.u32 %v1360_v33, %v1357_v25 }
 0x217   : > { %2317 = vmatmul.mubr.msk.bf16.gmra.mrb[16].mxu1 %vm707_vm8, %v907_v29 }
 0x218   : > { %2320 = vmatprep.mubr.msk.bf16.mxu1 %vm2625_vm0, %v2624_v1  ;;  %v1370_v39 = vsel %vm1353_vm12, %v1361_v37, %v1369_v34 }
 0x219   : > { %2369 = vmatmul.mubr.msk.bf16.gmra.mrb[12].mxu0 %vm707_vm8, %v1244_v30 }
 0x21a   : > { %2376 = vmatprep.mubr.msk.bf16.mxu0 %vm2625_vm0, %v2624_v1 }
 0x21f   : > { %2321 = vmatmul.mubr.msk.bf16.gmra.mrb[20].mxu1 %vm707_vm8, %v906_v17 }
 0x220   : > { %2332 = vmatprep.mubr.msk.bf16.mxu1 %vm2625_vm0, %v2624_v1 }
 0x221   : > { %2377 = vmatmul.mubr.msk.bf16.vlgmr.msra.gmra.mrb[4].mxu0 %vm707_vm8, %v1370_v39 }
 0x222   : > { %2389 = vmatpush3.bf16.msra.mxu0 %v2596_v38  ;;  %2380 = vmatprep.mubr.msk.bf16.mxu0 %vm2625_vm0, %v2624_v1 }
 0x223   : > { %2390 = vmatprep.subr.bf16.mxu0 %v2624_v1 }
 0x226   : > { %2391 = vmatpush3.bf16.msra.mxu0 %v2598_v42  ;;  %v2603_v42 = vld [vmem:[%s3073_s6] sm:$0xff]  }
 0x227   : > { %2404 = vmatprep.subr.bf16.mxu0 %v2624_v1  ;;  %2333 = vmatmul.mubr.msk.bf16.vlgmr.msra.gmra.mrb[16].mxu1 %vm707_vm8, %v2847_v22  ;;  %v2138_v22 = vcombine.low %v1462_v46, %v1328_v12  ;;  %v2154_v46 = vld [vmem:[%s3072_s5] ss:$0 sm:$0xff] }
 0x228   : > { %2336 = vmatprep.mubr.msk.bf16.mxu1 %vm2625_vm0, %v2624_v1 }
 0x229   : > { %2381 = vmatmul.mubr.msk.bf16.gmra.mrb[8].mxu0 %vm707_vm8, %v1379_v45  ;;  %v1472_v48 = vrot.slane %v2138_v22, 3  ;;  %v1569_v54 = vshrl.u32 %v2138_v22, 16  ;;  %v1572_v55 = vshll.u32 %v2138_v22, 16  ;;  %v2605_v45 = vld [vmem:[%s3074_s7 + $0x8] sm:$0xff]  }
 0x22a   : > { %2384 = vmatprep.mubr.msk.bf16.mxu0 %vm2625_vm0, %v2624_v1 }
 0x22b   : > { %v1474_v50 = vsel %vm1471_vm13, %v1472_v48, %v1473_v47  ;;  %v1571_v59 = vrot.slane %v1569_v54, 3  ;;  %v1574_v60 = vrot.slane %v1572_v55, 4  ;;  %v2606_v54 = vld [vmem:[%s3076_s9] sm:$0xff]   ;;  %v2607_v55 = vld [vmem:[%s3076_s9 + $0x8] sm:$0xff]  }
 0x22d   : > { %v1575_v63 = vor.u32 %v1574_v60, %v1571_v59 }
 0x22f   : > { %2337 = vmatmul.mubr.msk.bf16.gmra.mrb[20].mxu1 %vm707_vm8, %v2842_v21  ;;  %v2601_v21 = vld [vmem:[%s3071_s4 + $0x88] sm:$0xff]   ;;  %v1579_v0 = vsel %vm1016_vm9, %v1575_v63, %v1578_v61 }
 0x230   : > { %2426 = vmatprep.mubr.msk.bf16.mxu1 %vm2625_vm0, %v2624_v1 }
 0x231   : > { %2385 = vmatmul.mubr.msk.bf16.gmra.mrb[12].mxu0 %vm707_vm8, %v1378_v43  ;;  %v2604_v43 = vld [vmem:[%s3074_s7] sm:$0xff]  }
 0x232   : > { %2392 = vmatprep.mubr.msk.bf16.mxu0 %vm2625_vm0, %v2624_v1 }
 0x239   : > { %2393 = vmatmul.mubr.msk.bf16.vlgmr.msra.gmra.mrb[4].mxu0 %vm707_vm8, %v1474_v50 }
 0x23a   : > { %2405 = vmatpush3.bf16.msra.mxu0 %v2600_v49  ;;  %2396 = vmatprep.mubr.msk.bf16.mxu0 %vm2625_vm0, %v2624_v1 }
 0x23b   : > { %2406 = vmatprep.subr.bf16.mxu0 %v2624_v1 }
 0x23e   : > { %2407 = vmatpush3.bf16.msra.mxu0 %v2601_v21 }
 0x241   : > { %2397 = vmatmul.mubr.msk.bf16.gmra.mrb[8].mxu0 %vm707_vm8, %v1476_v52 }
 0x242   : > { %2400 = vmatprep.mubr.msk.bf16.mxu0 %vm2625_vm0, %v2624_v1 }
 0x249   : > { %2401 = vmatmul.mubr.msk.bf16.gmra.mrb[12].mxu0 %vm707_vm8, %v1475_v51 }
 0x24a   : > { %2408 = vmatprep.mubr.msk.bf16.mxu0 %vm2625_vm0, %v2624_v1 }
 0x251   : > { %2409 = vmatmul.mubr.msk.bf16.vlgmr.msra.gmra.mrb[4].mxu0 %vm707_vm8, %v1579_v0 }
 0x252   : > { %2412 = vmatprep.mubr.msk.bf16.mxu0 %vm2625_vm0, %v2624_v1 }
 0x259   : > { %2413 = vmatmul.mubr.msk.bf16.gmra.mrb[8].mxu0 %vm707_vm8, %v1588_v6 }
 0x25a   : > { %2416 = vmatprep.mubr.msk.bf16.mxu0 %vm2625_vm0, %v2624_v1 }
 0x261   : > { %2417 = vmatmul.mubr.msk.bf16.gmra.mrb[12].mxu0 %vm707_vm8, %v1587_v4 }
 0x2e2   : > { %v963_v7 = vpop.f32.mrb[12].mxu1 }
 0x2e3   : > { %v2314_v8 = vpop.f32.mrb[13].mxu1 }
 0x2e4   : > { %v966_v9 = vpop.f32.mrb[14].mxu1 }
 0x2e5   : > { %v2315_v10 = vpop.f32.mrb[15].mxu1 }
 0x2fa   : > { %v1106_v11 = vpop.f32.mrb[16].mxu1 }
 0x2fb   : > { %v2334_v12 = vpop.f32.mrb[17].mxu1 }
 0x2fc   : > { %v1109_v13 = vpop.f32.mrb[18].mxu1 }
 0x2fd   : > { %v2335_v14 = vpop.f32.mrb[19].mxu1 }
 0x2fe   : > { %v1827_v14 = vld [vmem:[%s3077_s10] sm:$0x1] }
 0x302   : > { %v1114_v15 = vpop.f32.mrb[20].mxu1 }
 0x303   : > { %v2338_v16 = vpop.f32.mrb[21].mxu1 }
 0x304   : > { %v1117_v17 = vpop.f32.mrb[22].mxu1 }
 0x305   : > { %v2339_v18 = vpop.f32.mrb[23].mxu1 }
 0x324   : > { %v1644_v19 = vpop.f32.mrb[4].mxu0 }
 0x325   : > { %v2460_v20 = vadd.f32 %v1644_v19, %v963_v7  ;;  %v2410_v23 = vpop.f32.mrb[5].mxu0 }
 0x326   : > { %v1647_v26 = vpop.f32.mrb[6].mxu0 }
 0x327   : > { %v2461_v27 = vadd.f32 %v1647_v26, %v966_v9  ;;  %v2411_v28 = vpop.f32.mrb[7].mxu0 }
 0x329   : > { %v1673_v29 = vpack.c.bf16 %v2461_v27, %v2460_v20 }
 0x32b   : > { %2421 = vmatpush3.bf16.msra.mxu1 %v1673_v29 }
 0x32c   : > { %v1652_v30 = vpop.f32.mrb[8].mxu0  ;;  %2422 = vmatprep.subr.bf16.mxu1 %v2624_v1 }
 0x32d   : > { %v2462_v24 = vadd.f32 %v1652_v30, %v1106_v11  ;;  %v2414_v31 = vpop.f32.mrb[9].mxu0 }
 0x32e   : > { %v1655_v32 = vpop.f32.mrb[10].mxu0 }
 0x32f   : > { %v2463_v25 = vadd.f32 %v1655_v32, %v1109_v13  ;;  %v2415_v33 = vpop.f32.mrb[11].mxu0  ;;  %v2610_v13 = vld [vmem:[%s3078_s11] sm:$0xff]  }
 0x331   : > { %v1674_v34 = vpack.c.bf16 %v2463_v25, %v2462_v24  ;;  %v1957_v25 = vlaneseq }
 0x333   : > { %2423 = vmatpush3.bf16.msra.mxu1 %v1674_v34  ;;  %v1958_v33 = vshrl.u32 %v1957_v25, 7 }
 0x334   : > { %v1660_v35 = vpop.f32.mrb[12].mxu0  ;;  %2424 = vmatprep.subr.bf16.mxu1 %v2624_v1 }
 0x335   : > { %v2464_v36 = vadd.f32 %v1660_v35, %v1114_v15  ;;  %v2418_v37 = vpop.f32.mrb[13].mxu0  ;;  %v1959_v34 = vsub.s32 0, %v1958_v33 }
 0x336   : > { %v1663_v38 = vpop.f32.mrb[14].mxu0  ;;  %v1956_v37 = vunpack.c.h.bf16 %v2733_v5 }
 0x337   : > { %v1675_v39 = vpack.c.bf16 %v2464_v36, %v2464_v36  ;;  %v2419_v40 = vpop.f32.mrb[15].mxu0  ;;  %v1955_v36 = vunpack.c.l.bf16 %v2733_v5 }
 0x339   : > { %v1694_v41 = vsel %vm1692_vm14, %v1675_v39, 0 }
 0x33a   : > { %2425 = vmatpush3.bf16.msra.mxu1 %v1694_v41 }
 0x33b   : > { %2430 = vmatprep.subr.bf16.mxu1 %v2624_v1 }
 0x33d   : > { %2427 = vmatmul.mubr.msk.bf16.vlgmr.msra.gmra.mrb[24].mxu1 %vm1688_vm15, %v2603_v42 }
 0x33e   : > { %2434 = vmatprep.mubr.msk.bf16.mxu1 %vm2625_vm0, %v2624_v1  ;;  %2431 = vmatpush3.bf16.msra.mxu1 %v2604_v43 }
 0x33f   : > { %2432 = vmatprep.subr.bf16.mxu1 %v2624_v1 }
 0x342   : > { %2433 = vmatpush3.bf16.msra.mxu1 %v2605_v45 }
 0x343   : > { %2438 = vmatprep.subr.bf16.mxu1 %v2624_v1 }
 0x410   : > { %v1730_v22 = vpop.f32.mrb[24].mxu1 }
 0x411   : > { %v1731_v47 = vadd.f32 %v2154_v46, %v1730_v22  ;;  %v2428_v48 = vpop.f32.mrb[25].mxu1 }
 0x412   : > { %v1733_v49 = vpop.f32.mrb[26].mxu1 }
 0x413   : > { %v1734_v50 = vadd.f32 %v2154_v46, %v1733_v49  ;;  %v2429_v21 = vpop.f32.mrb[27].mxu1  ;;  %v1737_v51 = vmax.f32 %v1731_v47, 0.0 }
 0x415   : > { %v1738_v52 = vmax.f32 %v1734_v50, 0.0 }
 0x417   : > { %v1739_v53 = vpack.c.bf16 %v1738_v52, %v1737_v51 }
 0x419   : > { %2435 = vmatmul.mubr.msk.bf16.vlgmr.msra.gmra.mrb[28].mxu1 %vm707_vm8, %v1739_v53 }
 0x41a   : > { %2446 = vmatprep.mubr.msk.bf16.mxu1 %vm2625_vm0, %v2624_v1  ;;  %2439 = vmatpush3.bf16.msra.mxu1 %v2606_v54 }
 0x41b   : > { %2440 = vmatprep.subr.bf16.mxu1 %v2624_v1 }
 0x41e   : > { %2441 = vmatpush3.bf16.msra.mxu1 %v2607_v55 }
 0x41f   : > { %2442 = vmatprep.subr.bf16.mxu1 %v2624_v1 }
 0x422   : > { %2443 = vmatpush3.bf16.msra.mxu1 %v2608_v56 }
 0x423   : > { %2444 = vmatprep.subr.bf16.mxu1 %v2624_v1 }
 0x426   : > { %2445 = vmatpush3.bf16.msra.mxu1 %v2609_v57 }
 0x427   : > { %2450 = vmatprep.subr.bf16.mxu1 %v2624_v1 }
 0x4ec   : > { %v1800_v59 = vpop.f32.mrb[28].mxu1 }
 0x4ed   : > { %v1801_v60 = vadd.f32 %v2157_v58, %v1800_v59  ;;  %v2436_v61 = vpop.f32.mrb[29].mxu1 }
 0x4ee   : > { %v1803_v44 = vpop.f32.mrb[30].mxu1 }
 0x4ef   : > { %v1804_v62 = vadd.f32 %v2157_v58, %v1803_v44  ;;  %v2437_v63 = vpop.f32.mrb[31].mxu1  ;;  %v1807_v0 = vsel %vm488_vm1, %v1801_v60, 0.0 }
 0x4f1   : > { %v1808_v2 = vsel %vm488_vm1, %v1804_v62, 0.0 }
 0x4f2   : > { %v1809_v3 = vadd.f32 %v1808_v2, %v1807_v0 }
 0x4f4   : > { %v1810_v4 = vrot.slane %v1809_v3, 4 }
 0x4f6   : > { %v1811_v6 = vadd.f32 %v1810_v4, %v1809_v3 }
 0x4f8   : > { %v1812_v7 = vrot.slane %v1811_v6, 2 }
 0x4fa   : > { %v1813_v8 = vadd.f32 %v1812_v7, %v1811_v6 }
 0x4fc   : > { %v1814_v9 = vrot.slane %v1813_v8, 1 }
 0x4fe   : > { %v1815_v10 = vadd.f32 %v1814_v9, %v1813_v8 }
 0x500   : > { %v1817_v11 = vmul.f32 0.0625, %v1815_v10 }
 0x502   : > { %v1818_v12 = vpack.c.bf16 %v1817_v11, %v1817_v11 }
 0x504   : > { %2447 = vmatmul.mubr.msk.bf16.vlgmr.msra.gmra.mrb[32].mxu1 %vm488_vm1, %v1818_v12 }
 0x505   : > { %2452 = vmatprep.mubr.msk.bf16.mxu1 %vm2625_vm0, %v2624_v1  ;;  %2451 = vmatpush3.bf16.msra.mxu1 %v2610_v13  ;;  %v1899_v1 = vld [vmem:[%s3079_s12] sm:$0x1]  ;;  %vm1975_vm0 = vcmask 519168  }
 0x5d7   : > { %v1889_v15 = vpop.f32.mrb[32].mxu1 }
 0x5d8   : > { %v1890_v16 = vadd.f32 %v1889_v15, %v1827_v14  ;;  %v2448_v17 = vpop.f32.mrb[33].mxu1 }
 0x5d9   : > { %v1892_v18 = vpop.f32.mrb[34].mxu1 }
 0x5da   : > { %v1895_v19 = vmax.f32 %v1890_v16, 0.0  ;;  %v2449_v20 = vpop.f32.mrb[35].mxu1 }
 0x5dc   : > { %v1896_v23 = vpack.c.bf16 %v1895_v19, %v1895_v19 }
 0x5de   : > { %2453 = vmatmul.mubr.msk.bf16.vlgmr.msra.gmra.mrb[36].mxu1 %vm554_vm2, %v1896_v23 }
 0x6b1   : > { %v1943_v26 = vpop.f32.mrb[36].mxu1 }
 0x6b2   : > { %v1944_v27 = vadd.f32 %v1943_v26, %v1899_v1  ;;  %v2454_v28 = vpop.f32.mrb[37].mxu1 }
 0x6b3   : > { %v1946_v29 = vpop.f32.mrb[38].mxu1 }
 0x6b4   : > { %v2168_v30 = vmul.f32 -1.442695, %v1944_v27  ;;  %v2455_v24 = vpop.f32.mrb[39].mxu1 }
 0x6b6   : > { %2612 = vpow2.f32 %v2168_v30 }
 0x6c0   : > { %v2613_v31 = vpop.eup %2612 }
 0x6c1   : > { %v1952_v32 = vadd.f32 1.0, %v2613_v31 }
 0x6c3   : > { %2614 = vrcp.f32 %v1952_v32 }
 0x6cd   : > { %v2615_v35 = vpop.eup %2614 }
 0x6ce   : > { %v1960_v38 = vrot.slane %v2615_v35, %v1959_v34 }
 0x6d0   : > { %v1961_v39 = vmul.f32 %v1960_v38, %v1801_v60  ;;  %v1962_v40 = vmul.f32 %v1960_v38, %v1804_v62 }
 0x6d2   : > { %v1963_v41 = vadd.f32 %v1961_v39, %v1955_v36  ;;  %v1964_v42 = vadd.f32 %v1962_v40, %v1956_v37 }
 0x6d4   : > { %v1965_v43 = vmax.f32 %v1963_v41, 0.0  ;;  %v1966_v45 = vmax.f32 %v1964_v42, 0.0 }
 0x6d6   : > { %v2180_v46 = vpack.c.bf16 %v1965_v43, %v1965_v43  ;;  %v2181_v22 = vpack.c.bf16 %v1966_v45, %v1966_v45 }
 0x6d8   : > { %1976 = vst.msk [vmem:[%s440_s22] sm:$0xf] %vm1975_vm0, %v2180_v46  ;;  %1977 = vst.msk [vmem:[%s440_s22 + $0x4] sm:$0xf] %vm1975_vm0, %v2181_v22 }
 0x6d9 PF: > { %s23_s25 = sadd.s32 1, %s2622_s25  }
 0x6da   : > { %p20_p4 = scmp.ge.s32.totalorder %s23_s25, 4  }
 0x6dc   :  { %22 = sbr.rel (!%p20_p4) target bundleno = 1 (0x1), region = 110 }

// kernel: se_resnext_forward.8
= control target key start
LH: loop header
LB: loop body
LE: loop exit
PB: predicated region body
PF: predicated region fallthrough
CT: control target
= control target key end

     0   :  { %s4196_s18 = smov 0   ;;  %s4932_s0 = inlined_call_operand.vmem [shape: bf16[2,64,16], index: 0, kind: input, shape index: {}]   ;;  %s4933_s1 = inlined_call_operand.vmem [shape: bf16[16,16], index: 1, kind: input, shape index: {}]   ;;  %s4934_s2 = inlined_call_operand.vmem [shape: f32[1,16], index: 2, kind: input, shape index: {}]   ;;  %s4935_s3 = inlined_call_operand.vmem [shape: bf16[100,64], index: 3, kind: input, shape index: {}]   ;;  %s4936_s4 = inlined_call_operand.vmem [shape: bf16[9,16,16], index: 4, kind: input, shape index: {}]   ;;  %s4937_s5 = inlined_call_operand.vmem [shape: f32[1,16], index: 5, kind: input, shape index: {}]   ;;  %s4938_s6 = inlined_call_operand.vmem [shape: bf16[64,100], index: 6, kind: input, shape index: {}]   ;;  %s4939_s7 = inlined_call_operand.vmem [shape: bf16[16,32], index: 7, kind: input, shape index: {}]   ;;  %s4940_s8 = inlined_call_operand.vmem [shape: f32[1,32], index: 8, kind: input, shape index: {}]   ;;  %s4941_s9 = inlined_call_operand.vmem [shape: bf16[32,8], index: 9, kind: input, shape index: {}]   ;;  %s4942_s10 = inlined_call_operand.vmem [shape: f32[1,8], index: 10, kind: input, shape index: {}]   ;;  %s4943_s11 = inlined_call_operand.vmem [shape: bf16[8,32], index: 11, kind: input, shape index: {}]   ;;  %s4944_s12 = inlined_call_operand.vmem [shape: f32[1,32], index: 12, kind: input, shape index: {}]   ;;  %s4945_s13 = inlined_call_operand.vmem [shape: bf16[16,32], index: 13, kind: input, shape index: {}]   ;;  %s4946_s14 = inlined_call_operand.vmem [shape: f32[1,32], index: 14, kind: input, shape index: {}]   ;;  %s4947_s15 = inlined_call_operand.vmem [shape: bf16[2,64,32], index: 15, kind: output, shape index: {}]  }
   0x1 LB: > { %s3106_s19 = sadd.s32 4294967295, %s4111_s18   ;;  %p3110_p0 = scmp.ge.s32.totalorder %s4111_s18, 1  ;;  %s4111_s18 = sphi %s4196_s18, %s25_s18  }
   0x2   : > { %p437_p1 = scmp.lt.s32.totalorder %s4111_s18, 3 }
   0x4   : > { %p438_p2 = pnand %p3110_p0, %p437_p1 }
   0x5   : > { %v4039_v0 = vld [vmem:[%s4933_s1] sm:$0xff] (!%p438_p2)   ;;  %p485_p3 = scmp.lt.s32.totalorder (!%p438_p2), %s3106_s19, 1  ;;  %vm539_vm0 = vcmask (!%p438_p2), 130048   ;;  %v4113_v5 = vmov (!%p438_p2), 0.0   ;;  %vm4114_vm1 = vmmov (!%p438_p2), 0   ;;  %vm675_vm2 = vcmask (!%p438_p2), 523264  }
   0x6   : > { %441 = sbr.rel (%p438_p2) target bundleno = 1983 (0x7bf), region = 80  ;;  %3446 = vmatprep.subr.bf16.mxu1 (!%p438_p2), %v4039_v0  ;;  %3582 = vmatprep.subr.bf16.mxu0 (!%p438_p2), %v4113_v5  ;;  %v3115_v6 = vld [vmem:[%s4934_s2] ss:$0 sm:$0xff] (!%p438_p2)  ;;  %v4045_v36 = vld [vmem:[%s4935_s3 + $0x8] sm:$0xff] (!%p438_p2)   ;;  %v4046_v37 = vld [vmem:[%s4935_s3 + $0x10] sm:$0xff] (!%p438_p2)   ;;  %vm785_vm3 = vcmask (!%p438_p2), 125952  }
   0x7   : > { %3447 = vmatpush3.bf16.msra.mxu1 (!%p438_p2), %v4039_v0  ;;  %3584 = vmatprep.mubr.msk.bf16.mxu0 (!%p438_p2), %vm4114_vm1, %v4113_v5  ;;  %v4044_v35 = vld [vmem:[%s4935_s3] sm:$0xff] (!%p438_p2)   ;;  %v4047_v38 = vld [vmem:[%s4935_s3 + $0x18] sm:$0xff] (!%p438_p2)   ;;  %v4049_v40 = vld [vmem:[%s4935_s3 + $0x28] sm:$0xff] (!%p438_p2)   ;;  %v4115_v42 = vmov (!%p438_p2), 0   ;;  %vm802_vm4 = vsmask.f32 (!%p438_p2), 3328 }
   0x8   : > { %3456 = vmatprep.subr.bf16.mxu1 (!%p438_p2), %v4113_v5  ;;  %v4048_v39 = vld [vmem:[%s4935_s3 + $0x20] sm:$0xff] (!%p438_p2)   ;;  %v4050_v41 = vld [vmem:[%s4935_s3 + $0x30] ss:$0 sps:$4 sm:$0x33] (!%p438_p2)   ;;  %788 = vst.msk [vmem:[#allocation2 + $0x8] sm:$0xf] (!%p438_p2), %vm785_vm3, %v4115_v42  ;;  %vm803_vm5 = vmand (!%p438_p2), %vm785_vm3, %vm802_vm4 }
   0x9   : > { %786 = vst.msk [vmem:[#allocation2] sm:$0xf] (!%p438_p2), %vm785_vm3, %v4115_v42  ;;  %787 = vst.msk [vmem:[#allocation2 + $0x4] sm:$0xf] (!%p438_p2), %vm785_vm3, %v4115_v42  ;;  %v4051_v43 = vld [vmem:[%s4936_s4 + $0x8] sm:$0xff] (!%p438_p2)   ;;  %v4054_v44 = vld [vmem:[%s4936_s4 + $0x18] sm:$0xff] (!%p438_p2)  }
   0xa   : > { %789 = vst.msk [vmem:[#allocation2 + $0xc] sm:$0xf] (!%p438_p2), %vm785_vm3, %v4115_v42  ;;  %790 = vst.msk [vmem:[#allocation2 + $0x10] sm:$0xf] (!%p438_p2), %vm785_vm3, %v4115_v42  ;;  %3583 = vmatpush3.bf16.msra.mxu0 (!%p438_p2), %v4054_v44  ;;  %v804_v45 = vld [vmem:[#allocation2 + $0x3c] sm:$0xf] (!%p438_p2) }
   0xb   : > { %791 = vst.msk [vmem:[#allocation2 + $0x14] sm:$0xf] (!%p438_p2), %vm785_vm3, %v4115_v42  ;;  %792 = vst.msk [vmem:[#allocation2 + $0x18] sm:$0xf] (!%p438_p2), %vm785_vm3, %v4115_v42  ;;  %3612 = vmatprep.subr.bf16.mxu0 (!%p438_p2), %v4113_v5  ;;  %v805_v46 = vsel (!%p438_p2), %vm803_vm5, 0, %v804_v45  ;;  %vm929_vm6 = vcmask (!%p438_p2), 1044480  }
   0xc   : > { %793 = vst.msk [vmem:[#allocation2 + $0x1c] sm:$0xf] (!%p438_p2), %vm785_vm3, %v4115_v42  ;;  %794 = vst.msk [vmem:[#allocation2 + $0x20] sm:$0xf] (!%p438_p2), %vm785_vm3, %v4115_v42  ;;  %vm1246_vm7 = vsmask.f32 (!%p438_p2), 4352 }
   0xd   : > { %s4949_s19 = smov (!%p485_p3, %s3106_s19), 1  ;;  %795 = vst.msk [vmem:[#allocation2 + $0x24] sm:$0xf] %vm785_vm3, %v4115_v42  ;;  %796 = vst.msk [vmem:[#allocation2 + $0x28] sm:$0xf] %vm785_vm3, %v4115_v42  ;;  %v4060_v45 = vld [vmem:[%s4936_s4 + $0x20] sm:$0xff]  }
   0xe   : > { %s3309_s22 = sshll.u32 %s4949_s19, 5  ;;  %797 = vst.msk [vmem:[#allocation2 + $0x2c] sm:$0xf] %vm785_vm3, %v4115_v42  ;;  %798 = vst.msk [vmem:[#allocation2 + $0x30] sm:$0xf] %vm785_vm3, %v4115_v42  ;;  %vm872_vm9 = vcmask 123904  }
   0xf   : > { %s4215_s25 = scalar_lea.vmem %s4932_s0, %s3309_s22  ;;  %799 = vst.msk [vmem:[#allocation2 + $0x34] sm:$0xf] %vm785_vm3, %v4115_v42  ;;  %800 = vst.msk [vmem:[#allocation2 + $0x38] sm:$0xf] %vm785_vm3, %v4115_v42  ;;  %vm1799_vm8 = vsmask.f32 7424  ;;  %s494_s21 = scalar_lea.vmem %s4947_s15, %s3309_s22 }
  0x10   : > { %v4040_v1 = vld [vmem:[%s4215_s25] sm:$0xff]   ;;  %v4041_v2 = vld [vmem:[%s4215_s25 + $0x8] sm:$0xff]   ;;  %v4042_v3 = vld [vmem:[%s4215_s25 + $0x10] sm:$0xff]   ;;  %806 = vst [vmem:[#allocation2 + $0x3c] sm:$0xf] %v805_v46  ;;  %vm2216_vm12 = vcmask 1046528  }
  0x11   : > { %3448 = vmatprep.mubr.msk.bf16.mxu1 %vm539_vm0, %v4040_v1  ;;  %v4043_v4 = vld [vmem:[%s4215_s25 + $0x18] sm:$0xff]   ;;  %v4304_v51 = vld [vmem:[#allocation2 + $0x4] sm:$0xf]  ;;  %v890_v52 = vld [vmem:[#allocation2] sm:$0x8]  ;;  %vm2573_vm13 = vcmask 818176  }
  0x12   : > { %3449 = vmatmul.mubr.msk.bf16.vlgmr.msra.gmra.mrb[0].mxu1 %vm539_vm0, %v4041_v2  ;;  %v3154_v55 = vcombine.low %v890_v52, %v4304_v51  ;;  %v1412_v59 = vld [vmem:[#allocation2 + $0x4] sm:$0x8]  ;;  %vm1061_vm10 = vsmask.f32 5376  ;;  %vm2365_vm11 = vsmask.f32 6400 }
  0x13   : > { %3452 = vmatprep.mubr.msk.bf16.mxu1 %vm539_vm0, %v4042_v3  ;;  %vm2586_vm14 = vcmask 1041408   ;;  %vm2759_vm15 = vcmask 261120  }
  0x14   : > { %v1248_v60 = vshrl.u32 %v3154_v55, 16  ;;  %v1251_v61 = vshll.u32 %v3154_v55, 16  ;;  %v930_v3 = vrot.slane %v3154_v55, 3 }
  0x1a   : > { %3453 = vmatmul.mubr.msk.bf16.gmra.mrb[4].mxu1 %vm539_vm0, %v4043_v4 }
  0x1b   : > { %3464 = vmatprep.mubr.msk.bf16.mxu1 %vm4114_vm1, %v4113_v5 }
  0xe5   : > { %v3450_v7 = vpop.f32.mrb[0].mxu1 }
  0xe6   : > { %v595_v8 = vadd.f32 %v3450_v7, %v3115_v6  ;;  %v586_v9 = vpop.f32.mrb[1].mxu1  ;;  %v1253_v7 = vrot.slane %v1251_v61, 4 }
  0xe7   : > { %v587_v10 = vadd.f32 %v3115_v6, %v586_v9  ;;  %v3451_v11 = vpop.f32.mrb[2].mxu1  ;;  %v4069_v9 = vld [vmem:[%s4936_s4] sm:$0xff]  }
  0xe8   : > { %v598_v12 = vadd.f32 %v3451_v11, %v3115_v6  ;;  %v589_v13 = vpop.f32.mrb[3].mxu1  ;;  %v619_v15 = vmax.f32 %v595_v8, 0.0 }
  0xe9   : > { %v590_v14 = vadd.f32 %v3115_v6, %v589_v13  ;;  %v617_v17 = vmax.f32 %v587_v10, 0.0 }
  0xea   : > { %v620_v16 = vmax.f32 %v598_v12, 0.0 }
  0xeb   : > { %v618_v18 = vmax.f32 %v590_v14, 0.0 }
  0xec   : > { %v626_v19 = vpack.c.bf16 %v620_v16, %v619_v15 }
  0xed   : > { %v625_v20 = vpack.c.bf16 %v618_v18, %v617_v17  ;;  %v3454_v21 = vpop.f32.mrb[4].mxu1 }
  0xee   : > { %v611_v22 = vadd.f32 %v3454_v21, %v3115_v6  ;;  %v602_v23 = vpop.f32.mrb[5].mxu1 }
  0xef   : > { %v603_v24 = vadd.f32 %v3115_v6, %v602_v23  ;;  %v3455_v25 = vpop.f32.mrb[6].mxu1  ;;  %3457 = vmatpush3.bf16.msra.mxu1 %v625_v20 }
  0xf0   : > { %v614_v26 = vadd.f32 %v3455_v25, %v3115_v6  ;;  %v605_v27 = vpop.f32.mrb[7].mxu1  ;;  %3458 = vmatprep.subr.bf16.mxu1 %v4113_v5  ;;  %v623_v29 = vmax.f32 %v611_v22, 0.0 }
  0xf1   : > { %v606_v28 = vadd.f32 %v3115_v6, %v605_v27  ;;  %v621_v31 = vmax.f32 %v603_v24, 0.0  ;;  %v1250_v6 = vrot.slane %v1248_v60, 3 }
  0xf2   : > { %v624_v30 = vmax.f32 %v614_v26, 0.0 }
  0xf3   : > { %v622_v32 = vmax.f32 %v606_v28, 0.0  ;;  %3459 = vmatpush3.bf16.msra.mxu1 %v626_v19  ;;  %v1254_v20 = vor.u32 %v1253_v7, %v1250_v6 }
  0xf4   : > { %v628_v33 = vpack.c.bf16 %v624_v30, %v623_v29  ;;  %3460 = vmatprep.subr.bf16.mxu1 %v4113_v5 }
  0xf5   : > { %v627_v34 = vpack.c.bf16 %v622_v32, %v621_v31 }
  0xf7   : > { %3461 = vmatpush3.bf16.msra.mxu1 %v627_v34 }
  0xf8   : > { %3462 = vmatprep.subr.bf16.mxu1 %v4113_v5 }
  0xfb   : > { %3463 = vmatpush3.bf16.msra.mxu1 %v628_v33 }
  0xfc   : > { %3492 = vmatprep.subr.bf16.mxu1 %v4113_v5 }
  0xfe   : > { %3465 = vmatmul.mubr.msk.bf16.vlgmr.msra.gmra.mrb[8].mxu1 %vm675_vm2, %v4044_v35 }
  0xff   : > { %3468 = vmatprep.mubr.msk.bf16.mxu1 %vm4114_vm1, %v4113_v5  ;;  %3493 = vmatpush3.bf16.msra.mxu1 %v4051_v43 }
 0x100   : > { %3522 = vmatprep.subr.bf16.mxu1 %v4113_v5 }
 0x106   : > { %3469 = vmatmul.mubr.msk.bf16.gmra.mrb[12].mxu1 %vm675_vm2, %v4045_v36 }
 0x107   : > { %3472 = vmatprep.mubr.msk.bf16.mxu1 %vm4114_vm1, %v4113_v5 }
 0x10e   : > { %3473 = vmatmul.mubr.msk.bf16.gmra.mrb[16].mxu1 %vm675_vm2, %v4046_v37 }
 0x10f   : > { %3476 = vmatprep.mubr.msk.bf16.mxu1 %vm4114_vm1, %v4113_v5 }
 0x116   : > { %3477 = vmatmul.mubr.msk.bf16.gmra.mrb[20].mxu1 %vm675_vm2, %v4047_v38 }
 0x117   : > { %3480 = vmatprep.mubr.msk.bf16.mxu1 %vm4114_vm1, %v4113_v5 }
 0x11e   : > { %3481 = vmatmul.mubr.msk.bf16.gmra.mrb[24].mxu1 %vm675_vm2, %v4048_v39 }
 0x11f   : > { %3484 = vmatprep.mubr.msk.bf16.mxu1 %vm4114_vm1, %v4113_v5 }
 0x126   : > { %3485 = vmatmul.mubr.msk.bf16.gmra.mrb[28].mxu1 %vm675_vm2, %v4049_v40 }
 0x127   : > { %3488 = vmatprep.mubr.msk.bf16.mxu1 %vm4114_vm1, %v4113_v5 }
 0x12e   : > { %3489 = vmatmul.mubr.msk.bf16.gmra.mrb[32].mxu1 %vm675_vm2, %v4050_v41  ;;  %vm2852_vm2 = vcmask 1043456  }
 0x12f   : > { %3494 = vmatprep.mubr.msk.bf16.mxu1 %vm4114_vm1, %v4113_v5 }
 0x1d1   : > { %v731_v47 = vpop.f32.mrb[8].mxu1 }
 0x1d2   : > { %v3311_v48 = vpack.c.bf16 %v731_v47, %v731_v47  ;;  %v3466_v49 = vpop.f32.mrb[9].mxu1 }
 0x1d3   : > { %v734_v50 = vpop.f32.mrb[10].mxu1 }
 0x1d4   : > { %860 = vst.msk [vmem:[#allocation2 + $0x8] sm:$0xf] %vm785_vm3, %v3311_v48  ;;  %v3312_v53 = vpack.c.bf16 %v734_v50, %v734_v50  ;;  %v3467_v54 = vpop.f32.mrb[11].mxu1 }
 0x1d6   : > { %861 = vst.msk [vmem:[#allocation2 + $0xc] sm:$0xf] %vm785_vm3, %v3312_v53 }
 0x1d9   : > { %v739_v56 = vpop.f32.mrb[12].mxu1 }
 0x1da   : > { %v3313_v57 = vpack.c.bf16 %v739_v56, %v739_v56  ;;  %v3470_v58 = vpop.f32.mrb[13].mxu1 }
 0x1db   : > { %v742_v62 = vpop.f32.mrb[14].mxu1  ;;  %v4309_v63 = vld [vmem:[#allocation2 + $0x8] sm:$0xf] }
 0x1dc   : > { %862 = vst.msk [vmem:[#allocation2 + $0x10] sm:$0xf] %vm785_vm3, %v3313_v57  ;;  %v3314_v0 = vpack.c.bf16 %v742_v62, %v742_v62  ;;  %v3471_v1 = vpop.f32.mrb[15].mxu1  ;;  %v3191_v4 = vcombine.low %v1412_v59, %v4309_v63 }
 0x1dd   : > { %v4312_v2 = vld [vmem:[#allocation2 + $0x8] sm:$0xff]  }
 0x1de   : > { %863 = vst.msk [vmem:[#allocation2 + $0x14] sm:$0xf] %vm785_vm3, %v3314_v0  ;;  %v931_v8 = vrot.slane %v4312_v2, 3  ;;  %v1071_v10 = vshrl.u32 %v4312_v2, 16  ;;  %v1074_v11 = vshll.u32 %v4312_v2, 16  ;;  %v1465_v14 = vshrl.u32 %v3191_v4, 16 }
 0x1df   : > { %v4326_v18 = vld [vmem:[#allocation2 + $0xc] sm:$0xf]  ;;  %v1468_v19 = vshll.u32 %v3191_v4, 16 }
 0x1e0   : > { %v932_v13 = vsel %vm929_vm6, %v930_v3, %v931_v8  ;;  %v1255_v15 = vrot.slane %v1071_v10, 3  ;;  %v1256_v21 = vrot.slane %v1074_v11, 4  ;;  %v1467_v29 = vrot.slane %v1465_v14, 3 }
 0x1e1   : > { %v747_v12 = vpop.f32.mrb[16].mxu1  ;;  %3495 = vmatmul.mubr.msk.bf16.vlgmr.msra.gmra.mrb[36].mxu1 %vm539_vm0, %v932_v13  ;;  %v1470_v31 = vrot.slane %v1468_v19, 4 }
 0x1e2   : > { %v3315_v16 = vpack.c.bf16 %v747_v12, %v747_v12  ;;  %v3474_v17 = vpop.f32.mrb[17].mxu1  ;;  %3498 = vmatprep.mubr.msk.bf16.mxu1 %vm4114_vm1, %v4113_v5  ;;  %3523 = vmatpush3.bf16.msra.mxu1 %v4069_v9  ;;  %v4335_v27 = vor.u32 %v1256_v21, %v1255_v15 }
 0x1e3   : > { %v750_v22 = vpop.f32.mrb[18].mxu1  ;;  %v1415_v23 = vld [vmem:[#allocation2 + $0x10] sm:$0xf]  ;;  %3552 = vmatprep.subr.bf16.mxu1 %v4113_v5  ;;  %v1471_v43 = vor.u32 %v1470_v31, %v1467_v29 }
 0x1e4   : > { %864 = vst.msk [vmem:[#allocation2 + $0x18] sm:$0xf] %vm785_vm3, %v3315_v16  ;;  %v3316_v24 = vpack.c.bf16 %v750_v22, %v750_v22  ;;  %v3475_v25 = vpop.f32.mrb[19].mxu1  ;;  %v3192_v26 = vcombine.low %v4326_v18, %v1415_v23  ;;  %v4342_v34 = vsel %vm1246_vm7, %v1254_v20, %v4335_v27 }
 0x1e5   : > { %v4337_v28 = vld [vmem:[#allocation2 + $0x10] sm:$0xff]  }
 0x1e6   : > { %v1416_v30 = vld [vmem:[#allocation2 + $0x14] sm:$0xf]  ;;  %865 = vst.msk [vmem:[#allocation2 + $0x1c] sm:$0xf] %vm785_vm3, %v3316_v24  ;;  %v1473_v32 = vshrl.u32 %v3192_v26, 16  ;;  %v1476_v33 = vshll.u32 %v3192_v26, 16 }
 0x1e7   : > { %v933_v35 = vrot.slane %v4337_v28, 3  ;;  %v4345_v36 = vcombine.low %v1415_v23, %v1416_v30 }
 0x1e8   : > { %v1475_v37 = vrot.slane %v1473_v32, 3  ;;  %v1478_v38 = vrot.slane %v1476_v33, 4 }
 0x1e9   : > { %v755_v39 = vpop.f32.mrb[20].mxu1  ;;  %v934_v40 = vsel %vm929_vm6, %v931_v8, %v933_v35  ;;  %v1806_v48 = vshll.u32 %v4345_v36, 16  ;;  %v1810_v4 = vshrl.u32 %v4345_v36, 16 }
 0x1ea   : > { %v3317_v41 = vpack.c.bf16 %v755_v39, %v755_v39  ;;  %v3478_v42 = vpop.f32.mrb[21].mxu1  ;;  %3499 = vmatmul.mubr.msk.bf16.gmra.mrb[40].mxu1 %vm539_vm0, %v934_v40  ;;  %v1479_v44 = vor.u32 %v1478_v38, %v1475_v37 }
 0x1eb   : > { %v758_v46 = vpop.f32.mrb[22].mxu1  ;;  %3502 = vmatprep.mubr.msk.bf16.mxu1 %vm4114_vm1, %v4113_v5  ;;  %v1417_v47 = vld [vmem:[#allocation2 + $0x18] sm:$0xf]  ;;  %v4367_v60 = vrot.slane %v1806_v48, 1 }
 0x1ec   : > { %866 = vst.msk [vmem:[#allocation2 + $0x20] sm:$0xf] %vm785_vm3, %v3317_v41  ;;  %v3318_v49 = vpack.c.bf16 %v758_v46, %v758_v46  ;;  %v3479_v50 = vpop.f32.mrb[23].mxu1  ;;  %v1480_v52 = vsel %vm1246_vm7, %v1471_v43, %v1479_v44  ;;  %v3193_v53 = vcombine.low %v1416_v30, %v1417_v47 }
 0x1ed   : > { %3585 = vmatmul.mubr.msk.bf16.vlgmr.msra.gmra.mrb[0].mxu0 %vm539_vm0, %v1480_v52  ;;  %v4358_v54 = vld [vmem:[#allocation2 + $0x18] sm:$0xff]   ;;  %v1812_v14 = vor.u32 %v1810_v4, %v4367_v60 }
 0x1ee   : > { %v1418_v55 = vld [vmem:[#allocation2 + $0x1c] sm:$0xf]  ;;  %867 = vst.msk [vmem:[#allocation2 + $0x24] sm:$0xf] %vm785_vm3, %v3318_v49  ;;  %3588 = vmatprep.mubr.msk.bf16.mxu0 %vm4114_vm1, %v4113_v5  ;;  %3613 = vmatpush3.bf16.msra.mxu0 %v4060_v45  ;;  %v1482_v56 = vshrl.u32 %v3193_v53, 16  ;;  %v1485_v57 = vshll.u32 %v3193_v53, 16 }
 0x1ef   : > { %v4363_v58 = vcombine.low %v1417_v47, %v1418_v55  ;;  %v935_v59 = vrot.slane %v4358_v54, 3  ;;  %3642 = vmatprep.subr.bf16.mxu0 %v4113_v5 }
 0x1f0   : > { %v1484_v61 = vrot.slane %v1482_v56, 3  ;;  %v1487_v62 = vrot.slane %v1485_v57, 4 }
 0x1f1   : > { %v1813_v0 = vshll.u32 %v4363_v58, 16  ;;  %v763_v1 = vpop.f32.mrb[24].mxu1  ;;  %v936_v3 = vsel %vm929_vm6, %v933_v35, %v935_v59  ;;  %v1817_v35 = vshrl.u32 %v4363_v58, 16 }
 0x1f2   : > { %v3319_v6 = vpack.c.bf16 %v763_v1, %v763_v1  ;;  %v3482_v7 = vpop.f32.mrb[25].mxu1  ;;  %3503 = vmatmul.mubr.msk.bf16.gmra.mrb[44].mxu1 %vm539_vm0, %v936_v3  ;;  %v1488_v8 = vor.u32 %v1487_v62, %v1484_v61 }
 0x1f3   : > { %v1815_v9 = vrot.slane %v1813_v0, 1  ;;  %v766_v12 = vpop.f32.mrb[26].mxu1  ;;  %3506 = vmatprep.mubr.msk.bf16.mxu1 %vm4114_vm1, %v4113_v5  ;;  %v1419_v13 = vld [vmem:[#allocation2 + $0x20] sm:$0xf] }
 0x1f4   : > { %868 = vst.msk [vmem:[#allocation2 + $0x28] sm:$0xf] %vm785_vm3, %v3319_v6  ;;  %v3320_v15 = vpack.c.bf16 %v766_v12, %v766_v12  ;;  %v3483_v16 = vpop.f32.mrb[27].mxu1  ;;  %v1489_v17 = vsel %vm1246_vm7, %v1479_v44, %v1488_v8  ;;  %v3194_v19 = vcombine.low %v1418_v55, %v1419_v13  ;;  %v874_v7 = vld [vmem:[#allocation2] sm:$0xc] }
 0x1f5   : > { %3589 = vmatmul.mubr.msk.bf16.gmra.mrb[4].mxu0 %vm539_vm0, %v1489_v17  ;;  %v4379_v20 = vld [vmem:[#allocation2 + $0x20] sm:$0xff]   ;;  %v4382_v22 = vsel %vm1799_vm8, %v1812_v14, %v1815_v9  ;;  %v1819_v43 = vor.u32 %v1817_v35, %v1815_v9 }
 0x1f6   : > { %v1420_v21 = vld [vmem:[#allocation2 + $0x24] sm:$0xf]  ;;  %869 = vst.msk [vmem:[#allocation2 + $0x2c] sm:$0xf] %vm785_vm3, %v3320_v15  ;;  %3592 = vmatprep.mubr.msk.bf16.mxu0 %vm4114_vm1, %v4113_v5  ;;  %v1491_v23 = vshrl.u32 %v3194_v19, 16  ;;  %v1494_v24 = vshll.u32 %v3194_v19, 16 }
 0x1f7   : > { %v4387_v25 = vcombine.low %v1419_v13, %v1420_v21  ;;  %v937_v26 = vrot.slane %v4379_v20, 3 }
 0x1f8   : > { %v1493_v29 = vrot.slane %v1491_v23, 3  ;;  %v1496_v30 = vrot.slane %v1494_v24, 4 }
 0x1f9   : > { %v1820_v31 = vshll.u32 %v4387_v25, 16  ;;  %v771_v32 = vpop.f32.mrb[28].mxu1  ;;  %v938_v33 = vsel %vm929_vm6, %v935_v59, %v937_v26  ;;  %v1824_v61 = vshrl.u32 %v4387_v25, 16 }
 0x1fa   : > { %v3321_v37 = vpack.c.bf16 %v771_v32, %v771_v32  ;;  %v3486_v38 = vpop.f32.mrb[29].mxu1  ;;  %3507 = vmatmul.mubr.msk.bf16.gmra.mrb[48].mxu1 %vm539_vm0, %v938_v33  ;;  %v1497_v39 = vor.u32 %v1496_v30, %v1493_v29  ;;  %v3169_v29 = vcombine.low %v874_v7, %v4304_v51 }
 0x1fb   : > { %v1822_v40 = vrot.slane %v1820_v31, 1  ;;  %v774_v41 = vpop.f32.mrb[30].mxu1  ;;  %3510 = vmatprep.mubr.msk.bf16.mxu1 %vm4114_vm1, %v4113_v5  ;;  %v1421_v42 = vld [vmem:[#allocation2 + $0x28] sm:$0xf] }
 0x1fc   : > { %870 = vst.msk [vmem:[#allocation2 + $0x30] sm:$0xf] %vm785_vm3, %v3321_v37  ;;  %v3322_v44 = vpack.c.bf16 %v774_v41, %v774_v41  ;;  %v3487_v45 = vpop.f32.mrb[31].mxu1  ;;  %v1498_v46 = vsel %vm1246_vm7, %v1488_v8, %v1497_v39  ;;  %v3195_v47 = vcombine.low %v1420_v21, %v1421_v42 }
 0x1fd   : > { %3593 = vmatmul.mubr.msk.bf16.gmra.mrb[8].mxu0 %vm539_vm0, %v1498_v46  ;;  %v4399_v48 = vld [vmem:[#allocation2 + $0x28] sm:$0xff]   ;;  %v4402_v50 = vsel %vm1799_vm8, %v1819_v43, %v1822_v40  ;;  %v1826_v8 = vor.u32 %v1824_v61, %v1822_v40 }
 0x1fe   : > { %v1422_v49 = vld [vmem:[#allocation2 + $0x2c] sm:$0xf]  ;;  %871 = vst.msk [vmem:[#allocation2 + $0x34] sm:$0xf] %vm785_vm3, %v3322_v44  ;;  %3596 = vmatprep.mubr.msk.bf16.mxu0 %vm4114_vm1, %v4113_v5  ;;  %v1500_v52 = vshrl.u32 %v3195_v47, 16  ;;  %v1503_v53 = vshll.u32 %v3195_v47, 16 }
 0x1ff   : > { %v4407_v55 = vcombine.low %v1421_v42, %v1422_v49  ;;  %v939_v56 = vrot.slane %v4399_v48, 3  ;;  %v1107_v14 = vshrl.u32 %v4399_v48, 16  ;;  %v1110_v21 = vshll.u32 %v4399_v48, 16 }
 0x200   : > { %v1502_v57 = vrot.slane %v1500_v52, 3  ;;  %v1505_v59 = vrot.slane %v1503_v53, 4  ;;  %v1066_v52 = vshll.u32 %v3169_v29, 16 }
 0x201   : > { %v1827_v62 = vshll.u32 %v4407_v55, 16  ;;  %v779_v0 = vpop.f32.mrb[32].mxu1  ;;  %v940_v1 = vsel %vm929_vm6, %v937_v26, %v939_v56  ;;  %v1831_v38 = vshrl.u32 %v4407_v55, 16  ;;  %v1271_v51 = vrot.slane %v1107_v14, 3 }
 0x202   : > { %v3323_v3 = vpack.c.bf16 %v779_v0, %v779_v0  ;;  %v3490_v4 = vpop.f32.mrb[33].mxu1  ;;  %3511 = vmatmul.mubr.msk.bf16.gmra.mrb[52].mxu1 %vm539_vm0, %v940_v1  ;;  %v1506_v6 = vor.u32 %v1505_v59, %v1502_v57  ;;  %v1272_v42 = vrot.slane %v1110_v21, 4 }
 0x203   : > { %v1829_v9 = vrot.slane %v1827_v62, 1  ;;  %v782_v12 = vpop.f32.mrb[34].mxu1  ;;  %3514 = vmatprep.mubr.msk.bf16.mxu1 %vm4114_vm1, %v4113_v5  ;;  %v1423_v13 = vld [vmem:[#allocation2 + $0x30] sm:$0xf] }
 0x204   : > { %873 = vst.msk [vmem:[#allocation2 + $0x38] sm:$0x3] %vm872_vm9, %v3323_v3  ;;  %v3491_v15 = vpop.f32.mrb[35].mxu1  ;;  %v1507_v16 = vsel %vm1246_vm7, %v1497_v39, %v1506_v6  ;;  %v886_v17 = vld [vmem:[#allocation2 + $0x30] sm:$0xf]  ;;  %v3196_v19 = vcombine.low %v1422_v49, %v1423_v13  ;;  %v1063_v49 = vshrl.u32 %v3169_v29, 16 }
 0x205   : > { %v4420_v23 = vsel %vm1799_vm8, %v1826_v8, %v1829_v9  ;;  %3597 = vmatmul.mubr.msk.bf16.gmra.mrb[12].mxu0 %vm539_vm0, %v1507_v16  ;;  %v887_v24 = vld [vmem:[#allocation2 + $0x34] sm:$0x1]  ;;  %v1833_v61 = vor.u32 %v1831_v38, %v1829_v9  ;;  %v1068_v12 = vrot.slane %v1066_v52, 3 }
 0x206   : > { %v1424_v26 = vld [vmem:[#allocation2 + $0x34] sm:$0xf]  ;;  %v4424_v31 = vcombine.low %v886_v17, %v887_v24  ;;  %3600 = vmatprep.mubr.msk.bf16.mxu0 %vm4114_vm1, %v4113_v5  ;;  %v1509_v32 = vshrl.u32 %v3196_v19, 16  ;;  %v1512_v33 = vshll.u32 %v3196_v19, 16  ;;  %v1065_v9 = vrot.slane %v1063_v49, 2  ;;  %v4469_v24 = vld [vmem:[#allocation2 + $0x1c] sm:$0xff]  }
 0x207   : > { %v1239_v30 = vld [vmem:[#allocation2 + $0x34] sm:$0x3]  ;;  %v4428_v35 = vcombine.low %v1423_v13, %v1424_v26  ;;  %v1076_v19 = vrot.slane %v1074_v11, 3  ;;  %v1080_v11 = vshrl.u32 %v4337_v28, 16 }
 0x208   : > { %v3180_v37 = vcombine.low %v886_v17, %v1239_v30  ;;  %v941_v39 = vrot.slane %v4424_v31, 3  ;;  %v1511_v40 = vrot.slane %v1509_v32, 3  ;;  %v1514_v41 = vrot.slane %v1512_v33, 4  ;;  %v4458_v8 = vld [vmem:[#allocation2 + $0x14] sm:$0xff]   ;;  %v4474_v32 = vld [vmem:[#allocation2 + $0x2c] sm:$0xff]  }
 0x209   : > { %v1834_v45 = vshll.u32 %v4428_v35, 16  ;;  %v1073_v17 = vrot.slane %v1071_v10, 2  ;;  %v2038_v30 = vshrl.u32 %v4458_v8, 16  ;;  %v1069_v33 = vor.u32 %v1068_v12, %v1065_v9  ;;  %v4073_v52 = vld [vmem:[%s4936_s4 + $0x10] sm:$0xff]  }
 0x20a   : > { %v1276_v43 = vshrl.u32 %v3180_v37, 16  ;;  %v1279_v44 = vshll.u32 %v3180_v37, 16  ;;  %v942_v46 = vsel %vm929_vm6, %v939_v56, %v941_v39  ;;  %v1515_v47 = vor.u32 %v1514_v41, %v1511_v40 }
 0x20b   : > { %3515 = vmatmul.mubr.msk.bf16.gmra.mrb[56].mxu1 %vm539_vm0, %v942_v46  ;;  %v4439_v53 = vld [vmem:[#allocation2 + $0x38] sm:$0x3]  ;;  %v4441_v62 = vrot.slane %v1834_v45, 1  ;;  %v4448_v56 = vor.u32 %v1272_v42, %v1271_v51  ;;  %v1077_v2 = vor.u32 %v1076_v19, %v1073_v17  ;;  %v2034_v10 = vshll.u32 %v4458_v8, 16 }
 0x20c   : > { %v1278_v57 = vrot.slane %v1276_v43, 3  ;;  %v1281_v59 = vrot.slane %v1279_v44, 4  ;;  %v1516_v0 = vsel %vm1246_vm7, %v1506_v6, %v1515_v47  ;;  %3518 = vmatprep.mubr.msk.bf16.mxu1 %vm4114_vm1, %v4113_v5  ;;  %v3197_v1 = vcombine.low %v1424_v26, %v4439_v53  ;;  %v4471_v26 = vld [vmem:[#allocation2 + $0x24] sm:$0xff]   ;;  %v4477_v37 = vld [vmem:[#allocation2 + $0x34] sm:$0xff]  }
 0x20d   : > { %3601 = vmatmul.mubr.msk.bf16.gmra.mrb[16].mxu0 %vm539_vm0, %v1516_v0  ;;  %v4454_v4 = vsel %vm1799_vm8, %v1833_v61, %v4441_v62  ;;  %v2042_v40 = vshll.u32 %v4469_v24, 16  ;;  %v2054_v41 = vshrl.u32 %v4471_v26, 16  ;;  %v1083_v51 = vshll.u32 %v4337_v28, 16 }
 0x20e   : > { %v4450_v3 = vor.u32 %v1281_v59, %v1278_v57  ;;  %3604 = vmatprep.mubr.msk.bf16.mxu0 %vm4114_vm1, %v4113_v5  ;;  %v1518_v7 = vshrl.u32 %v3197_v1, 16  ;;  %v1521_v6 = vshll.u32 %v3197_v1, 16  ;;  %v2374_v42 = vrot.slane %v2038_v30, 1 }
 0x20f   : > { %v2050_v43 = vshll.u32 %v4471_v26, 16  ;;  %v2062_v44 = vshrl.u32 %v4474_v32, 16  ;;  %v2058_v45 = vshll.u32 %v4474_v32, 16  ;;  %v2066_v46 = vshll.u32 %v4477_v37, 16 }
 0x210   : > { %v4463_v13 = vsel %vm1246_vm7, %v4448_v56, %v4450_v3  ;;  %v1520_v15 = vrot.slane %v1518_v7, 3  ;;  %v1523_v16 = vrot.slane %v1521_v6, 4  ;;  %v1078_v49 = vsel %vm1061_vm10, %v1069_v33, %v1077_v2 }
 0x211   : > { %v2375_v57 = vrot.slane %v2034_v10, 2  ;;  %v1082_v59 = vrot.slane %v1080_v11, 2  ;;  %v2379_v0 = vrot.slane %v2042_v40, 2  ;;  %v2382_v1 = vrot.slane %v2054_v41, 1 }
 0x212   : > { %v1524_v29 = vor.u32 %v1523_v16, %v1520_v15  ;;  %v1085_v7 = vrot.slane %v1083_v51, 3  ;;  %v2383_v9 = vrot.slane %v2050_v43, 2  ;;  %v2386_v12 = vrot.slane %v2062_v44, 1 }
 0x213   : > { %3519 = vmatmul.mubr.msk.bf16.gmra.mrb[60].mxu1 %vm539_vm0, %v941_v39  ;;  %v2046_v39 = vshrl.u32 %v4469_v24, 16  ;;  %v4514_v6 = vor.u32 %v2375_v57, %v2374_v42  ;;  %v2387_v16 = vrot.slane %v2058_v45, 2  ;;  %v2391_v19 = vrot.slane %v2066_v46, 2 }
 0x214   : > { %v1525_v38 = vsel %vm1246_vm7, %v1515_v47, %v1524_v29  ;;  %3524 = vmatprep.mubr.msk.bf16.mxu1 %vm4114_vm1, %v4113_v5  ;;  %v2070_v47 = vshrl.u32 %v4477_v37, 16  ;;  %v2384_v33 = vor.u32 %v2383_v9, %v2382_v1  ;;  %v1086_v57 = vor.u32 %v1085_v7, %v1082_v59 }
 0x215   : > { %3605 = vmatmul.mubr.msk.bf16.gmra.mrb[20].mxu0 %vm539_vm0, %v1525_v38  ;;  %v2378_v61 = vrot.slane %v2046_v39, 1  ;;  %v2388_v42 = vor.u32 %v2387_v16, %v2386_v12  ;;  %v4070_v12 = vld [vmem:[%s4936_s4 + $0x28] sm:$0xff]   ;;  %v1098_v16 = vshrl.u32 %v4379_v20, 16 }
 0x216   : > { %3608 = vmatprep.mubr.msk.bf16.mxu0 %vm4114_vm1, %v4113_v5  ;;  %v2390_v17 = vrot.slane %v2070_v47, 1  ;;  %v1087_v9 = vsel %vm1061_vm10, %v1077_v2, %v1086_v57 }
 0x217   : > { %v2380_v15 = vor.u32 %v2379_v0, %v2378_v61  ;;  %v1089_v61 = vshrl.u32 %v4358_v54, 16  ;;  %v1092_v0 = vshll.u32 %v4358_v54, 16 }
 0x219   : > { %v4532_v38 = vsel %vm2365_vm11, %v4514_v6, %v2380_v15  ;;  %v1091_v59 = vrot.slane %v1089_v61, 2  ;;  %v1094_v7 = vrot.slane %v1092_v0, 3 }
 0x21b   : > { %3525 = vmatmul.mubr.msk.bf16.vlgmr.msra.gmra.mrb[36].mxu1 %vm539_vm0, %v1078_v49  ;;  %v4534_v49 = vor.u32 %v2391_v19, %v2390_v17  ;;  %v1095_v2 = vor.u32 %v1094_v7, %v1091_v59  ;;  %v1101_v17 = vshll.u32 %v4379_v20, 16  ;;  %v1116_v59 = vshrl.u32 %v4424_v31, 16 }
 0x21c   : > { %3528 = vmatprep.mubr.msk.bf16.mxu1 %vm4114_vm1, %v4113_v5  ;;  %3553 = vmatpush3.bf16.msra.mxu1 %v4073_v52  ;;  %v4541_v52 = vsel %vm2365_vm11, %v2380_v15, %v2384_v33  ;;  %v3208_v15 = vcombine.low %v4309_v63, %v4326_v18  ;;  %v1100_v18 = vrot.slane %v1098_v16, 2  ;;  %v1119_v7 = vshll.u32 %v4424_v31, 16 }
 0x21d   : > { %3609 = vmatmul.mubr.msk.bf16.gmra.mrb[24].mxu0 %vm539_vm0, %v1524_v29  ;;  %v4544_v29 = vsel %vm2365_vm11, %v2384_v33, %v2388_v42  ;;  %v4548_v1 = vsel %vm2365_vm11, %v2388_v42, %v4534_v49  ;;  %v1096_v63 = vsel %vm1061_vm10, %v1086_v57, %v1095_v2  ;;  %v1103_v19 = vrot.slane %v1101_v17, 3 }
 0x21e   : > { %3614 = vmatprep.mubr.msk.bf16.mxu0 %vm4114_vm1, %v4113_v5  ;;  %v1109_v57 = vrot.slane %v1107_v14, 2  ;;  %v1118_v48 = vrot.slane %v1116_v59, 2  ;;  %v1802_v31 = vshll.u32 %v3208_v15, 16 }
 0x21f   : > { %v1104_v33 = vor.u32 %v1103_v19, %v1100_v18  ;;  %v1800_v18 = vshrl.u32 %v3208_v15, 16  ;;  %v4075_v19 = vld [vmem:[%s4936_s4 + $0x30] sm:$0xff]  }
 0x221   : > { %v1105_v42 = vsel %vm1061_vm10, %v1095_v2, %v1104_v33  ;;  %v3214_v2 = vcombine.low %v4439_v53, %v4439_v53  ;;  %v1264_v53 = vrot.slane %v1092_v0, 4 }
 0x223   : > { %3529 = vmatmul.mubr.msk.bf16.gmra.mrb[40].mxu1 %vm539_vm0, %v1087_v9  ;;  %v1112_v9 = vrot.slane %v1110_v21, 3  ;;  %v1121_v21 = vrot.slane %v1119_v7, 3  ;;  %v4080_v7 = vld [vmem:[%s4936_s4 + $0x38] sm:$0xff]  }
 0x224   : > { %3532 = vmatprep.mubr.msk.bf16.mxu1 %vm4114_vm1, %v4113_v5 }
 0x225   : > { %3615 = vmatmul.mubr.msk.bf16.vlgmr.msra.gmra.mrb[0].mxu0 %vm539_vm0, %v3208_v15 }
 0x226   : > { %3618 = vmatprep.mubr.msk.bf16.mxu0 %vm4114_vm1, %v4113_v5  ;;  %3643 = vmatpush3.bf16.msra.mxu0 %v4070_v12 }
 0x227   : > { %3672 = vmatprep.subr.bf16.mxu0 %v4113_v5 }
 0x22b   : > { %3533 = vmatmul.mubr.msk.bf16.gmra.mrb[44].mxu1 %vm539_vm0, %v1096_v63 }
 0x22c   : > { %3536 = vmatprep.mubr.msk.bf16.mxu1 %vm4114_vm1, %v4113_v5 }
 0x22d   : > { %3619 = vmatmul.mubr.msk.bf16.gmra.mrb[4].mxu0 %vm539_vm0, %v4345_v36  ;;  %v1113_v36 = vor.u32 %v1112_v9, %v1109_v57 }
 0x22e   : > { %3622 = vmatprep.mubr.msk.bf16.mxu0 %vm4114_vm1, %v4113_v5 }
 0x22f   : > { %v1114_v14 = vsel %vm1061_vm10, %v1104_v33, %v1113_v36 }
 0x233   : > { %3537 = vmatmul.mubr.msk.bf16.gmra.mrb[48].mxu1 %vm539_vm0, %v1105_v42  ;;  %v1977_v42 = vld [vmem:[#allocation2 + $0xc] sm:$0xf] }
 0x234   : > { %3540 = vmatprep.mubr.msk.bf16.mxu1 %vm4114_vm1, %v4113_v5 }
 0x235   : > { %3623 = vmatmul.mubr.msk.bf16.gmra.mrb[8].mxu0 %vm539_vm0, %v4363_v58  ;;  %v1122_v58 = vor.u32 %v1121_v21, %v1118_v48  ;;  %v2044_v48 = vrot.slane %v2042_v40, 1 }
 0x236   : > { %3626 = vmatprep.mubr.msk.bf16.mxu0 %vm4114_vm1, %v4113_v5 }
 0x237   : > { %v1123_v12 = vsel %vm1061_vm10, %v1113_v36, %v1122_v58 }
 0x23b   : > { %3541 = vmatmul.mubr.msk.bf16.gmra.mrb[52].mxu1 %vm539_vm0, %v1114_v14 }
 0x23c   : > { %3544 = vmatprep.mubr.msk.bf16.mxu1 %vm4114_vm1, %v4113_v5 }
 0x23d   : > { %3627 = vmatmul.mubr.msk.bf16.gmra.mrb[12].mxu0 %vm539_vm0, %v4387_v25  ;;  %v1259_v25 = vrot.slane %v1080_v11, 3  ;;  %v1804_v11 = vrot.slane %v1802_v31, 1  ;;  %v4085_v31 = vld [vmem:[#allocation2 + $0x3c] ss:$0 sps:$4 sm:$0x77]  }
 0x23e   : > { %3630 = vmatprep.mubr.msk.bf16.mxu0 %vm4114_vm1, %v4113_v5 }
 0x243   : > { %3545 = vmatmul.mubr.msk.bf16.gmra.mrb[56].mxu1 %vm539_vm0, %v1123_v12  ;;  %v2048_v12 = vor.u32 %v2046_v39, %v2044_v48  ;;  %v2068_v39 = vrot.slane %v2066_v46, 1  ;;  %v2078_v46 = vshrl.u32 %v4085_v31, 16 }
 0x244   : > { %3548 = vmatprep.mubr.msk.bf16.mxu1 %vm4114_vm1, %v4113_v5 }
 0x245   : > { %3631 = vmatmul.mubr.msk.bf16.gmra.mrb[16].mxu0 %vm539_vm0, %v4407_v55  ;;  %v1260_v55 = vrot.slane %v1083_v51, 4  ;;  %v1805_v51 = vor.u32 %v1804_v11, %v1800_v18  ;;  %v2209_v18 = vld [vmem:[#allocation2 + $0xc] sm:$0xe] }
 0x246   : > { %3634 = vmatprep.mubr.msk.bf16.mxu0 %vm4114_vm1, %v4113_v5 }
 0x247   : > { %v1261_v63 = vor.u32 %v1260_v55, %v1259_v25  ;;  %v1809_v33 = vsel %vm1799_vm8, %v1805_v51, %v4367_v60  ;;  %v1268_v60 = vrot.slane %v1101_v17, 4  ;;  %v1978_v17 = vld [vmem:[#allocation2 + $0x10] sm:$0xf]  ;;  %v2218_v51 = vrot.slane %v4458_v8, 1 }
 0x248   : > { %v2222_v8 = vrot.slane %v4471_v26, 1 }
 0x249   : > { %v1262_v28 = vsel %vm1246_vm7, %v4335_v27, %v1261_v63 }
 0x24b   : > { %3549 = vmatmul.mubr.msk.bf16.gmra.mrb[60].mxu1 %vm539_vm0, %v1122_v58  ;;  %v2052_v58 = vrot.slane %v2050_v43, 1 }
 0x24c   : > { %3554 = vmatprep.mubr.msk.bf16.mxu1 %vm4114_vm1, %v4113_v5 }
 0x24d   : > { %3635 = vmatmul.mubr.msk.bf16.gmra.mrb[20].mxu0 %vm539_vm0, %v4428_v35  ;;  %v2053_v25 = vsel %vm1799_vm8, %v2048_v12, %v2052_v58  ;;  %v2056_v40 = vor.u32 %v2054_v41, %v2052_v58  ;;  %v2072_v41 = vor.u32 %v2070_v47, %v2068_v39 }
 0x24e   : > { %3638 = vmatprep.mubr.msk.bf16.mxu0 %vm4114_vm1, %v4113_v5 }
 0x253   : > { %3555 = vmatmul.mubr.msk.bf16.vlgmr.msra.gmra.mrb[36].mxu1 %vm539_vm0, %v4342_v34  ;;  %v1263_v34 = vrot.slane %v1089_v61, 3  ;;  %v1267_v61 = vrot.slane %v1098_v16, 3 }
 0x254   : > { %3558 = vmatprep.mubr.msk.bf16.mxu1 %vm4114_vm1, %v4113_v5 }
 0x255   : > { %3639 = vmatmul.mubr.msk.bf16.gmra.mrb[24].mxu0 %vm539_vm0, %v3214_v2  ;;  %v1265_v27 = vor.u32 %v1264_v53, %v1263_v34  ;;  %v1269_v0 = vor.u32 %v1268_v60, %v1267_v61  ;;  %v4087_v34 = vld [vmem:[%s4936_s4 + $0x40] sm:$0xff]   ;;  %v2226_v61 = vrot.slane %v4477_v37, 1  ;;  %v2228_v60 = vrot.slane %v4085_v31, 1 }
 0x256   : > { %3644 = vmatprep.mubr.msk.bf16.mxu0 %vm4114_vm1, %v4113_v5 }
 0x257   : > { %v1266_v54 = vsel %vm1246_vm7, %v1261_v63, %v1265_v27  ;;  %v1270_v15 = vsel %vm1246_vm7, %v1265_v27, %v1269_v0  ;;  %v1274_v20 = vsel %vm1246_vm7, %v1269_v0, %v4448_v56  ;;  %v1838_v56 = vshrl.u32 %v4428_v35, 16 }
 0x258   : > { %v2229_v0 = vsel %vm2216_vm12, %v2226_v61, %v2228_v60 }
 0x259   : > { %v1840_v16 = vor.u32 %v1838_v56, %v4441_v62  ;;  %v4088_v56 = vld [vmem:[#allocation2 + $0x3c] ss:$0 sps:$4 sm:$0xff]  }
 0x25b   : > { %3559 = vmatmul.mubr.msk.bf16.gmra.mrb[40].mxu1 %vm539_vm0, %v1262_v28  ;;  %v3253_v28 = vcombine.low %v2209_v18, %v1978_v17 }
 0x25c   : > { %3562 = vmatprep.mubr.msk.bf16.mxu1 %vm4114_vm1, %v4113_v5 }
 0x25d   : > { %3645 = vmatmul.mubr.msk.bf16.vlgmr.msra.gmra.mrb[0].mxu0 %vm539_vm0, %v1809_v33  ;;  %v2217_v47 = vrot.slane %v3253_v28, 1 }
 0x25e   : > { %3648 = vmatprep.mubr.msk.bf16.mxu0 %vm4114_vm1, %v4113_v5  ;;  %3673 = vmatpush3.bf16.msra.mxu0 %v4075_v19  ;;  %v2220_v19 = vrot.slane %v4469_v24, 1 }
 0x25f   : > { %3702 = vmatprep.subr.bf16.mxu0 %v4113_v5  ;;  %v2219_v53 = vsel %vm2216_vm12, %v2217_v47, %v2218_v51 }
 0x260   : > { %v2221_v33 = vsel %vm2216_vm12, %v2218_v51, %v2220_v19  ;;  %v2223_v27 = vsel %vm2216_vm12, %v2220_v19, %v2222_v8 }
 0x263   : > { %3563 = vmatmul.mubr.msk.bf16.gmra.mrb[44].mxu1 %vm539_vm0, %v1266_v54  ;;  %v2224_v54 = vrot.slane %v4474_v32, 1  ;;  %v2367_v32 = vshrl.u32 %v3253_v28, 16 }
 0x264   : > { %3566 = vmatprep.mubr.msk.bf16.mxu1 %vm4114_vm1, %v4113_v5 }
 0x265   : > { %3649 = vmatmul.mubr.msk.bf16.gmra.mrb[4].mxu0 %vm539_vm0, %v4382_v22  ;;  %v4077_v22 = vld [vmem:[#allocation2 + $0x38] ss:$0 sps:$4 sm:$0x77]   ;;  %v2225_v24 = vsel %vm2216_vm12, %v2222_v8, %v2224_v54  ;;  %v2227_v26 = vsel %vm2216_vm12, %v2224_v54, %v2226_v61  ;;  %v2369_v37 = vrot.slane %v2367_v32, 1 }
 0x266   : > { %3652 = vmatprep.mubr.msk.bf16.mxu0 %vm4114_vm1, %v4113_v5  ;;  %v1846_v57 = vshrl.u32 %v4077_v22, 16 }
 0x26b   : > { %3567 = vmatmul.mubr.msk.bf16.gmra.mrb[48].mxu1 %vm539_vm0, %v1270_v15  ;;  %v2370_v15 = vshll.u32 %v3253_v28, 16 }
 0x26c   : > { %3570 = vmatprep.mubr.msk.bf16.mxu1 %vm4114_vm1, %v4113_v5 }
 0x26d   : > { %3653 = vmatmul.mubr.msk.bf16.gmra.mrb[8].mxu0 %vm539_vm0, %v4402_v50  ;;  %v1842_v50 = vshll.u32 %v4077_v22, 16 }
 0x26e   : > { %3656 = vmatprep.mubr.msk.bf16.mxu0 %vm4114_vm1, %v4113_v5 }
 0x273   : > { %3571 = vmatmul.mubr.msk.bf16.gmra.mrb[52].mxu1 %vm539_vm0, %v1274_v20  ;;  %v2372_v20 = vrot.slane %v2370_v15, 2 }
 0x274   : > { %3574 = vmatprep.mubr.msk.bf16.mxu1 %vm4114_vm1, %v4113_v5 }
 0x275   : > { %3657 = vmatmul.mubr.msk.bf16.gmra.mrb[12].mxu0 %vm539_vm0, %v4420_v23  ;;  %v1844_v23 = vrot.slane %v1842_v50, 1  ;;  %v2373_v22 = vor.u32 %v2372_v20, %v2369_v37 }
 0x276   : > { %3660 = vmatprep.mubr.msk.bf16.mxu0 %vm4114_vm1, %v4113_v5 }
 0x277   : > { %v1848_v36 = vor.u32 %v1846_v57, %v1844_v23  ;;  %v2377_v50 = vsel %vm2365_vm11, %v2373_v22, %v4514_v6  ;;  %v2395_v6 = vshrl.u32 %v4088_v56, 16 }
 0x27b   : > { %3575 = vmatmul.mubr.msk.bf16.gmra.mrb[56].mxu1 %vm539_vm0, %v4463_v13  ;;  %v1845_v13 = vsel %vm1799_vm8, %v1840_v16, %v1844_v23  ;;  %v2398_v23 = vshll.u32 %v4088_v56, 16  ;;  %v2397_v16 = vrot.slane %v2395_v6, 1 }
 0x27c   : > { %3578 = vmatprep.mubr.msk.bf16.mxu1 %vm4114_vm1, %v4113_v5 }
 0x27d   : > { %3661 = vmatmul.mubr.msk.bf16.gmra.mrb[16].mxu0 %vm539_vm0, %v4454_v4  ;;  %v3236_v4 = vcombine.low %v1977_v42, %v1978_v17 }
 0x27e   : > { %3664 = vmatprep.mubr.msk.bf16.mxu0 %vm4114_vm1, %v4113_v5 }
 0x27f   : > { %v2029_v9 = vshll.u32 %v3236_v4, 16  ;;  %v2027_v62 = vshrl.u32 %v3236_v4, 16 }
 0x281   : > { %v2031_v35 = vrot.slane %v2029_v9, 1 }
 0x283   : > { %3579 = vmatmul.mubr.msk.bf16.gmra.mrb[60].mxu1 %vm539_vm0, %v4450_v3  ;;  %v2036_v3 = vrot.slane %v2034_v10, 1  ;;  %v2032_v59 = vor.u32 %v2031_v35, %v2027_v62 }
 0x285   : > { %3665 = vmatmul.mubr.msk.bf16.gmra.mrb[20].mxu0 %vm539_vm0, %v1845_v13  ;;  %v2037_v14 = vsel %vm1799_vm8, %v2032_v59, %v2036_v3  ;;  %v2040_v10 = vor.u32 %v2038_v30, %v2036_v3  ;;  %v2060_v30 = vrot.slane %v2058_v45, 1  ;;  %v2074_v45 = vshll.u32 %v4085_v31, 16 }
 0x286   : > { %3668 = vmatprep.mubr.msk.bf16.mxu0 %vm4114_vm1, %v4113_v5 }
 0x287   : > { %v2045_v21 = vsel %vm1799_vm8, %v2040_v10, %v2044_v48  ;;  %v2061_v55 = vsel %vm1799_vm8, %v2056_v40, %v2060_v30  ;;  %v2064_v43 = vor.u32 %v2062_v44, %v2060_v30  ;;  %v2076_v63 = vrot.slane %v2074_v45, 1  ;;  %v4089_v45 = vld [vmem:[%s4938_s6] sm:$0xff]  }
 0x288   : > { %3776 = vmatprep.mubr.msk.bf16.mxu1 %vm2573_vm13, %v4089_v45 }
 0x289   : > { %v2069_v2 = vsel %vm1799_vm8, %v2064_v43, %v2068_v39  ;;  %v2077_v11 = vsel %vm1799_vm8, %v2072_v41, %v2076_v63  ;;  %v2080_v44 = vor.u32 %v2078_v46, %v2076_v63 }
 0x28d   : > { %3669 = vmatmul.mubr.msk.bf16.gmra.mrb[24].mxu0 %vm539_vm0, %v1848_v36 }
 0x28e   : > { %3674 = vmatprep.mubr.msk.bf16.mxu0 %vm4114_vm1, %v4113_v5 }
 0x295   : > { %3675 = vmatmul.mubr.msk.bf16.vlgmr.msra.gmra.mrb[0].mxu0 %vm539_vm0, %v2037_v14 }
 0x296   : > { %3678 = vmatprep.mubr.msk.bf16.mxu0 %vm4114_vm1, %v4113_v5  ;;  %3703 = vmatpush3.bf16.msra.mxu0 %v4080_v7 }
 0x297   : > { %3732 = vmatprep.subr.bf16.mxu0 %v4113_v5 }
 0x29d   : > { %3679 = vmatmul.mubr.msk.bf16.gmra.mrb[4].mxu0 %vm539_vm0, %v2045_v21 }
 0x29e   : > { %3682 = vmatprep.mubr.msk.bf16.mxu0 %vm4114_vm1, %v4113_v5 }
 0x2a5   : > { %3683 = vmatmul.mubr.msk.bf16.gmra.mrb[8].mxu0 %vm539_vm0, %v2053_v25 }
 0x2a6   : > { %3686 = vmatprep.mubr.msk.bf16.mxu0 %vm4114_vm1, %v4113_v5 }
 0x2ad   : > { %3687 = vmatmul.mubr.msk.bf16.gmra.mrb[12].mxu0 %vm539_vm0, %v2061_v55 }
 0x2ae   : > { %3690 = vmatprep.mubr.msk.bf16.mxu0 %vm4114_vm1, %v4113_v5 }
 0x2b5   : > { %3691 = vmatmul.mubr.msk.bf16.gmra.mrb[16].mxu0 %vm539_vm0, %v2069_v2 }
 0x2b6   : > { %3694 = vmatprep.mubr.msk.bf16.mxu0 %vm4114_vm1, %v4113_v5 }
 0x2bd   : > { %3695 = vmatmul.mubr.msk.bf16.gmra.mrb[20].mxu0 %vm539_vm0, %v2077_v11 }
 0x2be   : > { %3698 = vmatprep.mubr.msk.bf16.mxu0 %vm4114_vm1, %v4113_v5 }
 0x2c5   : > { %3699 = vmatmul.mubr.msk.bf16.gmra.mrb[24].mxu0 %vm539_vm0, %v2080_v44 }
 0x2c6   : > { %3704 = vmatprep.mubr.msk.bf16.mxu0 %vm4114_vm1, %v4113_v5 }
 0x2cd   : > { %3705 = vmatmul.mubr.msk.bf16.vlgmr.msra.gmra.mrb[0].mxu0 %vm539_vm0, %v2219_v53 }
 0x2ce   : > { %3708 = vmatprep.mubr.msk.bf16.mxu0 %vm4114_vm1, %v4113_v5  ;;  %3733 = vmatpush3.bf16.msra.mxu0 %v4087_v34 }
 0x2d5   : > { %3709 = vmatmul.mubr.msk.bf16.gmra.mrb[4].mxu0 %vm539_vm0, %v2221_v33 }
 0x2d6   : > { %3712 = vmatprep.mubr.msk.bf16.mxu0 %vm4114_vm1, %v4113_v5 }
 0x2dd   : > { %3713 = vmatmul.mubr.msk.bf16.gmra.mrb[8].mxu0 %vm539_vm0, %v2223_v27 }
 0x2de   : > { %3716 = vmatprep.mubr.msk.bf16.mxu0 %vm4114_vm1, %v4113_v5 }
 0x2e5   : > { %3717 = vmatmul.mubr.msk.bf16.gmra.mrb[12].mxu0 %vm539_vm0, %v2225_v24 }
 0x2e6   : > { %3720 = vmatprep.mubr.msk.bf16.mxu0 %vm4114_vm1, %v4113_v5 }
 0x2ed   : > { %3721 = vmatmul.mubr.msk.bf16.gmra.mrb[16].mxu0 %vm539_vm0, %v2227_v26 }
 0x2ee   : > { %3724 = vmatprep.mubr.msk.bf16.mxu0 %vm4114_vm1, %v4113_v5 }
 0x2f5   : > { %3725 = vmatmul.mubr.msk.bf16.gmra.mrb[20].mxu0 %vm539_vm0, %v2229_v0 }
 0x2f6   : > { %3728 = vmatprep.mubr.msk.bf16.mxu0 %vm4114_vm1, %v4113_v5 }
 0x2fd   : > { %3729 = vmatmul.mubr.msk.bf16.gmra.mrb[24].mxu0 %vm539_vm0, %v2228_v60 }
 0x2fe   : > { %3734 = vmatprep.mubr.msk.bf16.mxu0 %vm4114_vm1, %v4113_v5 }
 0x305   : > { %3735 = vmatmul.mubr.msk.bf16.vlgmr.msra.gmra.mrb[0].mxu0 %vm539_vm0, %v2377_v50 }
 0x306   : > { %3738 = vmatprep.mubr.msk.bf16.mxu0 %vm4114_vm1, %v4113_v5 }
 0x30d   : > { %3739 = vmatmul.mubr.msk.bf16.gmra.mrb[4].mxu0 %vm539_vm0, %v4532_v38  ;;  %v2400_v38 = vrot.slane %v2398_v23, 2 }
 0x30e   : > { %3742 = vmatprep.mubr.msk.bf16.mxu0 %vm4114_vm1, %v4113_v5 }
 0x30f   : > { %v2401_v42 = vor.u32 %v2400_v38, %v2397_v16 }
 0x315   : > { %3743 = vmatmul.mubr.msk.bf16.gmra.mrb[8].mxu0 %vm539_vm0, %v4541_v52 }
 0x316   : > { %3746 = vmatprep.mubr.msk.bf16.mxu0 %vm4114_vm1, %v4113_v5 }
 0x31d   : > { %3747 = vmatmul.mubr.msk.bf16.gmra.mrb[12].mxu0 %vm539_vm0, %v4544_v29  ;;  %v2402_v29 = vsel %vm2365_vm11, %v4534_v49, %v2401_v42 }
 0x31e   : > { %3750 = vmatprep.mubr.msk.bf16.mxu0 %vm4114_vm1, %v4113_v5 }
 0x325   : > { %3751 = vmatmul.mubr.msk.bf16.gmra.mrb[16].mxu0 %vm539_vm0, %v4548_v1 }
 0x326   : > { %v1345_v17 = vpop.f32.mrb[36].mxu1  ;;  %3754 = vmatprep.mubr.msk.bf16.mxu0 %vm4114_vm1, %v4113_v5 }
 0x327   : > { %v3556_v52 = vpop.f32.mrb[37].mxu1 }
 0x328   : > { %v1348_v13 = vpop.f32.mrb[38].mxu1 }
 0x329   : > { %v3557_v4 = vpop.f32.mrb[39].mxu1 }
 0x32d   : > { %3755 = vmatmul.mubr.msk.bf16.gmra.mrb[20].mxu0 %vm539_vm0, %v2402_v29 }
 0x32e   : > { %v1353_v57 = vpop.f32.mrb[40].mxu1  ;;  %3758 = vmatprep.mubr.msk.bf16.mxu0 %vm4114_vm1, %v4113_v5 }
 0x32f   : > { %v3560_v9 = vpop.f32.mrb[41].mxu1 }
 0x330   : > { %v1356_v36 = vpop.f32.mrb[42].mxu1 }
 0x331   : > { %v3561_v1 = vpop.f32.mrb[43].mxu1 }
 0x335   : > { %3759 = vmatmul.mubr.msk.bf16.gmra.mrb[24].mxu0 %vm539_vm0, %v2401_v42 }
 0x336   : > { %v1361_v35 = vpop.f32.mrb[44].mxu1 }
 0x337   : > { %v3564_v62 = vpop.f32.mrb[45].mxu1 }
 0x338   : > { %v1364_v3 = vpop.f32.mrb[46].mxu1 }
 0x339   : > { %v3565_v59 = vpop.f32.mrb[47].mxu1 }
 0x33e   : > { %v1369_v7 = vpop.f32.mrb[48].mxu1 }
 0x33f   : > { %v3568_v14 = vpop.f32.mrb[49].mxu1 }
 0x340   : > { %v1372_v48 = vpop.f32.mrb[50].mxu1 }
 0x341   : > { %v3569_v10 = vpop.f32.mrb[51].mxu1 }
 0x342   : > { %v4090_v10 = vld [vmem:[%s4938_s6 + $0x8] sm:$0xff]  }
 0x346   : > { %v1377_v49 = vpop.f32.mrb[52].mxu1 }
 0x347   : > { %v3572_v21 = vpop.f32.mrb[53].mxu1 }
 0x348   : > { %v1380_v58 = vpop.f32.mrb[54].mxu1  ;;  %v4092_v21 = vld [vmem:[%s4938_s6 + $0x18] sm:$0xff]  }
 0x349   : > { %v3573_v12 = vpop.f32.mrb[55].mxu1 }
 0x34a   : > { %v3273_v12 = vld [vmem:[%s4937_s5] ss:$0 sm:$0xff] }
 0x34e   : > { %v1385_v25 = vpop.f32.mrb[56].mxu1 }
 0x34f   : > { %v3576_v30 = vpop.f32.mrb[57].mxu1 }
 0x350   : > { %v1388_v40 = vpop.f32.mrb[58].mxu1 }
 0x351   : > { %v3577_v55 = vpop.f32.mrb[59].mxu1 }
 0x356   : > { %v1393_v39 = vpop.f32.mrb[60].mxu1 }
 0x357   : > { %v3580_v43 = vpop.f32.mrb[61].mxu1 }
 0x358   : > { %v1396_v31 = vpop.f32.mrb[62].mxu1 }
 0x359   : > { %v3581_v2 = vpop.f32.mrb[63].mxu1 }
 0x3d8   : > { %v2464_v41 = vpop.f32.mrb[0].mxu0 }
 0x3d9   : > { %v3818_v63 = vadd.f32 %v2464_v41, %v1345_v17  ;;  %v3736_v11 = vpop.f32.mrb[1].mxu0 }
 0x3da   : > { %v2467_v46 = vpop.f32.mrb[2].mxu0 }
 0x3db   : > { %v3819_v44 = vadd.f32 %v2467_v46, %v1348_v13  ;;  %v3737_v18 = vpop.f32.mrb[3].mxu0 }
 0x3dd   : > { %v2539_v28 = vpack.c.bf16 %v3819_v44, %v3818_v63 }
 0x3df   : > { %3762 = vmatprep.subr.bf16.mxu1 %v2539_v28 }
 0x3e0   : > { %v2472_v51 = vpop.f32.mrb[4].mxu0  ;;  %3763 = vmatpush3.bf16.msra.mxu1 %v2539_v28 }
 0x3e1   : > { %v3820_v47 = vadd.f32 %v2472_v51, %v1353_v57  ;;  %v3740_v34 = vpop.f32.mrb[5].mxu0 }
 0x3e2   : > { %v2475_v53 = vpop.f32.mrb[6].mxu0 }
 0x3e3   : > { %v3821_v19 = vadd.f32 %v2475_v53, %v1356_v36  ;;  %v3741_v33 = vpop.f32.mrb[7].mxu0 }
 0x3e5   : > { %v2540_v8 = vpack.c.bf16 %v3821_v19, %v3820_v47 }
 0x3e7   : > { %3764 = vmatprep.subr.bf16.mxu1 %v2540_v8 }
 0x3e8   : > { %v2480_v27 = vpop.f32.mrb[8].mxu0  ;;  %3765 = vmatpush3.bf16.msra.mxu1 %v2540_v8 }
 0x3e9   : > { %v3822_v54 = vadd.f32 %v2480_v27, %v1361_v35  ;;  %v3744_v24 = vpop.f32.mrb[9].mxu0 }
 0x3ea   : > { %v2483_v61 = vpop.f32.mrb[10].mxu0 }
 0x3eb   : > { %v3823_v26 = vadd.f32 %v2483_v61, %v1364_v3  ;;  %v3745_v60 = vpop.f32.mrb[11].mxu0 }
 0x3ec   : > { %v4094_v60 = vld [vmem:[%s4941_s9] sm:$0xff]  }
 0x3ed   : > { %v2541_v0 = vpack.c.bf16 %v3823_v26, %v3822_v54 }
 0x3ef   : > { %3766 = vmatprep.subr.bf16.mxu1 %v2541_v0 }
 0x3f0   : > { %v2488_v32 = vpop.f32.mrb[12].mxu0  ;;  %3767 = vmatpush3.bf16.msra.mxu1 %v2541_v0  ;;  %v4095_v0 = vld [vmem:[%s4941_s9 + $0x8] sm:$0xff]  }
 0x3f1   : > { %v3824_v15 = vadd.f32 %v2488_v32, %v1369_v7  ;;  %v3748_v37 = vpop.f32.mrb[13].mxu0  ;;  %v3282_v32 = vld [vmem:[%s4940_s8] ss:$0 sm:$0xff] }
 0x3f2   : > { %v2491_v20 = vpop.f32.mrb[14].mxu0 }
 0x3f3   : > { %v3825_v22 = vadd.f32 %v2491_v20, %v1372_v48  ;;  %v3749_v50 = vpop.f32.mrb[15].mxu0 }
 0x3f5   : > { %v2542_v56 = vpack.c.bf16 %v3825_v22, %v3824_v15 }
 0x3f7   : > { %3768 = vmatprep.subr.bf16.mxu1 %v2542_v56 }
 0x3f8   : > { %v2496_v6 = vpop.f32.mrb[16].mxu0  ;;  %3769 = vmatpush3.bf16.msra.mxu1 %v2542_v56 }
 0x3f9   : > { %v3826_v23 = vadd.f32 %v2496_v6, %v1377_v49  ;;  %v3752_v16 = vpop.f32.mrb[17].mxu0  ;;  %v4091_v49 = vld [vmem:[%s4938_s6 + $0x10] sm:$0xff]  }
 0x3fa   : > { %v2499_v38 = vpop.f32.mrb[18].mxu0 }
 0x3fb   : > { %v3827_v17 = vadd.f32 %v2499_v38, %v1380_v58  ;;  %v3753_v52 = vpop.f32.mrb[19].mxu0  ;;  %v4093_v58 = vld [vmem:[%s4939_s7] sm:$0xff]  }
 0x3fd   : > { %v2543_v13 = vpack.c.bf16 %v3827_v17, %v3826_v23 }
 0x3ff   : > { %3770 = vmatprep.subr.bf16.mxu1 %v2543_v13 }
 0x400   : > { %v2504_v42 = vpop.f32.mrb[20].mxu0  ;;  %3771 = vmatpush3.bf16.msra.mxu1 %v2543_v13 }
 0x401   : > { %v3828_v4 = vadd.f32 %v2504_v42, %v1385_v25  ;;  %v3756_v29 = vpop.f32.mrb[21].mxu0 }
 0x402   : > { %v2507_v57 = vpop.f32.mrb[22].mxu0 }
 0x403   : > { %v3829_v9 = vadd.f32 %v2507_v57, %v1388_v40  ;;  %v3757_v36 = vpop.f32.mrb[23].mxu0 }
 0x405   : > { %v2544_v1 = vpack.c.bf16 %v3829_v9, %v3828_v4 }
 0x407   : > { %3772 = vmatprep.subr.bf16.mxu1 %v2544_v1 }
 0x408   : > { %v2512_v35 = vpop.f32.mrb[24].mxu0  ;;  %3773 = vmatpush3.bf16.msra.mxu1 %v2544_v1 }
 0x409   : > { %v3830_v62 = vadd.f32 %v2512_v35, %v1393_v39  ;;  %v3760_v3 = vpop.f32.mrb[25].mxu0 }
 0x40a   : > { %v2515_v59 = vpop.f32.mrb[26].mxu0 }
 0x40b   : > { %v2545_v7 = vpack.c.bf16 %v3830_v62, %v3830_v62  ;;  %v3761_v14 = vpop.f32.mrb[27].mxu0 }
 0x40d   : > { %v2588_v48 = vsel %vm2586_vm14, %v2545_v7, 0  ;;  %4027 = vmatprep.subr.msk.bf16.mxu1 %vm2586_vm14, %v2545_v7 }
 0x40e   : > { %3775 = vmatpush3.bf16.msra.mxu1 %v2588_v48 }
 0x40f   : > { %3784 = vmatprep.subr.bf16.mxu1 %v4093_v58 }
 0x411   : > { %3777 = vmatmul.mubr.msk.bf16.vlgmr.msra.gmra.mrb[64].mxu1 %vm2573_vm13, %v4090_v10 }
 0x412   : > { %3780 = vmatprep.mubr.msk.bf16.mxu1 %vm2573_vm13, %v4091_v49  ;;  %3785 = vmatpush3.bf16.msra.mxu1 %v4093_v58 }
 0x413   : > { %3794 = vmatprep.subr.bf16.mxu1 %v4113_v5 }
 0x419   : > { %3781 = vmatmul.mubr.msk.bf16.gmra.mrb[68].mxu1 %vm2573_vm13, %v4092_v21 }
 0x4e4   : > { %v3778_v25 = vpop.f32.mrb[64].mxu1 }
 0x4e5   : > { %v2633_v30 = vadd.f32 %v3778_v25, %v3273_v12  ;;  %v2624_v40 = vpop.f32.mrb[65].mxu1 }
 0x4e6   : > { %v2625_v55 = vadd.f32 %v3273_v12, %v2624_v40  ;;  %v3779_v39 = vpop.f32.mrb[66].mxu1 }
 0x4e7   : > { %v2636_v43 = vadd.f32 %v3779_v39, %v3273_v12  ;;  %v2627_v31 = vpop.f32.mrb[67].mxu1  ;;  %v2657_v45 = vmax.f32 %v2633_v30, 0.0 }
 0x4e8   : > { %v2628_v2 = vadd.f32 %v3273_v12, %v2627_v31  ;;  %v2655_v63 = vmax.f32 %v2625_v55, 0.0 }
 0x4e9   : > { %v2658_v41 = vmax.f32 %v2636_v43, 0.0 }
 0x4ea   : > { %v2656_v11 = vmax.f32 %v2628_v2, 0.0  ;;  %v2846_v2 = vld [vmem:[%s4943_s11] sm:$0xf] }
 0x4eb   : > { %v2664_v46 = vpack.c.bf16 %v2658_v41, %v2657_v45  ;;  %v2854_v45 = vsel %vm2852_vm2, %v2846_v2, 0  ;;  %v4096_v41 = vld [vmem:[%s4945_s13] sm:$0xff]  }
 0x4ec   : > { %v2663_v44 = vpack.c.bf16 %v2656_v11, %v2655_v63  ;;  %v3782_v18 = vpop.f32.mrb[68].mxu1  ;;  %v2788_v63 = vld [vmem:[%s4942_s10] sm:$0x1] }
 0x4ed   : > { %v2649_v28 = vadd.f32 %v3782_v18, %v3273_v12  ;;  %v2640_v51 = vpop.f32.mrb[69].mxu1 }
 0x4ee   : > { %v2641_v47 = vadd.f32 %v3273_v12, %v2640_v51  ;;  %v3783_v34 = vpop.f32.mrb[70].mxu1  ;;  %3786 = vmatprep.mubr.msk.bf16.mxu1 %vm539_vm0, %v2663_v44 }
 0x4ef   : > { %v2652_v53 = vadd.f32 %v3783_v34, %v3273_v12  ;;  %v2643_v19 = vpop.f32.mrb[71].mxu1  ;;  %3787 = vmatmul.mubr.msk.bf16.vlgmr.msra.gmra.mrb[72].mxu1 %vm539_vm0, %v2664_v46  ;;  %v2661_v8 = vmax.f32 %v2649_v28, 0.0  ;;  %v4102_v34 = vld [vmem:[%s4215_s25 + $0x8] sm:$0xff]  }
 0x4f0   : > { %v2644_v33 = vadd.f32 %v3273_v12, %v2643_v19  ;;  %v2659_v54 = vmax.f32 %v2641_v47, 0.0  ;;  %3795 = vmatpush3.bf16.msra.mxu1 %v4094_v60  ;;  %v4101_v47 = vld [vmem:[%s4215_s25] sm:$0xff]   ;;  %v4104_v19 = vld [vmem:[%s4215_s25 + $0x18] sm:$0xff]  }
 0x4f1   : > { %v2662_v27 = vmax.f32 %v2652_v53, 0.0  ;;  %3796 = vmatprep.subr.bf16.mxu1 %v4113_v5  ;;  %v4103_v53 = vld [vmem:[%s4215_s25 + $0x10] sm:$0xff]  }
 0x4f2   : > { %v2660_v24 = vmax.f32 %v2644_v33, 0.0  ;;  %v2847_v33 = vld [vmem:[%s4944_s12] sm:$0x1] }
 0x4f3   : > { %v2666_v61 = vpack.c.bf16 %v2662_v27, %v2661_v8 }
 0x4f4   : > { %v2665_v26 = vpack.c.bf16 %v2660_v24, %v2659_v54  ;;  %3797 = vmatpush3.bf16.msra.mxu1 %v4095_v0 }
 0x4f5   : > { %3802 = vmatprep.subr.bf16.mxu1 %v4113_v5 }
 0x4f6   : > { %3790 = vmatprep.mubr.msk.bf16.mxu1 %vm539_vm0, %v2665_v26 }
 0x4f7   : > { %3791 = vmatmul.mubr.msk.bf16.gmra.mrb[76].mxu1 %vm539_vm0, %v2666_v61 }
 0x4f8   : > { %3798 = vmatprep.mubr.msk.bf16.mxu1 %vm4114_vm1, %v4113_v5 }
 0x5c2   : > { %v3788_v15 = vpop.f32.mrb[72].mxu1 }
 0x5c3   : > { %v2728_v37 = vpop.f32.mrb[73].mxu1  ;;  %v4852_v56 = vadd.f32 %v3788_v15, %v3282_v32 }
 0x5c4   : > { %v4850_v20 = vadd.f32 %v3282_v32, %v2728_v37  ;;  %v3789_v22 = vpop.f32.mrb[74].mxu1 }
 0x5c5   : > { %v2731_v50 = vpop.f32.mrb[75].mxu1  ;;  %v4858_v16 = vadd.f32 %v3789_v22, %v3282_v32  ;;  %v2763_v52 = vsel %vm2759_vm15, %v4852_v56, 0.0 }
 0x5c6   : > { %v4854_v6 = vadd.f32 %v3282_v32, %v2731_v50  ;;  %v2760_v23 = vsel %vm2759_vm15, %v4850_v20, 0.0 }
 0x5c7   : > { %v2765_v29 = vsel %vm2759_vm15, %v4858_v16, 0.0 }
 0x5c8   : > { %v2761_v38 = vsel %vm2759_vm15, %v4854_v6, 0.0 }
 0x5c9   : > { %v2762_v17 = vadd.f32 %v2761_v38, %v2760_v23  ;;  %v2982_v23 = vlaneseq }
 0x5ca   : > { %v3792_v13 = vpop.f32.mrb[76].mxu1 }
 0x5cb   : > { %v2764_v42 = vadd.f32 %v2763_v52, %v2762_v17  ;;  %v2744_v4 = vpop.f32.mrb[77].mxu1  ;;  %v4868_v35 = vadd.f32 %v3792_v13, %v3282_v32  ;;  %v2983_v13 = vshrl.u32 %v2982_v23, 7 }
 0x5cc   : > { %v4866_v57 = vadd.f32 %v3282_v32, %v2744_v4  ;;  %v3793_v9 = vpop.f32.mrb[78].mxu1  ;;  %v3293_v4 = vld [vmem:[%s4946_s14] ss:$0 sm:$0xff] }
 0x5cd   : > { %v2766_v36 = vadd.f32 %v2765_v29, %v2764_v42  ;;  %v2747_v1 = vpop.f32.mrb[79].mxu1  ;;  %v4874_v7 = vadd.f32 %v3793_v9, %v3282_v32  ;;  %v2771_v10 = vsel %vm2759_vm15, %v4868_v35, 0.0  ;;  %v2984_v42 = vsub.s32 0, %v2983_v13 }
 0x5ce   : > { %v2767_v62 = vsel %vm2759_vm15, %v4866_v57, 0.0  ;;  %v4872_v3 = vadd.f32 %v3282_v32, %v2747_v1 }
 0x5cf   : > { %v2768_v59 = vadd.f32 %v2767_v62, %v2766_v36  ;;  %v2773_v21 = vsel %vm2759_vm15, %v4874_v7, 0.0 }
 0x5d0   : > { %v2769_v14 = vsel %vm2759_vm15, %v4872_v3, 0.0 }
 0x5d1   : > { %v2770_v48 = vadd.f32 %v2769_v14, %v2768_v59 }
 0x5d3   : > { %v2772_v49 = vadd.f32 %v2771_v10, %v2770_v48 }
 0x5d5   : > { %v2774_v58 = vadd.f32 %v2773_v21, %v2772_v49 }
 0x5d7   : > { %v2775_v12 = vrot.slane %v2774_v58, 4 }
 0x5d9   : > { %v2776_v25 = vadd.f32 %v2775_v12, %v2774_v58 }
 0x5db   : > { %v2777_v30 = vrot.slane %v2776_v25, 2 }
 0x5dd   : > { %v2778_v40 = vadd.f32 %v2777_v30, %v2776_v25 }
 0x5df   : > { %v2779_v55 = vrot.slane %v2778_v40, 1 }
 0x5e1   : > { %v2780_v39 = vadd.f32 %v2779_v55, %v2778_v40 }
 0x5e3   : > { %v2782_v43 = vmul.f32 0.015625, %v2780_v39 }
 0x5e5   : > { %v2783_v31 = vpack.c.bf16 %v2782_v43, %v2782_v43 }
 0x5e7   : > { %3799 = vmatmul.mubr.msk.bf16.vlgmr.msra.gmra.mrb[80].mxu1 %vm2759_vm15, %v2783_v31 }
 0x5e8   : > { %3804 = vmatprep.mubr.msk.bf16.mxu1 %vm4114_vm1, %v4113_v5  ;;  %3803 = vmatpush3.bf16.msra.mxu1 %v2854_v45  ;;  %vm2848_vm1 = vcmask 64512  }
 0x5e9   : > { %3808 = vmatprep.subr.bf16.mxu1 %v4096_v41 }
 0x6ba   : > { %v2838_v5 = vpop.f32.mrb[80].mxu1 }
 0x6bb   : > { %v2839_v11 = vadd.f32 %v2838_v5, %v2788_v63  ;;  %v3800_v46 = vpop.f32.mrb[81].mxu1 }
 0x6bc   : > { %v2841_v44 = vpop.f32.mrb[82].mxu1 }
 0x6bd   : > { %v2844_v18 = vmax.f32 %v2839_v11, 0.0  ;;  %v3801_v28 = vpop.f32.mrb[83].mxu1 }
 0x6bf   : > { %v2845_v51 = vpack.c.bf16 %v2844_v18, %v2844_v18 }
 0x6c1   : > { %3805 = vmatmul.mubr.msk.bf16.vlgmr.msra.gmra.mrb[84].mxu1 %vm2848_vm1, %v2845_v51 }
 0x6c2   : > { %3809 = vmatpush3.bf16.msra.mxu1 %v4096_v41  ;;  %3810 = vmatprep.mubr.msk.bf16.mxu1 %vm539_vm0, %v4101_v47 }
 0x6c9   : > { %3811 = vmatmul.mubr.msk.bf16.vlgmr.msra.gmra.mrb[88].mxu1 %vm539_vm0, %v4102_v34 }
 0x6ca   : > { %3814 = vmatprep.mubr.msk.bf16.mxu1 %vm539_vm0, %v4103_v53 }
 0x6d1   : > { %3815 = vmatmul.mubr.msk.bf16.gmra.mrb[92].mxu1 %vm539_vm0, %v4104_v19  ;;  %vm3042_vm0 = vcmask 257024  }
 0x794   : > { %v2890_v8 = vpop.f32.mrb[84].mxu1 }
 0x795   : > { %v2891_v27 = vadd.f32 %v2890_v8, %v2847_v33  ;;  %v3806_v54 = vpop.f32.mrb[85].mxu1 }
 0x796   : > { %v2893_v24 = vpop.f32.mrb[86].mxu1 }
 0x797   : > { %v3292_v61 = vmul.f32 -1.442695, %v2891_v27  ;;  %v3807_v26 = vpop.f32.mrb[87].mxu1 }
 0x799   : > { %4097 = vpow2.f32 %v3292_v61 }
 0x79c   : > { %v3812_v60 = vpop.f32.mrb[88].mxu1 }
 0x79d   : > { %v2951_v0 = vpop.f32.mrb[89].mxu1  ;;  %v2960_v9 = vadd.f32 %v3812_v60, %v3293_v4 }
 0x79e   : > { %v3813_v32 = vpop.f32.mrb[90].mxu1  ;;  %v2952_v1 = vadd.f32 %v3293_v4, %v2951_v0 }
 0x79f   : > { %v2954_v15 = vpop.f32.mrb[91].mxu1  ;;  %v2963_v62 = vadd.f32 %v3813_v32, %v3293_v4 }
 0x7a0   : > { %v2955_v59 = vadd.f32 %v3293_v4, %v2954_v15 }
 0x7a3   : > { %v4098_v37 = vpop.eup %4097 }
 0x7a4   : > { %v2899_v22 = vadd.f32 1.0, %v4098_v37  ;;  %v3816_v50 = vpop.f32.mrb[92].mxu1 }
 0x7a5   : > { %v2967_v38 = vpop.f32.mrb[93].mxu1  ;;  %v2976_v14 = vadd.f32 %v3816_v50, %v3293_v4 }
 0x7a6   : > { %4099 = vrcp.f32 %v2899_v22  ;;  %v3817_v17 = vpop.f32.mrb[94].mxu1  ;;  %v2968_v48 = vadd.f32 %v3293_v4, %v2967_v38 }
 0x7a7   : > { %v2970_v52 = vpop.f32.mrb[95].mxu1  ;;  %v2979_v10 = vadd.f32 %v3817_v17, %v3293_v4 }
 0x7a8   : > { %v2971_v49 = vadd.f32 %v3293_v4, %v2970_v52 }
 0x7b0   : > { %v4100_v29 = vpop.eup %4099 }
 0x7b1   : > { %v2985_v36 = vrot.slane %v4100_v29, %v2984_v42 }
 0x7b3   : > { %v2988_v21 = vmul.f32 %v2985_v36, %v4852_v56  ;;  %v2986_v58 = vmul.f32 %v2985_v36, %v4850_v20  ;;  %v2989_v12 = vmul.f32 %v2985_v36, %v4858_v16  ;;  %v2987_v25 = vmul.f32 %v2985_v36, %v4854_v6 }
 0x7b4   : > { %v2992_v30 = vmul.f32 %v2985_v36, %v4868_v35  ;;  %v2990_v40 = vmul.f32 %v2985_v36, %v4866_v57  ;;  %v2993_v55 = vmul.f32 %v2985_v36, %v4874_v7  ;;  %v2991_v39 = vmul.f32 %v2985_v36, %v4872_v3 }
 0x7b5   : > { %v2996_v43 = vadd.f32 %v2988_v21, %v2960_v9  ;;  %v2994_v31 = vadd.f32 %v2986_v58, %v2952_v1  ;;  %v2997_v2 = vadd.f32 %v2989_v12, %v2963_v62  ;;  %v2995_v45 = vadd.f32 %v2987_v25, %v2955_v59 }
 0x7b6   : > { %v3000_v56 = vadd.f32 %v2992_v30, %v2976_v14  ;;  %v2998_v41 = vadd.f32 %v2990_v40, %v2968_v48  ;;  %v3001_v20 = vadd.f32 %v2993_v55, %v2979_v10  ;;  %v2999_v63 = vadd.f32 %v2991_v39, %v2971_v49 }
 0x7b7   : > { %v3004_v16 = vmax.f32 %v2996_v43, 0.0  ;;  %v3002_v5 = vmax.f32 %v2994_v31, 0.0  ;;  %v3005_v6 = vmax.f32 %v2997_v2, 0.0  ;;  %v3003_v11 = vmax.f32 %v2995_v45, 0.0 }
 0x7b8   : > { %v3008_v57 = vmax.f32 %v3000_v56, 0.0  ;;  %v3006_v35 = vmax.f32 %v2998_v41, 0.0  ;;  %v3009_v3 = vmax.f32 %v3001_v20, 0.0  ;;  %v3007_v7 = vmax.f32 %v2999_v63, 0.0 }
 0x7b9   : > { %v3326_v46 = vpack.c.bf16 %v3004_v16, %v3004_v16  ;;  %v3324_v44 = vpack.c.bf16 %v3002_v5, %v3002_v5  ;;  %v3327_v18 = vpack.c.bf16 %v3005_v6, %v3005_v6  ;;  %v3325_v28 = vpack.c.bf16 %v3003_v11, %v3003_v11 }
 0x7ba   : > { %v3330_v51 = vpack.c.bf16 %v3008_v57, %v3008_v57  ;;  %v3328_v47 = vpack.c.bf16 %v3006_v35, %v3006_v35  ;;  %v3331_v34 = vpack.c.bf16 %v3009_v3, %v3009_v3  ;;  %v3329_v53 = vpack.c.bf16 %v3007_v7, %v3007_v7 }
 0x7bb   : > { %3045 = vst.msk [vmem:[%s494_s21 + $0x8] sm:$0xf] %vm3042_vm0, %v3326_v46  ;;  %3043 = vst.msk [vmem:[%s494_s21] sm:$0xf] %vm3042_vm0, %v3324_v44 }
 0x7bc   : > { %3046 = vst.msk [vmem:[%s494_s21 + $0xc] sm:$0xf] %vm3042_vm0, %v3327_v18  ;;  %3044 = vst.msk [vmem:[%s494_s21 + $0x4] sm:$0xf] %vm3042_vm0, %v3325_v28 }
 0x7bd   : > { %3049 = vst.msk [vmem:[%s494_s21 + $0x18] sm:$0xf] %vm3042_vm0, %v3330_v51  ;;  %3047 = vst.msk [vmem:[%s494_s21 + $0x10] sm:$0xf] %vm3042_vm0, %v3328_v47 }
 0x7be   : > { %3050 = vst.msk [vmem:[%s494_s21 + $0x1c] sm:$0xf] %vm3042_vm0, %v3331_v34  ;;  %3048 = vst.msk [vmem:[%s494_s21 + $0x14] sm:$0xf] %vm3042_vm0, %v3329_v53 }
 0x7bf PF: > { %s25_s18 = sadd.s32 1, %s4111_s18  }
 0x7c0   : > { %p22_p4 = scmp.ge.s32.totalorder %s25_s18, 4  }
 0x7c2   :  { %24 = sbr.rel (!%p22_p4) target bundleno = 1 (0x1), region = 118 }

// kernel: se_resnext_forward.9
= control target key start
LH: loop header
LB: loop body
LE: loop exit
PB: predicated region body
PF: predicated region fallthrough
CT: control target
= control target key end

     0   :  { %s5650_s0 = inlined_call_operand.vmem [shape: bf16[2,64,32], index: 0, kind: input, shape index: {}]   ;;  %s5651_s1 = inlined_call_operand.vmem [shape: bf16[32,32], index: 1, kind: input, shape index: {}]   ;;  %s5652_s2 = inlined_call_operand.hbm [shape: f32[1,32], index: 2, kind: input, shape index: {}]   ;;  %s5653_s3 = inlined_call_operand.vmem [shape: bf16[100,64], index: 3, kind: input, shape index: {}]   ;;  %s5654_s4 = inlined_call_operand.vmem [shape: bf16[9,32,32], index: 4, kind: input, shape index: {}]   ;;  %s5655_s5 = inlined_call_operand.hbm [shape: f32[1,32], index: 5, kind: input, shape index: {}]   ;;  %s5656_s6 = inlined_call_operand.vmem [shape: bf16[16,100], index: 6, kind: input, shape index: {}]   ;;  %s5657_s7 = inlined_call_operand.vmem [shape: bf16[32,64], index: 7, kind: input, shape index: {}]   ;;  %s5658_s8 = inlined_call_operand.hbm [shape: f32[1,64], index: 8, kind: input, shape index: {}]   ;;  %s5659_s9 = inlined_call_operand.vmem [shape: bf16[64,16], index: 9, kind: input, shape index: {}]   ;;  %s5660_s10 = inlined_call_operand.hbm [shape: f32[1,16], index: 10, kind: input, shape index: {}]   ;;  %s5661_s11 = inlined_call_operand.vmem [shape: bf16[16,64], index: 11, kind: input, shape index: {}]   ;;  %s5662_s12 = inlined_call_operand.hbm [shape: f32[1,64], index: 12, kind: input, shape index: {}]   ;;  %s5663_s13 = inlined_call_operand.vmem [shape: bf16[16,64], index: 13, kind: input, shape index: {}]   ;;  %s5664_s14 = inlined_call_operand.vmem [shape: bf16[32,64], index: 14, kind: input, shape index: {}]   ;;  %s5665_s15 = inlined_call_operand.hbm [shape: f32[1,64], index: 15, kind: input, shape index: {}]   ;;  %s5666_s16 = inlined_call_operand.vmem [shape: bf16[2,16,64], index: 16, kind: output, shape index: {}]  }
   0x1   :  { %5671 = sst [smem:[#allocation18_spill]] %s5650_s0 }
   0x2   :  { %5672 = sst [smem:[#allocation19_spill]] %s5664_s14 }
   0x3   :  { %5673 = sst [smem:[#allocation20_spill]] %s5666_s16 }
   0x4   :  { %21 = vsyncpa [#allocation4], 0 }
   0x5   :  { %22 = vsyncpa [#allocation6], 0 }
   0x6   :  { %23 = vsyncpa [#allocation9], 0 }
   0x7   :  { %24 = vsyncpa [#allocation12], 0  ;;  %s4682_s21 = smov 0  }
   0x8 LB: > { %5674 = sst [smem:[#allocation17_spill]] %s4586_s21  ;;  %s4588_s22 = smov [#allocation5]   ;;  %s4586_s21 = sphi %s4682_s21, %s30_s21  }
   0x9   : > { %s435_s23 = sshll.u32 %s4588_s22, 4  ;;  %s4688_s24 = sadd.s32 4294967295, %s4586_s21   ;;  %s4693_s23 = int_to_ptr.vmem [resolvable:$true] %s435_s23 }
   0xa   : > { %p3264_p0 = scmp.ge.s32.totalorder %s4586_s21, 1  ;;  %p402_p1 = scmp.lt.s32.totalorder %s4586_s21, 3 }
   0xb   : > { %p5669_p2 = scmp.eq.s32.totalorder %s4688_s24, 0  ;;  %s4589_s26 = smov [#allocation8]  }
   0xc   : > { %p4695_p3 = pnand %p3264_p0, %p402_p1  ;;  %s466_s27 = sshll.u32 %s4589_s26, 4  ;;  %s4701_s27 = int_to_ptr.vmem [resolvable:$true] %s466_s27 }
   0xd   : > { %s4590_s28 = smov [#allocation3]   ;;  %s4591_s0 = smov [#allocation7]  }
   0xe   : > { %s5675_s25 = scalar_select %p4695_p3, 1, 0 }
   0xf   : > { %p4270_p4 = pneg %p4695_p3  ;;  %s418_s29 = sshll.u32 %s4590_s28, 4  ;;  %s4709_s29 = int_to_ptr.vmem [resolvable:$true] %s418_s29 }
  0x10   : > { %s452_s17 = sshll.u32 %s4591_s0, 4  ;;  %s4396_s20 = scalar_lea.hbm %s5655_s5, 16  ;;  %s4711_s17 = int_to_ptr.vmem [resolvable:$true] %s452_s17 }
  0x11   : > { %p4705_p5 = pnand %p5669_p2, %p4270_p4  ;;  %p4397_p6 = scmp.ne.s32.totalorder %s5655_s5, %s4396_s20 }
  0x12   : > { %p4403_p10 = scmp.lt.u32.totalorder %s4396_s20, %s5655_s5 }
  0x13   : > { %p4721_p7 = pneg %p4705_p5 }
  0x15   : > { %p4399_p8 = pnand %p4721_p7, %p4397_p6 }
  0x17   : > { %p4400_p9 = pneg %p4399_p8 }
  0x19   : > { %p4405_p11 = pnand %p4403_p10, %p4400_p9 }
  0x1b   : > { %4408 = shalt.err (!%p4405_p11)
}
  0x1c   : > { %s4409_s18 = scalar_lea.vmem %s4693_s23, 16  ;;  %s4416_s19 = scalar_lea.vmem %s4693_s23, 32 }
  0x1d   : > { %p4410_p12 = scmp.ne.s32.totalorder %s4693_s23, %s4409_s18  ;;  %p4417_p1 = scmp.lt.s32.totalorder %s4693_s23, %s4693_s23 }
  0x1e   : > { %p4418_p4 = scmp.lt.s32.totalorder %s4416_s19, %s4409_s18 }
  0x1f   : > { %p4412_p13 = pnand %p4410_p12, %p4721_p7 }
  0x20   : > { %p4419_p6 = por %p4418_p4, %p4417_p1 }
  0x21   : > { %p4413_p0 = pneg %p4412_p13 }
  0x23   : > { %p4420_p8 = pnand %p4419_p6, %p4413_p0 }
  0x25   : > { %4423 = shalt.err (!%p4420_p8)
}
  0x26   : > { %4276 = dma.hbm_to_vmem [thread:$0]  (!%p4705_p5), %s5655_s5, 16, %s4693_s23, [#allocation6]  }
  0x27   : > { %s4424_s0 = scalar_lea.hbm %s5660_s10, 16 }
  0x28   : > { %p4425_p9 = scmp.ne.s32.totalorder %s5660_s10, %s4424_s0  ;;  %p4431_p12 = scmp.lt.u32.totalorder %s4424_s0, %s5660_s10 }
  0x2a   : > { %p4427_p10 = pnand %p4425_p9, %p4721_p7 }
  0x2c   : > { %p4428_p11 = pneg %p4427_p10 }
  0x2e   : > { %p4433_p13 = pnand %p4431_p12, %p4428_p11 }
  0x30   : > { %4436 = shalt.err (!%p4433_p13)
}
  0x31   : > { %s4437_s23 = scalar_lea.vmem %s4701_s27, 16  ;;  %s4444_s14 = scalar_lea.vmem %s4701_s27, 32 }
  0x32   : > { %p4438_p0 = scmp.ne.s32.totalorder %s4701_s27, %s4437_s23  ;;  %p4445_p6 = scmp.lt.s32.totalorder %s4701_s27, %s4701_s27 }
  0x33   : > { %p4446_p8 = scmp.lt.s32.totalorder %s4444_s14, %s4437_s23 }
  0x34   : > { %p4440_p1 = pnand %p4438_p0, %p4721_p7 }
  0x35   : > { %p4447_p9 = por %p4446_p8, %p4445_p6 }
  0x36   : > { %p4441_p4 = pneg %p4440_p1 }
  0x38   : > { %p4448_p10 = pnand %p4447_p9, %p4441_p4 }
  0x3a   : > { %4451 = shalt.err (!%p4448_p10)
}
  0x3b   : > { %4282 = dma.hbm_to_vmem [thread:$0]  (!%p4705_p5), %s5660_s10, 16, %s4701_s27, [#allocation9]  }
  0x3c   : > { %s4452_s26 = scalar_lea.hbm %s5652_s2, 16 }
  0x3d   : > { %p4453_p11 = scmp.ne.s32.totalorder %s5652_s2, %s4452_s26  ;;  %p4459_p0 = scmp.lt.u32.totalorder %s4452_s26, %s5652_s2 }
  0x3f   : > { %p4455_p12 = pnand %p4453_p11, %p4721_p7 }
  0x41   : > { %p4456_p13 = pneg %p4455_p12 }
  0x43   : > { %p4461_p1 = pnand %p4459_p0, %p4456_p13 }
  0x45   : > { %4464 = shalt.err (!%p4461_p1)
}
  0x46   : > { %s4465_s27 = scalar_lea.vmem %s4709_s29, 16  ;;  %s4472_s14 = scalar_lea.vmem %s4709_s29, 32 }
  0x47   : > { %p4466_p4 = scmp.ne.s32.totalorder %s4709_s29, %s4465_s27  ;;  %p4473_p9 = scmp.lt.s32.totalorder %s4709_s29, %s4709_s29 }
  0x48   : > { %p4474_p10 = scmp.lt.s32.totalorder %s4472_s14, %s4465_s27 }
  0x49   : > { %p4468_p6 = pnand %p4466_p4, %p4721_p7 }
  0x4a   : > { %p4475_p11 = por %p4474_p10, %p4473_p9 }
  0x4b   : > { %p4469_p8 = pneg %p4468_p6 }
  0x4d   : > { %p4476_p12 = pnand %p4475_p11, %p4469_p8 }
  0x4f   : > { %4479 = shalt.err (!%p4476_p12)
}
  0x50   : > { %4273 = dma.hbm_to_vmem [thread:$0]  (!%p4705_p5), %s5652_s2, 16, %s4709_s29, [#allocation4]  }
  0x51   : > { %s4480_s26 = scalar_lea.hbm %s5658_s8, 16 }
  0x52   : > { %p4481_p13 = scmp.ne.s32.totalorder %s5658_s8, %s4480_s26  ;;  %p4487_p4 = scmp.lt.u32.totalorder %s4480_s26, %s5658_s8 }
  0x54   : > { %p4483_p0 = pnand %p4481_p13, %p4721_p7 }
  0x56   : > { %p4484_p1 = pneg %p4483_p0 }
  0x58   : > { %p4489_p6 = pnand %p4487_p4, %p4484_p1 }
  0x5a   : > { %4492 = shalt.err (!%p4489_p6)
}
  0x5b   : > { %s4493_s29 = scalar_lea.vmem %s4711_s17, 16  ;;  %s4500_s27 = scalar_lea.vmem %s4711_s17, 32 }
  0x5c   : > { %p4494_p8 = scmp.ne.s32.totalorder %s4711_s17, %s4493_s29  ;;  %p4501_p11 = scmp.lt.s32.totalorder %s4711_s17, %s4711_s17 }
  0x5d   : > { %p4502_p12 = scmp.lt.s32.totalorder %s4500_s27, %s4493_s29 }
  0x5e   : > { %p4496_p9 = pnand %p4494_p8, %p4721_p7 }
  0x5f   : > { %p4503_p13 = por %p4502_p12, %p4501_p11 }
  0x60   : > { %p4497_p10 = pneg %p4496_p9 }
  0x62   : > { %p4504_p0 = pnand %p4503_p13, %p4497_p10 }
  0x64   : > { %4507 = shalt.err (!%p4504_p0)
}
  0x65   : > { %4279 = dma.hbm_to_vmem [thread:$0]  (!%p4705_p5), %s5658_s8, 16, %s4711_s17, [#allocation6]  }
  0x66   : > { %s4592_s21 = smov [#allocation10]   ;;  %s4593_s22 = smov [#allocation11]  }
  0x67   : > { %s480_s20 = sshll.u32 %s4592_s21, 4  ;;  %s497_s26 = sshll.u32 %s4593_s22, 4  ;;  %s481_s20 = int_to_ptr.vmem [resolvable:$true] %s480_s20  ;;  %s498_s26 = int_to_ptr.vmem [resolvable:$true] %s497_s26 }
  0x68   : > { %s4508_s19 = scalar_lea.hbm %s5662_s12, 16 }
  0x69   : > { %p4509_p1 = scmp.ne.s32.totalorder %s5662_s12, %s4508_s19  ;;  %p4515_p8 = scmp.lt.u32.totalorder %s4508_s19, %s5662_s12 }
  0x6b   : > { %p4511_p4 = pnand %p4509_p1, %p4721_p7 }
  0x6d   : > { %p4512_p6 = pneg %p4511_p4 }
  0x6f   : > { %p4517_p9 = pnand %p4515_p8, %p4512_p6 }
  0x71   : > { %4520 = shalt.err (!%p4517_p9)
}
  0x72   : > { %s4521_s17 = scalar_lea.vmem %s481_s20, 16  ;;  %s4528_s16 = scalar_lea.vmem %s481_s20, 32 }
  0x73   : > { %p4522_p10 = scmp.ne.s32.totalorder %s481_s20, %s4521_s17  ;;  %p4529_p13 = scmp.lt.s32.totalorder %s481_s20, %s481_s20 }
  0x74   : > { %p4530_p0 = scmp.lt.s32.totalorder %s4528_s16, %s4521_s17 }
  0x75   : > { %p4524_p11 = pnand %p4522_p10, %p4721_p7 }
  0x76   : > { %p4531_p2 = por %p4530_p0, %p4529_p13 }
  0x77   : > { %p4525_p12 = pneg %p4524_p11 }
  0x79   : > { %p4532_p3 = pnand %p4531_p2, %p4525_p12 }
  0x7b   : > { %4535 = shalt.err (!%p4532_p3)
}
  0x7c   : > { %4285 = dma.hbm_to_vmem [thread:$0]  (!%p4705_p5), %s5662_s12, 16, %s481_s20, [#allocation9]  }
  0x7d   : > { %s4536_s19 = scalar_lea.hbm %s5665_s15, 16 }
  0x7e   : > { %p4537_p1 = scmp.ne.s32.totalorder %s5665_s15, %s4536_s19  ;;  %p4543_p3 = scmp.lt.u32.totalorder %s4536_s19, %s5665_s15 }
  0x80   : > { %p4539_p4 = pnand %p4537_p1, %p4721_p7 }
  0x82   : > { %p4540_p2 = pneg %p4539_p4 }
  0x84   : > { %p4545_p6 = pnand %p4543_p3, %p4540_p2 }
  0x86   : > { %4548 = shalt.err (!%p4545_p6)
}
  0x87   : > { %s4549_s17 = scalar_lea.vmem %s498_s26, 16  ;;  %s4556_s20 = scalar_lea.vmem %s498_s26, 32 }
  0x88   : > { %p4550_p8 = scmp.ne.s32.totalorder %s498_s26, %s4549_s17  ;;  %p4557_p11 = scmp.lt.s32.totalorder %s498_s26, %s498_s26 }
  0x89   : > { %p4558_p12 = scmp.lt.s32.totalorder %s4556_s20, %s4549_s17 }
  0x8a   : > { %p4552_p9 = pnand %p4550_p8, %p4721_p7 }
  0x8b   : > { %p4559_p13 = por %p4558_p12, %p4557_p11 }
  0x8c   : > { %p4553_p10 = pneg %p4552_p9 }
  0x8e   : > { %p4560_p0 = pnand %p4559_p13, %p4553_p10 }
  0x90   : > { %4563 = shalt.err (!%p4560_p0)
}
  0x91   : > { %4288 = dma.hbm_to_vmem [thread:$0]  (!%p4705_p5), %s5665_s15, 16, %s498_s26, [#allocation12]  }
  0x92   : > { %p5678_p1 = scmp.ne.s32.totalorder %s5675_s25, 0 }
  0x93   : > { %p5679_p4 = scmp.eq.s32.totalorder (!%p5678_p1), %s4688_s24, 0 }
  0x94   : > { %518 = sbr.rel (%p5678_p1) target bundleno = 2301 (0x8fd), region = 84 }
  0x9b   : > { %4569 = dma.done.wait (%p5679_p4), [#allocation4], 16   ;;  %p5680_p7 = pmov %p5679_p4 }
  0x9c   : > { %p5681_p2 = pmov %p5679_p4 }
  0x9d   : > { %4571 = vsyncadd (%p5680_p7), [#allocation4], 4294967280 }
  0x9e   : > { %4573 = dma.done.wait (%p5681_p2), [#allocation6], 32   ;;  %p5682_p3 = pmov %p5681_p2 }
  0x9f   : > { %p5683_p6 = pmov %p5681_p2 }
  0xa0   : > { %4575 = vsyncadd (%p5682_p3), [#allocation6], 4294967264 }
  0xa1   : > { %4577 = dma.done.wait (%p5683_p6), [#allocation9], 32   ;;  %p5684_p5 = pmov %p5681_p2 }
  0xa2   : > { %p5685_p8 = pmov %p5681_p2 }
  0xa3   : > { %4579 = vsyncadd (%p5684_p5), [#allocation9], 4294967264 }
  0xa4   : > { %4581 = dma.done.wait (%p5685_p8), [#allocation12], 16   ;;  %p5686_p9 = pmov %p5681_p2 }
  0xa5   : > { %p588_p10 = scmp.lt.s32.totalorder %s4688_s24, 1  ;;  %s5687_s26 = sld [smem:[#allocation18_spill]]  ;;  %v4318_v0 = vld [vmem:[%s5651_s1] sm:$0xff]   ;;  %v4319_v1 = vld [vmem:[%s5651_s1 + $0x8] sm:$0xff]   ;;  %vm650_vm0 = vcmask 261120   ;;  %v4594_v6 = vmov 0.0  }
  0xa6   : > { %4583 = vsyncadd (%p5686_p9), [#allocation12], 4294967280  ;;  %3633 = vmatprep.subr.bf16.mxu0 %v4318_v0  ;;  %3645 = vmatprep.subr.bf16.mxu1 %v4594_v6  ;;  %vm4595_vm1 = vmmov 0   ;;  %v3283_v7 = vld [vmem:[#allocation3] ss:$0 sm:$0xff]  ;;  %vm786_vm2 = vcmask 523264  }
  0xa7   : > { %s5692_s24 = smov (!%p588_p10, %s4688_s24), 1  ;;  %3634 = vmatpush3.bf16.msra.mxu0 %v4318_v0  ;;  %3653 = vmatprep.mubr.msk.bf16.mxu1 %vm4595_vm1, %v4594_v6  ;;  %v4324_v36 = vld [vmem:[%s5653_s3] sm:$0xff]   ;;  %v4325_v37 = vld [vmem:[%s5653_s3 + $0x8] sm:$0xff]   ;;  %v4326_v38 = vld [vmem:[%s5653_s3 + $0x10] sm:$0xff]   ;;  %vm896_vm3 = vcmask 257024   ;;  %v4596_v43 = vmov 0  }
  0xa8   : > { %s3492_s25 = sshll.u32 %s5692_s24, 5  ;;  %3635 = vmatprep.subr.bf16.mxu0 %v4319_v1  ;;  %v4327_v39 = vld [vmem:[%s5653_s3 + $0x18] sm:$0xff]   ;;  %v4328_v40 = vld [vmem:[%s5653_s3 + $0x20] sm:$0xff]   ;;  %v4329_v41 = vld [vmem:[%s5653_s3 + $0x28] sm:$0xff]   ;;  %899 = vst.msk [vmem:[#allocation2 + $0x8] sm:$0xf] %vm896_vm3, %v4596_v43 }
  0xa9   : > { %v4330_v42 = vld [vmem:[%s5653_s3 + $0x30] ss:$0 sps:$4 sm:$0x33]   ;;  %897 = vst.msk [vmem:[#allocation2] sm:$0xf] %vm896_vm3, %v4596_v43  ;;  %v4333_v45 = vld [vmem:[%s5654_s4 + $0x18] sm:$0xff]  }
  0xaa   : > { %898 = vst.msk [vmem:[#allocation2 + $0x4] sm:$0xf] %vm896_vm3, %v4596_v43  ;;  %900 = vst.msk [vmem:[#allocation2 + $0xc] sm:$0xf] %vm896_vm3, %v4596_v43  ;;  %v4331_v44 = vld [vmem:[%s5654_s4 + $0x10] sm:$0xff]   ;;  %v4978_v47 = vld [vmem:[%s5654_s4 + $0x38] sm:$0xff]  }
  0xab   : > { %s4877_s22 = scalar_lea.vmem %s5687_s26, %s3492_s25  ;;  %3636 = vmatpush3.bf16.msra.mxu0 %v4319_v1  ;;  %901 = vst.msk [vmem:[#allocation2 + $0x10] sm:$0xf] %vm896_vm3, %v4596_v43  ;;  %902 = vst.msk [vmem:[#allocation2 + $0x14] sm:$0xf] %vm896_vm3, %v4596_v43  ;;  %v4970_v46 = vld [vmem:[%s5654_s4 + $0x30] sm:$0xff]   ;;  %vm1044_vm6 = vcmask 1044480  }
  0xac   : > { %v4320_v2 = vld [vmem:[%s4877_s22] sm:$0xff]   ;;  %v4321_v3 = vld [vmem:[%s4877_s22 + $0x8] sm:$0xff]   ;;  %v4322_v4 = vld [vmem:[%s4877_s22 + $0x10] sm:$0xff]   ;;  %3777 = vmatprep.subr.bf16.mxu0 %v4594_v6  ;;  %903 = vst.msk [vmem:[#allocation2 + $0x18] sm:$0xf] %vm896_vm3, %v4596_v43  ;;  %vm983_vm8 = vcmask 254976  }
  0xad   : > { %3637 = vmatprep.mubr.msk.bf16.mxu0 %vm650_vm0, %v4320_v2  ;;  %v4323_v5 = vld [vmem:[%s4877_s22 + $0x18] sm:$0xff]   ;;  %904 = vst.msk [vmem:[#allocation2 + $0x1c] sm:$0xf] %vm896_vm3, %v4596_v43  ;;  %905 = vst.msk [vmem:[#allocation2 + $0x20] sm:$0xf] %vm896_vm3, %v4596_v43  ;;  %vm2385_vm12 = vcmask 1046528  }
  0xae   : > { %3638 = vmatmul.mubr.msk.bf16.vlgmr.msra.gmra.mrb[0].mxu0 %vm650_vm0, %v4321_v3  ;;  %906 = vst.msk [vmem:[#allocation2 + $0x24] sm:$0xf] %vm896_vm3, %v4596_v43  ;;  %907 = vst.msk [vmem:[#allocation2 + $0x28] sm:$0xf] %vm896_vm3, %v4596_v43  ;;  %vm913_vm4 = vsmask.f32 3328 }
  0xaf   : > { %3641 = vmatprep.mubr.msk.bf16.mxu0 %vm650_vm0, %v4322_v4  ;;  %908 = vst.msk [vmem:[#allocation2 + $0x2c] sm:$0xf] %vm896_vm3, %v4596_v43  ;;  %909 = vst.msk [vmem:[#allocation2 + $0x30] sm:$0xf] %vm896_vm3, %v4596_v43  ;;  %3778 = vmatpush3.bf16.msra.mxu0 %v4970_v46  ;;  %v915_v48 = vld [vmem:[#allocation2 + $0x3c] sm:$0xf] }
  0xb0   : > { %910 = vst.msk [vmem:[#allocation2 + $0x34] sm:$0xf] %vm896_vm3, %v4596_v43  ;;  %911 = vst.msk [vmem:[#allocation2 + $0x38] sm:$0xf] %vm896_vm3, %v4596_v43  ;;  %3779 = vmatprep.subr.bf16.mxu0 %v4594_v6  ;;  %v1003_v55 = vld [vmem:[#allocation2] sm:$0x8] }
  0xb1   : > { %vm914_vm5 = vmand %vm896_vm3, %vm913_vm4  ;;  %v4983_v54 = vld [vmem:[#allocation2 + $0x4] sm:$0xf]  ;;  %vm1375_vm7 = vsmask.f32 4352  ;;  %vm1182_vm9 = vsmask.f32 5376 }
  0xb2   : > { %v916_v49 = vsel %vm914_vm5, 0, %v915_v48  ;;  %v3325_v58 = vcombine.low %v1003_v55, %v4983_v54  ;;  %v1547_v62 = vld [vmem:[#allocation2 + $0x4] sm:$0x8]  ;;  %vm2542_vm10 = vsmask.f32 6400  ;;  %vm2739_vm13 = vcmask 1041408  }
  0xb3   : > { %3780 = vmatpush3.bf16.msra.mxu0 %v4978_v47  ;;  %917 = vst [vmem:[#allocation2 + $0x3c] sm:$0xf] %v916_v49  ;;  %v4340_v49 = vld [vmem:[%s5654_s4 + $0x40] sm:$0xff]   ;;  %vm1952_vm11 = vsmask.f32 7424  ;;  %vm2735_vm14 = vcmask 818176  }
  0xb4   : > { %3809 = vmatprep.subr.bf16.mxu0 %v4594_v6  ;;  %v1377_v63 = vshrl.u32 %v3325_v58, 16  ;;  %v1380_v0 = vshll.u32 %v3325_v58, 16  ;;  %vm2953_vm15 = vcmask 130048   ;;  %s5688_s26 = sld [smem:[#allocation19_spill]]  ;;  %s5689_s29 = sld [smem:[#allocation20_spill]] }
  0xb6   : > { %3642 = vmatmul.mubr.msk.bf16.gmra.mrb[4].mxu0 %vm650_vm0, %v4323_v5 }
  0xb7   : > { %3781 = vmatprep.mubr.msk.bf16.mxu0 %vm4595_vm1, %v4594_v6 }
 0x181   : > { %v3639_v8 = vpop.f32.mrb[0].mxu0 }
 0x182   : > { %v706_v9 = vadd.f32 %v3639_v8, %v3283_v7  ;;  %v697_v10 = vpop.f32.mrb[1].mxu0 }
 0x183   : > { %v698_v11 = vadd.f32 %v3283_v7, %v697_v10  ;;  %v3640_v12 = vpop.f32.mrb[2].mxu0  ;;  %v1382_v10 = vrot.slane %v1380_v0, 4 }
 0x184   : > { %v709_v13 = vadd.f32 %v3640_v12, %v3283_v7  ;;  %v700_v14 = vpop.f32.mrb[3].mxu0  ;;  %v730_v16 = vmax.f32 %v706_v9, 0.0  ;;  %v1379_v9 = vrot.slane %v1377_v63, 3  ;;  %v4350_v12 = vld [vmem:[%s5654_s4] sm:$0xff]  }
 0x185   : > { %v701_v15 = vadd.f32 %v3283_v7, %v700_v14  ;;  %v728_v18 = vmax.f32 %v698_v11, 0.0 }
 0x186   : > { %v731_v17 = vmax.f32 %v709_v13, 0.0 }
 0x187   : > { %v729_v19 = vmax.f32 %v701_v15, 0.0 }
 0x188   : > { %v737_v20 = vpack.c.bf16 %v731_v17, %v730_v16 }
 0x189   : > { %v3643_v21 = vpop.f32.mrb[4].mxu0  ;;  %v736_v22 = vpack.c.bf16 %v729_v19, %v728_v18 }
 0x18a   : > { %v722_v23 = vadd.f32 %v3643_v21, %v3283_v7  ;;  %v713_v24 = vpop.f32.mrb[5].mxu0 }
 0x18b   : > { %v714_v25 = vadd.f32 %v3283_v7, %v713_v24  ;;  %v3644_v26 = vpop.f32.mrb[6].mxu0  ;;  %3646 = vmatpush3.bf16.msra.mxu1 %v736_v22 }
 0x18c   : > { %v725_v27 = vadd.f32 %v3644_v26, %v3283_v7  ;;  %v716_v28 = vpop.f32.mrb[7].mxu0  ;;  %3647 = vmatprep.subr.bf16.mxu1 %v4594_v6  ;;  %v734_v30 = vmax.f32 %v722_v23, 0.0  ;;  %v1383_v23 = vor.u32 %v1382_v10, %v1379_v9 }
 0x18d   : > { %v717_v29 = vadd.f32 %v3283_v7, %v716_v28  ;;  %v732_v32 = vmax.f32 %v714_v25, 0.0  ;;  %v1045_v7 = vrot.slane %v3325_v58, 3 }
 0x18e   : > { %v735_v31 = vmax.f32 %v725_v27, 0.0  ;;  %v4351_v27 = vld [vmem:[%s5654_s4 + $0x8] sm:$0xff]  }
 0x18f   : > { %v733_v33 = vmax.f32 %v717_v29, 0.0  ;;  %3648 = vmatpush3.bf16.msra.mxu1 %v737_v20 }
 0x190   : > { %v739_v34 = vpack.c.bf16 %v735_v31, %v734_v30  ;;  %3649 = vmatprep.subr.bf16.mxu1 %v4594_v6 }
 0x191   : > { %v738_v35 = vpack.c.bf16 %v733_v33, %v732_v32 }
 0x193   : > { %3650 = vmatpush3.bf16.msra.mxu1 %v738_v35 }
 0x194   : > { %3651 = vmatprep.subr.bf16.mxu1 %v4594_v6 }
 0x197   : > { %3652 = vmatpush3.bf16.msra.mxu1 %v739_v34 }
 0x198   : > { %3681 = vmatprep.subr.bf16.mxu1 %v4594_v6 }
 0x19a   : > { %3654 = vmatmul.mubr.msk.bf16.vlgmr.msra.gmra.mrb[0].mxu1 %vm786_vm2, %v4324_v36 }
 0x19b   : > { %3657 = vmatprep.mubr.msk.bf16.mxu1 %vm4595_vm1, %v4594_v6  ;;  %3682 = vmatpush3.bf16.msra.mxu1 %v4331_v44 }
 0x19c   : > { %3683 = vmatprep.subr.bf16.mxu1 %v4594_v6 }
 0x19f   : > { %3684 = vmatpush3.bf16.msra.mxu1 %v4333_v45 }
 0x1a0   : > { %3713 = vmatprep.subr.bf16.mxu1 %v4594_v6 }
 0x1a2   : > { %3658 = vmatmul.mubr.msk.bf16.gmra.mrb[4].mxu1 %vm786_vm2, %v4325_v37 }
 0x1a3   : > { %3661 = vmatprep.mubr.msk.bf16.mxu1 %vm4595_vm1, %v4594_v6 }
 0x1aa   : > { %3662 = vmatmul.mubr.msk.bf16.gmra.mrb[8].mxu1 %vm786_vm2, %v4326_v38 }
 0x1ab   : > { %3665 = vmatprep.mubr.msk.bf16.mxu1 %vm4595_vm1, %v4594_v6 }
 0x1b2   : > { %3666 = vmatmul.mubr.msk.bf16.gmra.mrb[12].mxu1 %vm786_vm2, %v4327_v39 }
 0x1b3   : > { %3669 = vmatprep.mubr.msk.bf16.mxu1 %vm4595_vm1, %v4594_v6 }
 0x1ba   : > { %3670 = vmatmul.mubr.msk.bf16.gmra.mrb[16].mxu1 %vm786_vm2, %v4328_v40 }
 0x1bb   : > { %3673 = vmatprep.mubr.msk.bf16.mxu1 %vm4595_vm1, %v4594_v6 }
 0x1c2   : > { %3674 = vmatmul.mubr.msk.bf16.gmra.mrb[20].mxu1 %vm786_vm2, %v4329_v41 }
 0x1c3   : > { %3677 = vmatprep.mubr.msk.bf16.mxu1 %vm4595_vm1, %v4594_v6 }
 0x1ca   : > { %3678 = vmatmul.mubr.msk.bf16.gmra.mrb[24].mxu1 %vm786_vm2, %v4330_v42 }
 0x1cb   : > { %3685 = vmatprep.mubr.msk.bf16.mxu1 %vm4595_vm1, %v4594_v6 }
 0x26d   : > { %v842_v50 = vpop.f32.mrb[0].mxu1 }
 0x26e   : > { %v3494_v51 = vpack.c.bf16 %v842_v50, %v842_v50  ;;  %v3655_v52 = vpop.f32.mrb[1].mxu1 }
 0x26f   : > { %v845_v53 = vpop.f32.mrb[2].mxu1 }
 0x270   : > { %971 = vst.msk [vmem:[#allocation2 + $0x8] sm:$0xf] %vm896_vm3, %v3494_v51  ;;  %v3495_v56 = vpack.c.bf16 %v845_v53, %v845_v53  ;;  %v3656_v57 = vpop.f32.mrb[3].mxu1 }
 0x272   : > { %972 = vst.msk [vmem:[#allocation2 + $0xc] sm:$0xf] %vm896_vm3, %v3495_v56 }
 0x275   : > { %v850_v59 = vpop.f32.mrb[4].mxu1 }
 0x276   : > { %v3496_v60 = vpack.c.bf16 %v850_v59, %v850_v59  ;;  %v3659_v61 = vpop.f32.mrb[5].mxu1 }
 0x277   : > { %v853_v1 = vpop.f32.mrb[6].mxu1  ;;  %v4988_v2 = vld [vmem:[#allocation2 + $0x8] sm:$0xf] }
 0x278   : > { %973 = vst.msk [vmem:[#allocation2 + $0x10] sm:$0xf] %vm896_vm3, %v3496_v60  ;;  %v3497_v3 = vpack.c.bf16 %v853_v1, %v853_v1  ;;  %v3660_v4 = vpop.f32.mrb[7].mxu1  ;;  %v3369_v8 = vcombine.low %v1547_v62, %v4988_v2  ;;  %v4345_v61 = vld [vmem:[%s5654_s4 + $0x48] sm:$0xff]  }
 0x279   : > { %v4991_v5 = vld [vmem:[#allocation2 + $0x8] sm:$0xff]  }
 0x27a   : > { %974 = vst.msk [vmem:[#allocation2 + $0x14] sm:$0xf] %vm896_vm3, %v3497_v3  ;;  %v1046_v11 = vrot.slane %v4991_v5, 3  ;;  %v1192_v13 = vshrl.u32 %v4991_v5, 16  ;;  %v1195_v14 = vshll.u32 %v4991_v5, 16  ;;  %v1602_v17 = vshrl.u32 %v3369_v8, 16 }
 0x27b   : > { %v5005_v21 = vld [vmem:[#allocation2 + $0xc] sm:$0xf]  ;;  %v1605_v22 = vshll.u32 %v3369_v8, 16 }
 0x27c   : > { %v1047_v16 = vsel %vm1044_vm6, %v1045_v7, %v1046_v11  ;;  %v1384_v18 = vrot.slane %v1192_v13, 3  ;;  %v1385_v24 = vrot.slane %v1195_v14, 4  ;;  %v1604_v33 = vrot.slane %v1602_v17, 3 }
 0x27d   : > { %v858_v15 = vpop.f32.mrb[8].mxu1  ;;  %3686 = vmatmul.mubr.msk.bf16.vlgmr.msra.gmra.mrb[28].mxu1 %vm650_vm0, %v1047_v16  ;;  %v1607_v34 = vrot.slane %v1605_v22, 4 }
 0x27e   : > { %v3498_v19 = vpack.c.bf16 %v858_v15, %v858_v15  ;;  %v3663_v20 = vpop.f32.mrb[9].mxu1  ;;  %3689 = vmatprep.mubr.msk.bf16.mxu1 %vm4595_vm1, %v4594_v6  ;;  %3714 = vmatpush3.bf16.msra.mxu1 %v4350_v12  ;;  %v5020_v31 = vor.u32 %v1385_v24, %v1384_v18 }
 0x27f   : > { %v861_v25 = vpop.f32.mrb[10].mxu1  ;;  %v5011_v26 = vld [vmem:[#allocation2 + $0x10] sm:$0xf]  ;;  %3715 = vmatprep.subr.bf16.mxu1 %v4594_v6  ;;  %v1608_v45 = vor.u32 %v1607_v34, %v1604_v33 }
 0x280   : > { %975 = vst.msk [vmem:[#allocation2 + $0x18] sm:$0xf] %vm896_vm3, %v3498_v19  ;;  %v3499_v28 = vpack.c.bf16 %v861_v25, %v861_v25  ;;  %v3664_v29 = vpop.f32.mrb[11].mxu1  ;;  %v3370_v30 = vcombine.low %v5005_v21, %v5011_v26  ;;  %v5027_v37 = vsel %vm1375_vm7, %v1383_v23, %v5020_v31 }
 0x281   : > { %v5022_v32 = vld [vmem:[#allocation2 + $0x10] sm:$0xff]  }
 0x282   : > { %976 = vst.msk [vmem:[#allocation2 + $0x1c] sm:$0xf] %vm896_vm3, %v3499_v28  ;;  %v1610_v35 = vshrl.u32 %v3370_v30, 16  ;;  %v1613_v36 = vshll.u32 %v3370_v30, 16  ;;  %v1048_v38 = vrot.slane %v5022_v32, 3  ;;  %3716 = vmatpush3.bf16.msra.mxu1 %v4351_v27 }
 0x283   : > { %3745 = vmatprep.subr.bf16.mxu1 %v4594_v6  ;;  %v5036_v50 = vld [vmem:[#allocation2 + $0x14] sm:$0xf] }
 0x284   : > { %v1612_v39 = vrot.slane %v1610_v35, 3  ;;  %v1615_v40 = vrot.slane %v1613_v36, 4  ;;  %v1049_v42 = vsel %vm1044_vm6, %v1046_v11, %v1048_v38  ;;  %v5171_v5 = vcombine.low %v5011_v26, %v5036_v50 }
 0x285   : > { %v866_v41 = vpop.f32.mrb[12].mxu1  ;;  %3690 = vmatmul.mubr.msk.bf16.gmra.mrb[32].mxu1 %vm650_vm0, %v1049_v42  ;;  %v1201_v26 = vshrl.u32 %v5022_v32, 16 }
 0x286   : > { %v3500_v43 = vpack.c.bf16 %v866_v41, %v866_v41  ;;  %v3667_v44 = vpop.f32.mrb[13].mxu1  ;;  %v1616_v48 = vor.u32 %v1615_v40, %v1612_v39  ;;  %3693 = vmatprep.mubr.msk.bf16.mxu1 %vm4595_vm1, %v4594_v6 }
 0x287   : > { %v869_v51 = vpop.f32.mrb[14].mxu1  ;;  %v5040_v52 = vld [vmem:[#allocation2 + $0x18] sm:$0xf] }
 0x288   : > { %977 = vst.msk [vmem:[#allocation2 + $0x20] sm:$0xf] %vm896_vm3, %v3500_v43  ;;  %v3501_v53 = vpack.c.bf16 %v869_v51, %v869_v51  ;;  %v3668_v55 = vpop.f32.mrb[15].mxu1  ;;  %v1617_v56 = vsel %vm1375_vm7, %v1608_v45, %v1616_v48  ;;  %v3371_v57 = vcombine.low %v5036_v50, %v5040_v52  ;;  %v1204_v50 = vshll.u32 %v5022_v32, 16 }
 0x289   : > { %3782 = vmatmul.mubr.msk.bf16.vlgmr.msra.gmra.mrb[8].mxu0 %vm650_vm0, %v1617_v56  ;;  %v5047_v58 = vld [vmem:[#allocation2 + $0x18] sm:$0xff]   ;;  %v985_v56 = vld [vmem:[#allocation2] sm:$0xc] }
 0x28a   : > { %978 = vst.msk [vmem:[#allocation2 + $0x24] sm:$0xf] %vm896_vm3, %v3501_v53  ;;  %3810 = vmatpush3.bf16.msra.mxu0 %v4340_v49  ;;  %3785 = vmatprep.mubr.msk.bf16.mxu0 %vm4595_vm1, %v4594_v6  ;;  %v1619_v59 = vshrl.u32 %v3371_v57, 16  ;;  %v1622_v60 = vshll.u32 %v3371_v57, 16  ;;  %v1050_v62 = vrot.slane %v5047_v58, 3 }
 0x28b   : > { %3811 = vmatprep.subr.bf16.mxu0 %v4594_v6  ;;  %v5059_v9 = vld [vmem:[#allocation2 + $0x1c] sm:$0xf] }
 0x28c   : > { %v1621_v63 = vrot.slane %v1619_v59, 3  ;;  %v1624_v0 = vrot.slane %v1622_v60, 4  ;;  %v1051_v3 = vsel %vm1044_vm6, %v1048_v38, %v1050_v62 }
 0x28d   : > { %v874_v1 = vpop.f32.mrb[16].mxu1  ;;  %3694 = vmatmul.mubr.msk.bf16.gmra.mrb[36].mxu1 %vm650_vm0, %v1051_v3 }
 0x28e   : > { %v3502_v4 = vpack.c.bf16 %v874_v1, %v874_v1  ;;  %v3671_v7 = vpop.f32.mrb[17].mxu1  ;;  %v1625_v8 = vor.u32 %v1624_v0, %v1621_v63  ;;  %3812 = vmatpush3.bf16.msra.mxu0 %v4345_v61  ;;  %3697 = vmatprep.mubr.msk.bf16.mxu1 %vm4595_vm1, %v4594_v6 }
 0x28f   : > { %v877_v10 = vpop.f32.mrb[18].mxu1  ;;  %v5063_v11 = vld [vmem:[#allocation2 + $0x20] sm:$0xf]  ;;  %3841 = vmatprep.subr.bf16.mxu0 %v4594_v6 }
 0x290   : > { %979 = vst.msk [vmem:[#allocation2 + $0x28] sm:$0xf] %vm896_vm3, %v3502_v4  ;;  %v3503_v12 = vpack.c.bf16 %v877_v10, %v877_v10  ;;  %v3672_v15 = vpop.f32.mrb[19].mxu1  ;;  %v1626_v16 = vsel %vm1375_vm7, %v1616_v48, %v1625_v8  ;;  %v3372_v17 = vcombine.low %v5059_v9, %v5063_v11  ;;  %v3341_v4 = vcombine.low %v985_v56, %v4983_v54 }
 0x291   : > { %3786 = vmatmul.mubr.msk.bf16.gmra.mrb[12].mxu0 %vm650_vm0, %v1626_v16  ;;  %v5071_v18 = vld [vmem:[#allocation2 + $0x20] sm:$0xff]   ;;  %v1194_v56 = vrot.slane %v1192_v13, 2 }
 0x292   : > { %980 = vst.msk [vmem:[#allocation2 + $0x2c] sm:$0xf] %vm896_vm3, %v3503_v12  ;;  %3789 = vmatprep.mubr.msk.bf16.mxu0 %vm4595_vm1, %v4594_v6  ;;  %v1628_v19 = vshrl.u32 %v3372_v17, 16  ;;  %v1631_v20 = vshll.u32 %v3372_v17, 16  ;;  %v1052_v22 = vrot.slane %v5071_v18, 3 }
 0x293   : > { %v5079_v33 = vld [vmem:[#allocation2 + $0x24] sm:$0xf] }
 0x294   : > { %v1630_v23 = vrot.slane %v1628_v19, 3  ;;  %v1633_v24 = vrot.slane %v1631_v20, 4  ;;  %v1053_v27 = vsel %vm1044_vm6, %v1050_v62, %v1052_v22 }
 0x295   : > { %v882_v25 = vpop.f32.mrb[20].mxu1  ;;  %3698 = vmatmul.mubr.msk.bf16.gmra.mrb[40].mxu1 %vm650_vm0, %v1053_v27  ;;  %v4349_v27 = vld [vmem:[%s5654_s4 + $0x50] sm:$0xff]  }
 0x296   : > { %v3504_v28 = vpack.c.bf16 %v882_v25, %v882_v25  ;;  %v3675_v29 = vpop.f32.mrb[21].mxu1  ;;  %v1634_v30 = vor.u32 %v1633_v24, %v1630_v23  ;;  %3701 = vmatprep.mubr.msk.bf16.mxu1 %vm4595_vm1, %v4594_v6  ;;  %v1184_v23 = vshrl.u32 %v3341_v4, 16 }
 0x297   : > { %v885_v34 = vpop.f32.mrb[22].mxu1  ;;  %v5083_v35 = vld [vmem:[#allocation2 + $0x28] sm:$0xf] }
 0x298   : > { %981 = vst.msk [vmem:[#allocation2 + $0x30] sm:$0xf] %vm896_vm3, %v3504_v28  ;;  %v3505_v36 = vpack.c.bf16 %v885_v34, %v885_v34  ;;  %v1635_v38 = vsel %vm1375_vm7, %v1625_v8, %v1634_v30  ;;  %v3676_v39 = vpop.f32.mrb[23].mxu1  ;;  %v3373_v40 = vcombine.low %v5079_v33, %v5083_v35  ;;  %v5127_v34 = vcombine.low %v4988_v2, %v5005_v21  ;;  %v4352_v2 = vld [vmem:[%s5654_s4 + $0x58] sm:$0xff]  }
 0x299   : > { %3790 = vmatmul.mubr.msk.bf16.gmra.mrb[16].mxu0 %vm650_vm0, %v1635_v38  ;;  %v5090_v41 = vld [vmem:[#allocation2 + $0x28] sm:$0xff]   ;;  %v1187_v39 = vshll.u32 %v3341_v4, 16 }
 0x29a   : > { %982 = vst.msk [vmem:[#allocation2 + $0x34] sm:$0xf] %vm896_vm3, %v3505_v36  ;;  %3793 = vmatprep.mubr.msk.bf16.mxu0 %vm4595_vm1, %v4594_v6  ;;  %v1637_v42 = vshrl.u32 %v3373_v40, 16  ;;  %v1640_v43 = vshll.u32 %v3373_v40, 16  ;;  %v1054_v44 = vrot.slane %v5090_v41, 3  ;;  %v1228_v7 = vshrl.u32 %v5090_v41, 16 }
 0x29b   : > { %v5098_v57 = vld [vmem:[#allocation2 + $0x2c] sm:$0xf]  ;;  %v1231_v16 = vshll.u32 %v5090_v41, 16 }
 0x29c   : > { %v1639_v45 = vrot.slane %v1637_v42, 3  ;;  %v1642_v48 = vrot.slane %v1640_v43, 4  ;;  %v1055_v51 = vsel %vm1044_vm6, %v1052_v22, %v1054_v44  ;;  %v1400_v54 = vrot.slane %v1228_v7, 3 }
 0x29d   : > { %v890_v49 = vpop.f32.mrb[24].mxu1  ;;  %3702 = vmatmul.mubr.msk.bf16.gmra.mrb[44].mxu1 %vm650_vm0, %v1055_v51  ;;  %v1401_v28 = vrot.slane %v1231_v16, 4 }
 0x29e   : > { %v3506_v53 = vpack.c.bf16 %v890_v49, %v890_v49  ;;  %v1643_v55 = vor.u32 %v1642_v48, %v1639_v45  ;;  %v3679_v59 = vpop.f32.mrb[25].mxu1  ;;  %3705 = vmatprep.mubr.msk.bf16.mxu1 %vm4595_vm1, %v4594_v6  ;;  %v5151_v48 = vld [vmem:[#allocation2 + $0x14] sm:$0xff]   ;;  %v1186_v49 = vrot.slane %v1184_v23, 2 }
 0x29f   : > { %v997_v60 = vld [vmem:[#allocation2 + $0x30] sm:$0xf]  ;;  %v893_v61 = vpop.f32.mrb[26].mxu1  ;;  %v5147_v21 = vor.u32 %v1401_v28, %v1400_v54  ;;  %v1197_v59 = vrot.slane %v1195_v14, 3  ;;  %v4359_v28 = vld [vmem:[%s5654_s4 + $0x20] sm:$0xff]  }
 0x2a0   : > { %v5102_v62 = vld [vmem:[#allocation2 + $0x30] sm:$0xf]  ;;  %984 = vst.msk [vmem:[#allocation2 + $0x38] sm:$0x3] %vm983_vm8, %v3506_v53  ;;  %v1644_v63 = vsel %vm1375_vm7, %v1634_v30, %v1643_v55  ;;  %v3680_v0 = vpop.f32.mrb[27].mxu1  ;;  %v5163_v61 = vld [vmem:[#allocation2 + $0x1c] sm:$0xff]  }
 0x2a1   : > { %v3374_v1 = vcombine.low %v5098_v57, %v5102_v62  ;;  %3794 = vmatmul.mubr.msk.bf16.gmra.mrb[20].mxu0 %vm650_vm0, %v1644_v63  ;;  %v998_v3 = vld [vmem:[#allocation2 + $0x34] sm:$0x1]  ;;  %v5176_v14 = vld [vmem:[#allocation2 + $0x2c] sm:$0xff]  }
 0x2a2   : > { %v1366_v8 = vld [vmem:[#allocation2 + $0x34] sm:$0x3]  ;;  %v5110_v10 = vcombine.low %v997_v60, %v998_v3  ;;  %3813 = vmatprep.mubr.msk.bf16.mxu0 %vm4595_vm1, %v4594_v6  ;;  %v5166_v3 = vld [vmem:[#allocation2 + $0x24] sm:$0xff]  }
 0x2a3   : > { %v1646_v12 = vshrl.u32 %v3374_v1, 16  ;;  %v1649_v15 = vshll.u32 %v3374_v1, 16  ;;  %v3355_v17 = vcombine.low %v997_v60, %v1366_v8  ;;  %v5129_v36 = vld [vmem:[#allocation2 + $0x34] sm:$0xf]  ;;  %v2199_v1 = vshrl.u32 %v5151_v48, 16 }
 0x2a4   : > { %v1056_v19 = vrot.slane %v5110_v10, 3  ;;  %v2211_v23 = vshll.u32 %v5166_v3, 16  ;;  %v2215_v54 = vshrl.u32 %v5166_v3, 16  ;;  %v1240_v41 = vshll.u32 %v5110_v10, 16 }
 0x2a5   : > { %v1648_v20 = vrot.slane %v1646_v12, 3  ;;  %v1651_v22 = vrot.slane %v1649_v15, 4  ;;  %v1405_v24 = vshrl.u32 %v3355_v17, 16  ;;  %v1408_v29 = vshll.u32 %v3355_v17, 16 }
 0x2a6   : > { %v1057_v25 = vsel %vm1044_vm6, %v1054_v44, %v1056_v19  ;;  %v1198_v12 = vor.u32 %v1197_v59, %v1194_v56  ;;  %v2195_v15 = vshll.u32 %v5151_v48, 16  ;;  %v2207_v17 = vshrl.u32 %v5163_v61, 16 }
 0x2a7   : > { %v1652_v30 = vor.u32 %v1651_v22, %v1648_v20  ;;  %3706 = vmatmul.mubr.msk.bf16.gmra.mrb[48].mxu1 %vm650_vm0, %v1057_v25  ;;  %v5131_v38 = vld [vmem:[#allocation2 + $0x38] sm:$0x3]  ;;  %v1407_v42 = vrot.slane %v1405_v24, 3  ;;  %v1410_v43 = vrot.slane %v1408_v29, 4  ;;  %v2551_v22 = vrot.slane %v2199_v1, 1 }
 0x2a8   : > { %3709 = vmatprep.mubr.msk.bf16.mxu1 %vm4595_vm1, %v4594_v6  ;;  %v3375_v40 = vcombine.low %v5129_v36, %v5131_v38  ;;  %v5178_v4 = vld [vmem:[#allocation2 + $0x34] sm:$0xff]   ;;  %v2219_v24 = vshll.u32 %v5176_v14, 16  ;;  %v2223_v25 = vshrl.u32 %v5176_v14, 16 }
 0x2a9   : > { %3814 = vmatmul.mubr.msk.bf16.vlgmr.msra.gmra.mrb[8].mxu0 %vm650_vm0, %v5127_v34  ;;  %v5140_v44 = vsel %vm1375_vm7, %v1643_v55, %v1652_v30  ;;  %v5149_v45 = vor.u32 %v1410_v43, %v1407_v42  ;;  %v1189_v55 = vrot.slane %v1187_v39, 3  ;;  %v2227_v29 = vshll.u32 %v5178_v4, 16 }
 0x2aa   : > { %3842 = vmatpush3.bf16.msra.mxu0 %v4349_v27  ;;  %3817 = vmatprep.mubr.msk.bf16.mxu0 %vm4595_vm1, %v4594_v6  ;;  %v1655_v51 = vshrl.u32 %v3375_v40, 16  ;;  %v1658_v53 = vshll.u32 %v3375_v40, 16  ;;  %v2231_v27 = vshrl.u32 %v5178_v4, 16  ;;  %v2555_v39 = vrot.slane %v2207_v17, 1 }
 0x2ab   : > { %3843 = vmatprep.subr.bf16.mxu0 %v4594_v6  ;;  %v5161_v60 = vsel %vm1375_vm7, %v5147_v21, %v5149_v45  ;;  %v1190_v8 = vor.u32 %v1189_v55, %v1186_v49  ;;  %v1203_v42 = vrot.slane %v1201_v26, 2  ;;  %v1206_v43 = vrot.slane %v1204_v50, 3 }
 0x2ac   : > { %v1657_v63 = vrot.slane %v1655_v51, 3  ;;  %v1660_v0 = vrot.slane %v1658_v53, 4  ;;  %v5219_v49 = vcombine.low %v5040_v52, %v5059_v9  ;;  %v2559_v53 = vrot.slane %v2215_v54, 1  ;;  %v4360_v9 = vld [vmem:[%s5654_s4 + $0x28] sm:$0xff]  }
 0x2ad   : > { %v1199_v40 = vsel %vm1182_vm9, %v1190_v8, %v1198_v12  ;;  %v2560_v55 = vrot.slane %v2211_v23, 2  ;;  %v2563_v59 = vrot.slane %v2223_v25, 1  ;;  %v2567_v52 = vrot.slane %v2231_v27, 1 }
 0x2ae   : > { %3844 = vmatpush3.bf16.msra.mxu0 %v4352_v2  ;;  %v5174_v13 = vor.u32 %v1660_v0, %v1657_v63  ;;  %v2564_v63 = vrot.slane %v2219_v24, 2  ;;  %v2568_v8 = vrot.slane %v2227_v29, 2 }
 0x2af   : > { %3710 = vmatmul.mubr.msk.bf16.gmra.mrb[52].mxu1 %vm650_vm0, %v1056_v19  ;;  %3873 = vmatprep.subr.bf16.mxu0 %v4594_v6  ;;  %v2203_v19 = vshll.u32 %v5163_v61, 16  ;;  %v2561_v0 = vor.u32 %v2560_v55, %v2559_v53 }
 0x2b0   : > { %3717 = vmatprep.mubr.msk.bf16.mxu1 %vm4595_vm1, %v4594_v6  ;;  %v5191_v20 = vsel %vm1375_vm7, %v1652_v30, %v5174_v13  ;;  %v2552_v30 = vrot.slane %v2195_v15, 2  ;;  %v5255_v53 = vor.u32 %v2568_v8, %v2567_v52  ;;  %v5291_v8 = vcombine.low %v5083_v35, %v5098_v57 }
 0x2b1   : > { %3818 = vmatmul.mubr.msk.bf16.gmra.mrb[12].mxu0 %vm650_vm0, %v5171_v5  ;;  %v2556_v2 = vrot.slane %v2203_v19, 2  ;;  %v5307_v35 = vcombine.low %v5102_v62, %v5129_v36 }
 0x2b2   : > { %3821 = vmatprep.mubr.msk.bf16.mxu0 %vm4595_vm1, %v4594_v6  ;;  %v5221_v51 = vor.u32 %v2552_v30, %v2551_v22  ;;  %v1207_v22 = vor.u32 %v1206_v43, %v1203_v42 }
 0x2b3   : > { %v2557_v56 = vor.u32 %v2556_v2, %v2555_v39  ;;  %v1210_v39 = vshrl.u32 %v5047_v58, 16 }
 0x2b4   : > { %v1208_v55 = vsel %vm1182_vm9, %v1198_v12, %v1207_v22  ;;  %v1219_v12 = vshrl.u32 %v5071_v18, 16 }
 0x2b5   : > { %v5246_v30 = vsel %vm2542_vm10, %v5221_v51, %v2557_v56  ;;  %v5253_v2 = vsel %vm2542_vm10, %v2557_v56, %v2561_v0 }
 0x2b7   : > { %3718 = vmatmul.mubr.msk.bf16.vlgmr.msra.gmra.mrb[28].mxu1 %vm650_vm0, %v1199_v40  ;;  %v1213_v40 = vshll.u32 %v5047_v58, 16  ;;  %v4362_v58 = vld [vmem:[#allocation2 + $0x38] ss:$0 sps:$4 sm:$0x77]  }
 0x2b8   : > { %3721 = vmatprep.mubr.msk.bf16.mxu1 %vm4595_vm1, %v4594_v6  ;;  %3746 = vmatpush3.bf16.msra.mxu1 %v4359_v28  ;;  %v2565_v28 = vor.u32 %v2564_v63, %v2563_v59  ;;  %v1212_v59 = vrot.slane %v1210_v39, 2  ;;  %v5273_v63 = vcombine.low %v5063_v11, %v5079_v33  ;;  %v1221_v11 = vrot.slane %v1219_v12, 2 }
 0x2b9   : > { %3822 = vmatmul.mubr.msk.bf16.gmra.mrb[16].mxu0 %vm650_vm0, %v5219_v49  ;;  %3747 = vmatprep.subr.bf16.mxu1 %v4594_v6  ;;  %v1215_v56 = vrot.slane %v1213_v40, 3 }
 0x2ba   : > { %3825 = vmatprep.mubr.msk.bf16.mxu0 %vm4595_vm1, %v4594_v6  ;;  %v5258_v42 = vsel %vm2542_vm10, %v2561_v0, %v2565_v28  ;;  %v5262_v43 = vsel %vm2542_vm10, %v2565_v28, %v5255_v53  ;;  %v1977_v32 = vshrl.u32 %v5273_v63, 16 }
 0x2bb   : > { %v1216_v52 = vor.u32 %v1215_v56, %v1212_v59  ;;  %v1233_v59 = vrot.slane %v1231_v16, 3  ;;  %v3395_v16 = vcombine.low %v5131_v38, %v5131_v38  ;;  %v1242_v56 = vrot.slane %v1240_v41, 3 }
 0x2bc   : > { %3748 = vmatpush3.bf16.msra.mxu1 %v4360_v9  ;;  %v1222_v9 = vshll.u32 %v5071_v18, 16 }
 0x2bd   : > { %4033 = vmatprep.subr.bf16.mxu1 %v4594_v6  ;;  %v1217_v0 = vsel %vm1182_vm9, %v1207_v22, %v1216_v52 }
 0x2be   : > { %v1224_v33 = vrot.slane %v1222_v9, 3 }
 0x2bf   : > { %3722 = vmatmul.mubr.msk.bf16.gmra.mrb[32].mxu1 %vm650_vm0, %v1208_v55  ;;  %v1230_v55 = vrot.slane %v1228_v7, 2  ;;  %v1237_v7 = vshrl.u32 %v5110_v10, 16 }
 0x2c0   : > { %3725 = vmatprep.mubr.msk.bf16.mxu1 %vm4595_vm1, %v4594_v6  ;;  %v1225_v28 = vor.u32 %v1224_v33, %v1221_v11  ;;  %v1953_v33 = vshrl.u32 %v5127_v34, 16 }
 0x2c1   : > { %3826 = vmatmul.mubr.msk.bf16.gmra.mrb[20].mxu0 %vm650_vm0, %v5273_v63  ;;  %v1234_v57 = vor.u32 %v1233_v59, %v1230_v55  ;;  %v1239_v36 = vrot.slane %v1237_v7, 2  ;;  %v4358_v55 = vld [vmem:[%s5654_s4 + $0x60] sm:$0xff]   ;;  %v1966_v7 = vshll.u32 %v5219_v49, 16 }
 0x2c2   : > { %3829 = vmatprep.mubr.msk.bf16.mxu0 %vm4595_vm1, %v4594_v6  ;;  %v1226_v22 = vsel %vm1182_vm9, %v1216_v52, %v1225_v28  ;;  %v1955_v52 = vshll.u32 %v5127_v34, 16  ;;  %v4361_v34 = vld [vmem:[%s5654_s4 + $0x68] sm:$0xff]  }
 0x2c3   : > { %v1235_v62 = vsel %vm1182_vm9, %v1225_v28, %v1234_v57  ;;  %v1243_v11 = vor.u32 %v1242_v56, %v1239_v36  ;;  %v1968_v41 = vrot.slane %v1966_v7, 1  ;;  %v1973_v36 = vshll.u32 %v5273_v63, 16 }
 0x2c4   : > { %v1957_v10 = vrot.slane %v1955_v52, 1 }
 0x2c5   : > { %v1244_v28 = vsel %vm1182_vm9, %v1234_v57, %v1243_v11  ;;  %v1963_v57 = vshrl.u32 %v5171_v5, 16  ;;  %v1975_v56 = vrot.slane %v1973_v36, 1  ;;  %v1999_v36 = vshrl.u32 %v4362_v58, 16 }
 0x2c7   : > { %3726 = vmatmul.mubr.msk.bf16.gmra.mrb[36].mxu1 %vm650_vm0, %v1217_v0  ;;  %v1959_v0 = vshll.u32 %v5171_v5, 16  ;;  %v1970_v5 = vshrl.u32 %v5219_v49, 16  ;;  %v1979_v49 = vor.u32 %v1977_v32, %v1975_v56 }
 0x2c8   : > { %3729 = vmatprep.mubr.msk.bf16.mxu1 %vm4595_vm1, %v4594_v6 }
 0x2c9   : > { %3830 = vmatmul.mubr.msk.bf16.gmra.mrb[24].mxu0 %vm650_vm0, %v5291_v8  ;;  %v1961_v38 = vrot.slane %v1959_v0, 1  ;;  %v1972_v52 = vor.u32 %v1970_v5, %v1968_v41  ;;  %v1388_v0 = vrot.slane %v1201_v26, 3 }
 0x2ca   : > { %3833 = vmatprep.mubr.msk.bf16.mxu0 %vm4595_vm1, %v4594_v6 }
 0x2cf   : > { %3730 = vmatmul.mubr.msk.bf16.gmra.mrb[40].mxu1 %vm650_vm0, %v1226_v22  ;;  %v1958_v22 = vor.u32 %v1957_v10, %v1953_v33  ;;  %v1976_v10 = vsel %vm1952_vm11, %v1972_v52, %v1975_v56  ;;  %v1393_v33 = vrot.slane %v1213_v40, 4 }
 0x2d0   : > { %3733 = vmatprep.mubr.msk.bf16.mxu1 %vm4595_vm1, %v4594_v6 }
 0x2d1   : > { %3834 = vmatmul.mubr.msk.bf16.gmra.mrb[28].mxu0 %vm650_vm0, %v5307_v35  ;;  %v1962_v59 = vsel %vm1952_vm11, %v1958_v22, %v1961_v38 }
 0x2d2   : > { %3837 = vmatprep.mubr.msk.bf16.mxu0 %vm4595_vm1, %v4594_v6 }
 0x2d7   : > { %3734 = vmatmul.mubr.msk.bf16.gmra.mrb[44].mxu1 %vm650_vm0, %v1235_v62 }
 0x2d8   : > { %3737 = vmatprep.mubr.msk.bf16.mxu1 %vm4595_vm1, %v4594_v6 }
 0x2d9   : > { %3838 = vmatmul.mubr.msk.bf16.gmra.mrb[32].mxu0 %vm650_vm0, %v3395_v16  ;;  %v1965_v16 = vor.u32 %v1963_v57, %v1961_v38  ;;  %v1980_v38 = vshll.u32 %v5291_v8, 16 }
 0x2da   : > { %3845 = vmatprep.mubr.msk.bf16.mxu0 %vm4595_vm1, %v4594_v6 }
 0x2db   : > { %v1969_v62 = vsel %vm1952_vm11, %v1965_v16, %v1968_v41 }
 0x2df   : > { %3738 = vmatmul.mubr.msk.bf16.gmra.mrb[48].mxu1 %vm650_vm0, %v1244_v28 }
 0x2e0   : > { %3741 = vmatprep.mubr.msk.bf16.mxu1 %vm4595_vm1, %v4594_v6 }
 0x2e1   : > { %3846 = vmatmul.mubr.msk.bf16.vlgmr.msra.gmra.mrb[8].mxu0 %vm650_vm0, %v1962_v59  ;;  %v1397_v59 = vrot.slane %v1222_v9, 4  ;;  %v5404_v9 = vld [vmem:[#allocation2 + $0x10] sm:$0xf] }
 0x2e2   : > { %3874 = vmatpush3.bf16.msra.mxu0 %v4358_v55  ;;  %3849 = vmatprep.mubr.msk.bf16.mxu0 %vm4595_vm1, %v4594_v6  ;;  %v1396_v55 = vrot.slane %v1219_v12, 3 }
 0x2e3   : > { %3875 = vmatprep.subr.bf16.mxu0 %v4594_v6 }
 0x2e4   : > { %v1398_v57 = vor.u32 %v1397_v59, %v1396_v55  ;;  %v2393_v59 = vrot.slane %v5176_v14, 1 }
 0x2e6   : > { %3876 = vmatpush3.bf16.msra.mxu0 %v4361_v34  ;;  %v1995_v34 = vshll.u32 %v4362_v58, 16  ;;  %v1403_v5 = vsel %vm1375_vm7, %v1398_v57, %v5147_v21  ;;  %v4366_v21 = vld [vmem:[%s5654_s4 + $0x70] sm:$0xff]   ;;  %v4375_v58 = vld [vmem:[%s5654_s4 + $0x88] sm:$0xff]  }
 0x2e7   : > { %3742 = vmatmul.mubr.msk.bf16.gmra.mrb[52].mxu1 %vm650_vm0, %v1243_v11  ;;  %3905 = vmatprep.subr.bf16.mxu0 %v4594_v6  ;;  %v1389_v11 = vrot.slane %v1204_v50, 4 }
 0x2e8   : > { %3749 = vmatprep.mubr.msk.bf16.mxu1 %vm4595_vm1, %v4594_v6  ;;  %v1997_v41 = vrot.slane %v1995_v34, 1 }
 0x2e9   : > { %3850 = vmatmul.mubr.msk.bf16.gmra.mrb[12].mxu0 %vm650_vm0, %v1969_v62  ;;  %v1390_v26 = vor.u32 %v1389_v11, %v1388_v0 }
 0x2ea   : > { %3853 = vmatprep.mubr.msk.bf16.mxu0 %vm4595_vm1, %v4594_v6  ;;  %v2001_v52 = vor.u32 %v1999_v36, %v1997_v41 }
 0x2eb   : > { %v1391_v50 = vsel %vm1375_vm7, %v5020_v31, %v1390_v26  ;;  %v1984_v31 = vshrl.u32 %v5291_v8, 16  ;;  %v1991_v8 = vshrl.u32 %v5307_v35, 16 }
 0x2ef   : > { %3750 = vmatmul.mubr.msk.bf16.vlgmr.msra.gmra.mrb[28].mxu1 %vm650_vm0, %v5027_v37  ;;  %v1982_v37 = vrot.slane %v1980_v38, 1 }
 0x2f0   : > { %3753 = vmatprep.mubr.msk.bf16.mxu1 %vm4595_vm1, %v4594_v6  ;;  %4035 = vmatpush3.bf16.msra.mxu1 %v4970_v46  ;;  %v1392_v46 = vrot.slane %v1210_v39, 3 }
 0x2f1   : > { %3854 = vmatmul.mubr.msk.bf16.gmra.mrb[16].mxu0 %vm650_vm0, %v1976_v10  ;;  %4034 = vmatprep.subr.bf16.mxu1 %v4594_v6  ;;  %v1983_v28 = vsel %vm1952_vm11, %v1979_v49, %v1982_v37  ;;  %v1986_v22 = vor.u32 %v1984_v31, %v1982_v37  ;;  %v2197_v10 = vrot.slane %v2195_v15, 1  ;;  %v4370_v15 = vld [vmem:[%s5654_s4 + $0x78] sm:$0xff]   ;;  %v4374_v31 = vld [vmem:[%s5654_s4 + $0x80] sm:$0xff]  }
 0x2f2   : > { %3857 = vmatprep.mubr.msk.bf16.mxu0 %vm4595_vm1, %v4594_v6  ;;  %v1394_v63 = vor.u32 %v1393_v33, %v1392_v46 }
 0x2f3   : > { %v2201_v32 = vor.u32 %v2199_v1, %v2197_v10 }
 0x2f4   : > { %4036 = vmatpush3.bf16.msra.mxu1 %v4978_v47  ;;  %v1987_v47 = vshll.u32 %v5307_v35, 16  ;;  %v1395_v40 = vsel %vm1375_vm7, %v1390_v26, %v1394_v63  ;;  %v1399_v18 = vsel %vm1375_vm7, %v1394_v63, %v1398_v57  ;;  %v2136_v35 = vld [vmem:[#allocation2 + $0xc] sm:$0xf] }
 0x2f5   : > { %3969 = vmatprep.subr.bf16.mxu1 %v4594_v6  ;;  %v3423_v62 = vcombine.low %v2136_v35, %v5404_v9 }
 0x2f6   : > { %v1989_v39 = vrot.slane %v1987_v47, 1 }
 0x2f7   : > { %3754 = vmatmul.mubr.msk.bf16.gmra.mrb[32].mxu1 %vm650_vm0, %v1391_v50  ;;  %v2190_v56 = vshll.u32 %v3423_v62, 16  ;;  %v2188_v11 = vshrl.u32 %v3423_v62, 16  ;;  %v2221_v50 = vrot.slane %v2219_v24, 1  ;;  %v4372_v24 = vld [vmem:[#allocation2 + $0x3c] ss:$0 sps:$4 sm:$0x77]  }
 0x2f8   : > { %3757 = vmatprep.mubr.msk.bf16.mxu1 %vm4595_vm1, %v4594_v6  ;;  %v1990_v7 = vsel %vm1952_vm11, %v1986_v22, %v1989_v39  ;;  %v1993_v12 = vor.u32 %v1991_v8, %v1989_v39  ;;  %v2235_v49 = vshll.u32 %v4372_v24, 16  ;;  %v2391_v22 = vrot.slane %v5166_v3, 1 }
 0x2f9   : > { %3858 = vmatmul.mubr.msk.bf16.gmra.mrb[20].mxu0 %vm650_vm0, %v1983_v28  ;;  %v2192_v0 = vrot.slane %v2190_v56, 1  ;;  %v2376_v28 = vld [vmem:[#allocation2 + $0xc] sm:$0xe]  ;;  %v2397_v8 = vrot.slane %v4372_v24, 1 }
 0x2fa   : > { %3861 = vmatprep.mubr.msk.bf16.mxu0 %vm4595_vm1, %v4594_v6  ;;  %v1998_v16 = vsel %vm1952_vm11, %v1993_v12, %v1997_v41  ;;  %v2237_v46 = vrot.slane %v2235_v49, 1  ;;  %v3443_v47 = vcombine.low %v2376_v28, %v5404_v9  ;;  %v4376_v9 = vld [vmem:[#allocation2 + $0x3c] ss:$0 sps:$4 sm:$0xff]  }
 0x2fb   : > { %v2193_v38 = vor.u32 %v2192_v0, %v2188_v11 }
 0x2fc   : > { %v2386_v63 = vrot.slane %v3443_v47, 1  ;;  %v2544_v14 = vshrl.u32 %v3443_v47, 16  ;;  %v2547_v57 = vshll.u32 %v3443_v47, 16 }
 0x2fd   : > { %v2198_v26 = vsel %vm1952_vm11, %v2193_v38, %v2197_v10 }
 0x2fe   : > { %v2549_v12 = vrot.slane %v2547_v57, 2 }
 0x2ff   : > { %3758 = vmatmul.mubr.msk.bf16.gmra.mrb[36].mxu1 %vm650_vm0, %v1395_v40 }
 0x300   : > { %3761 = vmatprep.mubr.msk.bf16.mxu1 %vm4595_vm1, %v4594_v6 }
 0x301   : > { %3862 = vmatmul.mubr.msk.bf16.gmra.mrb[24].mxu0 %vm650_vm0, %v1990_v7  ;;  %v2395_v7 = vrot.slane %v5178_v4, 1  ;;  %v2546_v4 = vrot.slane %v2544_v14, 1 }
 0x302   : > { %3865 = vmatprep.mubr.msk.bf16.mxu0 %vm4595_vm1, %v4594_v6 }
 0x303   : > { %v2396_v3 = vsel %vm2385_vm12, %v2393_v59, %v2395_v7  ;;  %v2398_v34 = vsel %vm2385_vm12, %v2395_v7, %v2397_v8  ;;  %v2550_v41 = vor.u32 %v2549_v12, %v2546_v4 }
 0x307   : > { %3762 = vmatmul.mubr.msk.bf16.gmra.mrb[40].mxu1 %vm650_vm0, %v1399_v18  ;;  %v2554_v18 = vsel %vm2542_vm10, %v2550_v41, %v5221_v51  ;;  %v2572_v51 = vshrl.u32 %v4376_v9, 16 }
 0x308   : > { %3765 = vmatprep.mubr.msk.bf16.mxu1 %vm4595_vm1, %v4594_v6 }
 0x309   : > { %3866 = vmatmul.mubr.msk.bf16.gmra.mrb[28].mxu0 %vm650_vm0, %v1998_v16  ;;  %v2575_v16 = vshll.u32 %v4376_v9, 16  ;;  %v2574_v35 = vrot.slane %v2572_v51, 1 }
 0x30a   : > { %3869 = vmatprep.mubr.msk.bf16.mxu0 %vm4595_vm1, %v4594_v6 }
 0x30f   : > { %3766 = vmatmul.mubr.msk.bf16.gmra.mrb[44].mxu1 %vm650_vm0, %v1403_v5 }
 0x310   : > { %3769 = vmatprep.mubr.msk.bf16.mxu1 %vm4595_vm1, %v4594_v6 }
 0x311   : > { %3870 = vmatmul.mubr.msk.bf16.gmra.mrb[32].mxu0 %vm650_vm0, %v2001_v52 }
 0x312   : > { %3877 = vmatprep.mubr.msk.bf16.mxu0 %vm4595_vm1, %v4594_v6 }
 0x317   : > { %3770 = vmatmul.mubr.msk.bf16.gmra.mrb[48].mxu1 %vm650_vm0, %v5161_v60  ;;  %v2205_v60 = vrot.slane %v2203_v19, 1  ;;  %v2213_v19 = vrot.slane %v2211_v23, 1 }
 0x318   : > { %3773 = vmatprep.mubr.msk.bf16.mxu1 %vm4595_vm1, %v4594_v6 }
 0x319   : > { %3878 = vmatmul.mubr.msk.bf16.vlgmr.msra.gmra.mrb[8].mxu0 %vm650_vm0, %v2198_v26  ;;  %v2206_v37 = vsel %vm1952_vm11, %v2201_v32, %v2205_v60  ;;  %v2209_v1 = vor.u32 %v2207_v17, %v2205_v60  ;;  %v2217_v23 = vor.u32 %v2215_v54, %v2213_v19  ;;  %v2229_v17 = vrot.slane %v2227_v29, 1 }
 0x31a   : > { %3906 = vmatpush3.bf16.msra.mxu0 %v4366_v21  ;;  %3881 = vmatprep.mubr.msk.bf16.mxu0 %vm4595_vm1, %v4594_v6  ;;  %v2225_v54 = vor.u32 %v2223_v25, %v2221_v50 }
 0x31b   : > { %3907 = vmatprep.subr.bf16.mxu0 %v4594_v6  ;;  %v2233_v29 = vor.u32 %v2231_v27, %v2229_v17  ;;  %v2387_v27 = vrot.slane %v5151_v48, 1  ;;  %v2389_v48 = vrot.slane %v5163_v61, 1  ;;  %v2394_v61 = vsel %vm2385_vm12, %v2391_v22, %v2393_v59 }
 0x31d   : > { %v2238_v25 = vsel %vm1952_vm11, %v2233_v29, %v2237_v46  ;;  %v2388_v39 = vsel %vm2385_vm12, %v2386_v63, %v2387_v27  ;;  %v2390_v40 = vsel %vm2385_vm12, %v2387_v27, %v2389_v48  ;;  %v2392_v55 = vsel %vm2385_vm12, %v2389_v48, %v2391_v22 }
 0x31e   : > { %3908 = vmatpush3.bf16.msra.mxu0 %v4370_v15 }
 0x31f   : > { %3774 = vmatmul.mubr.msk.bf16.gmra.mrb[52].mxu1 %vm650_vm0, %v5149_v45  ;;  %3937 = vmatprep.subr.bf16.mxu0 %v4594_v6  ;;  %v2214_v45 = vsel %vm1952_vm11, %v2209_v1, %v2213_v19 }
 0x320   : > { %3797 = vmatprep.mubr.msk.bf16.mxu1 %vm4595_vm1, %v4594_v6 }
 0x321   : > { %3882 = vmatmul.mubr.msk.bf16.gmra.mrb[12].mxu0 %vm650_vm0, %v2206_v37 }
 0x322   : > { %3885 = vmatprep.mubr.msk.bf16.mxu0 %vm4595_vm1, %v4594_v6 }
 0x327   : > { %3798 = vmatmul.mubr.msk.bf16.vlgmr.msra.gmra.mrb[44].mxu1 %vm650_vm0, %v5140_v44  ;;  %v2222_v44 = vsel %vm1952_vm11, %v2217_v23, %v2221_v50 }
 0x328   : > { %3801 = vmatprep.mubr.msk.bf16.mxu1 %vm4595_vm1, %v4594_v6 }
 0x329   : > { %3886 = vmatmul.mubr.msk.bf16.gmra.mrb[16].mxu0 %vm650_vm0, %v2214_v45 }
 0x32a   : > { %3889 = vmatprep.mubr.msk.bf16.mxu0 %vm4595_vm1, %v4594_v6 }
 0x32f   : > { %3802 = vmatmul.mubr.msk.bf16.gmra.mrb[48].mxu1 %vm650_vm0, %v5191_v20  ;;  %v2230_v20 = vsel %vm1952_vm11, %v2225_v54, %v2229_v17 }
 0x330   : > { %3805 = vmatprep.mubr.msk.bf16.mxu1 %vm4595_vm1, %v4594_v6 }
 0x331   : > { %3890 = vmatmul.mubr.msk.bf16.gmra.mrb[20].mxu0 %vm650_vm0, %v2222_v44 }
 0x332   : > { %3893 = vmatprep.mubr.msk.bf16.mxu0 %vm4595_vm1, %v4594_v6 }
 0x337   : > { %3806 = vmatmul.mubr.msk.bf16.gmra.mrb[52].mxu1 %vm650_vm0, %v5174_v13  ;;  %v2239_v13 = vshrl.u32 %v4372_v24, 16 }
 0x338   : > { %3983 = vmatprep.mubr.msk.bf16.mxu1 %vm4595_vm1, %v4594_v6 }
 0x339   : > { %3894 = vmatmul.mubr.msk.bf16.gmra.mrb[24].mxu0 %vm650_vm0, %v2230_v20  ;;  %v2241_v33 = vor.u32 %v2239_v13, %v2237_v46 }
 0x33a   : > { %3897 = vmatprep.mubr.msk.bf16.mxu0 %vm4595_vm1, %v4594_v6 }
 0x341   : > { %3898 = vmatmul.mubr.msk.bf16.gmra.mrb[28].mxu0 %vm650_vm0, %v2238_v25 }
 0x342   : > { %3901 = vmatprep.mubr.msk.bf16.mxu0 %vm4595_vm1, %v4594_v6 }
 0x349   : > { %3902 = vmatmul.mubr.msk.bf16.gmra.mrb[32].mxu0 %vm650_vm0, %v2241_v33 }
 0x34a   : > { %3909 = vmatprep.mubr.msk.bf16.mxu0 %vm4595_vm1, %v4594_v6 }
 0x351   : > { %3910 = vmatmul.mubr.msk.bf16.vlgmr.msra.gmra.mrb[8].mxu0 %vm650_vm0, %v2388_v39 }
 0x352   : > { %3938 = vmatpush3.bf16.msra.mxu0 %v4374_v31  ;;  %3913 = vmatprep.mubr.msk.bf16.mxu0 %vm4595_vm1, %v4594_v6 }
 0x353   : > { %3939 = vmatprep.subr.bf16.mxu0 %v4594_v6 }
 0x356   : > { %3940 = vmatpush3.bf16.msra.mxu0 %v4375_v58 }
 0x359   : > { %3914 = vmatmul.mubr.msk.bf16.gmra.mrb[12].mxu0 %vm650_vm0, %v2390_v40 }
 0x35a   : > { %3917 = vmatprep.mubr.msk.bf16.mxu0 %vm4595_vm1, %v4594_v6 }
 0x361   : > { %3918 = vmatmul.mubr.msk.bf16.gmra.mrb[16].mxu0 %vm650_vm0, %v2392_v55 }
 0x362   : > { %3921 = vmatprep.mubr.msk.bf16.mxu0 %vm4595_vm1, %v4594_v6 }
 0x369   : > { %3922 = vmatmul.mubr.msk.bf16.gmra.mrb[20].mxu0 %vm650_vm0, %v2394_v61 }
 0x36a   : > { %3925 = vmatprep.mubr.msk.bf16.mxu0 %vm4595_vm1, %v4594_v6 }
 0x371   : > { %3926 = vmatmul.mubr.msk.bf16.gmra.mrb[24].mxu0 %vm650_vm0, %v2396_v3 }
 0x372   : > { %3929 = vmatprep.mubr.msk.bf16.mxu0 %vm4595_vm1, %v4594_v6 }
 0x379   : > { %3930 = vmatmul.mubr.msk.bf16.gmra.mrb[28].mxu0 %vm650_vm0, %v2398_v34 }
 0x37a   : > { %3933 = vmatprep.mubr.msk.bf16.mxu0 %vm4595_vm1, %v4594_v6 }
 0x381   : > { %3934 = vmatmul.mubr.msk.bf16.gmra.mrb[32].mxu0 %vm650_vm0, %v2397_v8 }
 0x382   : > { %3941 = vmatprep.mubr.msk.bf16.mxu0 %vm4595_vm1, %v4594_v6 }
 0x389   : > { %3942 = vmatmul.mubr.msk.bf16.vlgmr.msra.gmra.mrb[8].mxu0 %vm650_vm0, %v2554_v18 }
 0x38a   : > { %3945 = vmatprep.mubr.msk.bf16.mxu0 %vm4595_vm1, %v4594_v6 }
 0x391   : > { %3946 = vmatmul.mubr.msk.bf16.gmra.mrb[12].mxu0 %vm650_vm0, %v5246_v30  ;;  %v2577_v30 = vrot.slane %v2575_v16, 2 }
 0x392   : > { %3949 = vmatprep.mubr.msk.bf16.mxu0 %vm4595_vm1, %v4594_v6 }
 0x399   : > { %3950 = vmatmul.mubr.msk.bf16.gmra.mrb[16].mxu0 %vm650_vm0, %v5253_v2  ;;  %v2578_v2 = vor.u32 %v2577_v30, %v2574_v35 }
 0x39a   : > { %3953 = vmatprep.mubr.msk.bf16.mxu0 %vm4595_vm1, %v4594_v6 }
 0x39b   : > { %v2579_v62 = vsel %vm2542_vm10, %v5255_v53, %v2578_v2 }
 0x3a1   : > { %3954 = vmatmul.mubr.msk.bf16.gmra.mrb[20].mxu0 %vm650_vm0, %v5258_v42 }
 0x3a2   : > { %3957 = vmatprep.mubr.msk.bf16.mxu0 %vm4595_vm1, %v4594_v6 }
 0x3a9   : > { %3958 = vmatmul.mubr.msk.bf16.gmra.mrb[24].mxu0 %vm650_vm0, %v5262_v43 }
 0x3aa   : > { %3961 = vmatprep.mubr.msk.bf16.mxu0 %vm4595_vm1, %v4594_v6 }
 0x3b1   : > { %3962 = vmatmul.mubr.msk.bf16.gmra.mrb[28].mxu0 %vm650_vm0, %v2579_v62 }
 0x3b2   : > { %3965 = vmatprep.mubr.msk.bf16.mxu0 %vm4595_vm1, %v4594_v6 }
 0x3b9   : > { %3966 = vmatmul.mubr.msk.bf16.gmra.mrb[32].mxu0 %vm650_vm0, %v2578_v2 }
 0x3c2   : > { %v1480_v42 = vpop.f32.mrb[28].mxu1 }
 0x3c3   : > { %v3751_v36 = vpop.f32.mrb[29].mxu1 }
 0x3c4   : > { %v1483_v5 = vpop.f32.mrb[30].mxu1 }
 0x3c5   : > { %v3752_v56 = vpop.f32.mrb[31].mxu1 }
 0x3ca   : > { %v1488_v52 = vpop.f32.mrb[32].mxu1 }
 0x3cb   : > { %v3755_v43 = vpop.f32.mrb[33].mxu1 }
 0x3cc   : > { %v1491_v0 = vpop.f32.mrb[34].mxu1 }
 0x3cd   : > { %v3756_v11 = vpop.f32.mrb[35].mxu1 }
 0x3d2   : > { %v1496_v10 = vpop.f32.mrb[36].mxu1 }
 0x3d3   : > { %v3759_v38 = vpop.f32.mrb[37].mxu1 }
 0x3d4   : > { %v1499_v21 = vpop.f32.mrb[38].mxu1 }
 0x3d5   : > { %v3760_v26 = vpop.f32.mrb[39].mxu1 }
 0x3da   : > { %v1504_v53 = vpop.f32.mrb[40].mxu1 }
 0x3db   : > { %v3763_v15 = vpop.f32.mrb[41].mxu1 }
 0x3dc   : > { %v1507_v60 = vpop.f32.mrb[42].mxu1 }
 0x3dd   : > { %v3764_v32 = vpop.f32.mrb[43].mxu1 }
 0x3de   : > { %v4378_v32 = vld [vmem:[%s5657_s7] sm:$0xff]  }
 0x3fa   : > { %v1762_v37 = vpop.f32.mrb[44].mxu1 }
 0x3fb   : > { %v3799_v19 = vpop.f32.mrb[45].mxu1 }
 0x3fc   : > { %v1765_v1 = vpop.f32.mrb[46].mxu1  ;;  %v3467_v19 = vld [vmem:[#allocation5] ss:$0 sm:$0xff] }
 0x3fd   : > { %v3800_v45 = vpop.f32.mrb[47].mxu1 }
 0x402   : > { %v1770_v50 = vpop.f32.mrb[48].mxu1 }
 0x403   : > { %v3803_v23 = vpop.f32.mrb[49].mxu1 }
 0x404   : > { %v1773_v44 = vpop.f32.mrb[50].mxu1 }
 0x405   : > { %v3804_v17 = vpop.f32.mrb[51].mxu1 }
 0x40a   : > { %v1778_v24 = vpop.f32.mrb[52].mxu1 }
 0x40b   : > { %v3807_v54 = vpop.f32.mrb[53].mxu1 }
 0x40c   : > { %v1781_v20 = vpop.f32.mrb[54].mxu1 }
 0x40d   : > { %v3808_v49 = vpop.f32.mrb[55].mxu1 }
 0x40e   : > { %v4380_v49 = vld [vmem:[%s5659_s9] sm:$0xff]  }
 0x45c   : > { %v2647_v29 = vpop.f32.mrb[8].mxu0 }
 0x45d   : > { %v4037_v46 = vadd.f32 %v2647_v29, %v1480_v42  ;;  %v3943_v25 = vpop.f32.mrb[9].mxu0  ;;  %v4381_v29 = vld [vmem:[%s5659_s9 + $0x8] sm:$0xff]  }
 0x45e   : > { %v2650_v13 = vpop.f32.mrb[10].mxu0  ;;  %v4383_v25 = vld [vmem:[%s5659_s9 + $0x18] sm:$0xff]  }
 0x45f   : > { %v4038_v33 = vadd.f32 %v2650_v13, %v1483_v5  ;;  %v3944_v28 = vpop.f32.mrb[11].mxu0  ;;  %v3470_v13 = vld [vmem:[#allocation7] ss:$0 sm:$0xff] }
 0x461   : > { %v2716_v47 = vpack.c.bf16 %v4038_v33, %v4037_v46  ;;  %v4382_v46 = vld [vmem:[%s5659_s9 + $0x10] sm:$0xff]  }
 0x463   : > { %3970 = vmatpush3.bf16.msra.mxu1 %v2716_v47 }
 0x464   : > { %v2655_v27 = vpop.f32.mrb[12].mxu0  ;;  %3971 = vmatprep.subr.bf16.mxu1 %v4594_v6 }
 0x465   : > { %v4039_v63 = vadd.f32 %v2655_v27, %v1488_v52  ;;  %v3947_v31 = vpop.f32.mrb[13].mxu0 }
 0x466   : > { %v2658_v39 = vpop.f32.mrb[14].mxu0 }
 0x467   : > { %v4040_v58 = vadd.f32 %v2658_v39, %v1491_v0  ;;  %v3948_v48 = vpop.f32.mrb[15].mxu0 }
 0x469   : > { %v2717_v40 = vpack.c.bf16 %v4040_v58, %v4039_v63 }
 0x46b   : > { %3972 = vmatpush3.bf16.msra.mxu1 %v2717_v40 }
 0x46c   : > { %v2663_v22 = vpop.f32.mrb[16].mxu0  ;;  %3973 = vmatprep.subr.bf16.mxu1 %v4594_v6 }
 0x46d   : > { %v4041_v55 = vadd.f32 %v2663_v22, %v1496_v10  ;;  %v3951_v59 = vpop.f32.mrb[17].mxu0 }
 0x46e   : > { %v2666_v61 = vpop.f32.mrb[18].mxu0 }
 0x46f   : > { %v4042_v7 = vadd.f32 %v2666_v61, %v1499_v21  ;;  %v3952_v3 = vpop.f32.mrb[19].mxu0 }
 0x471   : > { %v2718_v8 = vpack.c.bf16 %v4042_v7, %v4041_v55 }
 0x473   : > { %3974 = vmatpush3.bf16.msra.mxu1 %v2718_v8  ;;  %v4384_v8 = vld [vmem:[%s5661_s11] sm:$0xff]  }
 0x474   : > { %v2671_v34 = vpop.f32.mrb[20].mxu0  ;;  %3975 = vmatprep.subr.bf16.mxu1 %v4594_v6 }
 0x475   : > { %v4043_v14 = vadd.f32 %v2671_v34, %v1504_v53  ;;  %v3955_v57 = vpop.f32.mrb[21].mxu0 }
 0x476   : > { %v2674_v4 = vpop.f32.mrb[22].mxu0 }
 0x477   : > { %v4044_v12 = vadd.f32 %v2674_v4, %v1507_v60  ;;  %v3956_v41 = vpop.f32.mrb[23].mxu0  ;;  %v4377_v60 = vld [vmem:[%s5656_s6] sm:$0xff]  }
 0x479   : > { %v2719_v18 = vpack.c.bf16 %v4044_v12, %v4043_v14  ;;  %v2874_v14 = vld [vmem:[#allocation8] sm:$0x1] }
 0x47b   : > { %3976 = vmatpush3.bf16.msra.mxu1 %v2719_v18 }
 0x47c   : > { %v2679_v9 = vpop.f32.mrb[24].mxu0  ;;  %3977 = vmatprep.subr.bf16.mxu1 %v4594_v6 }
 0x47d   : > { %v4045_v51 = vadd.f32 %v2679_v9, %v1762_v37  ;;  %v3959_v16 = vpop.f32.mrb[25].mxu0  ;;  %v4379_v37 = vld [vmem:[%s5657_s7 + $0x8] sm:$0xff]  }
 0x47e   : > { %v2682_v35 = vpop.f32.mrb[26].mxu0  ;;  %v4392_v16 = vld [vmem:[%s4877_s22] sm:$0xff]  }
 0x47f   : > { %v4046_v30 = vadd.f32 %v2682_v35, %v1765_v1  ;;  %v3960_v2 = vpop.f32.mrb[27].mxu0  ;;  %v4393_v35 = vld [vmem:[%s4877_s22 + $0x8] sm:$0xff]  }
 0x480   : > { %v4385_v2 = vld [vmem:[%s5663_s13] sm:$0xff]  }
 0x481   : > { %v2720_v62 = vpack.c.bf16 %v4046_v30, %v4045_v51  ;;  %v4394_v30 = vld [vmem:[%s4877_s22 + $0x10] sm:$0xff]  }
 0x483   : > { %3978 = vmatpush3.bf16.msra.mxu1 %v2720_v62  ;;  %v4395_v62 = vld [vmem:[%s4877_s22 + $0x18] sm:$0xff]   ;;  %s3493_s22 = sshll.u32 %s5692_s24, 3 }
 0x484   : > { %v2687_v42 = vpop.f32.mrb[28].mxu0  ;;  %3979 = vmatprep.subr.bf16.mxu1 %v4594_v6  ;;  %s597_s27 = scalar_lea.vmem %s5689_s29, %s3493_s22 }
 0x485   : > { %v4047_v36 = vadd.f32 %v2687_v42, %v1770_v50  ;;  %v3963_v5 = vpop.f32.mrb[29].mxu0  ;;  %v4386_v42 = vld [vmem:[%s5688_s26] sm:$0xff]  }
 0x486   : > { %v2690_v56 = vpop.f32.mrb[30].mxu0 }
 0x487   : > { %v4048_v52 = vadd.f32 %v2690_v56, %v1773_v44  ;;  %v3964_v43 = vpop.f32.mrb[31].mxu0 }
 0x489   : > { %v2721_v0 = vpack.c.bf16 %v4048_v52, %v4047_v36  ;;  %v4387_v36 = vld [vmem:[%s5688_s26 + $0x8] sm:$0xff]  }
 0x48b   : > { %3980 = vmatpush3.bf16.msra.mxu1 %v2721_v0 }
 0x48c   : > { %v2695_v11 = vpop.f32.mrb[32].mxu0  ;;  %3981 = vmatprep.subr.bf16.mxu1 %v4594_v6 }
 0x48d   : > { %v4049_v10 = vadd.f32 %v2695_v11, %v1778_v24  ;;  %v3967_v38 = vpop.f32.mrb[33].mxu0 }
 0x48e   : > { %v2698_v21 = vpop.f32.mrb[34].mxu0 }
 0x48f   : > { %v2722_v26 = vpack.c.bf16 %v4049_v10, %v4049_v10  ;;  %v3968_v53 = vpop.f32.mrb[35].mxu0 }
 0x491   : > { %v2741_v15 = vsel %vm2739_vm13, %v2722_v26, 0  ;;  %v2946_v26 = vld [vmem:[#allocation10] sm:$0x1] }
 0x492   : > { %3982 = vmatpush3.bf16.msra.mxu1 %v2741_v15 }
 0x493   : > { %3987 = vmatprep.subr.bf16.mxu1 %v4594_v6 }
 0x495   : > { %3984 = vmatmul.mubr.msk.bf16.vlgmr.msra.gmra.mrb[56].mxu1 %vm2735_vm14, %v4377_v60 }
 0x496   : > { %3991 = vmatprep.mubr.msk.bf16.mxu1 %vm4595_vm1, %v4594_v6  ;;  %3988 = vmatpush3.bf16.msra.mxu1 %v4378_v32 }
 0x497   : > { %3989 = vmatprep.subr.bf16.mxu1 %v4594_v6 }
 0x49a   : > { %3990 = vmatpush3.bf16.msra.mxu1 %v4379_v37 }
 0x49b   : > { %3995 = vmatprep.subr.bf16.mxu1 %v4594_v6 }
 0x568   : > { %v2777_v1 = vpop.f32.mrb[56].mxu1 }
 0x569   : > { %v2778_v45 = vadd.f32 %v3467_v19, %v2777_v1  ;;  %v3985_v50 = vpop.f32.mrb[57].mxu1 }
 0x56a   : > { %v2780_v23 = vpop.f32.mrb[58].mxu1  ;;  %v3484_v50 = vld [vmem:[#allocation11] ss:$0 sm:$0xff] }
 0x56b   : > { %v2781_v44 = vadd.f32 %v3467_v19, %v2780_v23  ;;  %v3986_v17 = vpop.f32.mrb[59].mxu1  ;;  %v2784_v24 = vmax.f32 %v2778_v45, 0.0 }
 0x56d   : > { %v2785_v54 = vmax.f32 %v2781_v44, 0.0 }
 0x56f   : > { %v2786_v20 = vpack.c.bf16 %v2785_v54, %v2784_v24 }
 0x571   : > { %3992 = vmatmul.mubr.msk.bf16.vlgmr.msra.gmra.mrb[60].mxu1 %vm650_vm0, %v2786_v20 }
 0x572   : > { %4003 = vmatprep.mubr.msk.bf16.mxu1 %vm4595_vm1, %v4594_v6  ;;  %3996 = vmatpush3.bf16.msra.mxu1 %v4380_v49 }
 0x573   : > { %3997 = vmatprep.subr.bf16.mxu1 %v4594_v6 }
 0x576   : > { %3998 = vmatpush3.bf16.msra.mxu1 %v4381_v29 }
 0x577   : > { %3999 = vmatprep.subr.bf16.mxu1 %v4594_v6 }
 0x57a   : > { %4000 = vmatpush3.bf16.msra.mxu1 %v4382_v46 }
 0x57b   : > { %4001 = vmatprep.subr.bf16.mxu1 %v4594_v6 }
 0x57e   : > { %4002 = vmatpush3.bf16.msra.mxu1 %v4383_v25 }
 0x57f   : > { %4007 = vmatprep.subr.bf16.mxu1 %v4594_v6 }
 0x644   : > { %v2847_v33 = vpop.f32.mrb[60].mxu1 }
 0x645   : > { %v5602_v28 = vadd.f32 %v3470_v13, %v2847_v33  ;;  %v3993_v47 = vpop.f32.mrb[61].mxu1 }
 0x646   : > { %v2850_v27 = vpop.f32.mrb[62].mxu1 }
 0x647   : > { %v5604_v63 = vadd.f32 %v3470_v13, %v2850_v27  ;;  %v3994_v31 = vpop.f32.mrb[63].mxu1  ;;  %v2854_v39 = vsel %vm786_vm2, %v5602_v28, 0.0 }
 0x649   : > { %v2855_v58 = vsel %vm786_vm2, %v5604_v63, 0.0 }
 0x64a   : > { %v2856_v48 = vadd.f32 %v2855_v58, %v2854_v39 }
 0x64c   : > { %v2857_v40 = vrot.slane %v2856_v48, 4 }
 0x64e   : > { %v2858_v22 = vadd.f32 %v2857_v40, %v2856_v48 }
 0x650   : > { %v2859_v55 = vrot.slane %v2858_v22, 2 }
 0x652   : > { %v2860_v59 = vadd.f32 %v2859_v55, %v2858_v22 }
 0x654   : > { %v2861_v61 = vrot.slane %v2860_v59, 1 }
 0x656   : > { %v2862_v7 = vadd.f32 %v2861_v61, %v2860_v59 }
 0x658   : > { %v2864_v3 = vmul.f32 0.0625, %v2862_v7 }
 0x65a   : > { %v2865_v34 = vpack.c.bf16 %v2864_v3, %v2864_v3 }
 0x65c   : > { %4004 = vmatmul.mubr.msk.bf16.vlgmr.msra.gmra.mrb[64].mxu1 %vm786_vm2, %v2865_v34 }
 0x65d   : > { %4008 = vmatpush3.bf16.msra.mxu1 %v4384_v8  ;;  %4009 = vmatprep.mubr.msk.bf16.mxu1 %vm4595_vm1, %v4594_v6 }
 0x65e   : > { %4013 = vmatprep.subr.bf16.mxu1 %v4594_v6 }
 0x72f   : > { %v2936_v57 = vpop.f32.mrb[64].mxu1 }
 0x730   : > { %v2937_v4 = vadd.f32 %v2936_v57, %v2874_v14  ;;  %v4005_v12 = vpop.f32.mrb[65].mxu1 }
 0x731   : > { %v2939_v41 = vpop.f32.mrb[66].mxu1 }
 0x732   : > { %v2942_v18 = vmax.f32 %v2937_v4, 0.0  ;;  %v4006_v9 = vpop.f32.mrb[67].mxu1 }
 0x734   : > { %v2943_v51 = vpack.c.bf16 %v2942_v18, %v2942_v18 }
 0x736   : > { %4010 = vmatmul.mubr.msk.bf16.vlgmr.msra.gmra.mrb[68].mxu1 %vm2953_vm15, %v2943_v51 }
 0x737   : > { %4014 = vmatpush3.bf16.msra.mxu1 %v4392_v16  ;;  %4021 = vmatprep.mubr.msk.bf16.mxu1 %vm4595_vm1, %v4594_v6 }
 0x738   : > { %4015 = vmatprep.subr.bf16.mxu1 %v4594_v6 }
 0x73b   : > { %4016 = vmatpush3.bf16.msra.mxu1 %v4393_v35 }
 0x73c   : > { %4017 = vmatprep.subr.bf16.mxu1 %v4594_v6 }
 0x73f   : > { %4018 = vmatpush3.bf16.msra.mxu1 %v4394_v30 }
 0x740   : > { %4019 = vmatprep.subr.bf16.mxu1 %v4594_v6 }
 0x743   : > { %4020 = vmatpush3.bf16.msra.mxu1 %v4395_v62 }
 0x744   : > { %4025 = vmatprep.subr.bf16.mxu1 %v4594_v6 }
 0x746   : > { %4022 = vmatmul.mubr.msk.bf16.vlgmr.msra.gmra.mrb[72].mxu1 %vm786_vm2, %v4385_v2 }
 0x747   : > { %4029 = vmatprep.mubr.msk.bf16.mxu1 %vm4595_vm1, %v4594_v6  ;;  %4026 = vmatpush3.bf16.msra.mxu1 %v4386_v42 }
 0x748   : > { %4027 = vmatprep.subr.bf16.mxu1 %v4594_v6  ;;  %v3126_v6 = vlaneseq }
 0x74a   : > { %v3127_v37 = vshrl.u32 %v3126_v6, 7 }
 0x74b   : > { %4028 = vmatpush3.bf16.msra.mxu1 %v4387_v36 }
 0x74c   : > { %v3128_v19 = vsub.s32 0, %v3127_v37 }
 0x809   : > { %v2991_v5 = vpop.f32.mrb[68].mxu1 }
 0x80a   : > { %v4011_v56 = vpop.f32.mrb[69].mxu1  ;;  %v2992_v53 = vadd.f32 %v2991_v5, %v2946_v26 }
 0x80b   : > { %v2994_v52 = vpop.f32.mrb[70].mxu1 }
 0x80c   : > { %v4012_v43 = vpop.f32.mrb[71].mxu1  ;;  %v3481_v15 = vmul.f32 -1.442695, %v2992_v53 }
 0x80e   : > { %4388 = vpow2.f32 %v3481_v15 }
 0x818   : > { %v4389_v60 = vpop.eup %4388 }
 0x819   : > { %v3051_v0 = vpop.f32.mrb[72].mxu1  ;;  %v3000_v32 = vadd.f32 1.0, %v4389_v60 }
 0x81a   : > { %v4023_v11 = vpop.f32.mrb[73].mxu1 }
 0x81b   : > { %v3054_v10 = vpop.f32.mrb[74].mxu1  ;;  %4390 = vrcp.f32 %v3000_v32 }
 0x81c   : > { %v3058_v38 = vpack.c.bf16 %v3054_v10, %v3051_v0  ;;  %v4024_v21 = vpop.f32.mrb[75].mxu1 }
 0x81e   : > { %4030 = vmatmul.mubr.msk.bf16.vlgmr.msra.gmra.mrb[76].mxu1 %vm650_vm0, %v3058_v38  ;;  %vm3144_vm0 = vcmask 519168  }
 0x825   : > { %v4391_v1 = vpop.eup %4390 }
 0x826   : > { %v3129_v45 = vrot.slane %v4391_v1, %v3128_v19 }
 0x828   : > { %v3130_v17 = vmul.f32 %v3129_v45, %v5602_v28  ;;  %v3131_v29 = vmul.f32 %v3129_v45, %v5604_v63 }
 0x8f1   : > { %v3119_v23 = vpop.f32.mrb[76].mxu1 }
 0x8f2   : > { %v3120_v44 = vadd.f32 %v3484_v50, %v3119_v23  ;;  %v4031_v24 = vpop.f32.mrb[77].mxu1 }
 0x8f3   : > { %v3122_v54 = vpop.f32.mrb[78].mxu1 }
 0x8f4   : > { %v3132_v20 = vadd.f32 %v3130_v17, %v3120_v44  ;;  %v3123_v49 = vadd.f32 %v3484_v50, %v3122_v54  ;;  %v4032_v46 = vpop.f32.mrb[79].mxu1 }
 0x8f6   : > { %v3134_v25 = vmax.f32 %v3132_v20, 0.0  ;;  %v3133_v13 = vadd.f32 %v3131_v29, %v3123_v49 }
 0x8f8   : > { %v3507_v33 = vpack.c.bf16 %v3134_v25, %v3134_v25  ;;  %v3135_v47 = vmax.f32 %v3133_v13, 0.0 }
 0x8fa   : > { %3145 = vst.msk [vmem:[%s597_s27] sm:$0xf] %vm3144_vm0, %v3507_v33  ;;  %v3508_v27 = vpack.c.bf16 %v3135_v47, %v3135_v47 }
 0x8fc   : > { %3146 = vst.msk [vmem:[%s597_s27 + $0x4] sm:$0xf] %vm3144_vm0, %v3508_v27 }
 0x8fd PF: > { %s5690_s14 = sld [smem:[#allocation17_spill]] }
 0x903   : > { %s30_s21 = sadd.s32 1, %s5690_s14  }
 0x904   : > { %p27_p11 = scmp.ge.s32.totalorder %s30_s21, 4  }
 0x906   :  { %29 = sbr.rel (!%p27_p11) target bundleno = 8 (0x8), region = 147 }
 0x90d   :  { %3168 = vsyncpa [#allocation4], 1 }
 0x90e   :  { %3170 = vsyncpa [#allocation4 + $0x1], 1 }
 0x90f   :  { %3171 = vsyncpa [#allocation6], 1 }
 0x910   :  { %3172 = vsyncpa [#allocation9], 1 }
 0x911   :  { %3173 = vsyncpa [#allocation12], 1 }

// kernel: se_resnext_forward.7
= control target key start
LH: loop header
LB: loop body
LE: loop exit
PB: predicated region body
PF: predicated region fallthrough
CT: control target
= control target key end

     0   :  { %s3022_s18 = smov 0   ;;  %s4157_s0 = inlined_call_operand.vmem [shape: bf16[2,256,147], index: 0, kind: input, shape index: {}]   ;;  %s4158_s1 = inlined_call_operand.vmem [shape: bf16[147,16], index: 1, kind: input, shape index: {}]   ;;  %s4159_s2 = inlined_call_operand.vmem [shape: f32[1,16], index: 2, kind: input, shape index: {}]   ;;  %s4160_s3 = inlined_call_operand.vmem [shape: bf16[289,256], index: 3, kind: input, shape index: {}]   ;;  %s4161_s4 = inlined_call_operand.vmem [shape: bf16[64,289], index: 4, kind: input, shape index: {}]   ;;  %s4162_s5 = inlined_call_operand.vmem [shape: bf16[2,64,16], index: 5, kind: output, shape index: {}]  }
   0x1 LB: > { %s2505_s19 = sadd.s32 4294967295, %s2988_s18   ;;  %p2509_p0 = scmp.ge.s32.totalorder %s2988_s18, 1  ;;  %s2988_s18 = sphi %s3022_s18, %s15_s18  }
   0x2   : > { %p187_p1 = scmp.lt.s32.totalorder %s2988_s18, 3 }
   0x4   : > { %p188_p2 = pnand %p2509_p0, %p187_p1 }
   0x6   : > { %191 = sbr.rel (%p188_p2) target bundleno = 1046 (0x416), region = 40 }
   0xd   : > { %v2822_v0 = vld [vmem:[%s4158_s1] sm:$0xff]   ;;  %v4163_v1 = vmov 0   ;;  %v2823_v2 = vld [vmem:[%s4158_s1 + $0x8] sm:$0xff]   ;;  %v2824_v3 = vld [vmem:[%s4158_s1 + $0x10] sm:$0xff]   ;;  %p215_p3 = scmp.lt.s32.totalorder %s2505_s19, 1  ;;  %vm485_vm0 = vcmask 154624  }
   0xe   : > { %541 = vmatprep.subr.bf16.mxu0 %v4163_v1  ;;  %974 = vmatprep.subr.bf16.mxu1 %v4163_v1  ;;  %v2825_v4 = vld [vmem:[%s4158_s1 + $0x18] sm:$0xff]   ;;  %v2826_v6 = vld [vmem:[%s4158_s1 + $0x20] sm:$0xff]   ;;  %v2827_v7 = vld [vmem:[%s4158_s1 + $0x28] sm:$0xff]   ;;  %vm534_vm1 = vcmask 1040384   ;;  %vm535_vm2 = vcmask 1041408   ;;  %v2991_v10 = vmov 65535  }
   0xf   : > { %542 = vmatpush1.bf16.msra.mxu0 %v2822_v0  ;;  %s4204_s19 = smov (!%p215_p3, %s2505_s19), 1  ;;  %v2828_v8 = vld [vmem:[%s4158_s1 + $0x30] sm:$0xff]   ;;  %v2829_v9 = vld [vmem:[%s4158_s1 + $0x38] sm:$0xff]   ;;  %v536_v11 = vsel %vm534_vm1, 4294967295, %v2991_v10  ;;  %v2830_v12 = vld [vmem:[%s4158_s1 + $0x40] sm:$0xff]   ;;  %vm1177_vm3 = vcmask 125952  }
  0x10   : > { %543 = vmatprep.subr.bf16.mxu0 %v4163_v1  ;;  %s2704_s28 = sshll.u32 %s4204_s19, 8  ;;  %v2831_v13 = vld [vmem:[%s4158_s1 + $0x48] ss:$0 sps:$4 sm:$0x33]   ;;  %v537_v14 = vsel %vm535_vm2, %v536_v11, 0  ;;  %vm1723_vm5 = vcmask 1046528  }
  0x11   : > { %s3053_s6 = scalar_lea.vmem %s4157_s0, %s2704_s28  ;;  %v539_v15 = vand.u32 %v2831_v13, %v537_v14  ;;  %v3131_v47 = vld [vmem:[%s4159_s2] ss:$0 sm:$0xff]  ;;  %v2882_v51 = vld [vmem:[%s4160_s3 + $0x4] ss:$8 sps:$4 sm:$0xff]   ;;  %1178 = vst.msk [vmem:[#allocation2] sm:$0xf] %vm1177_vm3, %v4163_v1 }
  0x12   : > { %v2834_v5 = vld [vmem:[%s3053_s6 + $0x4] ss:$8 sps:$4 sm:$0xff]   ;;  %v2832_v16 = vld [vmem:[%s3053_s6] ss:$8 sps:$4 sm:$0xff]   ;;  %v2835_v17 = vld [vmem:[%s3053_s6 + $0x14] ss:$8 sps:$4 sm:$0xff]   ;;  %1006 = vmatprep.mubr.bf16.mxu1 %v2882_v51 }
  0x13   : > { %544 = vmatpush1.bf16.msra.mxu0 %v2823_v2  ;;  %2557 = vmatprep.mubr.msk.bf16.mxu0 %vm485_vm0, %v2834_v5  ;;  %v2837_v18 = vld [vmem:[%s3053_s6 + $0x10] ss:$8 sps:$4 sm:$0xff]   ;;  %v2838_v19 = vld [vmem:[%s3053_s6 + $0x24] ss:$8 sps:$4 sm:$0xff]   ;;  %v2840_v20 = vld [vmem:[%s3053_s6 + $0x20] ss:$8 sps:$4 sm:$0xff]  }
  0x14   : > { %545 = vmatprep.subr.bf16.mxu0 %v4163_v1  ;;  %v2841_v21 = vld [vmem:[%s3053_s6 + $0x34] ss:$8 sps:$4 sm:$0xff]   ;;  %v2843_v22 = vld [vmem:[%s3053_s6 + $0x30] ss:$8 sps:$4 sm:$0xff]   ;;  %v2844_v23 = vld [vmem:[%s3053_s6 + $0x44] ss:$8 sps:$4 sm:$0xff]  }
  0x15   : > { %v2846_v24 = vld [vmem:[%s3053_s6 + $0x40] ss:$8 sps:$4 sm:$0xff]   ;;  %v2847_v25 = vld [vmem:[%s3053_s6 + $0x54] ss:$8 sps:$4 sm:$0xff]   ;;  %v2849_v26 = vld [vmem:[%s3053_s6 + $0x50] ss:$8 sps:$4 sm:$0xff]  }
  0x16   : > { %v2850_v27 = vld [vmem:[%s3053_s6 + $0x64] ss:$8 sps:$4 sm:$0xff]   ;;  %v2852_v28 = vld [vmem:[%s3053_s6 + $0x60] ss:$8 sps:$4 sm:$0xff]   ;;  %v2853_v29 = vld [vmem:[%s3053_s6 + $0x74] ss:$8 sps:$4 sm:$0xff]  }
  0x17   : > { %546 = vmatpush1.bf16.msra.mxu0 %v2824_v3  ;;  %v2855_v30 = vld [vmem:[%s3053_s6 + $0x70] ss:$8 sps:$4 sm:$0xff]   ;;  %v2856_v31 = vld [vmem:[%s3053_s6 + $0x84] ss:$8 sps:$4 sm:$0xff]   ;;  %v2858_v32 = vld [vmem:[%s3053_s6 + $0x80] ss:$8 sps:$4 sm:$0xff]  }
  0x18   : > { %547 = vmatprep.subr.bf16.mxu0 %v4163_v1  ;;  %v2859_v33 = vld [vmem:[%s3053_s6 + $0x94] ss:$8 sps:$4 sm:$0xff]   ;;  %v2861_v34 = vld [vmem:[%s3053_s6 + $0x90] ss:$8 sps:$4 sm:$0xff]   ;;  %v2862_v35 = vld [vmem:[%s3053_s6 + $0xa4] ss:$8 sps:$4 sm:$0xff]  }
  0x19   : > { %v2864_v36 = vld [vmem:[%s3053_s6 + $0xa0] ss:$8 sps:$4 sm:$0xff]   ;;  %v2865_v37 = vld [vmem:[%s3053_s6 + $0xb4] ss:$8 sps:$4 sm:$0xff]   ;;  %v2867_v38 = vld [vmem:[%s3053_s6 + $0xb0] ss:$8 sps:$4 sm:$0xff]  }
  0x1a   : > { %v2868_v39 = vld [vmem:[%s3053_s6 + $0xc4] ss:$8 sps:$4 sm:$0xff]   ;;  %v2870_v40 = vld [vmem:[%s3053_s6 + $0xc0] ss:$8 sps:$4 sm:$0xff]   ;;  %v2871_v41 = vld [vmem:[%s3053_s6 + $0xd4] ss:$8 sps:$4 sm:$0xff]  }
  0x1b   : > { %548 = vmatpush1.bf16.msra.mxu0 %v2825_v4  ;;  %v2873_v42 = vld [vmem:[%s3053_s6 + $0xd0] ss:$8 sps:$4 sm:$0xff]   ;;  %v2874_v43 = vld [vmem:[%s3053_s6 + $0xe4] ss:$8 sps:$4 sm:$0xff]   ;;  %v2876_v44 = vld [vmem:[%s3053_s6 + $0xe0] ss:$8 sps:$4 sm:$0xff]  }
  0x1c   : > { %549 = vmatprep.subr.bf16.mxu0 %v4163_v1  ;;  %v2877_v45 = vld [vmem:[%s3053_s6 + $0xf4] ss:$8 sps:$4 sm:$0xff]   ;;  %v2879_v46 = vld [vmem:[%s3053_s6 + $0xf0] ss:$8 sps:$4 sm:$0xff]   ;;  %1179 = vst.msk [vmem:[#allocation2 + $0x4] sm:$0xf] %vm1177_vm3, %v4163_v1 }
  0x1d   : > { %1180 = vst.msk [vmem:[#allocation2 + $0x8] sm:$0xf] %vm1177_vm3, %v4163_v1  ;;  %1181 = vst.msk [vmem:[#allocation2 + $0xc] sm:$0xf] %vm1177_vm3, %v4163_v1  ;;  %vm1526_vm4 = vsmask.f32 7424 }
  0x1e   : > { %1182 = vst.msk [vmem:[#allocation2 + $0x10] sm:$0xf] %vm1177_vm3, %v4163_v1  ;;  %1183 = vst.msk [vmem:[#allocation2 + $0x14] sm:$0xf] %vm1177_vm3, %v4163_v1  ;;  %vm1218_vm6 = vcmask 124928   ;;  %vm2110_vm10 = vcmask 1045504  }
  0x1f   : > { %550 = vmatpush1.bf16.msra.mxu0 %v2826_v6  ;;  %1184 = vst.msk [vmem:[#allocation2 + $0x18] sm:$0xf] %vm1177_vm3, %v4163_v1  ;;  %1185 = vst.msk [vmem:[#allocation2 + $0x1c] sm:$0xf] %vm1177_vm3, %v4163_v1  ;;  %vm1219_vm7 = vsmask.f32 2304 }
  0x20   : > { %551 = vmatprep.subr.bf16.mxu0 %v4163_v1  ;;  %1186 = vst.msk [vmem:[#allocation2 + $0x20] sm:$0xf] %vm1177_vm3, %v4163_v1  ;;  %1187 = vst.msk [vmem:[#allocation2 + $0x24] sm:$0xf] %vm1177_vm3, %v4163_v1  ;;  %vm1884_vm9 = vsmask.f32 6400 }
  0x21   : > { %1188 = vst.msk [vmem:[#allocation2 + $0x28] sm:$0xf] %vm1177_vm3, %v4163_v1  ;;  %1189 = vst.msk [vmem:[#allocation2 + $0x2c] sm:$0xf] %vm1177_vm3, %v4163_v1  ;;  %vm1390_vm11 = vcmask 122880   ;;  %vm2262_vm14 = vcmask 269312  }
  0x22   : > { %1190 = vst.msk [vmem:[#allocation2 + $0x30] sm:$0xf] %vm1177_vm3, %v4163_v1  ;;  %1191 = vst.msk [vmem:[#allocation2 + $0x34] sm:$0xf] %vm1177_vm3, %v4163_v1  ;;  %vm1391_vm12 = vsmask.f32 256 }
  0x23   : > { %552 = vmatpush1.bf16.msra.mxu0 %v2827_v7  ;;  %1192 = vst.msk [vmem:[#allocation2 + $0x38] sm:$0xf] %vm1177_vm3, %v4163_v1  ;;  %1193 = vst.msk [vmem:[#allocation2 + $0x3c] sm:$0xf] %vm1177_vm3, %v4163_v1  ;;  %s2705_s29 = sshll.u32 %s4204_s19, 5 }
  0x24   : > { %553 = vmatprep.subr.bf16.mxu0 %v4163_v1  ;;  %1194 = vst.msk [vmem:[#allocation2 + $0x40] sm:$0xf] %vm1177_vm3, %v4163_v1  ;;  %1195 = vst.msk [vmem:[#allocation2 + $0x44] sm:$0xf] %vm1177_vm3, %v4163_v1  ;;  %s224_s7 = scalar_lea.vmem %s4162_s5, %s2705_s29 }
  0x25   : > { %1196 = vst.msk [vmem:[#allocation2 + $0x48] sm:$0xf] %vm1177_vm3, %v4163_v1  ;;  %1197 = vst.msk [vmem:[#allocation2 + $0x4c] sm:$0xf] %vm1177_vm3, %v4163_v1 }
  0x26   : > { %1198 = vst.msk [vmem:[#allocation2 + $0x50] sm:$0xf] %vm1177_vm3, %v4163_v1  ;;  %1199 = vst.msk [vmem:[#allocation2 + $0x54] sm:$0xf] %vm1177_vm3, %v4163_v1 }
  0x27   : > { %554 = vmatpush1.bf16.msra.mxu0 %v2828_v8  ;;  %1200 = vst.msk [vmem:[#allocation2 + $0x58] sm:$0xf] %vm1177_vm3, %v4163_v1  ;;  %1201 = vst.msk [vmem:[#allocation2 + $0x5c] sm:$0xf] %vm1177_vm3, %v4163_v1 }
  0x28   : > { %555 = vmatprep.subr.bf16.mxu0 %v4163_v1  ;;  %1202 = vst.msk [vmem:[#allocation2 + $0x60] sm:$0xf] %vm1177_vm3, %v4163_v1  ;;  %1203 = vst.msk [vmem:[#allocation2 + $0x64] sm:$0xf] %vm1177_vm3, %v4163_v1 }
  0x29   : > { %1204 = vst.msk [vmem:[#allocation2 + $0x68] sm:$0xf] %vm1177_vm3, %v4163_v1  ;;  %1205 = vst.msk [vmem:[#allocation2 + $0x6c] sm:$0xf] %vm1177_vm3, %v4163_v1 }
  0x2a   : > { %1206 = vst.msk [vmem:[#allocation2 + $0x70] sm:$0xf] %vm1177_vm3, %v4163_v1  ;;  %1207 = vst.msk [vmem:[#allocation2 + $0x74] sm:$0xf] %vm1177_vm3, %v4163_v1 }
  0x2b   : > { %556 = vmatpush1.bf16.msra.mxu0 %v2829_v9  ;;  %1208 = vst.msk [vmem:[#allocation2 + $0x78] sm:$0xf] %vm1177_vm3, %v4163_v1  ;;  %1209 = vst.msk [vmem:[#allocation2 + $0x7c] sm:$0xf] %vm1177_vm3, %v4163_v1 }
  0x2c   : > { %557 = vmatprep.subr.bf16.mxu0 %v4163_v1  ;;  %1210 = vst.msk [vmem:[#allocation2 + $0x80] sm:$0xf] %vm1177_vm3, %v4163_v1  ;;  %1211 = vst.msk [vmem:[#allocation2 + $0x84] sm:$0xf] %vm1177_vm3, %v4163_v1 }
  0x2d   : > { %1212 = vst.msk [vmem:[#allocation2 + $0x88] sm:$0xf] %vm1177_vm3, %v4163_v1  ;;  %1213 = vst.msk [vmem:[#allocation2 + $0x8c] sm:$0xf] %vm1177_vm3, %v4163_v1 }
  0x2e   : > { %1214 = vst.msk [vmem:[#allocation2 + $0x90] sm:$0xf] %vm1177_vm3, %v4163_v1  ;;  %1215 = vst.msk [vmem:[#allocation2 + $0x94] sm:$0xf] %vm1177_vm3, %v4163_v1 }
  0x2f   : > { %558 = vmatpush1.bf16.msra.mxu0 %v2830_v12  ;;  %1216 = vst.msk [vmem:[#allocation2 + $0x98] sm:$0xf] %vm1177_vm3, %v4163_v1  ;;  %1217 = vst.msk [vmem:[#allocation2 + $0x9c] sm:$0xf] %vm1177_vm3, %v4163_v1 }
  0x30   : > { %559 = vmatprep.subr.bf16.mxu0 %v4163_v1  ;;  %vm1220_vm8 = vmand %vm1218_vm6, %vm1219_vm7 }
  0x31   : > { %vm4007_vm13 = vmand %vm1390_vm11, %vm1391_vm12 }
  0x33   : > { %560 = vmatpush1.bf16.msra.mxu0 %v539_v15 }
  0x36   : > { %574 = vmatmul.mubr.bf16.vlgmr.msra.gmra.mrb[0].mxu0 %v2832_v16 }
  0x37   : > { %2558 = vmatprep.mubr.msk.bf16.mxu0 %vm485_vm0, %v2835_v17 }
  0x3e   : > { %582 = vmatmul.mubr.bf16.gmra.mrb[4].mxu0 %v2837_v18 }
  0x3f   : > { %2559 = vmatprep.mubr.msk.bf16.mxu0 %vm485_vm0, %v2838_v19 }
  0x46   : > { %590 = vmatmul.mubr.bf16.gmra.mrb[8].mxu0 %v2840_v20 }
  0x47   : > { %2560 = vmatprep.mubr.msk.bf16.mxu0 %vm485_vm0, %v2841_v21 }
  0x4e   : > { %598 = vmatmul.mubr.bf16.gmra.mrb[12].mxu0 %v2843_v22 }
  0x4f   : > { %2561 = vmatprep.mubr.msk.bf16.mxu0 %vm485_vm0, %v2844_v23 }
  0x56   : > { %606 = vmatmul.mubr.bf16.gmra.mrb[16].mxu0 %v2846_v24 }
  0x57   : > { %2562 = vmatprep.mubr.msk.bf16.mxu0 %vm485_vm0, %v2847_v25 }
  0x5e   : > { %614 = vmatmul.mubr.bf16.gmra.mrb[20].mxu0 %v2849_v26 }
  0x5f   : > { %2563 = vmatprep.mubr.msk.bf16.mxu0 %vm485_vm0, %v2850_v27 }
  0x66   : > { %622 = vmatmul.mubr.bf16.gmra.mrb[24].mxu0 %v2852_v28 }
  0x67   : > { %2564 = vmatprep.mubr.msk.bf16.mxu0 %vm485_vm0, %v2853_v29 }
  0x6e   : > { %630 = vmatmul.mubr.bf16.gmra.mrb[28].mxu0 %v2855_v30 }
  0x6f   : > { %2565 = vmatprep.mubr.msk.bf16.mxu0 %vm485_vm0, %v2856_v31 }
  0x76   : > { %638 = vmatmul.mubr.bf16.gmra.mrb[32].mxu0 %v2858_v32 }
  0x77   : > { %2566 = vmatprep.mubr.msk.bf16.mxu0 %vm485_vm0, %v2859_v33 }
  0x7e   : > { %646 = vmatmul.mubr.bf16.gmra.mrb[36].mxu0 %v2861_v34 }
  0x7f   : > { %2567 = vmatprep.mubr.msk.bf16.mxu0 %vm485_vm0, %v2862_v35 }
  0x86   : > { %654 = vmatmul.mubr.bf16.gmra.mrb[40].mxu0 %v2864_v36 }
  0x87   : > { %2568 = vmatprep.mubr.msk.bf16.mxu0 %vm485_vm0, %v2865_v37 }
  0x8e   : > { %662 = vmatmul.mubr.bf16.gmra.mrb[44].mxu0 %v2867_v38 }
  0x8f   : > { %2569 = vmatprep.mubr.msk.bf16.mxu0 %vm485_vm0, %v2868_v39 }
  0x96   : > { %670 = vmatmul.mubr.bf16.gmra.mrb[48].mxu0 %v2870_v40 }
  0x97   : > { %2570 = vmatprep.mubr.msk.bf16.mxu0 %vm485_vm0, %v2871_v41 }
  0x9e   : > { %678 = vmatmul.mubr.bf16.gmra.mrb[52].mxu0 %v2873_v42 }
  0x9f   : > { %2571 = vmatprep.mubr.msk.bf16.mxu0 %vm485_vm0, %v2874_v43 }
  0xa6   : > { %686 = vmatmul.mubr.bf16.gmra.mrb[56].mxu0 %v2876_v44 }
  0xa7   : > { %2572 = vmatprep.mubr.msk.bf16.mxu0 %vm485_vm0, %v2877_v45 }
  0xae   : > { %694 = vmatmul.mubr.bf16.gmra.mrb[60].mxu0 %v2879_v46 }
 0x109   : > { %v575_v48 = vpop.f32.mrb[0].mxu0 }
 0x10a   : > { %v576_v49 = vadd.f32 %v3131_v47, %v575_v48  ;;  %v577_v50 = vpop.f32.mrb[1].mxu0 }
 0x10b   : > { %v578_v52 = vpop.f32.mrb[2].mxu0 }
 0x10c   : > { %v579_v53 = vadd.f32 %v3131_v47, %v578_v52  ;;  %v580_v54 = vpop.f32.mrb[3].mxu0  ;;  %v702_v55 = vmax.f32 %v576_v49, 0.0 }
 0x10e   : > { %v703_v56 = vmax.f32 %v579_v53, 0.0 }
 0x110   : > { %v734_v57 = vpack.c.bf16 %v703_v56, %v702_v55 }
 0x111   : > { %v583_v58 = vpop.f32.mrb[4].mxu0 }
 0x112   : > { %v584_v59 = vadd.f32 %v3131_v47, %v583_v58  ;;  %v585_v60 = vpop.f32.mrb[5].mxu0  ;;  %975 = vmatpush1.bf16.msra.mxu1 %v734_v57 }
 0x113   : > { %v586_v61 = vpop.f32.mrb[6].mxu0  ;;  %976 = vmatprep.subr.bf16.mxu1 %v4163_v1 }
 0x114   : > { %v587_v62 = vadd.f32 %v3131_v47, %v586_v61  ;;  %v588_v63 = vpop.f32.mrb[7].mxu0  ;;  %v704_v0 = vmax.f32 %v584_v59, 0.0 }
 0x116   : > { %v705_v2 = vmax.f32 %v587_v62, 0.0 }
 0x118   : > { %v735_v3 = vpack.c.bf16 %v705_v2, %v704_v0 }
 0x119   : > { %v591_v4 = vpop.f32.mrb[8].mxu0 }
 0x11a   : > { %v592_v5 = vadd.f32 %v3131_v47, %v591_v4  ;;  %v593_v6 = vpop.f32.mrb[9].mxu0  ;;  %977 = vmatpush1.bf16.msra.mxu1 %v735_v3 }
 0x11b   : > { %v594_v7 = vpop.f32.mrb[10].mxu0  ;;  %978 = vmatprep.subr.bf16.mxu1 %v4163_v1 }
 0x11c   : > { %v595_v8 = vadd.f32 %v3131_v47, %v594_v7  ;;  %v596_v9 = vpop.f32.mrb[11].mxu0  ;;  %v706_v10 = vmax.f32 %v592_v5, 0.0 }
 0x11e   : > { %v707_v11 = vmax.f32 %v595_v8, 0.0 }
 0x120   : > { %v736_v12 = vpack.c.bf16 %v707_v11, %v706_v10 }
 0x121   : > { %v599_v13 = vpop.f32.mrb[12].mxu0 }
 0x122   : > { %v600_v14 = vadd.f32 %v3131_v47, %v599_v13  ;;  %v601_v15 = vpop.f32.mrb[13].mxu0  ;;  %979 = vmatpush1.bf16.msra.mxu1 %v736_v12 }
 0x123   : > { %v602_v16 = vpop.f32.mrb[14].mxu0  ;;  %980 = vmatprep.subr.bf16.mxu1 %v4163_v1 }
 0x124   : > { %v603_v17 = vadd.f32 %v3131_v47, %v602_v16  ;;  %v604_v18 = vpop.f32.mrb[15].mxu0  ;;  %v708_v19 = vmax.f32 %v600_v14, 0.0 }
 0x126   : > { %v709_v20 = vmax.f32 %v603_v17, 0.0 }
 0x128   : > { %v737_v21 = vpack.c.bf16 %v709_v20, %v708_v19 }
 0x129   : > { %v607_v22 = vpop.f32.mrb[16].mxu0 }
 0x12a   : > { %v608_v23 = vadd.f32 %v3131_v47, %v607_v22  ;;  %v609_v24 = vpop.f32.mrb[17].mxu0  ;;  %981 = vmatpush1.bf16.msra.mxu1 %v737_v21 }
 0x12b   : > { %v610_v25 = vpop.f32.mrb[18].mxu0  ;;  %982 = vmatprep.subr.bf16.mxu1 %v4163_v1 }
 0x12c   : > { %v611_v26 = vadd.f32 %v3131_v47, %v610_v25  ;;  %v612_v27 = vpop.f32.mrb[19].mxu0  ;;  %v710_v28 = vmax.f32 %v608_v23, 0.0 }
 0x12e   : > { %v711_v29 = vmax.f32 %v611_v26, 0.0 }
 0x130   : > { %v738_v30 = vpack.c.bf16 %v711_v29, %v710_v28 }
 0x131   : > { %v615_v31 = vpop.f32.mrb[20].mxu0 }
 0x132   : > { %v616_v32 = vadd.f32 %v3131_v47, %v615_v31  ;;  %v617_v33 = vpop.f32.mrb[21].mxu0  ;;  %983 = vmatpush1.bf16.msra.mxu1 %v738_v30 }
 0x133   : > { %v618_v34 = vpop.f32.mrb[22].mxu0  ;;  %984 = vmatprep.subr.bf16.mxu1 %v4163_v1 }
 0x134   : > { %v619_v35 = vadd.f32 %v3131_v47, %v618_v34  ;;  %v620_v36 = vpop.f32.mrb[23].mxu0  ;;  %v712_v37 = vmax.f32 %v616_v32, 0.0 }
 0x136   : > { %v713_v38 = vmax.f32 %v619_v35, 0.0 }
 0x138   : > { %v739_v39 = vpack.c.bf16 %v713_v38, %v712_v37 }
 0x139   : > { %v623_v40 = vpop.f32.mrb[24].mxu0 }
 0x13a   : > { %v624_v41 = vadd.f32 %v3131_v47, %v623_v40  ;;  %v625_v42 = vpop.f32.mrb[25].mxu0  ;;  %985 = vmatpush1.bf16.msra.mxu1 %v739_v39 }
 0x13b   : > { %v626_v43 = vpop.f32.mrb[26].mxu0  ;;  %986 = vmatprep.subr.bf16.mxu1 %v4163_v1 }
 0x13c   : > { %v627_v44 = vadd.f32 %v3131_v47, %v626_v43  ;;  %v628_v45 = vpop.f32.mrb[27].mxu0  ;;  %v714_v46 = vmax.f32 %v624_v41, 0.0 }
 0x13e   : > { %v715_v48 = vmax.f32 %v627_v44, 0.0 }
 0x140   : > { %v740_v49 = vpack.c.bf16 %v715_v48, %v714_v46 }
 0x141   : > { %v631_v50 = vpop.f32.mrb[28].mxu0 }
 0x142   : > { %v632_v51 = vadd.f32 %v3131_v47, %v631_v50  ;;  %v633_v52 = vpop.f32.mrb[29].mxu0  ;;  %987 = vmatpush1.bf16.msra.mxu1 %v740_v49 }
 0x143   : > { %v634_v53 = vpop.f32.mrb[30].mxu0  ;;  %988 = vmatprep.subr.bf16.mxu1 %v4163_v1 }
 0x144   : > { %v635_v54 = vadd.f32 %v3131_v47, %v634_v53  ;;  %v636_v55 = vpop.f32.mrb[31].mxu0  ;;  %v716_v56 = vmax.f32 %v632_v51, 0.0 }
 0x146   : > { %v717_v57 = vmax.f32 %v635_v54, 0.0 }
 0x148   : > { %v741_v58 = vpack.c.bf16 %v717_v57, %v716_v56 }
 0x149   : > { %v639_v59 = vpop.f32.mrb[32].mxu0 }
 0x14a   : > { %v640_v60 = vadd.f32 %v3131_v47, %v639_v59  ;;  %v641_v61 = vpop.f32.mrb[33].mxu0  ;;  %989 = vmatpush1.bf16.msra.mxu1 %v741_v58 }
 0x14b   : > { %v642_v62 = vpop.f32.mrb[34].mxu0  ;;  %990 = vmatprep.subr.bf16.mxu1 %v4163_v1 }
 0x14c   : > { %v643_v63 = vadd.f32 %v3131_v47, %v642_v62  ;;  %v644_v0 = vpop.f32.mrb[35].mxu0  ;;  %v718_v2 = vmax.f32 %v640_v60, 0.0 }
 0x14e   : > { %v719_v3 = vmax.f32 %v643_v63, 0.0 }
 0x150   : > { %v742_v4 = vpack.c.bf16 %v719_v3, %v718_v2 }
 0x151   : > { %v647_v5 = vpop.f32.mrb[36].mxu0 }
 0x152   : > { %v648_v6 = vadd.f32 %v3131_v47, %v647_v5  ;;  %v649_v7 = vpop.f32.mrb[37].mxu0  ;;  %991 = vmatpush1.bf16.msra.mxu1 %v742_v4 }
 0x153   : > { %v650_v8 = vpop.f32.mrb[38].mxu0  ;;  %992 = vmatprep.subr.bf16.mxu1 %v4163_v1  ;;  %v2883_v7 = vld [vmem:[%s4160_s3 + $0x14] ss:$8 sps:$4 sm:$0xff]  }
 0x154   : > { %v651_v9 = vadd.f32 %v3131_v47, %v650_v8  ;;  %v652_v10 = vpop.f32.mrb[39].mxu0  ;;  %v720_v11 = vmax.f32 %v648_v6, 0.0  ;;  %v2880_v6 = vld [vmem:[%s4160_s3] ss:$8 sps:$4 sm:$0xff]   ;;  %v2885_v8 = vld [vmem:[%s4160_s3 + $0x10] ss:$8 sps:$4 sm:$0xff]  }
 0x155   : > { %v2889_v10 = vld [vmem:[%s4160_s3 + $0x34] ss:$8 sps:$4 sm:$0xff]  }
 0x156   : > { %v721_v12 = vmax.f32 %v651_v9, 0.0  ;;  %v2888_v9 = vld [vmem:[%s4160_s3 + $0x20] ss:$8 sps:$4 sm:$0xff]  }
 0x158   : > { %v743_v13 = vpack.c.bf16 %v721_v12, %v720_v11  ;;  %v2891_v11 = vld [vmem:[%s4160_s3 + $0x30] ss:$8 sps:$4 sm:$0xff]   ;;  %v2892_v12 = vld [vmem:[%s4160_s3 + $0x44] ss:$8 sps:$4 sm:$0xff]  }
 0x159   : > { %v655_v14 = vpop.f32.mrb[40].mxu0 }
 0x15a   : > { %v656_v15 = vadd.f32 %v3131_v47, %v655_v14  ;;  %v657_v16 = vpop.f32.mrb[41].mxu0  ;;  %993 = vmatpush1.bf16.msra.mxu1 %v743_v13  ;;  %v2894_v13 = vld [vmem:[%s4160_s3 + $0x40] ss:$8 sps:$4 sm:$0xff]   ;;  %v2895_v14 = vld [vmem:[%s4160_s3 + $0x54] ss:$8 sps:$4 sm:$0xff]  }
 0x15b   : > { %v658_v17 = vpop.f32.mrb[42].mxu0  ;;  %994 = vmatprep.subr.bf16.mxu1 %v4163_v1  ;;  %v2898_v16 = vld [vmem:[%s4160_s3 + $0x64] ss:$8 sps:$4 sm:$0xff]  }
 0x15c   : > { %v659_v18 = vadd.f32 %v3131_v47, %v658_v17  ;;  %v660_v19 = vpop.f32.mrb[43].mxu0  ;;  %v722_v20 = vmax.f32 %v656_v15, 0.0  ;;  %v2897_v15 = vld [vmem:[%s4160_s3 + $0x50] ss:$8 sps:$4 sm:$0xff]   ;;  %v2900_v17 = vld [vmem:[%s4160_s3 + $0x60] ss:$8 sps:$4 sm:$0xff]  }
 0x15d   : > { %v2903_v19 = vld [vmem:[%s4160_s3 + $0x70] ss:$8 sps:$4 sm:$0xff]  }
 0x15e   : > { %v723_v21 = vmax.f32 %v659_v18, 0.0  ;;  %v2901_v18 = vld [vmem:[%s4160_s3 + $0x74] ss:$8 sps:$4 sm:$0xff]  }
 0x160   : > { %v744_v22 = vpack.c.bf16 %v723_v21, %v722_v20  ;;  %v2904_v20 = vld [vmem:[%s4160_s3 + $0x84] ss:$8 sps:$4 sm:$0xff]   ;;  %v2906_v21 = vld [vmem:[%s4160_s3 + $0x80] ss:$8 sps:$4 sm:$0xff]  }
 0x161   : > { %v663_v23 = vpop.f32.mrb[44].mxu0 }
 0x162   : > { %v664_v24 = vadd.f32 %v3131_v47, %v663_v23  ;;  %v665_v25 = vpop.f32.mrb[45].mxu0  ;;  %995 = vmatpush1.bf16.msra.mxu1 %v744_v22  ;;  %v2907_v22 = vld [vmem:[%s4160_s3 + $0x94] ss:$8 sps:$4 sm:$0xff]   ;;  %v2909_v23 = vld [vmem:[%s4160_s3 + $0x90] ss:$8 sps:$4 sm:$0xff]  }
 0x163   : > { %v666_v26 = vpop.f32.mrb[46].mxu0  ;;  %996 = vmatprep.subr.bf16.mxu1 %v4163_v1  ;;  %v2912_v25 = vld [vmem:[%s4160_s3 + $0xa0] ss:$8 sps:$4 sm:$0xff]  }
 0x164   : > { %v667_v27 = vadd.f32 %v3131_v47, %v666_v26  ;;  %v668_v28 = vpop.f32.mrb[47].mxu0  ;;  %v724_v29 = vmax.f32 %v664_v24, 0.0  ;;  %v2910_v24 = vld [vmem:[%s4160_s3 + $0xa4] ss:$8 sps:$4 sm:$0xff]   ;;  %v2913_v26 = vld [vmem:[%s4160_s3 + $0xb4] ss:$8 sps:$4 sm:$0xff]  }
 0x165   : > { %v2916_v28 = vld [vmem:[%s4160_s3 + $0xc4] ss:$8 sps:$4 sm:$0xff]  }
 0x166   : > { %v725_v30 = vmax.f32 %v667_v27, 0.0  ;;  %v2915_v27 = vld [vmem:[%s4160_s3 + $0xb0] ss:$8 sps:$4 sm:$0xff]  }
 0x168   : > { %v745_v31 = vpack.c.bf16 %v725_v30, %v724_v29  ;;  %v2918_v29 = vld [vmem:[%s4160_s3 + $0xc0] ss:$8 sps:$4 sm:$0xff]   ;;  %v2919_v30 = vld [vmem:[%s4160_s3 + $0xd4] ss:$8 sps:$4 sm:$0xff]  }
 0x169   : > { %v671_v32 = vpop.f32.mrb[48].mxu0 }
 0x16a   : > { %v672_v33 = vadd.f32 %v3131_v47, %v671_v32  ;;  %v673_v34 = vpop.f32.mrb[49].mxu0  ;;  %997 = vmatpush1.bf16.msra.mxu1 %v745_v31  ;;  %v2921_v31 = vld [vmem:[%s4160_s3 + $0xd0] ss:$8 sps:$4 sm:$0xff]   ;;  %v2922_v32 = vld [vmem:[%s4160_s3 + $0xe4] ss:$8 sps:$4 sm:$0xff]  }
 0x16b   : > { %v674_v35 = vpop.f32.mrb[50].mxu0  ;;  %998 = vmatprep.subr.bf16.mxu1 %v4163_v1  ;;  %v2925_v34 = vld [vmem:[%s4160_s3 + $0xf4] ss:$8 sps:$4 sm:$0xff]  }
 0x16c   : > { %v675_v36 = vadd.f32 %v3131_v47, %v674_v35  ;;  %v676_v37 = vpop.f32.mrb[51].mxu0  ;;  %v726_v38 = vmax.f32 %v672_v33, 0.0  ;;  %v2924_v33 = vld [vmem:[%s4160_s3 + $0xe0] ss:$8 sps:$4 sm:$0xff]   ;;  %v2927_v35 = vld [vmem:[%s4160_s3 + $0xf0] ss:$8 sps:$4 sm:$0xff]  }
 0x16d   : > { %v2930_v37 = vld [vmem:[%s4160_s3 + $0x100] ss:$8 sps:$4 sm:$0xff]  }
 0x16e   : > { %v727_v39 = vmax.f32 %v675_v36, 0.0  ;;  %v2928_v36 = vld [vmem:[%s4160_s3 + $0x104] ss:$8 sps:$4 sm:$0xff]  }
 0x170   : > { %v746_v40 = vpack.c.bf16 %v727_v39, %v726_v38  ;;  %v2931_v38 = vld [vmem:[%s4160_s3 + $0x114] ss:$8 sps:$4 sm:$0xff]   ;;  %v786_v39 = vld [vmem:[%s4160_s3 + $0x120] sm:$0x11] }
 0x171   : > { %v679_v41 = vpop.f32.mrb[52].mxu0 }
 0x172   : > { %v680_v42 = vadd.f32 %v3131_v47, %v679_v41  ;;  %v681_v43 = vpop.f32.mrb[53].mxu0  ;;  %999 = vmatpush1.bf16.msra.mxu1 %v746_v40  ;;  %v2933_v40 = vld [vmem:[%s4160_s3 + $0x110] ss:$8 sps:$4 sm:$0xff]   ;;  %v2610_v41 = vcombine.high %v786_v39, %v786_v39 }
 0x173   : > { %v682_v44 = vpop.f32.mrb[54].mxu0  ;;  %1000 = vmatprep.subr.bf16.mxu1 %v4163_v1 }
 0x174   : > { %v683_v45 = vadd.f32 %v3131_v47, %v682_v44  ;;  %v684_v46 = vpop.f32.mrb[55].mxu0  ;;  %v728_v48 = vmax.f32 %v680_v42, 0.0  ;;  %v2609_v42 = vcombine.low %v786_v39, %v786_v39 }
 0x176   : > { %v729_v49 = vmax.f32 %v683_v45, 0.0 }
 0x178   : > { %v747_v50 = vpack.c.bf16 %v729_v49, %v728_v48 }
 0x179   : > { %v687_v51 = vpop.f32.mrb[56].mxu0 }
 0x17a   : > { %v688_v52 = vadd.f32 %v3131_v47, %v687_v51  ;;  %v689_v53 = vpop.f32.mrb[57].mxu0  ;;  %1001 = vmatpush1.bf16.msra.mxu1 %v747_v50 }
 0x17b   : > { %v690_v54 = vpop.f32.mrb[58].mxu0  ;;  %1002 = vmatprep.subr.bf16.mxu1 %v4163_v1 }
 0x17c   : > { %v691_v55 = vadd.f32 %v3131_v47, %v690_v54  ;;  %v692_v56 = vpop.f32.mrb[59].mxu0  ;;  %v730_v57 = vmax.f32 %v688_v52, 0.0 }
 0x17e   : > { %v731_v58 = vmax.f32 %v691_v55, 0.0 }
 0x180   : > { %v748_v59 = vpack.c.bf16 %v731_v58, %v730_v57 }
 0x181   : > { %v695_v60 = vpop.f32.mrb[60].mxu0 }
 0x182   : > { %v696_v61 = vadd.f32 %v3131_v47, %v695_v60  ;;  %v697_v62 = vpop.f32.mrb[61].mxu0  ;;  %1003 = vmatpush1.bf16.msra.mxu1 %v748_v59 }
 0x183   : > { %v698_v63 = vpop.f32.mrb[62].mxu0  ;;  %1004 = vmatprep.subr.bf16.mxu1 %v4163_v1 }
 0x184   : > { %v699_v0 = vadd.f32 %v3131_v47, %v698_v63  ;;  %v700_v2 = vpop.f32.mrb[63].mxu0  ;;  %v732_v3 = vmax.f32 %v696_v61, 0.0  ;;  %v2886_v47 = vld [vmem:[%s4160_s3 + $0x24] ss:$8 sps:$4 sm:$0xff]  }
 0x186   : > { %v733_v4 = vmax.f32 %v699_v0, 0.0 }
 0x188   : > { %v749_v5 = vpack.c.bf16 %v733_v4, %v732_v3 }
 0x18a   : > { %1005 = vmatpush1.bf16.msra.mxu1 %v749_v5 }
 0x18d   : > { %1007 = vmatmul.mubr.bf16.vlgmr.msra.gmra.mrb[0].mxu1 %v2880_v6 }
 0x18e   : > { %1014 = vmatprep.mubr.bf16.mxu1 %v2883_v7 }
 0x195   : > { %1015 = vmatmul.mubr.bf16.gmra.mrb[4].mxu1 %v2885_v8 }
 0x196   : > { %1022 = vmatprep.mubr.bf16.mxu1 %v2886_v47 }
 0x19d   : > { %1023 = vmatmul.mubr.bf16.gmra.mrb[8].mxu1 %v2888_v9 }
 0x19e   : > { %1030 = vmatprep.mubr.bf16.mxu1 %v2889_v10 }
 0x1a5   : > { %1031 = vmatmul.mubr.bf16.gmra.mrb[12].mxu1 %v2891_v11 }
 0x1a6   : > { %1038 = vmatprep.mubr.bf16.mxu1 %v2892_v12 }
 0x1ad   : > { %1039 = vmatmul.mubr.bf16.gmra.mrb[16].mxu1 %v2894_v13 }
 0x1ae   : > { %1046 = vmatprep.mubr.bf16.mxu1 %v2895_v14 }
 0x1b5   : > { %1047 = vmatmul.mubr.bf16.gmra.mrb[20].mxu1 %v2897_v15 }
 0x1b6   : > { %1054 = vmatprep.mubr.bf16.mxu1 %v2898_v16 }
 0x1bd   : > { %1055 = vmatmul.mubr.bf16.gmra.mrb[24].mxu1 %v2900_v17 }
 0x1be   : > { %1062 = vmatprep.mubr.bf16.mxu1 %v2901_v18 }
 0x1c5   : > { %1063 = vmatmul.mubr.bf16.gmra.mrb[28].mxu1 %v2903_v19 }
 0x1c6   : > { %1070 = vmatprep.mubr.bf16.mxu1 %v2904_v20 }
 0x1cd   : > { %1071 = vmatmul.mubr.bf16.gmra.mrb[32].mxu1 %v2906_v21 }
 0x1ce   : > { %1078 = vmatprep.mubr.bf16.mxu1 %v2907_v22 }
 0x1d5   : > { %1079 = vmatmul.mubr.bf16.gmra.mrb[36].mxu1 %v2909_v23 }
 0x1d6   : > { %1086 = vmatprep.mubr.bf16.mxu1 %v2910_v24 }
 0x1dd   : > { %1087 = vmatmul.mubr.bf16.gmra.mrb[40].mxu1 %v2912_v25 }
 0x1de   : > { %1094 = vmatprep.mubr.bf16.mxu1 %v2913_v26 }
 0x1e5   : > { %1095 = vmatmul.mubr.bf16.gmra.mrb[44].mxu1 %v2915_v27 }
 0x1e6   : > { %1102 = vmatprep.mubr.bf16.mxu1 %v2916_v28 }
 0x1ed   : > { %1103 = vmatmul.mubr.bf16.gmra.mrb[48].mxu1 %v2918_v29 }
 0x1ee   : > { %1110 = vmatprep.mubr.bf16.mxu1 %v2919_v30 }
 0x1f5   : > { %1111 = vmatmul.mubr.bf16.gmra.mrb[52].mxu1 %v2921_v31  ;;  %v2965_v31 = vld [vmem:[%s4161_s4 + $0x4] ss:$12 sps:$4 sm:$0xff]  }
 0x1f6   : > { %1118 = vmatprep.mubr.bf16.mxu1 %v2922_v32  ;;  %2312 = vmatprep.mubr.bf16.mxu0 %v2965_v31 }
 0x1fd   : > { %1119 = vmatmul.mubr.bf16.gmra.mrb[56].mxu1 %v2924_v33 }
 0x1fe   : > { %1126 = vmatprep.mubr.bf16.mxu1 %v2925_v34 }
 0x205   : > { %1127 = vmatmul.mubr.bf16.gmra.mrb[60].mxu1 %v2927_v35 }
 0x206   : > { %1134 = vmatprep.mubr.bf16.mxu1 %v2928_v36 }
 0x20d   : > { %1135 = vmatmul.mubr.bf16.gmra.mrb[64].mxu1 %v2930_v37 }
 0x20e   : > { %1142 = vmatprep.mubr.bf16.mxu1 %v2931_v38 }
 0x215   : > { %1143 = vmatmul.mubr.bf16.gmra.mrb[68].mxu1 %v2933_v40 }
 0x216   : > { %1150 = vmatprep.mubr.bf16.mxu1 %v2610_v41 }
 0x21d   : > { %1151 = vmatmul.mubr.bf16.gmra.mrb[72].mxu1 %v2609_v42 }
 0x260   : > { %v3371_v43 = vpop.f32.mrb[0].mxu1 }
 0x261   : > { %v2706_v44 = vpack.c.bf16 %v3371_v43, %v3371_v43  ;;  %v1010_v45 = vpop.f32.mrb[1].mxu1 }
 0x262   : > { %v3375_v46 = vpop.f32.mrb[2].mxu1 }
 0x263   : > { %1354 = vst.msk [vmem:[#allocation2] sm:$0xf] %vm1177_vm3, %v2706_v44  ;;  %v1158_v48 = vpack.c.bf16 %v3375_v46, %v3371_v43  ;;  %v2707_v49 = vpack.c.bf16 %v3375_v46, %v3375_v46  ;;  %v1013_v50 = vpop.f32.mrb[3].mxu1 }
 0x265   : > { %1355 = vst.msk [vmem:[#allocation2 + $0x4] sm:$0xf] %vm1177_vm3, %v2707_v49 }
 0x268   : > { %v3383_v51 = vpop.f32.mrb[4].mxu1 }
 0x269   : > { %v2708_v52 = vpack.c.bf16 %v3383_v51, %v3383_v51  ;;  %v1018_v53 = vpop.f32.mrb[5].mxu1 }
 0x26a   : > { %v3387_v54 = vpop.f32.mrb[6].mxu1  ;;  %v1396_v16 = vld [vmem:[#allocation2] sm:$0xf] }
 0x26b   : > { %1356 = vst.msk [vmem:[#allocation2 + $0x8] sm:$0xf] %vm1177_vm3, %v2708_v52  ;;  %v1159_v55 = vpack.c.bf16 %v3387_v54, %v3383_v51  ;;  %v2709_v56 = vpack.c.bf16 %v3387_v54, %v3387_v54  ;;  %v1021_v57 = vpop.f32.mrb[7].mxu1  ;;  %v1715_v44 = vld [vmem:[#allocation2] sm:$0xe] }
 0x26c   : > { %v1397_v12 = vld [vmem:[#allocation2 + $0x4] sm:$0xf] }
 0x26d   : > { %1357 = vst.msk [vmem:[#allocation2 + $0xc] sm:$0xf] %vm1177_vm3, %v2709_v56  ;;  %v2648_v18 = vcombine.low %v1396_v16, %v1397_v12  ;;  %v2667_v50 = vcombine.low %v1715_v44, %v1397_v12 }
 0x26f   : > { %v1530_v24 = vshll.u32 %v2648_v18, 16  ;;  %v1528_v35 = vshrl.u32 %v2648_v18, 16 }
 0x270   : > { %v3395_v58 = vpop.f32.mrb[8].mxu1 }
 0x271   : > { %v2710_v59 = vpack.c.bf16 %v3395_v58, %v3395_v58  ;;  %v1026_v60 = vpop.f32.mrb[9].mxu1  ;;  %v1532_v34 = vrot.slane %v1530_v24, 1 }
 0x272   : > { %v3399_v61 = vpop.f32.mrb[10].mxu1  ;;  %v1398_v19 = vld [vmem:[#allocation2 + $0x8] sm:$0xf] }
 0x273   : > { %1358 = vst.msk [vmem:[#allocation2 + $0x10] sm:$0xf] %vm1177_vm3, %v2710_v59  ;;  %v1160_v62 = vpack.c.bf16 %v3399_v61, %v3395_v58  ;;  %v2711_v63 = vpack.c.bf16 %v3399_v61, %v3399_v61  ;;  %v1029_v0 = vpop.f32.mrb[11].mxu1  ;;  %v1847_v38 = vld [vmem:[#allocation2 + $0x8] sm:$0xe]  ;;  %v1533_v41 = vor.u32 %v1532_v34, %v1528_v35 }
 0x274   : > { %v1399_v17 = vld [vmem:[#allocation2 + $0xc] sm:$0xf] }
 0x275   : > { %1359 = vst.msk [vmem:[#allocation2 + $0x14] sm:$0xf] %vm1177_vm3, %v2711_v63  ;;  %v3431_v20 = vcombine.low %v1398_v19, %v1399_v17  ;;  %v2671_v45 = vcombine.low %v1847_v38, %v1399_v17  ;;  %v1221_v63 = vld [vmem:[#allocation2 + $0xa0] sm:$0x7] }
 0x277   : > { %v1535_v30 = vshll.u32 %v3431_v20, 16  ;;  %v1539_v59 = vshrl.u32 %v3431_v20, 16  ;;  %v1725_v60 = vrot.slane %v3431_v20, 1 }
 0x278   : > { %v3407_v2 = vpop.f32.mrb[12].mxu1 }
 0x279   : > { %v2712_v3 = vpack.c.bf16 %v3407_v2, %v3407_v2  ;;  %v1034_v4 = vpop.f32.mrb[13].mxu1  ;;  %v1537_v36 = vrot.slane %v1535_v30, 1 }
 0x27a   : > { %v3411_v5 = vpop.f32.mrb[14].mxu1  ;;  %v1400_v32 = vld [vmem:[#allocation2 + $0x10] sm:$0xf]  ;;  %v1889_v4 = vshll.u32 %v2671_v45, 16 }
 0x27b   : > { %1360 = vst.msk [vmem:[#allocation2 + $0x18] sm:$0xf] %vm1177_vm3, %v2712_v3  ;;  %v1161_v6 = vpack.c.bf16 %v3411_v5, %v3407_v2  ;;  %v2713_v7 = vpack.c.bf16 %v3411_v5, %v3411_v5  ;;  %v1037_v8 = vpop.f32.mrb[15].mxu1  ;;  %v1538_v57 = vsel %vm1526_vm4, %v1533_v41, %v1537_v36  ;;  %v1886_v3 = vshrl.u32 %v2671_v45, 16 }
 0x27c   : > { %v3439_v26 = vld [vmem:[#allocation2 + $0x14] sm:$0xf]  ;;  %v1541_v12 = vor.u32 %v1539_v59, %v1537_v36  ;;  %v1855_v41 = vrot.slane %v2671_v45, 1 }
 0x27d   : > { %1361 = vst.msk [vmem:[#allocation2 + $0x1c] sm:$0xf] %vm1177_vm3, %v2713_v7  ;;  %v3452_v33 = vcombine.low %v1400_v32, %v3439_v26 }
 0x27f   : > { %v1543_v42 = vshll.u32 %v3452_v33, 16  ;;  %v1547_v8 = vshrl.u32 %v3452_v33, 16  ;;  %v1727_v35 = vrot.slane %v3452_v33, 1 }
 0x280   : > { %v3419_v47 = vpop.f32.mrb[16].mxu1 }
 0x281   : > { %v2714_v9 = vpack.c.bf16 %v3419_v47, %v3419_v47  ;;  %v1042_v10 = vpop.f32.mrb[17].mxu1  ;;  %v1545_v0 = vrot.slane %v1543_v42, 1  ;;  %v1894_v30 = vrot.slane %v1543_v42, 2 }
 0x282   : > { %v3423_v11 = vpop.f32.mrb[18].mxu1  ;;  %v1724_v10 = vrot.slane %v2667_v50, 1 }
 0x283   : > { %1362 = vst.msk [vmem:[#allocation2 + $0x20] sm:$0xf] %vm1177_vm3, %v2714_v9  ;;  %v2715_v14 = vpack.c.bf16 %v3423_v11, %v3423_v11  ;;  %v1045_v15 = vpop.f32.mrb[19].mxu1  ;;  %v1696_v9 = vmax.bf16 %v1538_v57, %v1158_v48  ;;  %v1546_v46 = vsel %vm1526_vm4, %v1541_v12, %v1545_v0  ;;  %v1888_v48 = vrot.slane %v1886_v3, 1 }
 0x284   : > { %v3470_v7 = vld [vmem:[#allocation2 + $0x18] sm:$0xff]   ;;  %v1222_v15 = vsel %vm1220_vm8, 0, %v1221_v63  ;;  %v1726_v17 = vsel %vm1723_vm5, %v1724_v10, %v1725_v60  ;;  %v1697_v33 = vmax.bf16 %v1546_v46, %v1159_v55  ;;  %v1856_v57 = vsel %vm1723_vm5, %v1855_v41, %v1727_v35 }
 0x285   : > { %1363 = vst.msk [vmem:[#allocation2 + $0x24] sm:$0xf] %vm1177_vm3, %v2715_v14  ;;  %v2008_v14 = vld [vmem:[#allocation2 + $0x10] sm:$0xe]  ;;  %1223 = vst [vmem:[#allocation2 + $0xa0] sm:$0x7] %v1222_v15 }
 0x286   : > { %v3482_v18 = vcombine.low %v2008_v14, %v3439_v26  ;;  %v1551_v24 = vshll.u32 %v3470_v7, 16  ;;  %v3513_v12 = vld [vmem:[#allocation2 + $0x98] ss:$0 sps:$4 sm:$0x33]   ;;  %v3518_v54 = vrot.slane %v3470_v7, 1 }
 0x288   : > { %v3433_v21 = vpop.f32.mrb[20].mxu1  ;;  %v2053_v38 = vshrl.u32 %v3482_v18, 16  ;;  %v1553_v42 = vrot.slane %v1551_v24, 1  ;;  %v2023_v59 = vrot.slane %v3482_v18, 1  ;;  %v1898_v15 = vrot.slane %v1551_v24, 2 }
 0x289   : > { %v2716_v22 = vpack.c.bf16 %v3433_v21, %v3433_v21  ;;  %v1050_v23 = vpop.f32.mrb[21].mxu1  ;;  %v3534_v24 = vld [vmem:[#allocation2 + $0x98] ss:$0 sps:$4 sm:$0x11]  }
 0x28a   : > { %v3437_v25 = vpop.f32.mrb[22].mxu1 }
 0x28b   : > { %1364 = vst.msk [vmem:[#allocation2 + $0x28] sm:$0xf] %vm1177_vm3, %v2716_v22  ;;  %v2717_v28 = vpack.c.bf16 %v3437_v25, %v3437_v25  ;;  %v1053_v29 = vpop.f32.mrb[23].mxu1  ;;  %v1891_v22 = vrot.slane %v1889_v4, 2  ;;  %v2055_v4 = vrot.slane %v2053_v38, 1 }
 0x28c   : > { %v1893_v29 = vrot.slane %v1547_v8, 1 }
 0x28d   : > { %1365 = vst.msk [vmem:[#allocation2 + $0x2c] sm:$0xf] %vm1177_vm3, %v2717_v28  ;;  %v1780_v28 = vmax.bf16 %v1726_v17, %v1696_v9  ;;  %v1892_v44 = vor.u32 %v1891_v22, %v1888_v48  ;;  %v1549_v9 = vor.u32 %v1547_v8, %v1545_v0  ;;  %v1728_v8 = vsel %vm1723_vm5, %v1725_v60, %v1727_v35 }
 0x28e   : > { %v3501_v50 = vor.u32 %v1894_v30, %v1893_v29  ;;  %v2112_v48 = vrot.slane %v3470_v7, 2  ;;  %v1781_v22 = vmax.bf16 %v1728_v8, %v1697_v33  ;;  %v2024_v30 = vsel %vm1723_vm5, %v2023_v59, %v3518_v54 }
 0x28f   : > { %v1828_v36 = vmax.bf16 %v1780_v28, %v1546_v46  ;;  %v1554_v0 = vsel %vm1526_vm4, %v1549_v9, %v1553_v42 }
 0x290   : > { %v3454_v37 = vpop.f32.mrb[24].mxu1 }
 0x291   : > { %v2718_v39 = vpack.c.bf16 %v3454_v37, %v3454_v37  ;;  %v1058_v40 = vpop.f32.mrb[25].mxu1  ;;  %v1865_v45 = vmax.bf16 %v1856_v57, %v1828_v36  ;;  %v1829_v36 = vmax.bf16 %v1781_v22, %v1554_v0 }
 0x292   : > { %v3459_v49 = vpop.f32.mrb[26].mxu1  ;;  %v1555_v40 = vshrl.u32 %v3470_v7, 16 }
 0x293   : > { %1366 = vst.msk [vmem:[#allocation2 + $0x30] sm:$0xf] %vm1177_vm3, %v2718_v39  ;;  %v1164_v52 = vpack.c.bf16 %v3459_v49, %v3454_v37  ;;  %v2719_v53 = vpack.c.bf16 %v3459_v49, %v3459_v49  ;;  %v1061_v56 = vpop.f32.mrb[27].mxu1 }
 0x294   : > { %v2102_v56 = vld [vmem:[#allocation2 + $0x10] sm:$0xc]  ;;  %v1897_v55 = vrot.slane %v1555_v40, 1 }
 0x295   : > { %1367 = vst.msk [vmem:[#allocation2 + $0x34] sm:$0xf] %vm1177_vm3, %v2719_v53  ;;  %v2056_v53 = vshll.u32 %v3482_v18, 16  ;;  %v2676_v63 = vcombine.low %v2102_v56, %v3439_v26  ;;  %v1896_v26 = vsel %vm1884_vm9, %v1892_v44, %v3501_v50 }
 0x296   : > { %v1989_v28 = vmax.bf16 %v1896_v26, %v1865_v45  ;;  %v3543_v29 = vor.u32 %v1898_v15, %v1897_v55  ;;  %v3563_v45 = vsel %vm1723_vm5, %v1727_v35, %v3518_v54  ;;  %v1557_v35 = vor.u32 %v1555_v40, %v1553_v42 }
 0x297   : > { %v2058_v18 = vrot.slane %v2056_v53, 2  ;;  %v1866_v26 = vmax.bf16 %v1829_v36, %v3563_v45 }
 0x298   : > { %v3476_v16 = vpop.f32.mrb[28].mxu1 }
 0x299   : > { %v2720_v19 = vpack.c.bf16 %v3476_v16, %v3476_v16  ;;  %v1066_v43 = vpop.f32.mrb[29].mxu1  ;;  %v2059_v53 = vor.u32 %v2058_v18, %v2055_v4 }
 0x29a   : > { %v3487_v23 = vpop.f32.mrb[30].mxu1 }
 0x29b   : > { %1368 = vst.msk [vmem:[#allocation2 + $0x38] sm:$0xf] %vm1177_vm3, %v2720_v19  ;;  %v1165_v31 = vpack.c.bf16 %v3487_v23, %v3476_v16  ;;  %v2721_v32 = vpack.c.bf16 %v3487_v23, %v3487_v23  ;;  %v1069_v34 = vpop.f32.mrb[31].mxu1  ;;  %v2060_v55 = vsel %vm1884_vm9, %v2059_v53, %v3543_v29 }
 0x29c   : > { %v3497_v39 = vld [vmem:[#allocation2 + $0x30] sm:$0xff]   ;;  %v3547_v34 = vld [vmem:[#allocation2 + $0x20] sm:$0xff]  }
 0x29d   : > { %1369 = vst.msk [vmem:[#allocation2 + $0x3c] sm:$0xf] %vm1177_vm3, %v2721_v32  ;;  %v4165_v10 = vshll.u32 %v3497_v39, 16  ;;  %v2111_v32 = vrot.slane %v2676_v63, 2  ;;  %v4166_v38 = vshrl.u32 %v3497_v39, 16  ;;  %v2033_v63 = vmax.bf16 %v2024_v30, %v1989_v28 }
 0x29e   : > { %v1559_v15 = vshll.u32 %v3547_v34, 16  ;;  %v1563_v8 = vshrl.u32 %v3547_v34, 16  ;;  %v1731_v61 = vrot.slane %v3547_v34, 1 }
 0x29f   : > { %v3538_v20 = vrot.slane %v4165_v10, 1  ;;  %v3555_v56 = vsel %vm2110_vm10, %v2111_v32, %v2112_v48  ;;  %v3592_v58 = vmax.bf16 %v2060_v55, %v2033_v63 }
 0x2a0   : > { %v3510_v3 = vpop.f32.mrb[32].mxu1  ;;  %v1561_v36 = vrot.slane %v1559_v15, 1  ;;  %v1902_v55 = vrot.slane %v1559_v15, 2  ;;  %v3625_v15 = vsel %vm1723_vm5, %v3518_v54, %v1731_v61 }
 0x2a1   : > { %v2722_v14 = vpack.c.bf16 %v3510_v3, %v3510_v3  ;;  %v1074_v51 = vpop.f32.mrb[33].mxu1  ;;  %v1581_v4 = vor.u32 %v4166_v38, %v3538_v20 }
 0x2a2   : > { %v3520_v17 = vpop.f32.mrb[34].mxu1  ;;  %v3682_v16 = vor.u32 %v1563_v8, %v1561_v36 }
 0x2a3   : > { %1370 = vst.msk [vmem:[#allocation2 + $0x40] sm:$0xf] %vm1177_vm3, %v2722_v14  ;;  %v1166_v19 = vpack.c.bf16 %v3520_v17, %v3510_v3  ;;  %v2723_v43 = vpack.c.bf16 %v3520_v17, %v3520_v17  ;;  %v1077_v46 = vpop.f32.mrb[35].mxu1 }
 0x2a4   : > { %v3540_v60 = vld [vmem:[#allocation2 + $0x38] sm:$0xff]  }
 0x2a5   : > { %1371 = vst.msk [vmem:[#allocation2 + $0x44] sm:$0xf] %vm1177_vm3, %v2723_v43  ;;  %v1583_v44 = vshll.u32 %v3540_v60, 16  ;;  %v1698_v43 = vmax.bf16 %v1554_v0, %v1160_v62  ;;  %v1587_v40 = vshrl.u32 %v3540_v60, 16  ;;  %v1737_v42 = vrot.slane %v3540_v60, 1 }
 0x2a6   : > { %v1900_v62 = vsel %vm1884_vm9, %v3501_v50, %v3543_v29  ;;  %v4167_v0 = vrot.slane %v3547_v34, 2  ;;  %v1901_v50 = vrot.slane %v1563_v8, 1 }
 0x2a7   : > { %v1585_v9 = vrot.slane %v1583_v44, 1  ;;  %v3600_v53 = vmax.bf16 %v1900_v62, %v1866_v26 }
 0x2a8   : > { %v3559_v59 = vpop.f32.mrb[36].mxu1 }
 0x2a9   : > { %v2724_v14 = vpack.c.bf16 %v3559_v59, %v3559_v59  ;;  %v1082_v51 = vpop.f32.mrb[37].mxu1  ;;  %v3581_v46 = vsel %vm1526_vm4, %v1581_v4, %v1585_v9  ;;  %v4164_v4 = vrot.slane %v3497_v39, 1  ;;  %v1589_v62 = vor.u32 %v1587_v40, %v1585_v9 }
 0x2aa   : > { %v3574_v18 = vpop.f32.mrb[38].mxu1  ;;  %v1702_v63 = vmax.bf16 %v3581_v46, %v1164_v52 }
 0x2ab   : > { %1372 = vst.msk [vmem:[#allocation2 + $0x48] sm:$0xf] %vm1177_vm3, %v2724_v14  ;;  %v2725_v28 = vpack.c.bf16 %v3574_v18, %v3574_v18  ;;  %v1085_v30 = vpop.f32.mrb[39].mxu1  ;;  %v3614_v26 = vsel %vm1723_vm5, %v4164_v4, %v1737_v42 }
 0x2ac   : > { %v3590_v32 = vld [vmem:[#allocation2 + $0x40] sm:$0xff]   ;;  %v1914_v30 = vrot.slane %v1583_v44, 2  ;;  %v1782_v44 = vmax.bf16 %v3563_v45, %v1698_v43  ;;  %v1786_v9 = vmax.bf16 %v3614_v26, %v1702_v63  ;;  %v3640_v63 = vor.u32 %v1902_v55, %v1901_v50 }
 0x2ad   : > { %1373 = vst.msk [vmem:[#allocation2 + $0x4c] sm:$0xf] %vm1177_vm3, %v2725_v28  ;;  %v1591_v14 = vshll.u32 %v3590_v32, 16  ;;  %v1595_v51 = vshrl.u32 %v3590_v32, 16  ;;  %v1913_v28 = vrot.slane %v1587_v40, 1  ;;  %v1739_v49 = vrot.slane %v3590_v32, 1 }
 0x2af   : > { %v1593_v37 = vrot.slane %v1591_v14, 1  ;;  %v1917_v52 = vrot.slane %v1595_v51, 1  ;;  %v1918_v41 = vrot.slane %v1591_v14, 2  ;;  %v1562_v14 = vsel %vm1526_vm4, %v1557_v35, %v1561_v36 }
 0x2b0   : > { %v3616_v1 = vpop.f32.mrb[40].mxu1  ;;  %v2034_v35 = vmax.bf16 %v3600_v53, %v3625_v15  ;;  %v3662_v50 = vmax.bf16 %v1562_v14, %v1161_v6  ;;  %v1830_v53 = vmax.bf16 %v1782_v44, %v1562_v14  ;;  %v1904_v6 = vsel %vm1884_vm9, %v3543_v29, %v3640_v63 }
 0x2b1   : > { %v2726_v57 = vpack.c.bf16 %v3616_v1, %v3616_v1  ;;  %v1090_v33 = vpop.f32.mrb[41].mxu1  ;;  %v1594_v4 = vsel %vm1526_vm4, %v1589_v62, %v1593_v37  ;;  %v3656_v62 = vsel %vm1723_vm5, %v1737_v42, %v1739_v49  ;;  %v1597_v5 = vor.u32 %v1595_v51, %v1593_v37 }
 0x2b2   : > { %v3629_v40 = vpop.f32.mrb[42].mxu1  ;;  %v1919_v33 = vor.u32 %v1918_v41, %v1917_v52  ;;  %v1834_v10 = vmax.bf16 %v1786_v9, %v1594_v4  ;;  %v3651_v41 = vsel %vm2110_vm10, %v2112_v48, %v4167_v0  ;;  %v1703_v7 = vmax.bf16 %v1594_v4, %v1165_v31 }
 0x2b3   : > { %1374 = vst.msk [vmem:[#allocation2 + $0x50] sm:$0xf] %vm1177_vm3, %v2726_v57  ;;  %v2727_v45 = vpack.c.bf16 %v3629_v40, %v3629_v40  ;;  %v1093_v43 = vpop.f32.mrb[43].mxu1  ;;  %v3653_v57 = vor.u32 %v1914_v30, %v1913_v28  ;;  %v3671_v30 = vld [vmem:[#allocation2 + $0x28] sm:$0xff]   ;;  %v1867_v9 = vmax.bf16 %v1830_v53, %v3625_v15  ;;  %v3706_v54 = vmax.bf16 %v2034_v35, %v1904_v6 }
 0x2b4   : > { %v3642_v38 = vld [vmem:[#allocation2 + $0x48] sm:$0xff]   ;;  %v1871_v48 = vmax.bf16 %v1834_v10, %v3656_v62  ;;  %v1787_v8 = vmax.bf16 %v3656_v62, %v1703_v7 }
 0x2b5   : > { %1375 = vst.msk [vmem:[#allocation2 + $0x54] sm:$0xf] %vm1177_vm3, %v2727_v45  ;;  %v1599_v55 = vshll.u32 %v3642_v38, 16  ;;  %v1603_v28 = vshrl.u32 %v3642_v38, 16  ;;  %v1741_v42 = vrot.slane %v3642_v38, 1  ;;  %v3675_v2 = vsel %vm1884_vm9, %v3653_v57, %v1919_v33 }
 0x2b6   : > { %v1995_v23 = vmax.bf16 %v3675_v2, %v1871_v48  ;;  %v2124_v43 = vrot.slane %v3642_v38, 2 }
 0x2b7   : > { %v1601_v10 = vrot.slane %v1599_v55, 1  ;;  %v1742_v4 = vsel %vm1723_vm5, %v1739_v49, %v1741_v42  ;;  %v1921_v52 = vrot.slane %v1603_v28, 1  ;;  %v1922_v44 = vrot.slane %v1599_v55, 2 }
 0x2b8   : > { %v3685_v31 = vpop.f32.mrb[44].mxu1  ;;  %v1567_v49 = vshll.u32 %v3671_v30, 16  ;;  %v2039_v7 = vmax.bf16 %v1995_v23, %v1742_v4 }
 0x2b9   : > { %v2728_v51 = vpack.c.bf16 %v3685_v31, %v3685_v31  ;;  %v1098_v37 = vpop.f32.mrb[45].mxu1  ;;  %v1602_v14 = vsel %vm1526_vm4, %v1597_v5, %v1601_v10  ;;  %v1923_v45 = vor.u32 %v1922_v44, %v1921_v52  ;;  %v4168_v52 = vrot.slane %v3590_v32, 2 }
 0x2ba   : > { %v3694_v36 = vpop.f32.mrb[46].mxu1  ;;  %v1835_v37 = vmax.bf16 %v1787_v8, %v1602_v14  ;;  %v1704_v44 = vmax.bf16 %v1602_v14, %v1166_v19  ;;  %v3726_v13 = vrot.slane %v1567_v49, 1  ;;  %v3735_v5 = vmax.bf16 %v1904_v6, %v1867_v9 }
 0x2bb   : > { %1376 = vst.msk [vmem:[#allocation2 + $0x58] sm:$0xf] %vm1177_vm3, %v2728_v51  ;;  %v2729_v55 = vpack.c.bf16 %v3694_v36, %v3694_v36  ;;  %v1101_v53 = vpop.f32.mrb[47].mxu1  ;;  %v1924_v38 = vsel %vm1884_vm9, %v1919_v33, %v1923_v45  ;;  %v4169_v51 = vrot.slane %v3671_v30, 1  ;;  %v3724_v33 = vsel %vm2110_vm10, %v4168_v52, %v2124_v43 }
 0x2bc   : > { %v3704_v27 = vld [vmem:[#allocation2 + $0x50] sm:$0xff]   ;;  %v1872_v8 = vmax.bf16 %v1835_v37, %v1742_v4  ;;  %v3716_v23 = vmax.bf16 %v2039_v7, %v1924_v38  ;;  %v1788_v52 = vmax.bf16 %v1742_v4, %v1704_v44 }
 0x2bd   : > { %1377 = vst.msk [vmem:[#allocation2 + $0x5c] sm:$0xf] %vm1177_vm3, %v2729_v55  ;;  %v1607_v35 = vshll.u32 %v3704_v27, 16  ;;  %v1611_v53 = vshrl.u32 %v3704_v27, 16  ;;  %v1743_v48 = vrot.slane %v3704_v27, 1  ;;  %v1605_v55 = vor.u32 %v1603_v28, %v1601_v10 }
 0x2be   : > { %v1996_v3 = vmax.bf16 %v1924_v38, %v1872_v8  ;;  %v2126_v17 = vrot.slane %v3704_v27, 2  ;;  %v1570_v27 = vsel %vm1526_vm4, %v3682_v16, %v3726_v13 }
 0x2bf   : > { %v1609_v14 = vrot.slane %v1607_v35, 1  ;;  %v1744_v37 = vsel %vm1723_vm5, %v1741_v42, %v1743_v48  ;;  %v1925_v7 = vrot.slane %v1611_v53, 1  ;;  %v1926_v0 = vrot.slane %v1607_v35, 2 }
 0x2c0   : > { %v3730_v19 = vpop.f32.mrb[48].mxu1  ;;  %v2040_v44 = vmax.bf16 %v1996_v3, %v1744_v37 }
 0x2c1   : > { %v2730_v29 = vpack.c.bf16 %v3730_v19, %v3730_v19  ;;  %v1106_v22 = vpop.f32.mrb[49].mxu1  ;;  %v1610_v38 = vsel %vm1526_vm4, %v1605_v55, %v1609_v14  ;;  %v1927_v8 = vor.u32 %v1926_v0, %v1925_v7  ;;  %v4171_v55 = vshrl.u32 %v3671_v30, 16 }
 0x2c2   : > { %v3738_v10 = vpop.f32.mrb[50].mxu1  ;;  %v1836_v9 = vmax.bf16 %v1788_v52, %v1610_v38  ;;  %v4172_v52 = vpack.c.bf16 %v3574_v18, %v3559_v59 }
 0x2c3   : > { %1378 = vst.msk [vmem:[#allocation2 + $0x60] sm:$0xf] %vm1177_vm3, %v2730_v29  ;;  %v2731_v6 = vpack.c.bf16 %v3738_v10, %v3738_v10  ;;  %v1109_v4 = vpop.f32.mrb[51].mxu1  ;;  %v1928_v0 = vsel %vm1884_vm9, %v1923_v45, %v1927_v8  ;;  %v3760_v29 = vsel %vm1723_vm5, %v1731_v61, %v4169_v51  ;;  %v1905_v7 = vrot.slane %v4171_v55, 1 }
 0x2c4   : > { %v3749_v35 = vld [vmem:[#allocation2 + $0x58] sm:$0xff]   ;;  %v1705_v45 = vmax.bf16 %v1610_v38, %v4172_v52  ;;  %v1873_v3 = vmax.bf16 %v1836_v9, %v1744_v37  ;;  %v1906_v4 = vrot.slane %v1567_v49, 2  ;;  %v3768_v22 = vmax.bf16 %v2040_v44, %v1928_v0 }
 0x2c5   : > { %1379 = vst.msk [vmem:[#allocation2 + $0x64] sm:$0xf] %vm1177_vm3, %v2731_v6  ;;  %v1615_v16 = vshll.u32 %v3749_v35, 16  ;;  %v1619_v42 = vshrl.u32 %v3749_v35, 16  ;;  %v1745_v61 = vrot.slane %v3749_v35, 1  ;;  %v3774_v51 = vsel %vm2110_vm10, %v2124_v43, %v2126_v17 }
 0x2c6   : > { %4173 = vst [vmem:[#allocation3_spill] sm:$0xff] %v3768_v22  ;;  %v1613_v55 = vor.u32 %v1611_v53, %v1609_v14  ;;  %v1997_v28 = vmax.bf16 %v1928_v0, %v1873_v3  ;;  %v4174_v6 = vmax.bf16 %v3625_v15, %v3662_v50  ;;  %v1789_v14 = vmax.bf16 %v1744_v37, %v1705_v45 }
 0x2c7   : > { %v1617_v38 = vrot.slane %v1615_v16, 1  ;;  %v1746_v9 = vsel %vm1723_vm5, %v1743_v48, %v1745_v61  ;;  %v1929_v44 = vrot.slane %v1619_v42, 1  ;;  %v1930_v52 = vrot.slane %v1615_v16, 2 }
 0x2c8   : > { %v3779_v59 = vmax.bf16 %v4174_v6, %v1570_v27  ;;  %v3783_v49 = vpop.f32.mrb[52].mxu1  ;;  %v4175_v50 = vrot.slane %v3671_v30, 2  ;;  %v4176_v0 = vrot.slane %v3547_v34, 2  ;;  %v2128_v18 = vrot.slane %v3749_v35, 2 }
 0x2c9   : > { %v2732_v43 = vpack.c.bf16 %v3783_v49, %v3783_v49  ;;  %v1114_v53 = vpop.f32.mrb[53].mxu1  ;;  %v1618_v48 = vsel %vm1526_vm4, %v1613_v55, %v1617_v38  ;;  %v1931_v16 = vor.u32 %v1930_v52, %v1929_v44  ;;  %v3801_v22 = vor.u32 %v1906_v4, %v1905_v7 }
 0x2ca   : > { %v3795_v3 = vsel %vm2110_vm10, %v4176_v0, %v4175_v50  ;;  %v3797_v6 = vpop.f32.mrb[54].mxu1  ;;  %v1837_v53 = vmax.bf16 %v1789_v14, %v1618_v48  ;;  %v2041_v50 = vmax.bf16 %v1997_v28, %v1746_v9  ;;  %v4177_v35 = vpack.c.bf16 %v3423_v11, %v3419_v47 }
 0x2cb   : > { %1380 = vst.msk [vmem:[#allocation2 + $0x68] sm:$0xf] %vm1177_vm3, %v2732_v43  ;;  %v2733_v34 = vpack.c.bf16 %v3797_v6, %v3797_v6  ;;  %v1117_v45 = vpop.f32.mrb[55].mxu1  ;;  %v1932_v0 = vsel %vm1884_vm9, %v1927_v8, %v1931_v16  ;;  %v1868_v4 = vmax.bf16 %v3779_v59, %v3760_v29  ;;  %v4178_v55 = vshrl.u32 %v3671_v30, 16 }
 0x2cc   : > { %v3809_v15 = vld [vmem:[#allocation2 + $0x60] sm:$0xff]   ;;  %v1700_v7 = vmax.bf16 %v1570_v27, %v4177_v35  ;;  %v4179_v28 = vpack.c.bf16 %v3629_v40, %v3616_v1  ;;  %v1874_v8 = vmax.bf16 %v1837_v53, %v1746_v9  ;;  %v2091_v43 = vmax.bf16 %v2041_v50, %v1932_v0 }
 0x2cd   : > { %v1573_v44 = vor.u32 %v4178_v55, %v3726_v13  ;;  %1381 = vst.msk [vmem:[#allocation2 + $0x6c] sm:$0xf] %vm1177_vm3, %v2733_v34  ;;  %v4180_v14 = vshrl.u32 %v3497_v39, 16  ;;  %v2129_v47 = vsel %vm2110_vm10, %v2126_v17, %v2128_v18  ;;  %v1623_v11 = vshll.u32 %v3809_v15, 16 }
 0x2ce   : > { %v1706_v52 = vmax.bf16 %v1618_v48, %v4179_v28  ;;  %v1627_v27 = vshrl.u32 %v3809_v15, 16  ;;  %v1747_v59 = vrot.slane %v3809_v15, 1  ;;  %v1998_v13 = vmax.bf16 %v1932_v0, %v1874_v8 }
 0x2cf   : > { %v1909_v45 = vrot.slane %v4180_v14, 1  ;;  %v2175_v35 = vmax.bf16 %v2129_v47, %v2091_v43  ;;  %v1621_v34 = vor.u32 %v1619_v42, %v1617_v38  ;;  %v4181_v55 = vshll.u32 %v3497_v39, 16 }
 0x2d0   : > { %v3831_v40 = vpop.f32.mrb[56].mxu1  ;;  %v1625_v48 = vrot.slane %v1623_v11, 1  ;;  %v1748_v53 = vsel %vm1723_vm5, %v1745_v61, %v1747_v59  ;;  %v1933_v50 = vrot.slane %v1627_v27, 1  ;;  %v1934_v28 = vrot.slane %v1623_v11, 2 }
 0x2d1   : > { %v1910_v1 = vrot.slane %v4181_v55, 2  ;;  %v2734_v17 = vpack.c.bf16 %v3831_v40, %v3831_v40  ;;  %v1122_v14 = vpop.f32.mrb[57].mxu1  ;;  %v1790_v37 = vmax.bf16 %v1746_v9, %v1706_v52  ;;  %2751 = vmatprep.subr.bf16.mxu0 %v2175_v35  ;;  %v1784_v0 = vmax.bf16 %v3760_v29, %v1700_v7 }
 0x2d2   : > { %v1908_v42 = vsel %vm1884_vm9, %v3640_v63, %v3801_v22  ;;  %v3840_v38 = vpop.f32.mrb[58].mxu1  ;;  %v4182_v8 = vmax.bf16 %v3555_v56, %v3592_v58  ;;  %v1626_v61 = vsel %vm1526_vm4, %v1621_v34, %v1625_v48  ;;  %v1935_v43 = vor.u32 %v1934_v28, %v1933_v50 }
 0x2d3   : > { %v2130_v47 = vrot.slane %v3809_v15, 2  ;;  %v1578_v9 = vsel %vm1526_vm4, %v1573_v44, %v3538_v20  ;;  %1382 = vst.msk [vmem:[#allocation2 + $0x70] sm:$0xf] %vm1177_vm3, %v2734_v17  ;;  %v1172_v7 = vpack.c.bf16 %v3840_v38, %v3831_v40  ;;  %v2735_v63 = vpack.c.bf16 %v3840_v38, %v3840_v38  ;;  %v1125_v52 = vpop.f32.mrb[59].mxu1 }
 0x2d4   : > { %2752 = vmatpush3.bf16.msra.mxu0 %v4182_v8  ;;  %v1838_v11 = vmax.bf16 %v1790_v37, %v1626_v61  ;;  %v2042_v56 = vmax.bf16 %v1998_v13, %v1748_v53  ;;  %v1936_v58 = vsel %vm1884_vm9, %v1931_v16, %v1935_v43  ;;  %v3855_v35 = vld [vmem:[#allocation2 + $0x68] sm:$0xff]   ;;  %v1992_v34 = vmax.bf16 %v1908_v42, %v1868_v4  ;;  %v4003_v38 = vld [vmem:[#allocation2 + $0xa0] ss:$0 sps:$4 sm:$0x33]  }
 0x2d5   : > { %v4183_v15 = vrot.slane %v3497_v39, 1  ;;  %v4184_v20 = vrot.slane %v3671_v30, 1  ;;  %v3864_v55 = vor.u32 %v1910_v1, %v1909_v45  ;;  %1383 = vst.msk [vmem:[#allocation2 + $0x74] sm:$0xf] %vm1177_vm3, %v2735_v63  ;;  %v4185_v37 = vpack.c.bf16 %v3694_v36, %v3685_v31 }
 0x2d6   : > { %v1875_v50 = vmax.bf16 %v1838_v11, %v1748_v53  ;;  %v2092_v16 = vmax.bf16 %v2042_v56, %v1936_v58  ;;  %v1832_v28 = vmax.bf16 %v1784_v0, %v1578_v9  ;;  %v2131_v4 = vsel %vm2110_vm10, %v2128_v18, %v2130_v47 }
 0x2d7   : > { %v3862_v44 = vsel %vm1723_vm5, %v4184_v20, %v4183_v15  ;;  %v1707_v13 = vmax.bf16 %v1626_v61, %v4185_v37  ;;  %v1631_v17 = vshll.u32 %v3855_v35, 16  ;;  %v1635_v14 = vshrl.u32 %v3855_v35, 16 }
 0x2d8   : > { %v1749_v8 = vrot.slane %v3855_v35, 1  ;;  %v1999_v52 = vmax.bf16 %v1936_v58, %v1875_v50  ;;  %v2176_v45 = vmax.bf16 %v2131_v4, %v2092_v16  ;;  %v1629_v1 = vor.u32 %v1627_v27, %v1625_v48  ;;  %v3877_v31 = vpop.f32.mrb[60].mxu1 }
 0x2d9   : > { %v4186_v63 = vmax.bf16 %v3735_v5, %v3760_v29  ;;  %v1633_v36 = vrot.slane %v1631_v17, 1  ;;  %v1937_v61 = vrot.slane %v1635_v14, 1  ;;  %v1938_v18 = vrot.slane %v1631_v17, 2  ;;  %v1130_v56 = vpop.f32.mrb[61].mxu1 }
 0x2da   : > { %v1750_v0 = vsel %vm1723_vm5, %v1747_v59, %v1749_v8  ;;  %v2736_v11 = vpack.c.bf16 %v3877_v31, %v3877_v31  ;;  %v1791_v20 = vmax.bf16 %v1748_v53, %v1707_v13  ;;  %2753 = vmatprep.subr.bf16.mxu0 %v2176_v45  ;;  %v1912_v27 = vsel %vm1884_vm9, %v3801_v22, %v3864_v55  ;;  %v3886_v29 = vpop.f32.mrb[62].mxu1 }
 0x2db   : > { %v2085_v15 = vmax.bf16 %v4186_v63, %v1908_v42  ;;  %v2036_v5 = vmax.bf16 %v1992_v34, %v3862_v44  ;;  %v4187_v48 = vmax.bf16 %v3651_v41, %v3706_v54  ;;  %v1634_v59 = vsel %vm1526_vm4, %v1629_v1, %v1633_v36  ;;  %v1133_v37 = vpop.f32.mrb[63].mxu1 }
 0x2dc   : > { %v1939_v42 = vor.u32 %v1938_v18, %v1937_v61  ;;  %v2132_v58 = vrot.slane %v3855_v35, 2  ;;  %v1869_v53 = vmax.bf16 %v1832_v28, %v3862_v44  ;;  %1384 = vst.msk [vmem:[#allocation2 + $0x78] sm:$0xf] %vm1177_vm3, %v2736_v11  ;;  %v1173_v22 = vpack.c.bf16 %v3886_v29, %v3877_v31  ;;  %v3901_v16 = vld [vmem:[#allocation2 + $0x70] sm:$0xff]  }
 0x2dd   : > { %2754 = vmatpush3.bf16.msra.mxu0 %v4187_v48  ;;  %v2737_v34 = vpack.c.bf16 %v3886_v29, %v3886_v29  ;;  %v1839_v13 = vmax.bf16 %v1791_v20, %v1634_v59  ;;  %v2043_v50 = vmax.bf16 %v1999_v52, %v1750_v0  ;;  %v2169_v41 = vmax.bf16 %v3795_v3, %v2085_v15 }
 0x2de   : > { %v1940_v54 = vsel %vm1884_vm9, %v1935_v43, %v1939_v42  ;;  %v4188_v35 = vpack.c.bf16 %v3437_v25, %v3433_v21  ;;  %v2118_v4 = vrot.slane %v3497_v39, 2  ;;  %v4189_v17 = vpack.c.bf16 %v3738_v10, %v3730_v19 }
 0x2df   : > { %1385 = vst.msk [vmem:[#allocation2 + $0x7c] sm:$0xf] %vm1177_vm3, %v2737_v34  ;;  %v1876_v1 = vmax.bf16 %v1839_v13, %v1750_v0  ;;  %v2093_v52 = vmax.bf16 %v2043_v50, %v1940_v54  ;;  %v3911_v63 = vmax.bf16 %v2036_v5, %v1912_v27  ;;  %v2133_v3 = vsel %vm2110_vm10, %v2130_v47, %v2132_v58 }
 0x2e0   : > { %v1701_v28 = vmax.bf16 %v1578_v9, %v4188_v35  ;;  %v1708_v45 = vmax.bf16 %v1634_v59, %v4189_v17  ;;  %v1639_v43 = vshll.u32 %v3901_v16, 16  ;;  %v1643_v15 = vshrl.u32 %v3901_v16, 16  ;;  %v3917_v11 = vpop.f32.mrb[64].mxu1 }
 0x2e1   : > { %v1751_v21 = vrot.slane %v3901_v16, 1  ;;  %v2000_v25 = vmax.bf16 %v1940_v54, %v1876_v1  ;;  %v2177_v9 = vmax.bf16 %v2133_v3, %v2093_v52  ;;  %v1637_v61 = vor.u32 %v1635_v14, %v1633_v36  ;;  %v1138_v5 = vpop.f32.mrb[65].mxu1 }
 0x2e2   : > { %v1993_v18 = vmax.bf16 %v1912_v27, %v1869_v53  ;;  %v1641_v19 = vrot.slane %v1639_v43, 1  ;;  %v1941_v56 = vrot.slane %v1643_v15, 1  ;;  %v1942_v20 = vrot.slane %v1639_v43, 2  ;;  %v3930_v27 = vpop.f32.mrb[66].mxu1 }
 0x2e3   : > { %v3920_v10 = vsel %vm1723_vm5, %v1749_v8, %v1751_v21  ;;  %v2738_v47 = vpack.c.bf16 %v3917_v11, %v3917_v11  ;;  %v1792_v48 = vmax.bf16 %v1750_v0, %v1708_v45  ;;  %2755 = vmatprep.subr.bf16.mxu0 %v2177_v9  ;;  %v4190_v59 = vrot.slane %v3671_v30, 2  ;;  %v1141_v13 = vpop.f32.mrb[67].mxu1 }
 0x2e4   : > { %v1962_v36 = vshrl.u32 %v3513_v12, 16  ;;  %2756 = vmatpush3.bf16.msra.mxu0 %v2169_v41  ;;  %v1642_v8 = vsel %vm1526_vm4, %v1637_v61, %v1641_v19  ;;  %v1943_v53 = vor.u32 %v1942_v20, %v1941_v56  ;;  %v2134_v34 = vrot.slane %v3901_v16, 2 }
 0x2e5   : > { %v2119_v14 = vsel %vm2110_vm10, %v4190_v59, %v2118_v4  ;;  %v1785_v37 = vmax.bf16 %v3862_v44, %v1701_v28  ;;  %1386 = vst.msk [vmem:[#allocation2 + $0x80] sm:$0xf] %vm1177_vm3, %v2738_v47  ;;  %v1174_v0 = vpack.c.bf16 %v3930_v27, %v3917_v11  ;;  %v2739_v30 = vpack.c.bf16 %v3930_v27, %v3930_v27 }
 0x2e6   : > { %v1840_v50 = vmax.bf16 %v1792_v48, %v1642_v8  ;;  %v2044_v54 = vmax.bf16 %v2000_v25, %v3920_v10  ;;  %v1944_v41 = vsel %vm1884_vm9, %v1939_v42, %v1943_v53  ;;  %v2170_v35 = vmax.bf16 %v2119_v14, %v3911_v63  ;;  %v3943_v17 = vld [vmem:[#allocation2 + $0x78] sm:$0xff]  }
 0x2e7   : > { %v2037_v44 = vmax.bf16 %v1993_v18, %v3614_v26  ;;  %v2120_v16 = vrot.slane %v3540_v60, 2  ;;  %1387 = vst.msk [vmem:[#allocation2 + $0x84] sm:$0xf] %vm1177_vm3, %v2739_v30  ;;  %v4191_v28 = vpack.c.bf16 %v3797_v6, %v3783_v49  ;;  %v1833_v42 = vmax.bf16 %v1785_v37, %v3581_v46 }
 0x2e8   : > { %v1877_v1 = vmax.bf16 %v1840_v50, %v3920_v10  ;;  %v2094_v52 = vmax.bf16 %v2044_v54, %v1944_v41  ;;  %v2135_v63 = vsel %vm2110_vm10, %v2132_v58, %v2134_v34  ;;  %v1647_v3 = vshll.u32 %v3943_v17, 16  ;;  %v3960_v6 = vpop.f32.mrb[68].mxu1 }
 0x2e9   : > { %v1709_v45 = vmax.bf16 %v1642_v8, %v4191_v28  ;;  %v1651_v43 = vshrl.u32 %v3943_v17, 16  ;;  %v1753_v25 = vrot.slane %v3943_v17, 1  ;;  %v1645_v18 = vor.u32 %v1643_v15, %v1641_v19  ;;  %v1146_v5 = vpop.f32.mrb[69].mxu1 }
 0x2ea   : > { %v2001_v9 = vmax.bf16 %v1944_v41, %v1877_v1  ;;  %v2178_v61 = vmax.bf16 %v2135_v63, %v2094_v52  ;;  %v1916_v49 = vsel %vm1884_vm9, %v3864_v55, %v3653_v57  ;;  %v1649_v56 = vrot.slane %v1647_v3, 1  ;;  %v3968_v59 = vpop.f32.mrb[70].mxu1 }
 0x2eb   : > { %v1754_v46 = vsel %vm1723_vm5, %v1751_v21, %v1753_v25  ;;  %v1945_v20 = vrot.slane %v1651_v43, 1  ;;  %v1946_v58 = vrot.slane %v1647_v3, 2  ;;  %v2740_v47 = vpack.c.bf16 %v3960_v6, %v3960_v6  ;;  %v1149_v37 = vpop.f32.mrb[71].mxu1 }
 0x2ec   : > { %v1793_v48 = vmax.bf16 %v3920_v10, %v1709_v45  ;;  %2757 = vmatprep.subr.bf16.mxu0 %v2178_v61  ;;  %v1965_v15 = vshll.u32 %v3513_v12, 16  ;;  %v1870_v19 = vmax.bf16 %v1833_v42, %v3614_v26  ;;  %v1650_v57 = vsel %vm1526_vm4, %v1645_v18, %v1649_v56  ;;  %v4001_v42 = vld [vmem:[#allocation2 + $0x98] sm:$0xff]  }
 0x2ed   : > { %2758 = vmatpush3.bf16.msra.mxu0 %v2170_v35  ;;  %v1947_v55 = vor.u32 %v1946_v58, %v1945_v20  ;;  %v2136_v21 = vrot.slane %v3943_v17, 2  ;;  %v2087_v14 = vmax.bf16 %v2037_v44, %v1916_v49  ;;  %1388 = vst.msk [vmem:[#allocation2 + $0x88] sm:$0xf] %vm1177_vm3, %v2740_v47  ;;  %v1175_v8 = vpack.c.bf16 %v3968_v59, %v3960_v6 }
 0x2ee   : > { %v2741_v10 = vpack.c.bf16 %v3968_v59, %v3968_v59  ;;  %v1841_v30 = vmax.bf16 %v1793_v48, %v1650_v57  ;;  %v2045_v26 = vmax.bf16 %v2001_v9, %v1754_v46  ;;  %v4192_v13 = vshll.u32 %v3534_v24, 16  ;;  %v3989_v44 = vld [vmem:[#allocation2 + $0x80] sm:$0xff]  }
 0x2ef   : > { %v3981_v54 = vrot.slane %v1962_v36, 1  ;;  %v1948_v41 = vsel %vm1884_vm9, %v1943_v53, %v1947_v55  ;;  %v2121_v35 = vsel %vm2110_vm10, %v2118_v4, %v2120_v16  ;;  %v1710_v28 = vmax.bf16 %v1650_v57, %v1172_v7 }
 0x2f0   : > { %v3979_v50 = vrot.slane %v4192_v13, 1  ;;  %1389 = vst.msk [vmem:[#allocation2 + $0x8c] sm:$0xf] %vm1177_vm3, %v2741_v10  ;;  %v1878_v45 = vmax.bf16 %v1841_v30, %v1754_v46  ;;  %v2095_v1 = vmax.bf16 %v2045_v26, %v1948_v41  ;;  %v1994_v36 = vmax.bf16 %v1916_v49, %v1870_v19  ;;  %v1152_v7 = vpop.f32.mrb[72].mxu1 }
 0x2f1   : > { %v2137_v53 = vsel %vm2110_vm10, %v2134_v34, %v2136_v21  ;;  %v1655_v52 = vshll.u32 %v3989_v44, 16  ;;  %v1659_v39 = vshrl.u32 %v3989_v44, 16  ;;  %v1755_v4 = vrot.slane %v3989_v44, 1  ;;  %v1393_v34 = vld [vmem:[#allocation2 + $0x90] sm:$0x1]  ;;  %v1154_v48 = vpop.f32.mrb[73].mxu1 }
 0x2f2   : > { %v2002_v63 = vmax.bf16 %v1948_v41, %v1878_v45  ;;  %v2179_v3 = vmax.bf16 %v2137_v53, %v2095_v1  ;;  %v2171_v9 = vmax.bf16 %v2121_v35, %v2087_v14  ;;  %v1653_v40 = vor.u32 %v1651_v43, %v1649_v56 }
 0x2f3   : > { %v1657_v18 = vrot.slane %v1655_v52, 1  ;;  %v1756_v49 = vsel %vm1723_vm5, %v1753_v25, %v1755_v4  ;;  %v1949_v20 = vrot.slane %v1659_v39, 1  ;;  %v1950_v58 = vrot.slane %v1655_v52, 2  ;;  %v1155_v25 = vpop.f32.mrb[74].mxu1 }
 0x2f4   : > { %v4012_v47 = vpack.c.bf16 %v1152_v7, %v1152_v7  ;;  %v4014_v5 = vrot.slane %v1965_v15, 2  ;;  %v1794_v43 = vmax.bf16 %v1754_v46, %v1710_v28  ;;  %2759 = vmatprep.subr.bf16.mxu0 %v2179_v3  ;;  %v2038_v56 = vmax.bf16 %v1994_v36, %v3656_v62  ;;  %v1156_v26 = vpop.f32.mrb[75].mxu1 }
 0x2f5   : > { %2760 = vmatpush3.bf16.msra.mxu0 %v2171_v9  ;;  %v1658_v19 = vsel %vm1526_vm4, %v1653_v40, %v1657_v18  ;;  %v1951_v57 = vor.u32 %v1950_v58, %v1949_v20  ;;  %v2138_v14 = vrot.slane %v3989_v44, 2  ;;  %v2062_v10 = vshrl.u32 %v4001_v42, 16 }
 0x2f6   : > { %v1394_v37 = vsel %vm4007_vm13, %v4012_v47, %v1393_v34  ;;  %v1842_v15 = vmax.bf16 %v1794_v43, %v1658_v19  ;;  %v2046_v30 = vmax.bf16 %v2002_v63, %v1756_v49  ;;  %v2088_v46 = vmax.bf16 %v2038_v56, %v3675_v2 }
 0x2f7   : > { %1395 = vst [vmem:[#allocation2 + $0x90] sm:$0x1] %v1394_v37  ;;  %v4024_v62 = vld [vmem:[#allocation2 + $0x88] sm:$0xff]   ;;  %v1952_v13 = vsel %vm1884_vm9, %v1947_v55, %v1951_v57  ;;  %v2065_v41 = vshll.u32 %v4001_v42, 16  ;;  %v2071_v35 = vshrl.u32 %v4003_v38, 16  ;;  %v2074_v44 = vshll.u32 %v4003_v38, 16 }
 0x2f8   : > { %v1711_v28 = vmax.bf16 %v1658_v19, %v1173_v22  ;;  %v1879_v45 = vmax.bf16 %v1842_v15, %v1756_v49  ;;  %v2096_v1 = vmax.bf16 %v2046_v30, %v1952_v13  ;;  %v4195_v2 = vrot.slane %v3590_v32, 2 }
 0x2f9   : > { %v1663_v55 = vshll.u32 %v4024_v62, 16  ;;  %v1667_v53 = vshrl.u32 %v4024_v62, 16  ;;  %v1757_v52 = vrot.slane %v4024_v62, 1  ;;  %v2139_v63 = vsel %vm2110_vm10, %v2136_v21, %v2138_v14 }
 0x2fa   : > { %v2123_v36 = vsel %vm2110_vm10, %v2120_v16, %v4195_v2  ;;  %v2180_v31 = vmax.bf16 %v2139_v63, %v2096_v1  ;;  %v1661_v22 = vor.u32 %v1659_v39, %v1657_v18  ;;  %v2140_v3 = vrot.slane %v4024_v62, 2 }
 0x2fb   : > { %v2172_v29 = vmax.bf16 %v2123_v36, %v2088_v46  ;;  %v1665_v32 = vrot.slane %v1663_v55, 1  ;;  %v2003_v9 = vmax.bf16 %v1952_v13, %v1879_v45  ;;  %v1953_v60 = vrot.slane %v1667_v53, 1 }
 0x2fc   : > { %v1954_v40 = vrot.slane %v1663_v55, 2  ;;  %v1795_v16 = vmax.bf16 %v1756_v49, %v1711_v28  ;;  %2761 = vmatprep.subr.bf16.mxu0 %v2180_v31  ;;  %v1758_v7 = vsel %vm1723_vm5, %v1755_v4, %v1757_v52  ;;  %v2064_v61 = vrot.slane %v2062_v10, 1 }
 0x2fd   : > { %v2067_v34 = vrot.slane %v2065_v41, 2  ;;  %2762 = vmatpush3.bf16.msra.mxu0 %v2172_v29  ;;  %v1666_v17 = vsel %vm1526_vm4, %v1661_v22, %v1665_v32  ;;  %v4047_v21 = vrot.slane %v2071_v35, 1  ;;  %v4049_v58 = vrot.slane %v2074_v44, 2 }
 0x2fe   : > { %v1955_v20 = vor.u32 %v1954_v40, %v1953_v60  ;;  %v2955_v39 = vld [vmem:[#allocation2 + $0x90] ss:$0 sps:$4 sm:$0x11]   ;;  %v1712_v18 = vmax.bf16 %v1666_v17, %v1174_v0  ;;  %v1843_v43 = vmax.bf16 %v1795_v16, %v1666_v17  ;;  %v1669_v56 = vor.u32 %v1667_v53, %v1665_v32 }
 0x2ff   : > { %v4054_v49 = vld [vmem:[#allocation2 + $0x90] sm:$0xff]   ;;  %v2047_v19 = vmax.bf16 %v2003_v9, %v1758_v7  ;;  %v2141_v10 = vsel %vm2110_vm10, %v2138_v14, %v2140_v3  ;;  %v1671_v25 = vshll.u32 %v2955_v39, 16  ;;  %v1675_v37 = vshrl.u32 %v2955_v39, 16 }
 0x300   : > { %v2956_v4 = vld [vmem:[#allocation2 + $0x90] ss:$0 sps:$4 sm:$0x33]   ;;  %v1956_v48 = vsel %vm1884_vm9, %v1951_v57, %v1955_v20  ;;  %v1796_v15 = vmax.bf16 %v1758_v7, %v1712_v18  ;;  %v1880_v30 = vmax.bf16 %v1843_v43, %v1758_v7  ;;  %v1811_v11 = vshll.u32 %v4054_v49, 16 }
 0x301   : > { %v1759_v46 = vrot.slane %v2956_v4, 1  ;;  %v2097_v26 = vmax.bf16 %v2047_v19, %v1956_v48  ;;  %v1815_v27 = vshrl.u32 %v4054_v49, 16  ;;  %v1673_v0 = vrot.slane %v1671_v25, 1 }
 0x302   : > { %v1714_v13 = vmax.bf16 %v1675_v37, %v4012_v47  ;;  %v2004_v41 = vmax.bf16 %v1956_v48, %v1880_v30  ;;  %v1857_v57 = vrot.slane %v4054_v49, 1  ;;  %v1813_v14 = vrot.slane %v1811_v11, 1  ;;  %v2969_v30 = vld [vmem:[%s4161_s4 + $0x1c] ss:$12 sps:$4 sm:$0xff]  }
 0x303   : > { %v1760_v35 = vsel %vm1723_vm5, %v1757_v52, %v1759_v46  ;;  %v2181_v44 = vmax.bf16 %v2141_v10, %v2097_v26  ;;  %v1957_v28 = vrot.slane %v1815_v27, 1  ;;  %v1674_v45 = vsel %vm1526_vm4, %v1669_v56, %v1673_v0  ;;  %v4200_v10 = vld [vmem:[#allocation3_spill] sm:$0xff] }
 0x304   : > { %v1798_v1 = vmax.bf16 %v1759_v46, %v1714_v13  ;;  %v1858_v2 = vsel %vm1723_vm5, %v1757_v52, %v1857_v57  ;;  %v1958_v36 = vrot.slane %v1811_v11, 2  ;;  %v1713_v55 = vmax.bf16 %v1674_v45, %v1175_v8  ;;  %v2975_v45 = vld [vmem:[%s4161_s4 + $0x4c] ss:$12 sps:$4 sm:$0xff]  }
 0x305   : > { %2763 = vmatprep.subr.bf16.mxu0 %v2181_v44  ;;  %v1814_v47 = vsel %vm1526_vm4, %v1669_v56, %v1813_v14  ;;  %v1817_v53 = vor.u32 %v1815_v27, %v1813_v14  ;;  %v2048_v63 = vmax.bf16 %v2004_v41, %v1858_v2  ;;  %v4196_v31 = vshrl.u32 %v3534_v24, 16  ;;  %v2968_v56 = vld [vmem:[#allocation2 + $0xa0] ss:$0 sps:$4 sm:$0x77]  }
 0x306   : > { %v4197_v22 = vmax.bf16 %v3724_v33, %v3716_v23  ;;  %v1844_v32 = vmax.bf16 %v1814_v47, %v1796_v15  ;;  %v1959_v9 = vor.u32 %v1958_v36, %v1957_v28  ;;  %v2142_v52 = vrot.slane %v4054_v49, 2  ;;  %v2972_v14 = vld [vmem:[%s4161_s4 + $0x34] ss:$12 sps:$4 sm:$0xff]   ;;  %v2974_v28 = vld [vmem:[%s4161_s4 + $0x30] ss:$12 sps:$4 sm:$0xff]  }
 0x307   : > { %v1846_v29 = vmax.bf16 %v4196_v31, %v1798_v1  ;;  %v1797_v60 = vmax.bf16 %v1760_v35, %v1713_v55  ;;  %v1968_v6 = vor.u32 %v4014_v5, %v3981_v54  ;;  %v2025_v59 = vrot.slane %v4001_v42, 1  ;;  %v2977_v1 = vld [vmem:[%s4161_s4 + $0x48] ss:$12 sps:$4 sm:$0xff]   ;;  %v2979_v36 = vld [vmem:[%s4161_s4 + $0x20] ss:$12 sps:$4 sm:$0xff]  }
 0x308   : > { %2764 = vmatpush3.bf16.msra.mxu0 %v4197_v22  ;;  %v2027_v8 = vrot.slane %v4003_v38, 1  ;;  %v4198_v40 = vrot.slane %v3513_v12, 1  ;;  %v1881_v16 = vmax.bf16 %v1858_v2, %v1844_v32  ;;  %v1960_v7 = vsel %vm1884_vm9, %v1955_v20, %v1959_v9  ;;  %v2963_v12 = vld [vmem:[%s4161_s4] ss:$12 sps:$4 sm:$0xff]   ;;  %v2978_v2 = vld [vmem:[%s4161_s4 + $0x8] ss:$12 sps:$4 sm:$0xff]  }
 0x309   : > { %v1822_v23 = vsel %vm1526_vm4, %v1817_v53, %v3979_v50  ;;  %v2098_v33 = vmax.bf16 %v2048_v63, %v1960_v7  ;;  %v2068_v17 = vor.u32 %v2067_v34, %v2064_v61  ;;  %v2077_v18 = vor.u32 %v4049_v58, %v4047_v21  ;;  %v2980_v55 = vld [vmem:[%s4161_s4 + $0x38] ss:$12 sps:$4 sm:$0xff]   ;;  %v2981_v47 = vld [vmem:[%s4161_s4 + $0x50] ss:$12 sps:$4 sm:$0xff]  }
 0x30a   : > { %v1883_v24 = vmax.bf16 %v4198_v40, %v1846_v29  ;;  %v1845_v39 = vmax.bf16 %v1822_v23, %v1797_v60  ;;  %v2005_v43 = vmax.bf16 %v1960_v7, %v1881_v16  ;;  %v2143_v38 = vsel %vm2110_vm10, %v2140_v3, %v2142_v52 }
 0x30b   : > { %v4199_v49 = vmov %v4198_v40  ;;  %v2182_v4 = vmax.bf16 %v2143_v38, %v2098_v33  ;;  %v2026_v50 = vsel %vm1723_vm5, %v1857_v57, %v2025_v59  ;;  %v2144_v61 = vrot.slane %v4001_v42, 2 }
 0x30c   : > { %v2007_v5 = vmax.bf16 %v3981_v54, %v1883_v24  ;;  %v1860_v20 = vsel %vm1723_vm5, %v1857_v57, %v4199_v49  ;;  %v2049_v48 = vmax.bf16 %v2026_v50, %v2005_v43  ;;  %v1969_v58 = vsel %vm1884_vm9, %v1959_v9, %v1968_v6 }
 0x30d   : > { %v1882_v34 = vmax.bf16 %v1860_v20, %v1845_v39  ;;  %v2028_v54 = vsel %vm1723_vm5, %v2025_v59, %v2027_v8  ;;  %2765 = vmatprep.subr.bf16.mxu0 %v2182_v4  ;;  %v2069_v62 = vsel %vm1884_vm9, %v1959_v9, %v2068_v17  ;;  %v4201_v25 = vmax.bf16 %v3774_v51, %v4200_v10 }
 0x30e   : > { %v2051_v19 = vmax.bf16 %v2027_v8, %v2007_v5  ;;  %v2099_v42 = vmax.bf16 %v2069_v62, %v2049_v48  ;;  %v2078_v37 = vsel %vm1884_vm9, %v2068_v17, %v2077_v18  ;;  %v2146_v15 = vrot.slane %v2968_v56, 2 }
 0x30f   : > { %v2006_v3 = vmax.bf16 %v1969_v58, %v1882_v34  ;;  %2766 = vmatpush3.bf16.msra.mxu0 %v4201_v25  ;;  %v2145_v26 = vsel %vm2110_vm10, %v2142_v52, %v2144_v61  ;;  %v4202_v57 = vmov 0  }
 0x310   : > { %v2101_v46 = vmax.bf16 %v4047_v21, %v2051_v19  ;;  %v2183_v27 = vmax.bf16 %v2145_v26, %v2099_v42  ;;  %v2147_v0 = vsel %vm2110_vm10, %v2144_v61, %v2146_v15  ;;  %v2276_v35 = vsel %vm534_vm1, 65535, %v4202_v57  ;;  %v2971_v21 = vld [vmem:[%s4161_s4 + $0x18] ss:$12 sps:$4 sm:$0xff]  }
 0x311   : > { %v2050_v11 = vmax.bf16 %v2028_v54, %v2006_v3 }
 0x312   : > { %2313 = vmatmul.mubr.bf16.vlgmr.msra.gmra.mrb[64].mxu0 %v2963_v12  ;;  %2798 = vmatprep.subr.bf16.mxu0 %v2183_v27  ;;  %v2185_v51 = vmax.bf16 %v2146_v15, %v2101_v46 }
 0x313   : > { %v2100_v13 = vmax.bf16 %v2078_v37, %v2050_v11  ;;  %2320 = vmatprep.mubr.bf16.mxu0 %v2969_v30  ;;  %2799 = vmatpush3.bf16.msra.mxu0 %v2183_v27 }
 0x314   : > { %v2278_v44 = vand.u32 %v2276_v35, %v2185_v51 }
 0x315   : > { %v2184_v41 = vmax.bf16 %v2147_v0, %v2100_v13 }
 0x317   : > { %2800 = vmatprep.subr.bf16.mxu0 %v2184_v41 }
 0x318   : > { %2801 = vmatpush3.bf16.msra.mxu0 %v2184_v41 }
 0x319   : > { %2802 = vmatprep.subr.bf16.mxu0 %v2278_v44 }
 0x31a   : > { %2321 = vmatmul.mubr.bf16.gmra.mrb[68].mxu0 %v2971_v21 }
 0x31b   : > { %2328 = vmatprep.mubr.bf16.mxu0 %v2972_v14 }
 0x31c   : > { %2803 = vmatpush3.bf16.msra.mxu0 %v2278_v44 }
 0x322   : > { %2329 = vmatmul.mubr.bf16.gmra.mrb[72].mxu0 %v2974_v28 }
 0x323   : > { %2336 = vmatprep.mubr.bf16.mxu0 %v2975_v45 }
 0x32a   : > { %2337 = vmatmul.mubr.bf16.gmra.mrb[76].mxu0 %v2977_v1 }
 0x32b   : > { %2804 = vmatprep.mubr.msk.bf16.mxu0 %vm2262_vm14, %v2978_v2 }
 0x332   : > { %2805 = vmatmul.mubr.msk.bf16.vlgmr.msra.gmra.mrb[80].mxu0 %vm2262_vm14, %v2979_v36 }
 0x333   : > { %2808 = vmatprep.mubr.msk.bf16.mxu0 %vm2262_vm14, %v2980_v55 }
 0x33a   : > { %2809 = vmatmul.mubr.msk.bf16.gmra.mrb[84].mxu0 %vm2262_vm14, %v2981_v47 }
 0x3e5   : > { %v2767_v53 = vpop.f32.mrb[64].mxu0 }
 0x3e6   : > { %v2768_v63 = vpop.f32.mrb[65].mxu0 }
 0x3e7   : > { %v2769_v31 = vadd.f32 %v2768_v63, %v2767_v53  ;;  %v2770_v29 = vpop.f32.mrb[66].mxu0 }
 0x3e8   : > { %v2771_v22 = vpop.f32.mrb[67].mxu0 }
 0x3e9   : > { %v2772_v32 = vadd.f32 %v2771_v22, %v2770_v29 }
 0x3ed   : > { %v2773_v9 = vpop.f32.mrb[68].mxu0 }
 0x3ee   : > { %v2774_v52 = vpop.f32.mrb[69].mxu0 }
 0x3ef   : > { %v2775_v60 = vadd.f32 %v2774_v52, %v2773_v9  ;;  %v2776_v6 = vpop.f32.mrb[70].mxu0 }
 0x3f0   : > { %v2777_v59 = vpop.f32.mrb[71].mxu0 }
 0x3f1   : > { %v2778_v8 = vadd.f32 %v2777_v59, %v2776_v6 }
 0x3f5   : > { %v2779_v40 = vpop.f32.mrb[72].mxu0 }
 0x3f6   : > { %v2780_v24 = vpop.f32.mrb[73].mxu0 }
 0x3f7   : > { %v2781_v16 = vadd.f32 %v2780_v24, %v2779_v40  ;;  %v2782_v7 = vpop.f32.mrb[74].mxu0 }
 0x3f8   : > { %v2783_v23 = vpop.f32.mrb[75].mxu0 }
 0x3f9   : > { %v2784_v33 = vadd.f32 %v2783_v23, %v2782_v7 }
 0x3fd   : > { %v2785_v17 = vpop.f32.mrb[76].mxu0 }
 0x3fe   : > { %v2786_v39 = vpop.f32.mrb[77].mxu0 }
 0x3ff   : > { %v2787_v18 = vadd.f32 %v2786_v39, %v2785_v17  ;;  %v2788_v5 = vpop.f32.mrb[78].mxu0 }
 0x400   : > { %v2789_v43 = vpop.f32.mrb[79].mxu0 }
 0x401   : > { %v2790_v38 = vadd.f32 %v2789_v43, %v2788_v5 }
 0x405   : > { %v2806_v49 = vpop.f32.mrb[80].mxu0 }
 0x406   : > { %v2388_v20 = vadd.f32 %v2806_v49, %v2775_v60  ;;  %v2379_v56 = vpop.f32.mrb[81].mxu0 }
 0x407   : > { %v2380_v4 = vadd.f32 %v2769_v31, %v2379_v56  ;;  %v2807_v50 = vpop.f32.mrb[82].mxu0 }
 0x408   : > { %v2745_v61 = vpack.c.bf16 %v2388_v20, %v2388_v20  ;;  %v2391_v34 = vadd.f32 %v2807_v50, %v2778_v8  ;;  %v2382_v48 = vpop.f32.mrb[83].mxu0 }
 0x409   : > { %v2743_v58 = vpack.c.bf16 %v2380_v4, %v2380_v4  ;;  %v2383_v54 = vadd.f32 %v2772_v32, %v2382_v48 }
 0x40a   : > { %2444 = vst.msk [vmem:[%s224_s7 + $0x8] sm:$0xf] %vm1177_vm3, %v2745_v61  ;;  %v2746_v19 = vpack.c.bf16 %v2391_v34, %v2391_v34 }
 0x40b   : > { %2442 = vst.msk [vmem:[%s224_s7] sm:$0xf] %vm1177_vm3, %v2743_v58  ;;  %v2744_v12 = vpack.c.bf16 %v2383_v54, %v2383_v54 }
 0x40c   : > { %2445 = vst.msk [vmem:[%s224_s7 + $0xc] sm:$0xf] %vm1177_vm3, %v2746_v19 }
 0x40d   : > { %2443 = vst.msk [vmem:[%s224_s7 + $0x4] sm:$0xf] %vm1177_vm3, %v2744_v12  ;;  %v2810_v62 = vpop.f32.mrb[84].mxu0 }
 0x40e   : > { %v2404_v3 = vadd.f32 %v2810_v62, %v2787_v18  ;;  %v2395_v10 = vpop.f32.mrb[85].mxu0 }
 0x40f   : > { %v2396_v25 = vadd.f32 %v2781_v16, %v2395_v10  ;;  %v2811_v42 = vpop.f32.mrb[86].mxu0 }
 0x410   : > { %v2749_v37 = vpack.c.bf16 %v2404_v3, %v2404_v3  ;;  %v2407_v15 = vadd.f32 %v2811_v42, %v2790_v38  ;;  %v2398_v30 = vpop.f32.mrb[87].mxu0 }
 0x411   : > { %v2747_v46 = vpack.c.bf16 %v2396_v25, %v2396_v25  ;;  %v2399_v26 = vadd.f32 %v2784_v33, %v2398_v30 }
 0x412   : > { %2448 = vst.msk [vmem:[%s224_s7 + $0x18] sm:$0xf] %vm1177_vm3, %v2749_v37  ;;  %v2750_v11 = vpack.c.bf16 %v2407_v15, %v2407_v15 }
 0x413   : > { %2446 = vst.msk [vmem:[%s224_s7 + $0x10] sm:$0xf] %vm1177_vm3, %v2747_v46  ;;  %v2748_v27 = vpack.c.bf16 %v2399_v26, %v2399_v26 }
 0x414   : > { %2449 = vst.msk [vmem:[%s224_s7 + $0x1c] sm:$0xf] %vm1177_vm3, %v2750_v11 }
 0x415   : > { %2447 = vst.msk [vmem:[%s224_s7 + $0x14] sm:$0xf] %vm1177_vm3, %v2748_v27 }
 0x416 PF: > { %s15_s18 = sadd.s32 1, %s2988_s18  }
 0x417   : > { %p12_p4 = scmp.ge.s32.totalorder %s15_s18, 4  }
 0x419   :  { %14 = sbr.rel (!%p12_p4) target bundleno = 1 (0x1), region = 70 }

// kernel: se_resnext_forward.13
= control target key start
LH: loop header
LB: loop body
LE: loop exit
PB: predicated region body
PF: predicated region fallthrough
CT: control target
= control target key end

     0   :  { %s202_s0 = inlined_call_operand.vmem [shape: bf16[2,1,256], index: 0, kind: input, shape index: {}]   ;;  %s203_s1 = inlined_call_operand.vmem [shape: f32[1,256], index: 1, kind: input, shape index: {}]   ;;  %s204_s2 = inlined_call_operand.<no memory space> [shape: f32[1,1], index: 2, kind: input, shape index: {}]   ;;  %s205_s3 = inlined_call_operand.hbm [shape: f32[2,256], index: 3, kind: output, shape index: {0}]   ;;  %s206_s4 = inlined_call_operand.vmem [shape: f32[2,1], index: 4, kind: output, shape index: {1}]  }
   0x1   :  { %v10_v0 = vstv %s204_s2 }
   0x2   :  { %11 = vst [vmem:[#allocation2] sm:$0x1] %v10_v0 }
   0x3   :  { %v44_v1 = vlaneseq }
   0x4   :  { %12 = vsyncpa [#allocation4], 0  ;;  %v148_v3 = vmov 1983009808   ;;  %v42_v5 = vld [vmem:[%s203_s1] sm:$0x3] }
   0x5   :  { %v45_v2 = vshrl.u32 %v44_v1, 7  ;;  %v54_v4 = vunpack.c.l.s4 %v148_v3  ;;  %v19_v9 = vld [vmem:[%s202_s0] sm:$0x3]  ;;  %v20_v13 = vld [vmem:[%s202_s0 + $0x2] sm:$0x3]  ;;  %vm32_vm0 = vcmask 1041409  }
   0x6   :  { %v21_v14 = vunpack.c.l.bf16 %v19_v9  ;;  %v22_v16 = vunpack.c.l.bf16 %v20_v13  ;;  %vm87_vm1 = vcmask 1041408   ;;  %vm34_vm2 = vcmask 1043459   ;;  %s149_s0 = smov [#allocation3]  }
   0x7   :  { %v46_v6 = vsub.s32 0, %v45_v2  ;;  %v50_v7 = vsub.s32 1, %v45_v2  ;;  %v55_v8 = vunpack.c.0.s8 %v54_v4  ;;  %v73_v18 = vsub.s32 2, %v45_v2  ;;  %s109_s1 = sshll.u32 %s149_s0, 4  ;;  %s110_s1 = int_to_ptr.vmem [resolvable:$true] %s109_s1 }
   0x8   :  { %v31_v31 = vrot.slane %v22_v16, 7  ;;  %vm36_vm3 = vcmask 1045509   ;;  %vm38_vm4 = vcmask 1047559   ;;  %s124_s22 = scalar_lea.vmem %s110_s1, 64  ;;  %p129_p1 = scmp.lt.s32.totalorder %s110_s1, %s110_s1 }
   0x9   :  { %v47_v10 = vrot.slane %v42_v5, %v46_v6  ;;  %v51_v11 = vrot.slane %v42_v5, %v50_v7  ;;  %v58_v12 = vsub.s32 %v55_v8, %v45_v2  ;;  %p125_p0 = scmp.ne.s32.totalorder %s110_s1, %s124_s22  ;;  %p130_p2 = scmp.lt.s32.totalorder %s124_s22, %s124_s22 }
   0xa   :  { %v33_v32 = vsel %vm32_vm0, %v31_v31, %v21_v14 }
   0xb   :  { %v52_v15 = vcombine.low %v47_v10, %v51_v11  ;;  %v35_v33 = vsel %vm34_vm2, %v31_v31, %v33_v32  ;;  %p131_p3 = por %p130_p2, %p129_p1 }
   0xc   :  { %v37_v34 = vsel %vm36_vm3, %v31_v31, %v35_v33 }
   0xd   :  { %v59_v17 = vrot.slane %v52_v15, %v58_v12  ;;  %v39_v35 = vsel %vm38_vm4, %v31_v31, %v37_v34  ;;  %p132_p4 = pnand %p131_p3, %p125_p0 }
   0xe   :  { %41 = vst [vmem:[#allocation3] sm:$0xf] %v39_v35 }
   0xf   :  { %v60_v19 = vrot.slane %v59_v17, 1  ;;  %v63_v20 = vmul.f32 %v59_v17, %v21_v14 }
  0x11   :  { %v64_v21 = vmul.f32 %v60_v19, %v22_v16  ;;  %v70_v22 = vrot.slane %v63_v20, %v46_v6  ;;  %v74_v23 = vrot.slane %v63_v20, %v73_v18 }
  0x13   :  { %v78_v24 = vrot.slane %v64_v21, %v46_v6  ;;  %v82_v25 = vrot.slane %v64_v21, %v73_v18 }
  0x15   :  { %v83_v26 = vsel %vm32_vm0, %v78_v24, %v70_v22  ;;  %v84_v27 = vsel %vm32_vm0, %v82_v25, %v74_v23 }
  0x16   :  { %v88_v28 = vsel %vm87_vm1, %v83_v26, 0.0  ;;  %v89_v29 = vsel %vm87_vm1, %v84_v27, 0.0 }
  0x17   :  { %v90_v30 = vadd.f32 %v89_v29, %v88_v28 }
  0x19   :  { %91 = vadd.xlane.f32.xlu0 %v90_v30 }
  0x1a   :  { %135 = shalt.err (!%p132_p4)
}
  0x1b   :  { %s136_s25 = scalar_lea.hbm %s205_s3, 64 }
  0x1c   :  { %p137_p5 = scmp.ne.s32.totalorder %s205_s3, %s136_s25  ;;  %p140_p6 = scmp.lt.u32.totalorder %s136_s25, %s205_s3 }
  0x1e   :  { %p142_p7 = pnand %p140_p6, %p137_p5 }
  0x20   :  { %145 = shalt.err (!%p142_p7)
}
  0x21   :  { %112 = dma.vmem_to_hbm [thread:$0]  %s110_s1, 64, %s205_s3, [#allocation4]   ;;  %v121_v36 = vld [vmem:[#allocation2] ss:$0 sm:$0xff]  ;;  %vm101_vm5 = vcmask 1024  }
  0xa6   :  { %v92_v37 = vpop.xlane.xlu0 %91 }
  0xa7   :  { %v100_v38 = vadd.f32 %v121_v36, %v92_v37 }
  0xa9   :  { %102 = vst.msk [vmem:[%s206_s4] sm:$0x3] %vm101_vm5, %v100_v38 }
  0xaa   :  { %146 = dma.done.wait [#allocation4], 64  }
  0xab   :  { %147 = vsyncadd [#allocation4], 4294967232 }
  0xac   :  { %120 = vsyncpa [#allocation4], 1 }

// kernel: se_resnext_forward.11
= control target key start
LH: loop header
LB: loop body
LE: loop exit
PB: predicated region body
PF: predicated region fallthrough
CT: control target
= control target key end

     0   :  { %s3865_s0 = inlined_call_operand.vmem [shape: bf16[2,16,64], index: 0, kind: input, shape index: {}]   ;;  %s3866_s1 = inlined_call_operand.vmem [shape: bf16[64,64], index: 1, kind: input, shape index: {}]   ;;  %s3867_s2 = inlined_call_operand.vmem [shape: f32[1,64], index: 2, kind: input, shape index: {}]   ;;  %s3868_s3 = inlined_call_operand.vmem [shape: bf16[36,16], index: 3, kind: input, shape index: {}]   ;;  %s3869_s4 = inlined_call_operand.vmem [shape: bf16[9,64,64], index: 4, kind: input, shape index: {}]   ;;  %s3870_s5 = inlined_call_operand.vmem [shape: f32[1,64], index: 5, kind: input, shape index: {}]   ;;  %s3871_s6 = inlined_call_operand.vmem [shape: bf16[4,36], index: 6, kind: input, shape index: {}]   ;;  %s3872_s7 = inlined_call_operand.vmem [shape: bf16[64,128], index: 7, kind: input, shape index: {}]   ;;  %s3873_s8 = inlined_call_operand.vmem [shape: f32[1,128], index: 8, kind: input, shape index: {}]   ;;  %s3874_s9 = inlined_call_operand.vmem [shape: bf16[128,32], index: 9, kind: input, shape index: {}]   ;;  %s3875_s10 = inlined_call_operand.vmem [shape: f32[1,32], index: 10, kind: input, shape index: {}]   ;;  %s3876_s11 = inlined_call_operand.vmem [shape: bf16[32,128], index: 11, kind: input, shape index: {}]   ;;  %s3877_s12 = inlined_call_operand.vmem [shape: f32[1,128], index: 12, kind: input, shape index: {}]   ;;  %s3878_s13 = inlined_call_operand.vmem [shape: bf16[4,16], index: 13, kind: input, shape index: {}]   ;;  %s3879_s14 = inlined_call_operand.vmem [shape: bf16[64,128], index: 14, kind: input, shape index: {}]   ;;  %s3880_s15 = inlined_call_operand.hbm [shape: f32[1,128], index: 15, kind: input, shape index: {}]   ;;  %s3881_s16 = inlined_call_operand.vmem [shape: bf16[2,4,128], index: 16, kind: output, shape index: {}]  }
   0x1   :  { %3884 = sst [smem:[#allocation6_spill]] %s3865_s0 }
   0x2   :  { %21 = vsyncpa [#allocation4], 0  ;;  %s3341_s21 = smov 0  }
   0x3 LB: > { %s3347_s22 = sadd.s32 4294967295, %s3250_s21   ;;  %p2438_p0 = scmp.ge.s32.totalorder %s3250_s21, 1  ;;  %s3250_s21 = sphi %s3341_s21, %s27_s21  }
   0x4   : > { %p399_p1 = scmp.lt.s32.totalorder %s3250_s21, 3  ;;  %p3882_p3 = scmp.eq.s32.totalorder %s3347_s22, 0 }
   0x5   : > { %s3252_s24 = smov [#allocation3]   ;;  %s3212_s29 = scalar_lea.hbm %s3880_s15, 16 }
   0x6   : > { %p3351_p2 = pnand %p2438_p0, %p399_p1  ;;  %s454_s25 = sshll.u32 %s3252_s24, 4  ;;  %s455_s25 = int_to_ptr.vmem [resolvable:$true] %s454_s25 }
   0x7   : > { %p3213_p6 = scmp.ne.s32.totalorder %s3880_s15, %s3212_s29  ;;  %p3219_p10 = scmp.lt.u32.totalorder %s3212_s29, %s3880_s15 }
   0x8   : > { %s3885_s23 = scalar_select %p3351_p2, 1, 0 }
   0x9   : > { %p3110_p4 = pneg %p3351_p2 }
   0xb   : > { %p3360_p5 = pnand %p3882_p3, %p3110_p4 }
   0xd   : > { %p3214_p7 = pneg %p3360_p5 }
   0xf   : > { %p3215_p8 = pnand %p3214_p7, %p3213_p6 }
  0x11   : > { %p3216_p9 = pneg %p3215_p8 }
  0x13   : > { %p3221_p11 = pnand %p3219_p10, %p3216_p9 }
  0x15   : > { %3224 = shalt.err (!%p3221_p11)
}
  0x16   : > { %s3225_s19 = scalar_lea.vmem %s455_s25, 16  ;;  %s3232_s20 = scalar_lea.vmem %s455_s25, 32 }
  0x17   : > { %p3226_p12 = scmp.ne.s32.totalorder %s455_s25, %s3225_s19  ;;  %p3233_p1 = scmp.lt.s32.totalorder %s455_s25, %s455_s25 }
  0x18   : > { %p3234_p4 = scmp.lt.s32.totalorder %s3232_s20, %s3225_s19 }
  0x19   : > { %p3228_p13 = pnand %p3226_p12, %p3214_p7 }
  0x1a   : > { %p3235_p3 = por %p3234_p4, %p3233_p1 }
  0x1b   : > { %p3229_p0 = pneg %p3228_p13 }
  0x1d   : > { %p3236_p2 = pnand %p3235_p3, %p3229_p0 }
  0x1f   : > { %3239 = shalt.err (!%p3236_p2)
}
  0x20   : > { %3113 = dma.hbm_to_vmem [thread:$0]  (!%p3360_p5), %s3880_s15, 16, %s455_s25, [#allocation4]  }
  0x21   : > { %p3887_p6 = scmp.ne.s32.totalorder %s3885_s23, 0 }
  0x22   : > { %p3888_p8 = scmp.eq.s32.totalorder (!%p3887_p6), %s3347_s22, 0 }
  0x23   : > { %475 = sbr.rel (%p3887_p6) target bundleno = 2011 (0x7db), region = 84 }
  0x2a   : > { %3245 = dma.done.wait (%p3888_p8), [#allocation4], 16   ;;  %p3889_p7 = pmov %p3888_p8 }
  0x2b   : > { %p524_p9 = scmp.lt.s32.totalorder %s3347_s22, 1  ;;  %v3253_v0 = vmov 0.0   ;;  %vm3254_vm0 = vmmov 0   ;;  %v3128_v1 = vld [vmem:[%s3866_s1] sm:$0xff]   ;;  %v3129_v2 = vld [vmem:[%s3866_s1 + $0x8] sm:$0xff]   ;;  %s3890_s17 = sld [smem:[#allocation6_spill]] }
  0x2c   : > { %3247 = vsyncadd (%p3889_p7), [#allocation4], 4294967280  ;;  %2743 = vmatprep.subr.bf16.mxu0 %v3253_v0  ;;  %2751 = vmatprep.mubr.msk.bf16.mxu0 %vm3254_vm0, %v3253_v0  ;;  %v3130_v3 = vld [vmem:[%s3866_s1 + $0x10] sm:$0xff]   ;;  %vm580_vm1 = vcmask 523264   ;;  %v3131_v4 = vld [vmem:[%s3866_s1 + $0x18] sm:$0xff]   ;;  %vm646_vm2 = vcmask 130048  }
  0x2d   : > { %2809 = vmatprep.subr.bf16.mxu1 %v3253_v0  ;;  %2817 = vmatprep.mubr.msk.bf16.mxu1 %vm3254_vm0, %v3253_v0  ;;  %s3892_s22 = smov (!%p524_p9, %s3347_s22), 1  ;;  %v2446_v6 = vld [vmem:[%s3867_s2] ss:$0 sm:$0xff]  ;;  %v3134_v17 = vld [vmem:[%s3868_s3 + $0x8] sm:$0xff]   ;;  %vm712_vm3 = vcmask 519168   ;;  %v3255_v19 = vmov 0  }
  0x2e   : > { %s2637_s26 = sshll.u32 %s3892_s22, 3  ;;  %2744 = vmatpush3.bf16.msra.mxu0 %v3128_v1  ;;  %v3133_v16 = vld [vmem:[%s3868_s3] sm:$0xff]   ;;  %v3135_v18 = vld [vmem:[%s3868_s3 + $0x10] ss:$0 sps:$4 sm:$0x33]   ;;  %v3137_v21 = vld [vmem:[%s3869_s4 + $0x28] sm:$0xff]  }
  0x2f   : > { %2745 = vmatprep.subr.bf16.mxu0 %v3253_v0  ;;  %714 = vst.msk [vmem:[#allocation2 + $0x4] sm:$0xf] %vm712_vm3, %v3255_v19  ;;  %715 = vst.msk [vmem:[#allocation2 + $0x8] sm:$0xf] %vm712_vm3, %v3255_v19  ;;  %v3136_v20 = vld [vmem:[%s3869_s4 + $0x20] sm:$0xff]   ;;  %v3139_v23 = vld [vmem:[%s3869_s4 + $0x30] sm:$0xff]  }
  0x30   : > { %716 = vst.msk [vmem:[#allocation2 + $0xc] sm:$0xf] %vm712_vm3, %v3255_v19  ;;  %717 = vst.msk [vmem:[#allocation2 + $0x10] sm:$0xf] %vm712_vm3, %v3255_v19  ;;  %v3138_v22 = vld [vmem:[%s3869_s4 + $0x40] sm:$0xff]   ;;  %v3140_v24 = vld [vmem:[%s3869_s4 + $0x48] sm:$0xff]  }
  0x31   : > { %s3407_s18 = scalar_lea.vmem %s3890_s17, %s2637_s26  ;;  %718 = vst.msk [vmem:[#allocation2 + $0x14] sm:$0xf] %vm712_vm3, %v3255_v19  ;;  %719 = vst.msk [vmem:[#allocation2 + $0x18] sm:$0xf] %vm712_vm3, %v3255_v19  ;;  %2810 = vmatpush3.bf16.msra.mxu1 %v3138_v22  ;;  %vm720_vm4 = vcmask 517120   ;;  %v3141_v27 = vld [vmem:[%s3869_s4 + $0x38] sm:$0xff]  }
  0x32   : > { %2746 = vmatpush3.bf16.msra.mxu0 %v3129_v2  ;;  %v3132_v5 = vld [vmem:[%s3407_s18] sm:$0xff]   ;;  %2811 = vmatprep.subr.bf16.mxu1 %v3253_v0  ;;  %vm721_vm5 = vsmask.f32 1280  ;;  %v723_v25 = vld [vmem:[#allocation2 + $0x1c] sm:$0x3]  ;;  %v3142_v28 = vld [vmem:[%s3869_s4 + $0x50] sm:$0xff]  }
  0x33   : > { %2747 = vmatprep.subr.bf16.mxu0 %v3253_v0  ;;  %vm722_vm6 = vmand %vm720_vm4, %vm721_vm5  ;;  %v3145_v29 = vld [vmem:[%s3869_s4 + $0x58] sm:$0xff]   ;;  %vm789_vm7 = vcmask 1046528   ;;  %v3147_v54 = vld [vmem:[%s3869_s4] sm:$0xff]   ;;  %vm1013_vm8 = vsmask.f32 6400  ;;  %vm1678_vm12 = vcmask 1044480  }
  0x34   : > { %v724_v26 = vsel %vm722_vm6, 0, %v723_v25  ;;  %vm887_vm9 = vsmask.f32 7424  ;;  %vm1159_vm10 = vsmask.f32 4352  ;;  %vm1921_vm13 = vcmask 1041408  }
  0x35   : > { %2812 = vmatpush3.bf16.msra.mxu1 %v3140_v24  ;;  %725 = vst [vmem:[#allocation2 + $0x1c] sm:$0x3] %v724_v26  ;;  %vm1544_vm11 = vsmask.f32 5376  ;;  %vm1917_vm14 = vcmask 293888   ;;  %vm2049_vm15 = vcmask 1043456  }
  0x36   : > { %2748 = vmatpush3.bf16.msra.mxu0 %v3130_v3  ;;  %2813 = vmatprep.subr.bf16.mxu1 %v3253_v0  ;;  %v766_v37 = vld [vmem:[#allocation2 + $0x4] sm:$0xe]  ;;  %s2445_s17 = sshll.u32 %s3892_s22, 1 }
  0x37   : > { %2749 = vmatprep.subr.bf16.mxu0 %v3253_v0  ;;  %s532_s24 = scalar_lea.vmem %s3881_s16, %s2445_s17 }
  0x39   : > { %2814 = vmatpush3.bf16.msra.mxu1 %v3142_v28 }
  0x3a   : > { %2750 = vmatpush3.bf16.msra.mxu0 %v3131_v4  ;;  %2815 = vmatprep.subr.bf16.mxu1 %v3253_v0  ;;  %v3148_v4 = vld [vmem:[%s3869_s4 + $0x60] sm:$0xff]  }
  0x3b   : > { %2755 = vmatprep.subr.bf16.mxu0 %v3253_v0 }
  0x3d   : > { %2752 = vmatmul.mubr.msk.bf16.vlgmr.msra.gmra.mrb[0].mxu0 %vm580_vm1, %v3132_v5  ;;  %2816 = vmatpush3.bf16.msra.mxu1 %v3145_v29 }
  0x3e   : > { %2757 = vmatprep.mubr.msk.bf16.mxu0 %vm3254_vm0, %v3253_v0  ;;  %2829 = vmatprep.subr.bf16.mxu1 %v3253_v0 }
 0x110   : > { %v618_v7 = vpop.f32.mrb[0].mxu0 }
 0x111   : > { %v619_v8 = vadd.f32 %v2446_v6, %v618_v7  ;;  %v2753_v9 = vpop.f32.mrb[1].mxu0  ;;  %v3150_v7 = vld [vmem:[%s3869_s4 + $0x8] sm:$0xff]  }
 0x112   : > { %v621_v10 = vpop.f32.mrb[2].mxu0 }
 0x113   : > { %v622_v11 = vadd.f32 %v2446_v6, %v621_v10  ;;  %v2754_v12 = vpop.f32.mrb[3].mxu0  ;;  %v625_v13 = vmax.f32 %v619_v8, 0.0 }
 0x114   : > { %v3151_v12 = vld [vmem:[%s3869_s4 + $0x68] sm:$0xff]  }
 0x115   : > { %v626_v14 = vmax.f32 %v622_v11, 0.0 }
 0x117   : > { %v627_v15 = vpack.c.bf16 %v626_v14, %v625_v13  ;;  %v3152_v13 = vld [vmem:[%s3869_s4 + $0x10] sm:$0xff]   ;;  %v753_v14 = vld [vmem:[#allocation2 + $0x4] sm:$0xf] }
 0x119   : > { %2756 = vmatpush3.bf16.msra.mxu0 %v627_v15 }
 0x11a   : > { %2769 = vmatprep.subr.bf16.mxu0 %v3253_v0 }
 0x11c   : > { %2758 = vmatmul.mubr.msk.bf16.vlgmr.msra.gmra.mrb[4].mxu0 %vm646_vm2, %v3133_v16 }
 0x11d   : > { %2761 = vmatprep.mubr.msk.bf16.mxu0 %vm3254_vm0, %v3253_v0  ;;  %2770 = vmatpush3.bf16.msra.mxu0 %v3136_v20  ;;  %v1129_v20 = vld [vmem:[#allocation2 + $0x4] sm:$0x8] }
 0x11e   : > { %2771 = vmatprep.subr.bf16.mxu0 %v3253_v0 }
 0x121   : > { %2772 = vmatpush3.bf16.msra.mxu0 %v3137_v21  ;;  %v3153_v21 = vld [vmem:[%s3869_s4 + $0x18] sm:$0xff]  }
 0x122   : > { %2773 = vmatprep.subr.bf16.mxu0 %v3253_v0 }
 0x124   : > { %2762 = vmatmul.mubr.msk.bf16.gmra.mrb[8].mxu0 %vm646_vm2, %v3134_v17 }
 0x125   : > { %2765 = vmatprep.mubr.msk.bf16.mxu0 %vm3254_vm0, %v3253_v0  ;;  %2774 = vmatpush3.bf16.msra.mxu0 %v3139_v23 }
 0x126   : > { %2775 = vmatprep.subr.bf16.mxu0 %v3253_v0 }
 0x129   : > { %2776 = vmatpush3.bf16.msra.mxu0 %v3141_v27  ;;  %v3156_v27 = vld [vmem:[%s3869_s4 + $0x78] sm:$0xff]  }
 0x12a   : > { %2789 = vmatprep.subr.bf16.mxu0 %v3253_v0 }
 0x12c   : > { %2766 = vmatmul.mubr.msk.bf16.gmra.mrb[12].mxu0 %vm646_vm2, %v3135_v18  ;;  %v3154_v18 = vld [vmem:[%s3869_s4 + $0x70] sm:$0xff]  }
 0x12d   : > { %2777 = vmatprep.mubr.msk.bf16.mxu0 %vm3254_vm0, %v3253_v0 }
 0x1ef   : > { %v690_v30 = vpop.f32.mrb[4].mxu0 }
 0x1f0   : > { %v2638_v31 = vpack.c.bf16 %v690_v30, %v690_v30  ;;  %v2759_v32 = vpop.f32.mrb[5].mxu0 }
 0x1f1   : > { %v693_v33 = vpop.f32.mrb[6].mxu0 }
 0x1f2   : > { %747 = vst.msk [vmem:[#allocation2 + $0x8] sm:$0xf] %vm712_vm3, %v2638_v31  ;;  %v2639_v34 = vpack.c.bf16 %v693_v33, %v693_v33  ;;  %v2760_v35 = vpop.f32.mrb[7].mxu0 }
 0x1f4   : > { %748 = vst.msk [vmem:[#allocation2 + $0xc] sm:$0xf] %vm712_vm3, %v2639_v34 }
 0x1f7   : > { %v698_v36 = vpop.f32.mrb[8].mxu0 }
 0x1f8   : > { %v2640_v38 = vpack.c.bf16 %v698_v36, %v698_v36  ;;  %v2763_v39 = vpop.f32.mrb[9].mxu0 }
 0x1f9   : > { %v701_v40 = vpop.f32.mrb[10].mxu0  ;;  %v754_v41 = vld [vmem:[#allocation2 + $0x8] sm:$0xf] }
 0x1fa   : > { %749 = vst.msk [vmem:[#allocation2 + $0x10] sm:$0xf] %vm712_vm3, %v2640_v38  ;;  %v2641_v42 = vpack.c.bf16 %v701_v40, %v701_v40  ;;  %v2764_v43 = vpop.f32.mrb[11].mxu0  ;;  %v2472_v44 = vcombine.low %v766_v37, %v754_v41  ;;  %v2482_v19 = vcombine.low %v753_v14, %v754_v41  ;;  %v3539_v22 = vld [vmem:[#allocation2 + $0x8] sm:$0xf] }
 0x1fb   : > { %v3541_v23 = vld [vmem:[#allocation2 + $0xc] sm:$0xf]  ;;  %v2514_v28 = vcombine.low %v1129_v20, %v3539_v22 }
 0x1fc   : > { %750 = vst.msk [vmem:[#allocation2 + $0x14] sm:$0xf] %vm712_vm3, %v2641_v42  ;;  %v1015_v45 = vshrl.u32 %v2472_v44, 16  ;;  %v1018_v47 = vshll.u32 %v2472_v44, 16  ;;  %v790_v52 = vrot.slane %v2472_v44, 1  ;;  %v891_v26 = vshll.u32 %v2482_v19, 16 }
 0x1fd   : > { %v1161_v33 = vshrl.u32 %v2514_v28, 16  ;;  %v1164_v34 = vshll.u32 %v2514_v28, 16  ;;  %v889_v35 = vshrl.u32 %v2482_v19, 16  ;;  %vm2184_vm3 = vcmask 261120  }
 0x1fe   : > { %v1017_v53 = vrot.slane %v1015_v45, 1  ;;  %v1020_v59 = vrot.slane %v1018_v47, 2  ;;  %v893_v32 = vrot.slane %v891_v26, 1  ;;  %v1514_v26 = vld [vmem:[#allocation2 + $0x8] sm:$0xc] }
 0x1ff   : > { %v706_v46 = vpop.f32.mrb[12].mxu0  ;;  %v1163_v42 = vrot.slane %v1161_v33, 3  ;;  %v1166_v43 = vrot.slane %v1164_v34, 4  ;;  %v1519_v33 = vld [vmem:[#allocation2 + $0x1c] sm:$0x1] }
 0x200   : > { %v2642_v48 = vpack.c.bf16 %v706_v46, %v706_v46  ;;  %v2767_v49 = vpop.f32.mrb[13].mxu0  ;;  %v1021_v2 = vor.u32 %v1020_v59, %v1017_v53  ;;  %v894_v41 = vor.u32 %v893_v32, %v889_v35  ;;  %v3162_v59 = vld [vmem:[%s3869_s4 + $0x90] sm:$0xff]  }
 0x201   : > { %v3487_v50 = vld [vmem:[#allocation2 + $0xc] sm:$0xff]   ;;  %v709_v51 = vpop.f32.mrb[14].mxu0  ;;  %v1167_v49 = vor.u32 %v1166_v43, %v1163_v42 }
 0x202   : > { %752 = vst.msk [vmem:[#allocation2 + $0x18] sm:$0x3] %vm720_vm4, %v2642_v48  ;;  %v2768_v55 = vpop.f32.mrb[15].mxu0  ;;  %v791_v56 = vrot.slane %v3487_v50, 1  ;;  %v896_v57 = vshll.u32 %v3487_v50, 16  ;;  %v900_v58 = vshrl.u32 %v3487_v50, 16 }
 0x203   : > { %v3496_v60 = vld [vmem:[#allocation2 + $0x14] ss:$0 sps:$4 sm:$0x77]   ;;  %v3528_v17 = vld [vmem:[#allocation2 + $0x10] sm:$0xf]  ;;  %v3159_v51 = vld [vmem:[%s3869_s4 + $0x80] sm:$0xff]  }
 0x204   : > { %v792_v61 = vsel %vm789_vm7, %v790_v52, %v791_v56  ;;  %v1022_v62 = vrot.slane %v900_v58, 1  ;;  %v1023_v63 = vrot.slane %v896_v57, 2  ;;  %v3149_v1 = vld [vmem:[#allocation2 + $0x14] ss:$0 sps:$4 sm:$0xff]   ;;  %v793_v9 = vrot.slane %v3496_v60, 1 }
 0x205   : > { %2778 = vmatmul.mubr.msk.bf16.vlgmr.msra.gmra.mrb[16].mxu0 %vm580_vm1, %v792_v61  ;;  %v1027_v5 = vshrl.u32 %v3149_v1, 16  ;;  %v1030_v6 = vshll.u32 %v3149_v1, 16  ;;  %v2515_v25 = vcombine.low %v3541_v23, %v3528_v17  ;;  %v1133_v36 = vld [vmem:[#allocation2 + $0x14] sm:$0xf]  ;;  %v898_v37 = vrot.slane %v896_v57, 1  ;;  %v3161_v57 = vld [vmem:[%s3869_s4 + $0x88] sm:$0xff]  }
 0x206   : > { %v1024_v3 = vor.u32 %v1023_v63, %v1022_v62  ;;  %2781 = vmatprep.mubr.msk.bf16.mxu0 %vm3254_vm0, %v3253_v0  ;;  %2790 = vmatpush3.bf16.msra.mxu0 %v3147_v54  ;;  %v794_v15 = vsel %vm789_vm7, %v791_v56, %v793_v9  ;;  %v904_v44 = vshll.u32 %v3496_v60, 16  ;;  %v908_v62 = vshrl.u32 %v3496_v60, 16  ;;  %v3163_v63 = vld [vmem:[%s3869_s4 + $0x98] sm:$0xff]   ;;  %v3165_v60 = vld [vmem:[%s3869_s4 + $0xa0] sm:$0xff]  }
 0x207   : > { %2791 = vmatprep.subr.bf16.mxu0 %v3253_v0  ;;  %v1029_v10 = vrot.slane %v1027_v5, 1  ;;  %v1032_v11 = vrot.slane %v1030_v6, 2  ;;  %v1169_v29 = vshrl.u32 %v2515_v25, 16  ;;  %v1172_v30 = vshll.u32 %v2515_v25, 16  ;;  %v3170_v6 = vld [vmem:[%s3869_s4 + $0xb8] sm:$0xff]   ;;  %v3656_v25 = vld [vmem:[#allocation2 + $0x10] sm:$0xff]  }
 0x208   : > { %v1025_v8 = vsel %vm1013_vm8, %v1021_v2, %v1024_v3  ;;  %v899_v45 = vsel %vm887_vm9, %v894_v41, %v898_v37  ;;  %v902_v52 = vor.u32 %v900_v58, %v898_v37  ;;  %v906_v54 = vrot.slane %v904_v44, 1 }
 0x209   : > { %2818 = vmatmul.mubr.msk.bf16.vlgmr.msra.gmra.mrb[0].mxu1 %vm580_vm1, %v1025_v8  ;;  %v1033_v16 = vor.u32 %v1032_v11, %v1029_v10  ;;  %v3557_v31 = vld [vmem:[#allocation2 + $0x18] sm:$0x3]  ;;  %v1171_v38 = vrot.slane %v1169_v29, 3  ;;  %v1174_v39 = vrot.slane %v1172_v30, 4  ;;  %v2532_v2 = vcombine.low %v3539_v22, %v3541_v23  ;;  %v3174_v22 = vld [vmem:[%s3869_s4 + $0xd0] sm:$0xff]  }
 0x20a   : > { %2830 = vmatpush3.bf16.msra.mxu1 %v3148_v4  ;;  %2821 = vmatprep.mubr.msk.bf16.mxu1 %vm3254_vm0, %v3253_v0  ;;  %v2516_v40 = vcombine.low %v1133_v36, %v3557_v31  ;;  %v907_v50 = vsel %vm887_vm9, %v902_v52, %v906_v54  ;;  %v910_v1 = vor.u32 %v908_v62, %v906_v54  ;;  %v3169_v4 = vld [vmem:[%s3869_s4 + $0xb0] sm:$0xff]   ;;  %v1515_v23 = vld [vmem:[#allocation2 + $0xc] sm:$0xf]  ;;  %v1554_v30 = vshrl.u32 %v3656_v25, 16  ;;  %v3667_v32 = vld [vmem:[#allocation2 + $0x18] sm:$0xf] }
 0x20b   : > { %2792 = vmatpush3.bf16.msra.mxu0 %v3150_v7  ;;  %2831 = vmatprep.subr.bf16.mxu1 %v3253_v0  ;;  %v1034_v24 = vsel %vm1013_vm8, %v1024_v3, %v1033_v16  ;;  %v1175_v46 = vor.u32 %v1174_v39, %v1171_v38  ;;  %v3167_v3 = vld [vmem:[%s3869_s4 + $0xa8] sm:$0xff]   ;;  %v2533_v5 = vcombine.low %v3528_v17, %v1133_v36  ;;  %v1401_v7 = vshll.u32 %v2532_v2, 16 }
 0x20c   : > { %2793 = vmatprep.subr.bf16.mxu0 %v3253_v0  ;;  %v1178_v47 = vshrl.u32 %v2516_v40, 16  ;;  %v1181_v48 = vshll.u32 %v2516_v40, 16  ;;  %v2534_v8 = vcombine.low %v3557_v31, %v3557_v31  ;;  %v2566_v28 = vcombine.low %v1514_v26, %v1515_v23  ;;  %v3185_v62 = vld [vmem:[%s3869_s4 + $0x108] sm:$0xff]  }
 0x20d   : > { %2782 = vmatmul.mubr.msk.bf16.gmra.mrb[20].mxu0 %vm580_vm1, %v794_v15  ;;  %v1176_v53 = vsel %vm1159_vm10, %v1167_v49, %v1175_v46  ;;  %v1403_v10 = vrot.slane %v1401_v7, 1  ;;  %v3171_v15 = vld [vmem:[%s3869_s4 + $0xc0] sm:$0xff]   ;;  %v1409_v19 = vshrl.u32 %v2533_v5, 16  ;;  %v1557_v31 = vshll.u32 %v3656_v25, 16 }
 0x20e   : > { %2785 = vmatprep.mubr.msk.bf16.mxu0 %vm3254_vm0, %v3253_v0  ;;  %2832 = vmatpush3.bf16.msra.mxu1 %v3151_v12  ;;  %v1180_v55 = vrot.slane %v1178_v47, 3  ;;  %v1183_v56 = vrot.slane %v1181_v48, 4  ;;  %v1399_v12 = vshrl.u32 %v2532_v2, 16  ;;  %v1546_v34 = vshrl.u32 %v2566_v28, 16 }
 0x20f   : > { %2794 = vmatpush3.bf16.msra.mxu0 %v3152_v13  ;;  %2833 = vmatprep.subr.bf16.mxu1 %v3253_v0  ;;  %v3172_v13 = vld [vmem:[#allocation2 + $0x18] ss:$0 sps:$4 sm:$0x77]   ;;  %v1549_v35 = vshll.u32 %v2566_v28, 16  ;;  %v1556_v37 = vrot.slane %v1554_v30, 2  ;;  %v1559_v38 = vrot.slane %v1557_v31, 3  ;;  %v3675_v39 = vcombine.low %v3667_v32, %v1519_v33 }
 0x210   : > { %2795 = vmatprep.subr.bf16.mxu0 %v3253_v0  ;;  %v1184_v58 = vor.u32 %v1183_v56, %v1180_v55  ;;  %v1404_v14 = vor.u32 %v1403_v10, %v1399_v12  ;;  %v1413_v17 = vshll.u32 %v3172_v13, 16  ;;  %v1417_v29 = vshrl.u32 %v3172_v13, 16  ;;  %v3182_v55 = vld [vmem:[%s3869_s4 + $0xf8] sm:$0xff]   ;;  %v1665_v56 = vld [vmem:[#allocation2 + $0x8] sm:$0x8] }
 0x211   : > { %2822 = vmatmul.mubr.msk.bf16.gmra.mrb[4].mxu1 %vm580_vm1, %v1034_v24  ;;  %v1548_v40 = vrot.slane %v1546_v34, 2  ;;  %v1551_v41 = vrot.slane %v1549_v35, 3  ;;  %v1560_v42 = vor.u32 %v1559_v38, %v1556_v37  ;;  %v1563_v43 = vshrl.u32 %v3675_v39, 16 }
 0x212   : > { %2825 = vmatprep.mubr.msk.bf16.mxu1 %vm3254_vm0, %v3253_v0  ;;  %2834 = vmatpush3.bf16.msra.mxu1 %v3154_v18  ;;  %v1185_v61 = vsel %vm1159_vm10, %v1175_v46, %v1184_v58  ;;  %v3173_v18 = vld [vmem:[%s3869_s4 + $0xc8] sm:$0xff]   ;;  %v1415_v20 = vrot.slane %v1413_v17, 1  ;;  %v1566_v44 = vshll.u32 %v3675_v39, 16  ;;  %v3178_v46 = vld [vmem:[%s3869_s4 + $0xe0] sm:$0xff]   ;;  %v1800_v7 = vrot.slane %v1557_v31, 4 }
 0x213   : > { %2796 = vmatpush3.bf16.msra.mxu0 %v3153_v21  ;;  %2835 = vmatprep.subr.bf16.mxu1 %v3253_v0  ;;  %v1565_v48 = vrot.slane %v1563_v43, 2 }
 0x214   : > { %2949 = vmatprep.subr.bf16.mxu0 %v3253_v0  ;;  %v1419_v36 = vor.u32 %v1417_v29, %v1415_v20  ;;  %v1568_v49 = vrot.slane %v1566_v44, 3 }
 0x215   : > { %2786 = vmatmul.mubr.msk.bf16.gmra.mrb[24].mxu0 %vm580_vm1, %v793_v9  ;;  %v1405_v9 = vshll.u32 %v2533_v5, 16 }
 0x216   : > { %2797 = vmatprep.mubr.msk.bf16.mxu0 %vm3254_vm0, %v3253_v0  ;;  %2836 = vmatpush3.bf16.msra.mxu1 %v3156_v27  ;;  %v3175_v27 = vld [vmem:[%s3869_s4 + $0xd8] sm:$0xff]   ;;  %v1569_v52 = vor.u32 %v1568_v49, %v1565_v48 }
 0x217   : > { %2849 = vmatprep.subr.bf16.mxu1 %v3253_v0  ;;  %v1407_v11 = vrot.slane %v1405_v9, 1 }
 0x218   : > { %v1570_v54 = vsel %vm1544_vm11, %v1560_v42, %v1569_v52 }
 0x219   : > { %2826 = vmatmul.mubr.msk.bf16.gmra.mrb[8].mxu1 %vm580_vm1, %v1033_v16  ;;  %v1408_v16 = vsel %vm887_vm9, %v1404_v14, %v1407_v11  ;;  %v1411_v21 = vor.u32 %v1409_v19, %v1407_v11 }
 0x21a   : > { %2837 = vmatprep.mubr.msk.bf16.mxu1 %vm3254_vm0, %v3253_v0 }
 0x21b   : > { %v1416_v24 = vsel %vm887_vm9, %v1411_v21, %v1415_v20 }
 0x21d   : > { %2798 = vmatmul.mubr.msk.bf16.vlgmr.msra.gmra.mrb[16].mxu0 %vm580_vm1, %v899_v45  ;;  %v1552_v45 = vor.u32 %v1551_v41, %v1548_v40 }
 0x21e   : > { %2801 = vmatprep.mubr.msk.bf16.mxu0 %vm3254_vm0, %v3253_v0 }
 0x21f   : > { %v1561_v47 = vsel %vm1544_vm11, %v1552_v45, %v1560_v42 }
 0x221   : > { %2838 = vmatmul.mubr.msk.bf16.vlgmr.msra.gmra.mrb[0].mxu1 %vm580_vm1, %v1176_v53  ;;  %v3181_v53 = vld [vmem:[%s3869_s4 + $0xf0] sm:$0xff]  }
 0x222   : > { %2850 = vmatpush3.bf16.msra.mxu1 %v3159_v51  ;;  %2841 = vmatprep.mubr.msk.bf16.mxu1 %vm3254_vm0, %v3253_v0  ;;  %v3180_v51 = vld [vmem:[%s3869_s4 + $0xe8] sm:$0xff]  }
 0x223   : > { %2851 = vmatprep.subr.bf16.mxu1 %v3253_v0 }
 0x225   : > { %2802 = vmatmul.mubr.msk.bf16.gmra.mrb[20].mxu0 %vm580_vm1, %v907_v50  ;;  %v1680_v50 = vrot.slane %v3656_v25, 3 }
 0x226   : > { %2805 = vmatprep.mubr.msk.bf16.mxu0 %vm3254_vm0, %v3253_v0  ;;  %2852 = vmatpush3.bf16.msra.mxu1 %v3161_v57  ;;  %v2584_v57 = vcombine.low %v1665_v56, %v1515_v23  ;;  %v3190_v56 = vld [vmem:[%s3872_s7 + $0x8] sm:$0xff]  }
 0x227   : > { %2853 = vmatprep.subr.bf16.mxu1 %v3253_v0 }
 0x229   : > { %2842 = vmatmul.mubr.msk.bf16.gmra.mrb[4].mxu1 %vm580_vm1, %v1185_v61 }
 0x22a   : > { %2845 = vmatprep.mubr.msk.bf16.mxu1 %vm3254_vm0, %v3253_v0  ;;  %2854 = vmatpush3.bf16.msra.mxu1 %v3162_v59  ;;  %v3184_v59 = vld [vmem:[%s3869_s4 + $0x100] sm:$0xff]  }
 0x22b   : > { %2855 = vmatprep.subr.bf16.mxu1 %v3253_v0 }
 0x22d   : > { %2806 = vmatmul.mubr.msk.bf16.gmra.mrb[24].mxu0 %vm580_vm1, %v910_v1  ;;  %v3186_v1 = vld [vmem:[%s3869_s4 + $0x110] sm:$0xff]  }
 0x22e   : > { %2856 = vmatpush3.bf16.msra.mxu1 %v3163_v63  ;;  %2955 = vmatprep.mubr.msk.bf16.mxu0 %vm3254_vm0, %v3253_v0  ;;  %v1682_v63 = vrot.slane %v3675_v39, 3 }
 0x22f   : > { %2869 = vmatprep.subr.bf16.mxu1 %v3253_v0 }
 0x231   : > { %2846 = vmatmul.mubr.msk.bf16.gmra.mrb[8].mxu1 %vm580_vm1, %v1184_v58  ;;  %v1679_v58 = vrot.slane %v2584_v57, 3 }
 0x232   : > { %2857 = vmatprep.mubr.msk.bf16.mxu1 %vm3254_vm0, %v3253_v0 }
 0x233   : > { %v1681_v61 = vsel %vm1678_vm12, %v1679_v58, %v1680_v50  ;;  %v2608_v58 = vld [vmem:[%s3870_s5] ss:$0 sm:$0xff] }
 0x239   : > { %2858 = vmatmul.mubr.msk.bf16.vlgmr.msra.gmra.mrb[0].mxu1 %vm580_vm1, %v2532_v2  ;;  %v3187_v2 = vld [vmem:[%s3869_s4 + $0x118] sm:$0xff]  }
 0x23a   : > { %2870 = vmatpush3.bf16.msra.mxu1 %v3165_v60  ;;  %2861 = vmatprep.mubr.msk.bf16.mxu1 %vm3254_vm0, %v3253_v0  ;;  %v1683_v60 = vsel %vm1678_vm12, %v1680_v50, %v1682_v63  ;;  %v3192_v50 = vld [vmem:[%s3872_s7 + $0x18] sm:$0xff]  }
 0x23b   : > { %2871 = vmatprep.subr.bf16.mxu1 %v3253_v0 }
 0x23e   : > { %2872 = vmatpush3.bf16.msra.mxu1 %v3167_v3  ;;  %v1778_v3 = vld [vmem:[#allocation2 + $0x1c] sm:$0x3] }
 0x23f   : > { %2873 = vmatprep.subr.bf16.mxu1 %v3253_v0 }
 0x241   : > { %2862 = vmatmul.mubr.msk.bf16.gmra.mrb[4].mxu1 %vm580_vm1, %v2533_v5  ;;  %v1795_v5 = vshll.u32 %v2584_v57, 16 }
 0x242   : > { %2865 = vmatprep.mubr.msk.bf16.mxu1 %vm3254_vm0, %v3253_v0  ;;  %2874 = vmatpush3.bf16.msra.mxu1 %v3169_v4  ;;  %v1792_v4 = vshrl.u32 %v2584_v57, 16  ;;  %v3191_v57 = vld [vmem:[%s3872_s7 + $0x10] sm:$0xff]  }
 0x243   : > { %2875 = vmatprep.subr.bf16.mxu1 %v3253_v0  ;;  %v1797_v10 = vrot.slane %v1795_v5, 4  ;;  %v3195_v5 = vld [vmem:[%s3874_s9 + $0x10] sm:$0xff]  }
 0x244   : > { %v1794_v9 = vrot.slane %v1792_v4, 3  ;;  %v3194_v4 = vld [vmem:[%s3874_s9 + $0x8] sm:$0xff]  }
 0x246   : > { %2876 = vmatpush3.bf16.msra.mxu1 %v3170_v6  ;;  %v1799_v6 = vrot.slane %v1554_v30, 3  ;;  %v1798_v14 = vor.u32 %v1797_v10, %v1794_v9  ;;  %v3199_v9 = vld [vmem:[%s3874_s9 + $0x30] sm:$0xff]   ;;  %v3200_v10 = vld [vmem:[%s3874_s9 + $0x38] sm:$0xff]  }
 0x247   : > { %2889 = vmatprep.subr.bf16.mxu1 %v3253_v0 }
 0x248   : > { %v1801_v11 = vor.u32 %v1800_v7, %v1799_v6  ;;  %v3196_v6 = vld [vmem:[%s3874_s9 + $0x18] sm:$0xff]   ;;  %v3197_v7 = vld [vmem:[%s3874_s9 + $0x20] sm:$0xff]  }
 0x249   : > { %2866 = vmatmul.mubr.msk.bf16.gmra.mrb[8].mxu1 %vm580_vm1, %v2534_v8  ;;  %v2600_v8 = vcombine.low %v3667_v32, %v1778_v3 }
 0x24a   : > { %2877 = vmatprep.mubr.msk.bf16.mxu1 %vm3254_vm0, %v3253_v0 }
 0x24b   : > { %v1804_v12 = vshrl.u32 %v2600_v8, 16  ;;  %v1807_v13 = vshll.u32 %v2600_v8, 16  ;;  %v3198_v8 = vld [vmem:[%s3874_s9 + $0x28] sm:$0xff]  }
 0x24d   : > { %v1809_v17 = vrot.slane %v1807_v13, 4 }
 0x251   : > { %2878 = vmatmul.mubr.msk.bf16.vlgmr.msra.gmra.mrb[0].mxu1 %vm580_vm1, %v1408_v16  ;;  %v1806_v16 = vrot.slane %v1804_v12, 3 }
 0x252   : > { %2890 = vmatpush3.bf16.msra.mxu1 %v3171_v15  ;;  %2881 = vmatprep.mubr.msk.bf16.mxu1 %vm3254_vm0, %v3253_v0  ;;  %v1802_v15 = vsel %vm1159_vm10, %v1798_v14, %v1801_v11 }
 0x253   : > { %2891 = vmatprep.subr.bf16.mxu1 %v3253_v0 }
 0x256   : > { %2892 = vmatpush3.bf16.msra.mxu1 %v3173_v18  ;;  %v1810_v18 = vor.u32 %v1809_v17, %v1806_v16 }
 0x257   : > { %2893 = vmatprep.subr.bf16.mxu1 %v3253_v0 }
 0x258   : > { %v1811_v19 = vsel %vm1159_vm10, %v1801_v11, %v1810_v18  ;;  %v2610_v11 = vld [vmem:[%s3873_s8] ss:$0 sm:$0xff] }
 0x259   : > { %2882 = vmatmul.mubr.msk.bf16.gmra.mrb[4].mxu1 %vm580_vm1, %v1416_v24 }
 0x25a   : > { %2885 = vmatprep.mubr.msk.bf16.mxu1 %vm3254_vm0, %v3253_v0  ;;  %2894 = vmatpush3.bf16.msra.mxu1 %v3174_v22 }
 0x25b   : > { %2895 = vmatprep.subr.bf16.mxu1 %v3253_v0 }
 0x25e   : > { %2896 = vmatpush3.bf16.msra.mxu1 %v3175_v27 }
 0x25f   : > { %2909 = vmatprep.subr.bf16.mxu1 %v3253_v0 }
 0x261   : > { %2886 = vmatmul.mubr.msk.bf16.gmra.mrb[8].mxu1 %vm580_vm1, %v1419_v36 }
 0x262   : > { %2897 = vmatprep.mubr.msk.bf16.mxu1 %vm3254_vm0, %v3253_v0 }
 0x269   : > { %2898 = vmatmul.mubr.msk.bf16.vlgmr.msra.gmra.mrb[0].mxu1 %vm580_vm1, %v1561_v47 }
 0x26a   : > { %2910 = vmatpush3.bf16.msra.mxu1 %v3178_v46  ;;  %2901 = vmatprep.mubr.msk.bf16.mxu1 %vm3254_vm0, %v3253_v0 }
 0x26b   : > { %2911 = vmatprep.subr.bf16.mxu1 %v3253_v0 }
 0x26e   : > { %2912 = vmatpush3.bf16.msra.mxu1 %v3180_v51 }
 0x26f   : > { %2913 = vmatprep.subr.bf16.mxu1 %v3253_v0 }
 0x271   : > { %2902 = vmatmul.mubr.msk.bf16.gmra.mrb[4].mxu1 %vm580_vm1, %v1570_v54  ;;  %v1906_v54 = vld [vmem:[%s3871_s6] sm:$0x3] }
 0x272   : > { %2905 = vmatprep.mubr.msk.bf16.mxu1 %vm3254_vm0, %v3253_v0  ;;  %2914 = vmatpush3.bf16.msra.mxu1 %v3181_v53 }
 0x273   : > { %2915 = vmatprep.subr.bf16.mxu1 %v3253_v0 }
 0x276   : > { %2916 = vmatpush3.bf16.msra.mxu1 %v3182_v55  ;;  %v3189_v55 = vld [vmem:[%s3872_s7] sm:$0xff]  }
 0x277   : > { %2929 = vmatprep.subr.bf16.mxu1 %v3253_v0 }
 0x279   : > { %2906 = vmatmul.mubr.msk.bf16.gmra.mrb[8].mxu1 %vm580_vm1, %v1569_v52 }
 0x27a   : > { %2917 = vmatprep.mubr.msk.bf16.mxu1 %vm3254_vm0, %v3253_v0 }
 0x281   : > { %2918 = vmatmul.mubr.msk.bf16.vlgmr.msra.gmra.mrb[0].mxu1 %vm580_vm1, %v1681_v61 }
 0x282   : > { %2930 = vmatpush3.bf16.msra.mxu1 %v3184_v59  ;;  %2921 = vmatprep.mubr.msk.bf16.mxu1 %vm3254_vm0, %v3253_v0 }
 0x283   : > { %2931 = vmatprep.subr.bf16.mxu1 %v3253_v0 }
 0x286   : > { %2932 = vmatpush3.bf16.msra.mxu1 %v3185_v62 }
 0x287   : > { %2933 = vmatprep.subr.bf16.mxu1 %v3253_v0 }
 0x289   : > { %2922 = vmatmul.mubr.msk.bf16.gmra.mrb[4].mxu1 %vm580_vm1, %v1683_v60 }
 0x28a   : > { %2925 = vmatprep.mubr.msk.bf16.mxu1 %vm3254_vm0, %v3253_v0  ;;  %2934 = vmatpush3.bf16.msra.mxu1 %v3186_v1 }
 0x28b   : > { %2935 = vmatprep.subr.bf16.mxu1 %v3253_v0 }
 0x28e   : > { %2936 = vmatpush3.bf16.msra.mxu1 %v3187_v2  ;;  %v3193_v2 = vld [vmem:[%s3874_s9] sm:$0xff]  }
 0x291   : > { %2926 = vmatmul.mubr.msk.bf16.gmra.mrb[8].mxu1 %vm580_vm1, %v1682_v63 }
 0x292   : > { %2937 = vmatprep.mubr.msk.bf16.mxu1 %vm3254_vm0, %v3253_v0 }
 0x299   : > { %2938 = vmatmul.mubr.msk.bf16.vlgmr.msra.gmra.mrb[0].mxu1 %vm580_vm1, %v1802_v15 }
 0x29a   : > { %2941 = vmatprep.mubr.msk.bf16.mxu1 %vm3254_vm0, %v3253_v0 }
 0x2a1   : > { %2942 = vmatmul.mubr.msk.bf16.gmra.mrb[4].mxu1 %vm580_vm1, %v1811_v19 }
 0x2a2   : > { %2945 = vmatprep.mubr.msk.bf16.mxu1 %vm3254_vm0, %v3253_v0 }
 0x2a9   : > { %2946 = vmatmul.mubr.msk.bf16.gmra.mrb[8].mxu1 %vm580_vm1, %v1810_v18 }
 0x2f0   : > { %v978_v20 = vpop.f32.mrb[16].mxu0 }
 0x2f1   : > { %v2799_v21 = vpop.f32.mrb[17].mxu0 }
 0x2f2   : > { %v981_v22 = vpop.f32.mrb[18].mxu0 }
 0x2f3   : > { %v2800_v23 = vpop.f32.mrb[19].mxu0 }
 0x2f8   : > { %v986_v24 = vpop.f32.mrb[20].mxu0 }
 0x2f9   : > { %v2803_v25 = vpop.f32.mrb[21].mxu0 }
 0x2fa   : > { %v989_v26 = vpop.f32.mrb[22].mxu0 }
 0x2fb   : > { %v2804_v27 = vpop.f32.mrb[23].mxu0 }
 0x2fc   : > { %v3202_v27 = vld [vmem:[%s3876_s11 + $0x8] sm:$0xff]  }
 0x300   : > { %v994_v28 = vpop.f32.mrb[24].mxu0 }
 0x301   : > { %v2807_v29 = vpop.f32.mrb[25].mxu0 }
 0x302   : > { %v997_v30 = vpop.f32.mrb[26].mxu0 }
 0x303   : > { %v2808_v31 = vpop.f32.mrb[27].mxu0 }
 0x36c   : > { %v1879_v32 = vpop.f32.mrb[0].mxu1 }
 0x36d   : > { %v3017_v33 = vadd.f32 %v1879_v32, %v978_v20  ;;  %v2939_v34 = vpop.f32.mrb[1].mxu1 }
 0x36e   : > { %v1882_v35 = vpop.f32.mrb[2].mxu1 }
 0x36f   : > { %v3018_v36 = vadd.f32 %v1882_v35, %v981_v22  ;;  %v2940_v37 = vpop.f32.mrb[3].mxu1 }
 0x370   : > { %v2234_v37 = vld [vmem:[%s3878_s13] sm:$0x3] }
 0x371   : > { %v1907_v38 = vpack.c.bf16 %v3018_v36, %v3017_v33  ;;  %v3211_v36 = vld [vmem:[%s3407_s18] sm:$0xff]  }
 0x373   : > { %2950 = vmatpush3.bf16.msra.mxu0 %v1907_v38  ;;  %v3203_v38 = vld [vmem:[%s3879_s14] sm:$0xff]  }
 0x374   : > { %v1887_v39 = vpop.f32.mrb[4].mxu1  ;;  %2951 = vmatprep.subr.bf16.mxu0 %v3253_v0 }
 0x375   : > { %v3019_v40 = vadd.f32 %v1887_v39, %v986_v24  ;;  %v2943_v41 = vpop.f32.mrb[5].mxu1  ;;  %v3204_v39 = vld [vmem:[%s3879_s14 + $0x8] sm:$0xff]  }
 0x376   : > { %v1890_v42 = vpop.f32.mrb[6].mxu1  ;;  %v3206_v41 = vld [vmem:[%s3879_s14 + $0x18] sm:$0xff]  }
 0x377   : > { %v3020_v43 = vadd.f32 %v1890_v42, %v989_v26  ;;  %v2944_v44 = vpop.f32.mrb[7].mxu1  ;;  %v3201_v26 = vld [vmem:[%s3876_s11] sm:$0xff]  }
 0x379   : > { %v1908_v45 = vpack.c.bf16 %v3020_v43, %v3019_v40  ;;  %v3205_v40 = vld [vmem:[%s3879_s14 + $0x10] sm:$0xff]  }
 0x37b   : > { %2952 = vmatpush3.bf16.msra.mxu0 %v1908_v45 }
 0x37c   : > { %v1895_v46 = vpop.f32.mrb[8].mxu1  ;;  %2953 = vmatprep.subr.bf16.mxu0 %v3253_v0 }
 0x37d   : > { %v3021_v47 = vadd.f32 %v1895_v46, %v994_v28  ;;  %v2947_v48 = vpop.f32.mrb[9].mxu1  ;;  %v2076_v28 = vld [vmem:[%s3875_s10] sm:$0x1] }
 0x37e   : > { %v1898_v49 = vpop.f32.mrb[10].mxu1 }
 0x37f   : > { %v1909_v51 = vpack.c.bf16 %v3021_v47, %v3021_v47  ;;  %v2948_v52 = vpop.f32.mrb[11].mxu1 }
 0x380   : > { %v2171_v52 = vld [vmem:[%s3877_s12] sm:$0x1] }
 0x381   : > { %v1923_v53 = vsel %vm1921_vm13, %v1909_v51, 0 }
 0x382   : > { %2954 = vmatpush3.bf16.msra.mxu0 %v1923_v53 }
 0x383   : > { %2959 = vmatprep.subr.bf16.mxu0 %v3253_v0 }
 0x385   : > { %2956 = vmatmul.mubr.msk.bf16.vlgmr.msra.gmra.mrb[28].mxu0 %vm1917_vm14, %v1906_v54 }
 0x386   : > { %2960 = vmatpush3.bf16.msra.mxu0 %v3189_v55  ;;  %2967 = vmatprep.mubr.msk.bf16.mxu0 %vm3254_vm0, %v3253_v0 }
 0x387   : > { %2961 = vmatprep.subr.bf16.mxu0 %v3253_v0 }
 0x38a   : > { %2962 = vmatpush3.bf16.msra.mxu0 %v3190_v56  ;;  %v2362_v56 = vlaneseq }
 0x38b   : > { %2963 = vmatprep.subr.bf16.mxu0 %v3253_v0 }
 0x38e   : > { %2964 = vmatpush3.bf16.msra.mxu0 %v3191_v57  ;;  %v2363_v57 = vshrl.u32 %v2362_v56, 7 }
 0x38f   : > { %2965 = vmatprep.subr.bf16.mxu0 %v3253_v0 }
 0x392   : > { %2966 = vmatpush3.bf16.msra.mxu0 %v3192_v50  ;;  %v2364_v50 = vsub.s32 0, %v2363_v57 }
 0x393   : > { %2971 = vmatprep.subr.bf16.mxu0 %v3253_v0 }
 0x458   : > { %v1959_v59 = vpop.f32.mrb[28].mxu0 }
 0x459   : > { %v1960_v61 = vadd.f32 %v2608_v58, %v1959_v59  ;;  %v2957_v62 = vpop.f32.mrb[29].mxu0 }
 0x45a   : > { %v1962_v63 = vpop.f32.mrb[30].mxu0 }
 0x45b   : > { %v1965_v1 = vmax.f32 %v1960_v61, 0.0  ;;  %v2958_v60 = vpop.f32.mrb[31].mxu0  ;;  %v2629_v61 = vld [vmem:[#allocation3] ss:$0 sm:$0xff] }
 0x45d   : > { %v1966_v3 = vpack.c.bf16 %v1965_v1, %v1965_v1 }
 0x45f   : > { %2968 = vmatmul.mubr.msk.bf16.vlgmr.msra.gmra.mrb[32].mxu0 %vm580_vm1, %v1966_v3 }
 0x460   : > { %2972 = vmatpush3.bf16.msra.mxu0 %v3193_v2  ;;  %2987 = vmatprep.mubr.msk.bf16.mxu0 %vm3254_vm0, %v3253_v0 }
 0x461   : > { %2973 = vmatprep.subr.bf16.mxu0 %v3253_v0 }
 0x464   : > { %2974 = vmatpush3.bf16.msra.mxu0 %v3194_v4 }
 0x465   : > { %2975 = vmatprep.subr.bf16.mxu0 %v3253_v0 }
 0x468   : > { %2976 = vmatpush3.bf16.msra.mxu0 %v3195_v5 }
 0x469   : > { %2977 = vmatprep.subr.bf16.mxu0 %v3253_v0 }
 0x46c   : > { %2978 = vmatpush3.bf16.msra.mxu0 %v3196_v6 }
 0x46d   : > { %2979 = vmatprep.subr.bf16.mxu0 %v3253_v0 }
 0x470   : > { %2980 = vmatpush3.bf16.msra.mxu0 %v3197_v7 }
 0x471   : > { %2981 = vmatprep.subr.bf16.mxu0 %v3253_v0 }
 0x474   : > { %2982 = vmatpush3.bf16.msra.mxu0 %v3198_v8 }
 0x475   : > { %2983 = vmatprep.subr.bf16.mxu0 %v3253_v0 }
 0x478   : > { %2984 = vmatpush3.bf16.msra.mxu0 %v3199_v9 }
 0x479   : > { %2985 = vmatprep.subr.bf16.mxu0 %v3253_v0 }
 0x47c   : > { %2986 = vmatpush3.bf16.msra.mxu0 %v3200_v10 }
 0x47d   : > { %2991 = vmatprep.subr.bf16.mxu0 %v3253_v0 }
 0x532   : > { %v2043_v12 = vpop.f32.mrb[32].mxu0 }
 0x533   : > { %v3812_v13 = vadd.f32 %v2610_v11, %v2043_v12  ;;  %v2969_v14 = vpop.f32.mrb[33].mxu0 }
 0x534   : > { %v2046_v15 = vpop.f32.mrb[34].mxu0 }
 0x535   : > { %v2050_v16 = vsel %vm2049_vm15, %v3812_v13, 0.0  ;;  %v2970_v17 = vpop.f32.mrb[35].mxu0 }
 0x536   : > { %v2051_v18 = vrot.slane %v2050_v16, 4 }
 0x538   : > { %v2052_v19 = vadd.f32 %v2051_v18, %v2050_v16 }
 0x53a   : > { %v2053_v20 = vrot.slane %v2052_v19, 2 }
 0x53c   : > { %v2054_v21 = vadd.f32 %v2053_v20, %v2052_v19 }
 0x53e   : > { %v2055_v22 = vrot.slane %v2054_v21, 1 }
 0x540   : > { %v2056_v23 = vadd.f32 %v2055_v22, %v2054_v21 }
 0x542   : > { %v2058_v24 = vmul.f32 0.25, %v2056_v23 }
 0x544   : > { %v2059_v25 = vpack.c.bf16 %v2058_v24, %v2058_v24 }
 0x546   : > { %2988 = vmatmul.mubr.bf16.vlgmr.msra.gmra.mrb[36].mxu0 %v2059_v25 }
 0x547   : > { %2995 = vmatprep.mubr.msk.bf16.mxu0 %vm3254_vm0, %v3253_v0  ;;  %2992 = vmatpush3.bf16.msra.mxu0 %v3201_v26 }
 0x548   : > { %2993 = vmatprep.subr.bf16.mxu0 %v3253_v0 }
 0x54b   : > { %2994 = vmatpush3.bf16.msra.mxu0 %v3202_v27 }
 0x54c   : > { %2999 = vmatprep.subr.bf16.mxu0 %v3253_v0 }
 0x619   : > { %v2159_v29 = vpop.f32.mrb[36].mxu0 }
 0x61a   : > { %v2160_v30 = vadd.f32 %v2159_v29, %v2076_v28  ;;  %v2989_v31 = vpop.f32.mrb[37].mxu0 }
 0x61b   : > { %v2162_v32 = vpop.f32.mrb[38].mxu0 }
 0x61c   : > { %v2165_v33 = vmax.f32 %v2160_v30, 0.0  ;;  %v2990_v34 = vpop.f32.mrb[39].mxu0 }
 0x61e   : > { %v2166_v35 = vpack.c.bf16 %v2165_v33, %v2165_v33 }
 0x620   : > { %2996 = vmatmul.mubr.msk.bf16.vlgmr.msra.gmra.mrb[40].mxu0 %vm2184_vm3, %v2166_v35 }
 0x621   : > { %3000 = vmatpush3.bf16.msra.mxu0 %v3211_v36  ;;  %3001 = vmatprep.mubr.msk.bf16.mxu0 %vm3254_vm0, %v3253_v0 }
 0x622   : > { %3005 = vmatprep.subr.bf16.mxu0 %v3253_v0 }
 0x628   : > { %3002 = vmatmul.mubr.msk.bf16.vlgmr.msra.gmra.mrb[44].mxu0 %vm646_vm2, %v2234_v37 }
 0x629   : > { %3006 = vmatpush3.bf16.msra.mxu0 %v3203_v38  ;;  %3013 = vmatprep.mubr.msk.bf16.mxu0 %vm3254_vm0, %v3253_v0 }
 0x62a   : > { %3007 = vmatprep.subr.bf16.mxu0 %v3253_v0 }
 0x62d   : > { %3008 = vmatpush3.bf16.msra.mxu0 %v3204_v39 }
 0x62e   : > { %3009 = vmatprep.subr.bf16.mxu0 %v3253_v0 }
 0x631   : > { %3010 = vmatpush3.bf16.msra.mxu0 %v3205_v40 }
 0x632   : > { %3011 = vmatprep.subr.bf16.mxu0 %v3253_v0 }
 0x635   : > { %3012 = vmatpush3.bf16.msra.mxu0 %v3206_v41 }
 0x6f3   : > { %v2222_v42 = vpop.f32.mrb[40].mxu0 }
 0x6f4   : > { %v2997_v43 = vpop.f32.mrb[41].mxu0  ;;  %v2223_v53 = vadd.f32 %v2222_v42, %v2171_v52 }
 0x6f5   : > { %v2225_v44 = vpop.f32.mrb[42].mxu0 }
 0x6f6   : > { %v2998_v45 = vpop.f32.mrb[43].mxu0  ;;  %v2627_v54 = vmul.f32 -1.442695, %v2223_v53 }
 0x6f8   : > { %3207 = vpow2.f32 %v2627_v54 }
 0x6fb   : > { %v2273_v46 = vpop.f32.mrb[44].mxu0 }
 0x6fc   : > { %v2279_v47 = vpack.c.bf16 %v2273_v46, %v2273_v46  ;;  %v3003_v48 = vpop.f32.mrb[45].mxu0 }
 0x6fd   : > { %v2276_v49 = vpop.f32.mrb[46].mxu0 }
 0x6fe   : > { %3014 = vmatmul.mubr.msk.bf16.vlgmr.msra.gmra.mrb[48].mxu0 %vm580_vm1, %v2279_v47  ;;  %v3004_v51 = vpop.f32.mrb[47].mxu0 }
 0x702   : > { %v3208_v0 = vpop.eup %3207 }
 0x703   : > { %v2231_v55 = vadd.f32 1.0, %v3208_v0 }
 0x705   : > { %3209 = vrcp.f32 %v2231_v55 }
 0x70f   : > { %v3210_v58 = vpop.eup %3209 }
 0x710   : > { %v2365_v59 = vrot.slane %v3210_v58, %v2364_v50 }
 0x712   : > { %v2366_v1 = vmul.f32 %v2365_v59, %v3812_v13 }
 0x7d1   : > { %v2356_v62 = vpop.f32.mrb[48].mxu0 }
 0x7d2   : > { %v2357_v63 = vadd.f32 %v2629_v61, %v2356_v62  ;;  %v3015_v60 = vpop.f32.mrb[49].mxu0 }
 0x7d3   : > { %v2359_v2 = vpop.f32.mrb[50].mxu0 }
 0x7d4   : > { %v2367_v3 = vadd.f32 %v2366_v1, %v2357_v63  ;;  %v3016_v4 = vpop.f32.mrb[51].mxu0 }
 0x7d6   : > { %v2368_v5 = vmax.f32 %v2367_v3, 0.0 }
 0x7d8   : > { %v2369_v6 = vpack.c.bf16 %v2368_v5, %v2368_v5 }
 0x7da   : > { %2370 = vst [vmem:[%s532_s24] sm:$0x3] %v2369_v6 }
 0x7db PF: > { %s27_s21 = sadd.s32 1, %s3250_s21  }
 0x7dc   : > { %p24_p2 = scmp.ge.s32.totalorder %s27_s21, 4  }
 0x7de   :  { %26 = sbr.rel (!%p24_p2) target bundleno = 3 (0x3), region = 127 }
 0x7e5   :  { %2390 = vsyncpa [#allocation4], 1 }
 0x7e6   :  { %2392 = vsyncpa [#allocation4 + $0x1], 1 }

// kernel: se_resnext_forward.12
= control target key start
LH: loop header
LB: loop body
LE: loop exit
PB: predicated region body
PF: predicated region fallthrough
CT: control target
= control target key end

     0   :  { %s3582_s21 = smov 0   ;;  %s4227_s0 = inlined_call_operand.vmem [shape: bf16[2,4,128], index: 0, kind: input, shape index: {}]   ;;  %s4228_s1 = inlined_call_operand.vmem [shape: bf16[128,128], index: 1, kind: input, shape index: {}]   ;;  %s4229_s2 = inlined_call_operand.vmem [shape: f32[1,128], index: 2, kind: input, shape index: {}]   ;;  %s4230_s3 = inlined_call_operand.vmem [shape: bf16[16,4], index: 3, kind: input, shape index: {}]   ;;  %s4231_s4 = inlined_call_operand.vmem [shape: bf16[9,128,128], index: 4, kind: input, shape index: {}]   ;;  %s4232_s5 = inlined_call_operand.vmem [shape: f32[1,128], index: 5, kind: input, shape index: {}]   ;;  %s4233_s6 = inlined_call_operand.vmem [shape: bf16[1,16], index: 6, kind: input, shape index: {}]   ;;  %s4234_s7 = inlined_call_operand.vmem [shape: bf16[128,256], index: 7, kind: input, shape index: {}]   ;;  %s4235_s8 = inlined_call_operand.vmem [shape: f32[1,256], index: 8, kind: input, shape index: {}]   ;;  %s4236_s9 = inlined_call_operand.vmem [shape: bf16[256,64], index: 9, kind: input, shape index: {}]   ;;  %s4237_s10 = inlined_call_operand.vmem [shape: f32[1,64], index: 10, kind: input, shape index: {}]   ;;  %s4238_s11 = inlined_call_operand.vmem [shape: bf16[64,256], index: 11, kind: input, shape index: {}]   ;;  %s4239_s12 = inlined_call_operand.vmem [shape: f32[1,256], index: 12, kind: input, shape index: {}]   ;;  %s4240_s13 = inlined_call_operand.vmem [shape: bf16[1,4], index: 13, kind: input, shape index: {}]   ;;  %s4241_s14 = inlined_call_operand.vmem [shape: bf16[128,256], index: 14, kind: input, shape index: {}]   ;;  %s4242_s15 = inlined_call_operand.vmem [shape: f32[1,256], index: 15, kind: input, shape index: {}]   ;;  %s4243_s16 = inlined_call_operand.vmem [shape: bf16[2,1,256], index: 16, kind: output, shape index: {}]  }
   0x1   :  { %4244 = sst [smem:[#allocation3_spill]] %s4227_s0 }
   0x2 LB: > { %s2623_s22 = sadd.s32 4294967295, %s3491_s21   ;;  %p2627_p0 = scmp.ge.s32.totalorder %s3491_s21, 1  ;;  %s3491_s21 = sphi %s3582_s21, %s26_s21  }
   0x3   : > { %p461_p1 = scmp.lt.s32.totalorder %s3491_s21, 3 }
   0x5   : > { %p462_p2 = pnand %p2627_p0, %p461_p1 }
   0x6   : > { %v3306_v0 = vld [vmem:[%s4228_s1] sm:$0xff] (!%p462_p2)   ;;  %v3493_v1 = vmov (!%p462_p2), 0.0   ;;  %v3307_v2 = vld [vmem:[%s4228_s1 + $0x8] sm:$0xff] (!%p462_p2)   ;;  %vm3494_vm0 = vmmov (!%p462_p2), 0   ;;  %p509_p3 = scmp.lt.s32.totalorder (!%p462_p2), %s2623_s22, 1  ;;  %v3308_v3 = vld [vmem:[%s4228_s1 + $0x10] sm:$0xff] (!%p462_p2)  }
   0x7   : > { %465 = sbr.rel (%p462_p2) target bundleno = 2013 (0x7dd), region = 84  ;;  %3046 = vmatprep.subr.bf16.mxu0 (!%p462_p2), %v3493_v1  ;;  %3066 = vmatprep.subr.bf16.mxu1 (!%p462_p2), %v3493_v1  ;;  %v3309_v4 = vld [vmem:[%s4228_s1 + $0x18] sm:$0xff] (!%p462_p2)   ;;  %v3310_v5 = vld [vmem:[%s4228_s1 + $0x20] sm:$0xff] (!%p462_p2)   ;;  %v3311_v6 = vld [vmem:[%s4228_s1 + $0x28] sm:$0xff] (!%p462_p2)   ;;  %s4245_s29 = sld [smem:[#allocation3_spill]] (!%p462_p2)  ;;  %vm643_vm1 = vcmask (!%p462_p2), 1041408  }
   0x8   : > { %3047 = vmatpush3.bf16.msra.mxu0 (!%p462_p2), %v3306_v0  ;;  %3062 = vmatprep.mubr.msk.bf16.mxu0 (!%p462_p2), %vm3494_vm0, %v3493_v1  ;;  %v3312_v7 = vld [vmem:[%s4228_s1 + $0x30] sm:$0xff] (!%p462_p2)   ;;  %v3313_v8 = vld [vmem:[%s4228_s1 + $0x38] sm:$0xff] (!%p462_p2)   ;;  %v3315_v10 = vld [vmem:[%s4231_s4 + $0x40] sm:$0xff] (!%p462_p2)   ;;  %vm639_vm2 = vcmask (!%p462_p2), 31744   ;;  %v3495_v29 = vmov (!%p462_p2), 0   ;;  %vm692_vm3 = vcmask (!%p462_p2), 1042432  }
   0x9   : > { %3048 = vmatprep.subr.bf16.mxu0 (!%p462_p2), %v3493_v1  ;;  %3068 = vmatprep.mubr.msk.bf16.mxu1 (!%p462_p2), %vm3494_vm0, %v3493_v1  ;;  %v3316_v11 = vld [vmem:[%s4231_s4 + $0x48] sm:$0xff] (!%p462_p2)   ;;  %v3318_v12 = vld [vmem:[%s4231_s4 + $0x50] sm:$0xff] (!%p462_p2)   ;;  %v3320_v13 = vld [vmem:[%s4231_s4 + $0x58] sm:$0xff] (!%p462_p2)   ;;  %689 = vst [vmem:[#allocation2 + $0x4] sm:$0xf] (!%p462_p2), %v3495_v29  ;;  %vm753_vm6 = vcmask (!%p462_p2), 1045504  }
   0xa   : > { %v2630_v14 = vld [vmem:[%s4229_s2] ss:$0 sm:$0xff] (!%p462_p2)  ;;  %v3319_v25 = vld [vmem:[%s4231_s4 + $0x88] sm:$0xff] (!%p462_p2)   ;;  %v3321_v26 = vld [vmem:[%s4231_s4 + $0x90] sm:$0xff] (!%p462_p2)   ;;  %690 = vst [vmem:[#allocation2 + $0x8] sm:$0xf] (!%p462_p2), %v3495_v29 }
   0xb   : > { %v3314_v23 = vld [vmem:[%s4230_s3] sm:$0xff] (!%p462_p2)   ;;  %v3323_v28 = vld [vmem:[%s4231_s4 + $0x98] sm:$0xff] (!%p462_p2)   ;;  %691 = vst [vmem:[#allocation2 + $0xc] sm:$0xf] (!%p462_p2), %v3495_v29  ;;  %v3324_v30 = vld [vmem:[%s4231_s4 + $0x68] sm:$0xff] (!%p462_p2)   ;;  %vm1850_vm11 = vcmask (!%p462_p2), 130048  }
   0xc   : > { %3049 = vmatpush3.bf16.msra.mxu0 (!%p462_p2), %v3307_v2  ;;  %v3317_v24 = vld [vmem:[%s4231_s4 + $0x80] sm:$0xff] (!%p462_p2)   ;;  %v3326_v32 = vld [vmem:[%s4231_s4 + $0x70] sm:$0xff] (!%p462_p2)   ;;  %v3327_v33 = vld [vmem:[%s4231_s4 + $0xa8] sm:$0xff] (!%p462_p2)   ;;  %vm693_vm4 = vsmask.f32 (!%p462_p2), 2304  ;;  %vm2280_vm12 = vcmask (!%p462_p2), 523264  }
   0xd   : > { %3050 = vmatprep.subr.bf16.mxu0 (!%p462_p2), %v3493_v1  ;;  %v3322_v27 = vld [vmem:[%s4231_s4 + $0x60] sm:$0xff] (!%p462_p2)   ;;  %v3328_v34 = vld [vmem:[%s4231_s4 + $0x78] sm:$0xff] (!%p462_p2)   ;;  %v3329_v35 = vld [vmem:[%s4231_s4 + $0xb0] sm:$0xff] (!%p462_p2)   ;;  %vm979_vm7 = vsmask.f32 (!%p462_p2), 5376  ;;  %vm2560_vm13 = vcmask (!%p462_p2), 1040384  }
   0xe   : > { %s4247_s22 = smov (!%p509_p3, %s2623_s22), 1  ;;  %v3325_v31 = vld [vmem:[%s4231_s4 + $0xa0] sm:$0xff]   ;;  %vm694_vm5 = vmand %vm692_vm3, %vm693_vm4  ;;  %v695_v36 = vld [vmem:[#allocation2 + $0x10] sm:$0x7]  ;;  %vm850_vm8 = vsmask.f32 6400 }
   0xf   : > { %s2628_s0 = sshll.u32 %s4247_s22, 1  ;;  %v696_v37 = vsel %vm694_vm5, 0, %v695_v36  ;;  %v3333_v38 = vld [vmem:[%s4231_s4 + $0xb8] sm:$0xff]   ;;  %v3332_v51 = vld [vmem:[%s4231_s4] sm:$0xff]   ;;  %v3334_v62 = vld [vmem:[%s4231_s4 + $0x8] sm:$0xff]   ;;  %vm2563_vm15 = vcmask 1041409  }
  0x10   : > { %3051 = vmatpush3.bf16.msra.mxu0 %v3308_v3  ;;  %s3634_s30 = scalar_lea.vmem %s4245_s29, %s2628_s0  ;;  %697 = vst [vmem:[#allocation2 + $0x10] sm:$0x7] %v696_v37  ;;  %v727_v44 = vld [vmem:[#allocation2 + $0x4] sm:$0xc]  ;;  %vm1114_vm9 = vsmask.f32 4352  ;;  %s516_s28 = scalar_lea.vmem %s4243_s16, %s2628_s0 }
  0x11   : > { %3052 = vmatprep.subr.bf16.mxu0 %v3493_v1  ;;  %v518_v9 = vld [vmem:[%s3634_s30] sm:$0x3]  ;;  %vm1362_vm10 = vsmask.f32 7424  ;;  %vm2561_vm14 = vsmask.f32 256 }
  0x12   : > { %v3336_v2 = vld [vmem:[%s4231_s4 + $0xc0] sm:$0xff]  }
  0x14   : > { %3053 = vmatpush3.bf16.msra.mxu0 %v3309_v4 }
  0x15   : > { %3054 = vmatprep.subr.bf16.mxu0 %v3493_v1 }
  0x17   : > { %v3399_v56 = vld [vmem:[#allocation2 + $0x10] ss:$0 sps:$4 sm:$0x77]  }
  0x18   : > { %3055 = vmatpush3.bf16.msra.mxu0 %v3310_v5  ;;  %v3738_v3 = vld [vmem:[#allocation2 + $0x10] ss:$0 sps:$4 sm:$0x33]   ;;  %v1747_v4 = vshrl.u32 %v3399_v56, 16  ;;  %v1750_v5 = vshll.u32 %v3399_v56, 16 }
  0x19   : > { %3056 = vmatprep.subr.bf16.mxu0 %v3493_v1 }
  0x1c   : > { %3057 = vmatpush3.bf16.msra.mxu0 %v3311_v6 }
  0x1d   : > { %3058 = vmatprep.subr.bf16.mxu0 %v3493_v1 }
  0x20   : > { %3059 = vmatpush3.bf16.msra.mxu0 %v3312_v7 }
  0x21   : > { %3060 = vmatprep.subr.bf16.mxu0 %v3493_v1 }
  0x24   : > { %3061 = vmatpush3.bf16.msra.mxu0 %v3313_v8 }
  0x25   : > { %3072 = vmatprep.subr.bf16.mxu0 %v3493_v1 }
  0x27   : > { %3063 = vmatmul.mubr.bf16.vlgmr.msra.gmra.mrb[0].mxu0 %v518_v9  ;;  %v3337_v9 = vld [vmem:[%s4231_s4 + $0x10] sm:$0xff]  }
  0x28   : > { %3088 = vmatprep.mubr.msk.bf16.mxu0 %vm3494_vm0, %v3493_v1  ;;  %3073 = vmatpush3.bf16.msra.mxu0 %v3315_v10  ;;  %v3338_v10 = vld [vmem:[%s4231_s4 + $0xc8] sm:$0xff]  }
  0x29   : > { %3074 = vmatprep.subr.bf16.mxu0 %v3493_v1 }
  0x2c   : > { %3075 = vmatpush3.bf16.msra.mxu0 %v3316_v11 }
  0x2d   : > { %3076 = vmatprep.subr.bf16.mxu0 %v3493_v1 }
  0x30   : > { %3077 = vmatpush3.bf16.msra.mxu0 %v3318_v12  ;;  %v1623_v12 = vrot.slane %v3738_v3, 2 }
  0x31   : > { %3078 = vmatprep.subr.bf16.mxu0 %v3493_v1 }
  0x34   : > { %3079 = vmatpush3.bf16.msra.mxu0 %v3320_v13  ;;  %v1749_v13 = vrot.slane %v1747_v4, 2  ;;  %v3354_v4 = vld [vmem:[%s4231_s4 + $0x108] sm:$0xff]  }
  0x35   : > { %3080 = vmatprep.subr.bf16.mxu0 %v3493_v1 }
  0x38   : > { %3081 = vmatpush3.bf16.msra.mxu0 %v3322_v27  ;;  %v3342_v27 = vld [vmem:[%s4231_s4 + $0xd8] sm:$0xff]  }
  0x39   : > { %3082 = vmatprep.subr.bf16.mxu0 %v3493_v1 }
  0x3c   : > { %3083 = vmatpush3.bf16.msra.mxu0 %v3324_v30 }
  0x3d   : > { %3084 = vmatprep.subr.bf16.mxu0 %v3493_v1 }
  0x40   : > { %3085 = vmatpush3.bf16.msra.mxu0 %v3326_v32  ;;  %v1089_v32 = vld [vmem:[#allocation2 + $0x4] sm:$0x8] }
  0x41   : > { %3086 = vmatprep.subr.bf16.mxu0 %v3493_v1 }
  0x44   : > { %3087 = vmatpush3.bf16.msra.mxu0 %v3328_v34  ;;  %v3344_v34 = vld [vmem:[%s4231_s4 + $0xe0] sm:$0xff]  }
  0x45   : > { %3092 = vmatprep.subr.bf16.mxu0 %v3493_v1 }
  0xfa   : > { %v624_v15 = vpop.f32.mrb[0].mxu0 }
  0xfb   : > { %v625_v16 = vadd.f32 %v2630_v14, %v624_v15  ;;  %v3064_v17 = vpop.f32.mrb[1].mxu0  ;;  %v1752_v14 = vrot.slane %v1750_v5, 3  ;;  %v3355_v5 = vld [vmem:[%s4231_s4 + $0x110] sm:$0xff]  }
  0xfc   : > { %v627_v18 = vpop.f32.mrb[2].mxu0 }
  0xfd   : > { %v630_v19 = vmax.f32 %v625_v16, 0.0  ;;  %v3065_v20 = vpop.f32.mrb[3].mxu0  ;;  %v3339_v18 = vld [vmem:[%s4231_s4 + $0x18] sm:$0xff]  }
  0xff   : > { %v631_v21 = vpack.c.bf16 %v630_v19, %v630_v19  ;;  %v3340_v19 = vld [vmem:[%s4231_s4 + $0xd0] sm:$0xff]  }
 0x101   : > { %v645_v22 = vsel %vm643_vm1, %v631_v21, 0 }
 0x102   : > { %3067 = vmatpush3.bf16.msra.mxu1 %v645_v22 }
 0x103   : > { %3112 = vmatprep.subr.bf16.mxu1 %v3493_v1 }
 0x105   : > { %3069 = vmatmul.mubr.msk.bf16.vlgmr.msra.gmra.mrb[0].mxu1 %vm639_vm2, %v3314_v23  ;;  %v1753_v23 = vor.u32 %v1752_v14, %v1749_v13  ;;  %v3363_v14 = vld [vmem:[%s4231_s4 + $0x148] sm:$0xff]  }
 0x106   : > { %3113 = vmatpush3.bf16.msra.mxu1 %v3317_v24  ;;  %3128 = vmatprep.mubr.msk.bf16.mxu1 %vm3494_vm0, %v3493_v1  ;;  %v708_v24 = vld [vmem:[#allocation2 + $0x4] sm:$0xe] }
 0x107   : > { %3114 = vmatprep.subr.bf16.mxu1 %v3493_v1 }
 0x10a   : > { %3115 = vmatpush3.bf16.msra.mxu1 %v3319_v25 }
 0x10b   : > { %3116 = vmatprep.subr.bf16.mxu1 %v3493_v1 }
 0x10e   : > { %3117 = vmatpush3.bf16.msra.mxu1 %v3321_v26  ;;  %v3341_v26 = vld [vmem:[%s4231_s4 + $0x20] sm:$0xff]  }
 0x10f   : > { %3118 = vmatprep.subr.bf16.mxu1 %v3493_v1 }
 0x112   : > { %3119 = vmatpush3.bf16.msra.mxu1 %v3323_v28 }
 0x113   : > { %3120 = vmatprep.subr.bf16.mxu1 %v3493_v1 }
 0x116   : > { %3121 = vmatpush3.bf16.msra.mxu1 %v3325_v31  ;;  %v3343_v31 = vld [vmem:[%s4231_s4 + $0x28] sm:$0xff]  }
 0x117   : > { %3122 = vmatprep.subr.bf16.mxu1 %v3493_v1 }
 0x11a   : > { %3123 = vmatpush3.bf16.msra.mxu1 %v3327_v33 }
 0x11b   : > { %3124 = vmatprep.subr.bf16.mxu1 %v3493_v1 }
 0x11e   : > { %3125 = vmatpush3.bf16.msra.mxu1 %v3329_v35 }
 0x11f   : > { %3126 = vmatprep.subr.bf16.mxu1 %v3493_v1 }
 0x122   : > { %3127 = vmatpush3.bf16.msra.mxu1 %v3333_v38 }
 0x123   : > { %3132 = vmatprep.subr.bf16.mxu1 %v3493_v1 }
 0x1d8   : > { %v681_v39 = vpop.f32.mrb[0].mxu1 }
 0x1d9   : > { %v3070_v40 = vpop.f32.mrb[1].mxu1 }
 0x1da   : > { %v684_v41 = vpop.f32.mrb[2].mxu1 }
 0x1db   : > { %v2925_v42 = vpack.c.bf16 %v684_v41, %v681_v39  ;;  %v3071_v43 = vpop.f32.mrb[3].mxu1  ;;  %v3345_v41 = vld [vmem:[%s4231_s4 + $0x30] sm:$0xff]  }
 0x1dd   : > { %2927 = vst [vmem:[#allocation2 + $0x8] sm:$0xff] %v2925_v42   ;;  %v3346_v42 = vld [vmem:[%s4231_s4 + $0xe8] sm:$0xff]  }
 0x1e4   : > { %v3719_v45 = vld [vmem:[#allocation2 + $0x8] sm:$0xf]  ;;  %v3722_v47 = vld [vmem:[#allocation2 + $0xc] ss:$0 sps:$4 sm:$0x33]  }
 0x1e5   : > { %v2659_v46 = vcombine.low %v727_v44, %v3719_v45  ;;  %v3335_v48 = vld [vmem:[#allocation2 + $0xc] ss:$0 sps:$4 sm:$0x77]   ;;  %v755_v50 = vrot.slane %v3722_v47, 2  ;;  %v1601_v7 = vld [vmem:[#allocation2 + $0x8] sm:$0xc]  ;;  %v2669_v30 = vcombine.low %v708_v24, %v3719_v45  ;;  %v2719_v39 = vcombine.low %v1089_v32, %v3719_v45 }
 0x1e6   : > { %v989_v54 = vshrl.u32 %v3335_v48, 16  ;;  %v992_v55 = vshll.u32 %v3335_v48, 16  ;;  %v3740_v6 = vld [vmem:[#allocation2 + $0xc] sm:$0xf]  ;;  %v860_v37 = vshrl.u32 %v3722_v47, 16  ;;  %v863_v38 = vshll.u32 %v3722_v47, 16 }
 0x1e7   : > { %v754_v49 = vrot.slane %v2659_v46, 2  ;;  %v981_v52 = vshrl.u32 %v2659_v46, 16  ;;  %v984_v53 = vshll.u32 %v2659_v46, 16  ;;  %v2822_v11 = vcombine.low %v1601_v7, %v3740_v6  ;;  %v3781_v33 = vld [vmem:[#allocation2 + $0xc] sm:$0xf]  ;;  %v3356_v7 = vld [vmem:[%s4231_s4 + $0x118] sm:$0xff]  }
 0x1e8   : > { %v991_v60 = vrot.slane %v989_v54, 2  ;;  %v994_v61 = vrot.slane %v992_v55, 3  ;;  %v852_v35 = vshrl.u32 %v2669_v30, 16  ;;  %v855_v36 = vshll.u32 %v2669_v30, 16  ;;  %v3372_v32 = vld [vmem:[%s4231_s4 + $0x180] sm:$0xff]  }
 0x1e9   : > { %v756_v57 = vsel %vm753_vm6, %v754_v49, %v755_v50  ;;  %v983_v58 = vrot.slane %v981_v52, 2  ;;  %v986_v59 = vrot.slane %v984_v53, 3  ;;  %v1622_v15 = vrot.slane %v2822_v11, 2  ;;  %v3347_v52 = vld [vmem:[%s4231_s4 + $0x38] sm:$0xff]   ;;  %v3348_v53 = vld [vmem:[%s4231_s4 + $0xf0] sm:$0xff]  }
 0x1ea   : > { %3089 = vmatmul.mubr.bf16.vlgmr.msra.gmra.mrb[4].mxu0 %v756_v57  ;;  %v995_v0 = vor.u32 %v994_v61, %v991_v60  ;;  %v1739_v16 = vshrl.u32 %v2822_v11, 16  ;;  %v1742_v17 = vshll.u32 %v2822_v11, 16  ;;  %v2720_v40 = vcombine.low %v3781_v33, %v3781_v33  ;;  %v3350_v60 = vld [vmem:[%s4231_s4 + $0xf8] sm:$0xff]  }
 0x1eb   : > { %3093 = vmatpush3.bf16.msra.mxu0 %v3332_v51  ;;  %v987_v63 = vor.u32 %v986_v59, %v983_v58  ;;  %3108 = vmatprep.mubr.msk.bf16.mxu0 %vm3494_vm0, %v3493_v1  ;;  %v3763_v20 = vsel %vm753_vm6, %v1622_v15, %v1623_v12  ;;  %v854_v43 = vrot.slane %v852_v35, 1  ;;  %v857_v44 = vrot.slane %v855_v36, 2  ;;  %v3360_v11 = vld [vmem:[%s4231_s4 + $0x138] sm:$0xff]   ;;  %v3362_v12 = vld [vmem:[%s4231_s4 + $0x140] sm:$0xff]   ;;  %v3364_v15 = vld [vmem:[%s4231_s4 + $0x150] sm:$0xff]  }
 0x1ec   : > { %3094 = vmatprep.subr.bf16.mxu0 %v3493_v1  ;;  %v1741_v21 = vrot.slane %v1739_v16, 2  ;;  %v1744_v22 = vrot.slane %v1742_v17, 3  ;;  %v862_v46 = vrot.slane %v860_v37, 1  ;;  %v865_v47 = vrot.slane %v863_v38, 2  ;;  %v1334_v16 = vld [vmem:[#allocation2 + $0x8] sm:$0xf] }
 0x1ed   : > { %v996_v8 = vsel %vm979_vm7, %v987_v63, %v995_v0  ;;  %v1116_v48 = vshrl.u32 %v2719_v39, 16  ;;  %v1119_v49 = vshll.u32 %v2719_v39, 16  ;;  %v1124_v50 = vshrl.u32 %v2720_v40, 16  ;;  %v3353_v0 = vld [vmem:[%s4231_s4 + $0x100] sm:$0xff]   ;;  %v3374_v35 = vld [vmem:[%s4231_s4 + $0x190] sm:$0xff]   ;;  %v3375_v36 = vld [vmem:[%s4231_s4 + $0x198] sm:$0xff]  }
 0x1ee   : > { %3129 = vmatmul.mubr.bf16.vlgmr.msra.gmra.mrb[4].mxu1 %v996_v8  ;;  %v1745_v25 = vor.u32 %v1744_v22, %v1741_v21  ;;  %v1127_v51 = vshll.u32 %v2720_v40, 16  ;;  %v858_v54 = vor.u32 %v857_v44, %v854_v43  ;;  %v866_v55 = vor.u32 %v865_v47, %v862_v46  ;;  %v3357_v8 = vld [vmem:[%s4231_s4 + $0x120] sm:$0xff]   ;;  %v3371_v21 = vld [vmem:[#allocation2 + $0x10] ss:$0 sps:$4 sm:$0x11]   ;;  %v3377_v40 = vld [vmem:[%s4231_s4 + $0x1a8] sm:$0xff]  }
 0x1ef   : > { %3095 = vmatpush3.bf16.msra.mxu0 %v3334_v62  ;;  %3133 = vmatpush3.bf16.msra.mxu1 %v3336_v2  ;;  %v1118_v56 = vrot.slane %v1116_v48, 3  ;;  %v1121_v57 = vrot.slane %v1119_v49, 4  ;;  %v1126_v58 = vrot.slane %v1124_v50, 3  ;;  %v2745_v13 = vcombine.low %v3719_v45, %v3781_v33  ;;  %v3365_v45 = vld [vmem:[%s4231_s4 + $0x158] sm:$0xff]   ;;  %v3366_v17 = vld [vmem:[%s4231_s4 + $0x160] sm:$0xff]   ;;  %v3378_v46 = vld [vmem:[%s4231_s4 + $0x1b0] sm:$0xff]  }
 0x1f0   : > { %3096 = vmatprep.subr.bf16.mxu0 %v3493_v1  ;;  %3134 = vmatprep.subr.bf16.mxu1 %v3493_v1  ;;  %v3774_v28 = vsel %vm979_vm7, %v1745_v25, %v1753_v23  ;;  %v1129_v59 = vrot.slane %v1127_v51, 4  ;;  %v867_v61 = vsel %vm850_vm8, %v858_v54, %v866_v55  ;;  %v3368_v23 = vld [vmem:[%s4231_s4 + $0x170] sm:$0xff]   ;;  %v1371_v25 = vshll.u32 %v3371_v21, 16  ;;  %v1467_v37 = vld [vmem:[#allocation2 + $0x8] sm:$0xe]  ;;  %v3376_v38 = vld [vmem:[%s4231_s4 + $0x1a0] sm:$0xff]  }
 0x1f1   : > { %3148 = vmatprep.mubr.msk.bf16.mxu1 %vm3494_vm0, %v3493_v1  ;;  %v1122_v62 = vor.u32 %v1121_v57, %v1118_v56  ;;  %v2796_v39 = vcombine.low %v1467_v37, %v3740_v6  ;;  %v1501_v43 = vshrl.u32 %v3738_v3, 16  ;;  %v1504_v44 = vshll.u32 %v3738_v3, 16  ;;  %v3379_v50 = vld [vmem:[%s4231_s4 + $0x1b8] sm:$0xff]   ;;  %v3383_v54 = vld [vmem:[%s4231_s4 + $0x1c8] sm:$0xff]   ;;  %v3384_v55 = vld [vmem:[%s4231_s4 + $0x1d0] sm:$0xff]  }
 0x1f2   : > { %v1130_v63 = vor.u32 %v1129_v59, %v1126_v58  ;;  %v3385_v56 = vld [vmem:[%s4231_s4 + $0x1d8] sm:$0xff]   ;;  %v3386_v57 = vld [vmem:[%s4231_s4 + $0x1e0] sm:$0xff]   ;;  %v3387_v58 = vld [vmem:[%s4231_s4 + $0x1e8] sm:$0xff]  }
 0x1f3   : > { %3097 = vmatpush3.bf16.msra.mxu0 %v3337_v9  ;;  %3135 = vmatpush3.bf16.msra.mxu1 %v3338_v10  ;;  %v3358_v9 = vld [vmem:[%s4231_s4 + $0x128] sm:$0xff]   ;;  %v3359_v10 = vld [vmem:[%s4231_s4 + $0x130] sm:$0xff]   ;;  %v1503_v48 = vrot.slane %v1501_v43, 1  ;;  %v1506_v49 = vrot.slane %v1504_v44, 2  ;;  %v1849_v37 = vld [vmem:[%s4232_s5] sm:$0x1] }
 0x1f4   : > { %3098 = vmatprep.subr.bf16.mxu0 %v3493_v1  ;;  %3136 = vmatprep.subr.bf16.mxu1 %v3493_v1  ;;  %v1131_v2 = vsel %vm1114_vm9, %v1122_v62, %v1130_v63  ;;  %v3388_v59 = vld [vmem:[%s4231_s4 + $0x1f0] sm:$0xff]   ;;  %v3392_v62 = vld [vmem:[%s4231_s4 + $0x208] sm:$0xff]   ;;  %v3425_v44 = vld [vmem:[%s4236_s9] sm:$0xff]  }
 0x1f5   : > { %v1507_v3 = vor.u32 %v1506_v49, %v1503_v48  ;;  %v3393_v63 = vld [vmem:[%s4231_s4 + $0x210] sm:$0xff]  }
 0x1f6   : > { %v3403_v21 = vld [vmem:[%s4234_s7 + $0x10] ss:$8 sps:$4 sm:$0xff]  }
 0x1f7   : > { %3099 = vmatpush3.bf16.msra.mxu0 %v3339_v18  ;;  %3137 = vmatpush3.bf16.msra.mxu1 %v3340_v19  ;;  %v2770_v18 = vcombine.low %v1334_v16, %v3740_v6  ;;  %v3367_v19 = vld [vmem:[%s4231_s4 + $0x168] sm:$0xff]   ;;  %v3428_v48 = vld [vmem:[%s4236_s9 + $0x50] sm:$0xff]  }
 0x1f8   : > { %3100 = vmatprep.subr.bf16.mxu0 %v3493_v1  ;;  %3138 = vmatprep.subr.bf16.mxu1 %v3493_v1  ;;  %v3402_v16 = vld [vmem:[%s4234_s7 + $0x4] ss:$8 sps:$4 sm:$0xff]   ;;  %v3429_v49 = vld [vmem:[%s4236_s9 + $0x10] sm:$0xff]  }
 0x1f9   : > { %v1366_v22 = vshll.u32 %v2770_v18, 16 }
 0x1fb   : > { %3101 = vmatpush3.bf16.msra.mxu0 %v3341_v26  ;;  %3139 = vmatpush3.bf16.msra.mxu1 %v3342_v27  ;;  %v1368_v24 = vrot.slane %v1366_v22, 1  ;;  %v3369_v26 = vld [vmem:[%s4231_s4 + $0x178] sm:$0xff]   ;;  %v1364_v27 = vshrl.u32 %v2770_v18, 16  ;;  %v3400_v18 = vld [vmem:[%s4234_s7] ss:$8 sps:$4 sm:$0xff]  }
 0x1fc   : > { %3102 = vmatprep.subr.bf16.mxu0 %v3493_v1  ;;  %3140 = vmatprep.subr.bf16.mxu1 %v3493_v1  ;;  %v3408_v22 = vld [vmem:[%s4234_s7 + $0x24] ss:$8 sps:$4 sm:$0xff]  }
 0x1fd   : > { %v1369_v30 = vor.u32 %v1368_v24, %v1364_v27  ;;  %v3411_v24 = vld [vmem:[%s4234_s7 + $0x34] ss:$8 sps:$4 sm:$0xff]   ;;  %v3412_v27 = vld [vmem:[%s4234_s7 + $0x40] ss:$8 sps:$4 sm:$0xff]  }
 0x1ff   : > { %3103 = vmatpush3.bf16.msra.mxu0 %v3343_v31  ;;  %3141 = vmatpush3.bf16.msra.mxu1 %v3344_v34  ;;  %v1373_v31 = vrot.slane %v1371_v25, 1  ;;  %v3373_v34 = vld [vmem:[%s4231_s4 + $0x188] sm:$0xff]   ;;  %v3409_v25 = vld [vmem:[%s4234_s7 + $0x30] ss:$8 sps:$4 sm:$0xff]  }
 0x200   : > { %3104 = vmatprep.subr.bf16.mxu0 %v3493_v1  ;;  %3142 = vmatprep.subr.bf16.mxu1 %v3493_v1 }
 0x201   : > { %v1374_v33 = vsel %vm1362_vm10, %v1369_v30, %v1373_v31  ;;  %v3417_v30 = vld [vmem:[%s4234_s7 + $0x54] ss:$8 sps:$4 sm:$0xff]   ;;  %v3415_v31 = vld [vmem:[%s4234_s7 + $0x50] ss:$8 sps:$4 sm:$0xff]  }
 0x203   : > { %3105 = vmatpush3.bf16.msra.mxu0 %v3345_v41  ;;  %3143 = vmatpush3.bf16.msra.mxu1 %v3346_v42  ;;  %v1493_v41 = vshrl.u32 %v2796_v39, 16  ;;  %v1496_v42 = vshll.u32 %v2796_v39, 16 }
 0x204   : > { %3106 = vmatprep.subr.bf16.mxu0 %v3493_v1  ;;  %3144 = vmatprep.subr.bf16.mxu1 %v3493_v1 }
 0x205   : > { %v1495_v6 = vrot.slane %v1493_v41, 1  ;;  %v1498_v47 = vrot.slane %v1496_v42, 2 }
 0x207   : > { %3107 = vmatpush3.bf16.msra.mxu0 %v3347_v52  ;;  %3145 = vmatpush3.bf16.msra.mxu1 %v3348_v53  ;;  %v1499_v51 = vor.u32 %v1498_v47, %v1495_v6  ;;  %v3382_v52 = vld [vmem:[%s4231_s4 + $0x1c0] sm:$0xff]   ;;  %v3426_v6 = vld [vmem:[%s4236_s9 + $0x48] sm:$0xff]  }
 0x208   : > { %3252 = vmatprep.subr.bf16.mxu0 %v3493_v1  ;;  %3146 = vmatprep.subr.bf16.mxu1 %v3493_v1  ;;  %v3427_v47 = vld [vmem:[%s4236_s9 + $0x8] sm:$0xff]  }
 0x209   : > { %v1508_v53 = vsel %vm850_vm8, %v1499_v51, %v1507_v3  ;;  %v3431_v51 = vld [vmem:[%s4236_s9 + $0x18] sm:$0xff]   ;;  %v3432_v3 = vld [vmem:[%s4236_s9 + $0x60] sm:$0xff]  }
 0x20a   : > { %3109 = vmatmul.mubr.bf16.vlgmr.msra.gmra.mrb[4].mxu0 %v867_v61  ;;  %v3391_v61 = vld [vmem:[%s4231_s4 + $0x200] sm:$0xff]  }
 0x20b   : > { %3254 = vmatprep.mubr.msk.bf16.mxu0 %vm3494_vm0, %v3493_v1  ;;  %3147 = vmatpush3.bf16.msra.mxu1 %v3350_v60  ;;  %v3389_v60 = vld [vmem:[%s4231_s4 + $0x1f8] sm:$0xff]  }
 0x20c   : > { %3152 = vmatprep.subr.bf16.mxu1 %v3493_v1 }
 0x20e   : > { %3149 = vmatmul.mubr.bf16.vlgmr.msra.gmra.mrb[4].mxu1 %v1131_v2  ;;  %v3396_v2 = vld [vmem:[%s4231_s4 + $0x228] sm:$0xff]  }
 0x20f   : > { %3153 = vmatpush3.bf16.msra.mxu1 %v3353_v0  ;;  %3168 = vmatprep.mubr.msk.bf16.mxu1 %vm3494_vm0, %v3493_v1  ;;  %v3395_v0 = vld [vmem:[%s4231_s4 + $0x220] sm:$0xff]  }
 0x210   : > { %3154 = vmatprep.subr.bf16.mxu1 %v3493_v1 }
 0x213   : > { %3155 = vmatpush3.bf16.msra.mxu1 %v3354_v4  ;;  %v3397_v4 = vld [vmem:[%s4231_s4 + $0x230] sm:$0xff]  }
 0x214   : > { %3156 = vmatprep.subr.bf16.mxu1 %v3493_v1 }
 0x217   : > { %3157 = vmatpush3.bf16.msra.mxu1 %v3355_v5  ;;  %v3398_v5 = vld [vmem:[%s4231_s4 + $0x238] sm:$0xff]  }
 0x218   : > { %3158 = vmatprep.subr.bf16.mxu1 %v3493_v1 }
 0x21b   : > { %3159 = vmatpush3.bf16.msra.mxu1 %v3356_v7 }
 0x21c   : > { %3160 = vmatprep.subr.bf16.mxu1 %v3493_v1 }
 0x21f   : > { %3161 = vmatpush3.bf16.msra.mxu1 %v3357_v8 }
 0x220   : > { %3162 = vmatprep.subr.bf16.mxu1 %v3493_v1 }
 0x223   : > { %3163 = vmatpush3.bf16.msra.mxu1 %v3358_v9 }
 0x224   : > { %3164 = vmatprep.subr.bf16.mxu1 %v3493_v1 }
 0x227   : > { %3165 = vmatpush3.bf16.msra.mxu1 %v3359_v10 }
 0x228   : > { %3166 = vmatprep.subr.bf16.mxu1 %v3493_v1 }
 0x22b   : > { %3167 = vmatpush3.bf16.msra.mxu1 %v3360_v11 }
 0x22c   : > { %3172 = vmatprep.subr.bf16.mxu1 %v3493_v1 }
 0x22e   : > { %3169 = vmatmul.mubr.bf16.vlgmr.msra.gmra.mrb[4].mxu1 %v2745_v13 }
 0x22f   : > { %3173 = vmatpush3.bf16.msra.mxu1 %v3362_v12  ;;  %3188 = vmatprep.mubr.msk.bf16.mxu1 %vm3494_vm0, %v3493_v1 }
 0x230   : > { %3174 = vmatprep.subr.bf16.mxu1 %v3493_v1 }
 0x233   : > { %3175 = vmatpush3.bf16.msra.mxu1 %v3363_v14 }
 0x234   : > { %3176 = vmatprep.subr.bf16.mxu1 %v3493_v1 }
 0x237   : > { %3177 = vmatpush3.bf16.msra.mxu1 %v3364_v15 }
 0x238   : > { %3178 = vmatprep.subr.bf16.mxu1 %v3493_v1 }
 0x23b   : > { %3179 = vmatpush3.bf16.msra.mxu1 %v3365_v45 }
 0x23c   : > { %3180 = vmatprep.subr.bf16.mxu1 %v3493_v1 }
 0x23f   : > { %3181 = vmatpush3.bf16.msra.mxu1 %v3366_v17 }
 0x240   : > { %3182 = vmatprep.subr.bf16.mxu1 %v3493_v1 }
 0x243   : > { %3183 = vmatpush3.bf16.msra.mxu1 %v3367_v19  ;;  %v3405_v19 = vld [vmem:[%s4234_s7 + $0x14] ss:$8 sps:$4 sm:$0xff]  }
 0x244   : > { %3184 = vmatprep.subr.bf16.mxu1 %v3493_v1 }
 0x247   : > { %3185 = vmatpush3.bf16.msra.mxu1 %v3368_v23  ;;  %v3406_v23 = vld [vmem:[%s4234_s7 + $0x20] ss:$8 sps:$4 sm:$0xff]  }
 0x248   : > { %3186 = vmatprep.subr.bf16.mxu1 %v3493_v1 }
 0x24b   : > { %3187 = vmatpush3.bf16.msra.mxu1 %v3369_v26  ;;  %v3414_v26 = vld [vmem:[%s4234_s7 + $0x44] ss:$8 sps:$4 sm:$0xff]  }
 0x24c   : > { %3192 = vmatprep.subr.bf16.mxu1 %v3493_v1 }
 0x24e   : > { %3189 = vmatmul.mubr.bf16.vlgmr.msra.gmra.mrb[4].mxu1 %v1374_v33  ;;  %v3418_v33 = vld [vmem:[%s4234_s7 + $0x60] ss:$8 sps:$4 sm:$0xff]  }
 0x24f   : > { %3193 = vmatpush3.bf16.msra.mxu1 %v3372_v32  ;;  %3208 = vmatprep.mubr.msk.bf16.mxu1 %vm3494_vm0, %v3493_v1  ;;  %v3420_v32 = vld [vmem:[%s4234_s7 + $0x64] ss:$8 sps:$4 sm:$0xff]  }
 0x250   : > { %3194 = vmatprep.subr.bf16.mxu1 %v3493_v1 }
 0x253   : > { %3195 = vmatpush3.bf16.msra.mxu1 %v3373_v34  ;;  %v3421_v34 = vld [vmem:[%s4234_s7 + $0x70] ss:$8 sps:$4 sm:$0xff]  }
 0x254   : > { %3196 = vmatprep.subr.bf16.mxu1 %v3493_v1 }
 0x257   : > { %3197 = vmatpush3.bf16.msra.mxu1 %v3374_v35  ;;  %v3423_v35 = vld [vmem:[%s4234_s7 + $0x74] ss:$8 sps:$4 sm:$0xff]  }
 0x258   : > { %3198 = vmatprep.subr.bf16.mxu1 %v3493_v1 }
 0x25b   : > { %3199 = vmatpush3.bf16.msra.mxu1 %v3375_v36  ;;  %v3424_v36 = vld [vmem:[%s4236_s9 + $0x40] sm:$0xff]  }
 0x25c   : > { %3200 = vmatprep.subr.bf16.mxu1 %v3493_v1 }
 0x25f   : > { %3201 = vmatpush3.bf16.msra.mxu1 %v3376_v38 }
 0x260   : > { %3202 = vmatprep.subr.bf16.mxu1 %v3493_v1 }
 0x263   : > { %3203 = vmatpush3.bf16.msra.mxu1 %v3377_v40 }
 0x264   : > { %3204 = vmatprep.subr.bf16.mxu1 %v3493_v1 }
 0x267   : > { %3205 = vmatpush3.bf16.msra.mxu1 %v3378_v46 }
 0x268   : > { %3206 = vmatprep.subr.bf16.mxu1 %v3493_v1 }
 0x26b   : > { %3207 = vmatpush3.bf16.msra.mxu1 %v3379_v50  ;;  %v3430_v50 = vld [vmem:[%s4236_s9 + $0x58] sm:$0xff]  }
 0x26c   : > { %3212 = vmatprep.subr.bf16.mxu1 %v3493_v1 }
 0x26e   : > { %3209 = vmatmul.mubr.bf16.vlgmr.msra.gmra.mrb[4].mxu1 %v1508_v53  ;;  %v3434_v53 = vld [vmem:[%s4236_s9 + $0x68] sm:$0xff]  }
 0x26f   : > { %3213 = vmatpush3.bf16.msra.mxu1 %v3382_v52  ;;  %3228 = vmatprep.mubr.msk.bf16.mxu1 %vm3494_vm0, %v3493_v1  ;;  %v3433_v52 = vld [vmem:[%s4236_s9 + $0x20] sm:$0xff]  }
 0x270   : > { %3214 = vmatprep.subr.bf16.mxu1 %v3493_v1 }
 0x273   : > { %3215 = vmatpush3.bf16.msra.mxu1 %v3383_v54  ;;  %v3435_v54 = vld [vmem:[%s4236_s9 + $0x28] sm:$0xff]  }
 0x274   : > { %3216 = vmatprep.subr.bf16.mxu1 %v3493_v1 }
 0x277   : > { %3217 = vmatpush3.bf16.msra.mxu1 %v3384_v55  ;;  %v3436_v55 = vld [vmem:[%s4236_s9 + $0x70] sm:$0xff]  }
 0x278   : > { %3218 = vmatprep.subr.bf16.mxu1 %v3493_v1 }
 0x27b   : > { %3219 = vmatpush3.bf16.msra.mxu1 %v3385_v56  ;;  %v3437_v56 = vld [vmem:[%s4236_s9 + $0x30] sm:$0xff]  }
 0x27c   : > { %3220 = vmatprep.subr.bf16.mxu1 %v3493_v1 }
 0x27f   : > { %3221 = vmatpush3.bf16.msra.mxu1 %v3386_v57  ;;  %v3438_v57 = vld [vmem:[%s4236_s9 + $0x78] sm:$0xff]  }
 0x280   : > { %3222 = vmatprep.subr.bf16.mxu1 %v3493_v1 }
 0x283   : > { %3223 = vmatpush3.bf16.msra.mxu1 %v3387_v58  ;;  %v3439_v58 = vld [vmem:[%s4236_s9 + $0x38] sm:$0xff]  }
 0x284   : > { %3224 = vmatprep.subr.bf16.mxu1 %v3493_v1 }
 0x287   : > { %3225 = vmatpush3.bf16.msra.mxu1 %v3388_v59  ;;  %v3442_v59 = vld [vmem:[%s4238_s11 + $0x4] ss:$8 sps:$4 sm:$0xff]  }
 0x288   : > { %3226 = vmatprep.subr.bf16.mxu1 %v3493_v1 }
 0x28b   : > { %3227 = vmatpush3.bf16.msra.mxu1 %v3389_v60  ;;  %v1994_v60 = vlaneseq }
 0x28c   : > { %3232 = vmatprep.subr.bf16.mxu1 %v3493_v1 }
 0x28e   : > { %3229 = vmatmul.mubr.bf16.vlgmr.msra.gmra.mrb[4].mxu1 %v3763_v20  ;;  %v3394_v20 = vld [vmem:[%s4231_s4 + $0x218] sm:$0xff]  }
 0x28f   : > { %3233 = vmatpush3.bf16.msra.mxu1 %v3391_v61  ;;  %3248 = vmatprep.mubr.msk.bf16.mxu1 %vm3494_vm0, %v3493_v1  ;;  %v4102_v61 = vshrl.u32 %v1994_v60, 7 }
 0x290   : > { %3234 = vmatprep.subr.bf16.mxu1 %v3493_v1 }
 0x293   : > { %3235 = vmatpush3.bf16.msra.mxu1 %v3392_v62  ;;  %v4105_v62 = vsub.s32 0, %v4102_v61 }
 0x294   : > { %3236 = vmatprep.subr.bf16.mxu1 %v3493_v1 }
 0x297   : > { %3237 = vmatpush3.bf16.msra.mxu1 %v3393_v63  ;;  %v1912_v63 = vld [vmem:[%s4235_s8] sm:$0x3] }
 0x298   : > { %3238 = vmatprep.subr.bf16.mxu1 %v3493_v1 }
 0x29b   : > { %3239 = vmatpush3.bf16.msra.mxu1 %v3394_v20  ;;  %v4111_v20 = vsub.s32 1, %v4102_v61 }
 0x29c   : > { %3240 = vmatprep.subr.bf16.mxu1 %v3493_v1 }
 0x29f   : > { %3241 = vmatpush3.bf16.msra.mxu1 %v3395_v0  ;;  %v1997_v0 = vrot.slane %v1912_v63, %v4105_v62 }
 0x2a0   : > { %3242 = vmatprep.subr.bf16.mxu1 %v3493_v1 }
 0x2a3   : > { %3243 = vmatpush3.bf16.msra.mxu1 %v3396_v2  ;;  %v2001_v2 = vrot.slane %v1912_v63, %v4111_v20 }
 0x2a4   : > { %3244 = vmatprep.subr.bf16.mxu1 %v3493_v1 }
 0x2a7   : > { %3245 = vmatpush3.bf16.msra.mxu1 %v3397_v4 }
 0x2a8   : > { %3246 = vmatprep.subr.bf16.mxu1 %v3493_v1 }
 0x2ab   : > { %3247 = vmatpush3.bf16.msra.mxu1 %v3398_v5 }
 0x2ae   : > { %3249 = vmatmul.mubr.bf16.vlgmr.msra.gmra.mrb[4].mxu1 %v3774_v28  ;;  %v1847_v28 = vld [vmem:[%s4233_s6] sm:$0x1] }
 0x2dd   : > { %v951_v7 = vpop.f32.mrb[4].mxu0 }
 0x2de   : > { %v3110_v8 = vpop.f32.mrb[5].mxu0 }
 0x2df   : > { %v954_v9 = vpop.f32.mrb[6].mxu0 }
 0x2e0   : > { %v3111_v10 = vpop.f32.mrb[7].mxu0 }
 0x381   : > { %v1838_v11 = vpop.f32.mrb[4].mxu1 }
 0x382   : > { %v3264_v12 = vadd.f32 %v1838_v11, %v951_v7  ;;  %v3250_v13 = vpop.f32.mrb[5].mxu1 }
 0x383   : > { %v1841_v14 = vpop.f32.mrb[6].mxu1 }
 0x384   : > { %v3265_v15 = vadd.f32 %v1841_v14, %v954_v9  ;;  %v3251_v45 = vpop.f32.mrb[7].mxu1  ;;  %v3445_v14 = vld [vmem:[%s4238_s11 + $0x14] ss:$8 sps:$4 sm:$0xff]  }
 0x385   : > { %v3446_v45 = vld [vmem:[%s4238_s11 + $0x20] ss:$8 sps:$4 sm:$0xff]  }
 0x386   : > { %v1848_v17 = vpack.c.bf16 %v3265_v15, %v3264_v12  ;;  %v3440_v12 = vld [vmem:[%s4238_s11] ss:$8 sps:$4 sm:$0xff]   ;;  %v3443_v15 = vld [vmem:[%s4238_s11 + $0x10] ss:$8 sps:$4 sm:$0xff]  }
 0x388   : > { %3253 = vmatpush3.bf16.msra.mxu0 %v1848_v17  ;;  %v3451_v17 = vld [vmem:[%s4238_s11 + $0x34] ss:$8 sps:$4 sm:$0xff]  }
 0x389   : > { %2004 = vmatprep.subr.bf16.mxu0 %v3402_v16  ;;  %v3448_v16 = vld [vmem:[%s4238_s11 + $0x24] ss:$8 sps:$4 sm:$0xff]  }
 0x38b   : > { %3255 = vmatmul.mubr.msk.bf16.vlgmr.msra.gmra.mrb[8].mxu0 %vm1850_vm11, %v1847_v28  ;;  %v3449_v28 = vld [vmem:[%s4238_s11 + $0x30] ss:$8 sps:$4 sm:$0xff]  }
 0x38c   : > { %2005 = vmatpush1.bf16.msra.mxu0 %v3400_v18  ;;  %2036 = vmatprep.mubr.bf16.mxu0 %v3495_v29 }
 0x38d   : > { %2006 = vmatprep.subr.bf16.mxu0 %v3405_v19  ;;  %v2081_v19 = vld [vmem:[%s4237_s10] sm:$0x1] }
 0x390   : > { %2007 = vmatpush1.bf16.msra.mxu0 %v3403_v21 }
 0x391   : > { %2008 = vmatprep.subr.bf16.mxu0 %v3408_v22 }
 0x394   : > { %2009 = vmatpush1.bf16.msra.mxu0 %v3406_v23 }
 0x395   : > { %2010 = vmatprep.subr.bf16.mxu0 %v3411_v24 }
 0x398   : > { %2011 = vmatpush1.bf16.msra.mxu0 %v3409_v25 }
 0x399   : > { %2012 = vmatprep.subr.bf16.mxu0 %v3414_v26 }
 0x39c   : > { %2013 = vmatpush1.bf16.msra.mxu0 %v3412_v27  ;;  %v3484_v27 = vld [vmem:[%s3634_s30] sm:$0x3] }
 0x39d   : > { %2014 = vmatprep.subr.bf16.mxu0 %v3417_v30  ;;  %v2342_v30 = vsel %vm643_vm1, %v3484_v27, 0  ;;  %vm2562_vm1 = vmand %vm2560_vm13, %vm2561_vm14  ;;  %v2567_v27 = vld [vmem:[%s516_s28] sm:$0x3] }
 0x3a0   : > { %2015 = vmatpush1.bf16.msra.mxu0 %v3415_v31 }
 0x3a1   : > { %2016 = vmatprep.subr.bf16.mxu0 %v3420_v32  ;;  %v3454_v32 = vld [vmem:[%s4241_s14 + $0x4] ss:$8 sps:$4 sm:$0xff]  }
 0x3a4   : > { %2017 = vmatpush1.bf16.msra.mxu0 %v3418_v33  ;;  %v2337_v33 = vld [vmem:[%s4240_s13] sm:$0x1] }
 0x3a5   : > { %2018 = vmatprep.subr.bf16.mxu0 %v3423_v35  ;;  %v3457_v35 = vld [vmem:[%s4241_s14 + $0x14] ss:$8 sps:$4 sm:$0xff]  }
 0x3a8   : > { %2019 = vmatpush1.bf16.msra.mxu0 %v3421_v34  ;;  %v3452_v34 = vld [vmem:[%s4241_s14] ss:$8 sps:$4 sm:$0xff]  }
 0x3a9   : > { %3022 = vmatprep.subr.bf16.mxu0 %v3424_v36  ;;  %v3460_v36 = vld [vmem:[%s4241_s14 + $0x24] ss:$8 sps:$4 sm:$0xff]  }
 0x45e   : > { %v1888_v38 = vpop.f32.mrb[8].mxu0 }
 0x45f   : > { %v1889_v39 = vadd.f32 %v1888_v38, %v1849_v37  ;;  %v3256_v40 = vpop.f32.mrb[9].mxu0  ;;  %v3458_v37 = vld [vmem:[%s4241_s14 + $0x20] ss:$8 sps:$4 sm:$0xff]   ;;  %v3463_v38 = vld [vmem:[%s4241_s14 + $0x34] ss:$8 sps:$4 sm:$0xff]  }
 0x460   : > { %v1891_v41 = vpop.f32.mrb[10].mxu0  ;;  %v3464_v40 = vld [vmem:[%s4241_s14 + $0x40] ss:$8 sps:$4 sm:$0xff]  }
 0x461   : > { %v1894_v42 = vmax.f32 %v1889_v39, 0.0  ;;  %v3257_v43 = vpop.f32.mrb[11].mxu0  ;;  %v3466_v39 = vld [vmem:[%s4241_s14 + $0x44] ss:$8 sps:$4 sm:$0xff]   ;;  %v3469_v41 = vld [vmem:[%s4241_s14 + $0x54] ss:$8 sps:$4 sm:$0xff]  }
 0x462   : > { %v3472_v43 = vld [vmem:[%s4241_s14 + $0x64] ss:$8 sps:$4 sm:$0xff]  }
 0x463   : > { %v1895_v46 = vpack.c.bf16 %v1894_v42, %v1894_v42  ;;  %v3467_v42 = vld [vmem:[%s4241_s14 + $0x50] ss:$8 sps:$4 sm:$0xff]  }
 0x465   : > { %2037 = vmatmul.mubr.bf16.vlgmr.msra.gmra.mrb[12].mxu0 %v1895_v46  ;;  %v3475_v46 = vld [vmem:[%s4241_s14 + $0x74] ss:$8 sps:$4 sm:$0xff]  }
 0x466   : > { %3023 = vmatpush3.bf16.msra.mxu0 %v3425_v44  ;;  %v3470_v44 = vld [vmem:[%s4241_s14 + $0x60] ss:$8 sps:$4 sm:$0xff]  }
 0x467   : > { %3024 = vmatprep.subr.bf16.mxu0 %v3426_v6  ;;  %v3473_v6 = vld [vmem:[%s4241_s14 + $0x70] ss:$8 sps:$4 sm:$0xff]  }
 0x46a   : > { %3025 = vmatpush3.bf16.msra.mxu0 %v3427_v47 }
 0x46b   : > { %3026 = vmatprep.subr.bf16.mxu0 %v3428_v48 }
 0x46e   : > { %3027 = vmatpush3.bf16.msra.mxu0 %v3429_v49 }
 0x46f   : > { %3028 = vmatprep.subr.bf16.mxu0 %v3430_v50 }
 0x472   : > { %3029 = vmatpush3.bf16.msra.mxu0 %v3431_v51 }
 0x473   : > { %3030 = vmatprep.subr.bf16.mxu0 %v3432_v3 }
 0x476   : > { %3031 = vmatpush3.bf16.msra.mxu0 %v3433_v52 }
 0x477   : > { %3032 = vmatprep.subr.bf16.mxu0 %v3434_v53 }
 0x47a   : > { %3033 = vmatpush3.bf16.msra.mxu0 %v3435_v54 }
 0x47b   : > { %3034 = vmatprep.subr.bf16.mxu0 %v3436_v55  ;;  %v2228_v55 = vld [vmem:[%s4239_s12] sm:$0x3] }
 0x47e   : > { %3035 = vmatpush3.bf16.msra.mxu0 %v3437_v56  ;;  %v2273_v56 = vrot.slane %v2228_v55, %v4105_v62 }
 0x47f   : > { %3036 = vmatprep.subr.bf16.mxu0 %v3438_v57  ;;  %v2277_v57 = vrot.slane %v2228_v55, %v4111_v20 }
 0x482   : > { %3037 = vmatpush3.bf16.msra.mxu0 %v3439_v58 }
 0x483   : > { %2284 = vmatprep.subr.bf16.mxu0 %v3442_v59 }
 0x538   : > { %v2038_v4 = vpop.f32.mrb[12].mxu0 }
 0x539   : > { %v4115_v5 = vadd.f32 %v2038_v4, %v1997_v0  ;;  %v2040_v7 = vpop.f32.mrb[13].mxu0 }
 0x53a   : > { %v4117_v8 = vadd.f32 %v2040_v7, %v2001_v2  ;;  %v2042_v9 = vpop.f32.mrb[14].mxu0 }
 0x53b   : > { %v2043_v10 = vpop.f32.mrb[15].mxu0  ;;  %v2047_v13 = vpack.c.bf16 %v4115_v5, %v4115_v5  ;;  %v2401_v9 = vld [vmem:[%s4242_s15] sm:$0x3] }
 0x53c   : > { %v2048_v11 = vpack.c.bf16 %v4117_v8, %v4117_v8  ;;  %v2486_v10 = vrot.slane %v2401_v9, %v4105_v62 }
 0x53e   : > { %2210 = vmatprep.mubr.bf16.mxu0 %v2048_v11 }
 0x53f   : > { %2211 = vmatmul.mubr.bf16.vlgmr.msra.gmra.mrb[16].mxu0 %v2047_v13  ;;  %v3496_v13 = vmov 1966171168  }
 0x540   : > { %2285 = vmatpush1.bf16.msra.mxu0 %v3440_v12  ;;  %2316 = vmatprep.mubr.bf16.mxu0 %v3495_v29  ;;  %v2490_v12 = vrot.slane %v2401_v9, %v4111_v20 }
 0x541   : > { %2286 = vmatprep.subr.bf16.mxu0 %v3445_v14  ;;  %v2546_v14 = vunpack.c.l.s4 %v3496_v13 }
 0x544   : > { %2287 = vmatpush1.bf16.msra.mxu0 %v3443_v15 }
 0x545   : > { %2288 = vmatprep.subr.bf16.mxu0 %v3448_v16 }
 0x548   : > { %2289 = vmatpush1.bf16.msra.mxu0 %v3446_v45 }
 0x549   : > { %2290 = vmatprep.subr.bf16.mxu0 %v3451_v17 }
 0x54c   : > { %2291 = vmatpush1.bf16.msra.mxu0 %v3449_v28 }
 0x54d   : > { %3258 = vmatprep.subr.bf16.mxu0 %v3493_v1 }
 0x612   : > { %v3038_v18 = vpop.f32.mrb[16].mxu0 }
 0x613   : > { %v3039_v21 = vpop.f32.mrb[17].mxu0 }
 0x614   : > { %v3040_v22 = vadd.f32 %v3039_v21, %v3038_v18  ;;  %v3041_v23 = vpop.f32.mrb[18].mxu0  ;;  %v2547_v21 = vunpack.c.0.s8 %v2546_v14 }
 0x615   : > { %v3042_v24 = vpop.f32.mrb[19].mxu0 }
 0x616   : > { %v2213_v25 = vadd.f32 %v3040_v22, %v2081_v19 }
 0x618   : > { %v2218_v26 = vmax.f32 %v2213_v25, 0.0 }
 0x61a   : > { %v2219_v31 = vpack.c.bf16 %v2218_v26, %v2218_v26  ;;  %v2550_v26 = vsub.s32 %v2547_v21, %v4102_v61 }
 0x61c   : > { %2897 = vmatmul.mubr.msk.bf16.vlgmr.msra.gmra.mrb[20].mxu0 %vm2280_vm12, %v2219_v31 }
 0x61d   : > { %3259 = vmatpush3.bf16.msra.mxu0 %v2342_v30  ;;  %3260 = vmatprep.mubr.msk.bf16.mxu0 %vm3494_vm0, %v3493_v1  ;;  %v3455_v1 = vld [vmem:[%s4241_s14 + $0x10] ss:$8 sps:$4 sm:$0xff]   ;;  %vm2564_vm0 = vsmask.f32 1280 }
 0x61e   : > { %2493 = vmatprep.subr.bf16.mxu0 %v3454_v32 }
 0x624   : > { %3261 = vmatmul.mubr.msk.bf16.vlgmr.msra.gmra.mrb[24].mxu0 %vm639_vm2, %v2337_v33  ;;  %vm2565_vm2 = vmand %vm2563_vm15, %vm2564_vm0 }
 0x625   : > { %2494 = vmatpush1.bf16.msra.mxu0 %v3452_v34  ;;  %2525 = vmatprep.mubr.bf16.mxu0 %v3495_v29  ;;  %v3461_v29 = vld [vmem:[%s4241_s14 + $0x30] ss:$8 sps:$4 sm:$0xff]   ;;  %vm2566_vm3 = vmor %vm2565_vm2, %vm2562_vm1 }
 0x626   : > { %2495 = vmatprep.subr.bf16.mxu0 %v3457_v35 }
 0x629   : > { %2496 = vmatpush1.bf16.msra.mxu0 %v3455_v1 }
 0x62a   : > { %2497 = vmatprep.subr.bf16.mxu0 %v3460_v36 }
 0x62d   : > { %2498 = vmatpush1.bf16.msra.mxu0 %v3458_v37 }
 0x62e   : > { %2499 = vmatprep.subr.bf16.mxu0 %v3463_v38 }
 0x631   : > { %2500 = vmatpush1.bf16.msra.mxu0 %v3461_v29 }
 0x632   : > { %2501 = vmatprep.subr.bf16.mxu0 %v3466_v39 }
 0x635   : > { %2502 = vmatpush1.bf16.msra.mxu0 %v3464_v40 }
 0x636   : > { %2503 = vmatprep.subr.bf16.mxu0 %v3469_v41 }
 0x639   : > { %2504 = vmatpush1.bf16.msra.mxu0 %v3467_v42 }
 0x63a   : > { %2505 = vmatprep.subr.bf16.mxu0 %v3472_v43 }
 0x63d   : > { %2506 = vmatpush1.bf16.msra.mxu0 %v3470_v44 }
 0x63e   : > { %2507 = vmatprep.subr.bf16.mxu0 %v3475_v46 }
 0x641   : > { %2508 = vmatpush1.bf16.msra.mxu0 %v3473_v6 }
 0x6ef   : > { %v2318_v47 = vpop.f32.mrb[20].mxu0 }
 0x6f0   : > { %v2320_v48 = vpop.f32.mrb[21].mxu0  ;;  %v2319_v58 = vadd.f32 %v2318_v47, %v2273_v56 }
 0x6f1   : > { %v2322_v49 = vpop.f32.mrb[22].mxu0  ;;  %v2321_v59 = vadd.f32 %v2320_v48, %v2277_v57 }
 0x6f2   : > { %v2323_v50 = vpop.f32.mrb[23].mxu0  ;;  %v2898_v60 = vmul.f32 -1.442695, %v2319_v58 }
 0x6f3   : > { %v2899_v63 = vmul.f32 -1.442695, %v2321_v59 }
 0x6f4   : > { %3476 = vpow2.f32 %v2898_v60 }
 0x6f5   : > { %3478 = vpow2.f32 %v2899_v63 }
 0x6f7   : > { %v2378_v51 = vpop.f32.mrb[24].mxu0 }
 0x6f8   : > { %v2384_v3 = vpack.c.bf16 %v2378_v51, %v2378_v51  ;;  %v3262_v52 = vpop.f32.mrb[25].mxu0 }
 0x6f9   : > { %v2381_v53 = vpop.f32.mrb[26].mxu0 }
 0x6fa   : > { %2526 = vmatmul.mubr.bf16.vlgmr.msra.gmra.mrb[28].mxu0 %v2384_v3  ;;  %v3263_v54 = vpop.f32.mrb[27].mxu0 }
 0x6fe   : > { %v3477_v0 = vpop.eup %3476 }
 0x6ff   : > { %v3479_v2 = vpop.eup %3478  ;;  %v2331_v4 = vadd.f32 1.0, %v3477_v0 }
 0x700   : > { %v2332_v7 = vadd.f32 1.0, %v3479_v2 }
 0x701   : > { %3480 = vrcp.f32 %v2331_v4 }
 0x702   : > { %3482 = vrcp.f32 %v2332_v7 }
 0x70b   : > { %v3481_v11 = vpop.eup %3480 }
 0x70c   : > { %v3483_v15 = vpop.eup %3482  ;;  %v2534_v17 = vmul.f32 %v3481_v11, %v4115_v5 }
 0x70d   : > { %v2535_v19 = vmul.f32 %v3483_v15, %v4117_v8 }
 0x7cd   : > { %v2527_v45 = vpop.f32.mrb[28].mxu0 }
 0x7ce   : > { %v2528_v16 = vadd.f32 %v2527_v45, %v2486_v10  ;;  %v2529_v28 = vpop.f32.mrb[29].mxu0 }
 0x7cf   : > { %v2530_v18 = vadd.f32 %v2529_v28, %v2490_v12  ;;  %v2531_v22 = vpop.f32.mrb[30].mxu0 }
 0x7d0   : > { %v2536_v23 = vadd.f32 %v2534_v17, %v2528_v16  ;;  %v2532_v24 = vpop.f32.mrb[31].mxu0 }
 0x7d1   : > { %v2537_v62 = vadd.f32 %v2535_v19, %v2530_v18 }
 0x7d2   : > { %v2538_v20 = vmax.f32 %v2536_v23, 0.0 }
 0x7d3   : > { %v2539_v25 = vmax.f32 %v2537_v62, 0.0 }
 0x7d5   : > { %v2917_v5 = vpack.c.bf16 %v2539_v25, %v2538_v20 }
 0x7d7   : > { %v2551_v8 = vrot.slane %v2917_v5, %v2550_v26 }
 0x7d9   : > { %v2558_v30 = vrot.slane %v2551_v8, %v2550_v26 }
 0x7db   : > { %v2568_v31 = vsel %vm2566_vm3, %v2558_v30, %v2567_v27 }
 0x7dc   : > { %2569 = vst [vmem:[%s516_s28] sm:$0x3] %v2568_v31 }
 0x7dd PF: > { %s26_s21 = sadd.s32 1, %s3491_s21  }
 0x7de   : > { %p23_p4 = scmp.ge.s32.totalorder %s26_s21, 4  }
 0x7e0   :  { %25 = sbr.rel (!%p23_p4) target bundleno = 2 (0x2), region = 122 }

</bundles_post_ra>
